<compile_context>
chip_gen: v7x
topology: tpu7x:2x2x1
jax: 0.10.0
libtpu: 0.0.40
codegen_flags: <defaults>
</compile_context>

<pallas_src>
import functools

import jax
import jax.numpy as jnp
from jax import lax
from jax.experimental import pallas as pl
from jax.experimental.pallas import tpu as pltpu

K_TOP = 10                      # Selector.k
HID = 100                       # logical hidden width of the module
HP = 128                        # lane-padded hidden width used on-chip
MATMUL_DTYPE = jnp.bfloat16     # dot operands; accumulation/elementwise stay f32


def _conv_same_flat(x_flat, w_cat_ref, *, n_taps, pad_l, seq, hout, s_idx):
    """'same'-padded 1-D cross-correlation on a batch-flattened activation.

    x_flat   : (M, Cin), rows ordered batch-element-major / sequence-minor.
    w_cat_ref: (Cin, n_taps*hout) -- taps concatenated along the output axis so
               the whole conv is a single MXU matmul.
    Per-tap slices of the result are rotated along the flattened row axis
    (XLU roll) and rows that would read across a batch-element boundary are
    zeroed, which reproduces the zero 'same' padding with no padded buffers.
    """
    m = x_flat.shape[0]
    y_all = jnp.dot(x_flat, w_cat_ref[...], preferred_element_type=jnp.float32)
    acc = None
    for j in range(n_taps):
        d = j - pad_l                                  # input offset of tap j
        y = y_all[:, j * hout:(j + 1) * hout]          # lane-aligned slice
        if d != 0:
            y = pltpu.roll(y, shift=(-d) % m, axis=0)  # y[i] <- y[i + d]
            valid = (s_idx >= -d) & (s_idx < seq - d)  # (M, 1)
            y = jnp.where(valid, y, 0.0)
        acc = y if acc is None else acc + y
    return acc


def selector_kernel(x_ref, w1_ref, wg_ref, wl_ref, wli_ref,
                    wf1g_ref, wf1l_ref, const_ref, o_ref, *, tb, seq, kc):
    m = tb * seq
    e = x_ref.shape[-1]

    # sequence index (within its batch element) of every flattened row
    s_idx = lax.broadcasted_iota(jnp.int32, (m, 1), 0) % seq

    b1, bg, bl, bli, bf1 = [const_ref[i:i + 1, :] for i in range(5)]
    wf2 = const_ref[5:6, :]        # (1, HP) final 1x1-conv weight (kept f32)
    bf2 = const_ref[6:7, 0:1]      # (1, 1)

    # ---- conv1d(emb -> H, 'same') + ReLU (dropout == identity in eval) ----
    x = x_ref[...].reshape(m, e)                                   # (M, E) bf16
    x_base = _conv_same_flat(x, w1_ref, n_taps=kc, pad_l=(kc - 1) // 2,
                             seq=seq, hout=HP, s_idx=s_idx) + b1
    x_base = jnp.maximum(x_base, 0.0)                              # (M, HP) f32

    # ---- global branch: max-pool over sequence -> Linear -> ReLU ----
    gmax = jnp.max(x_base.reshape(tb, seq, HP), axis=1)            # (TB, HP)
    g = jnp.dot(gmax.astype(MATMUL_DTYPE), wg_ref[...],
                preferred_element_type=jnp.float32) + bg
    g = jnp.maximum(g, 0.0)                                        # (TB, HP)

    # ---- local branch: two 'same' convs (H -> H, k=3) with ReLU ----
    l = _conv_same_flat(x_base.astype(MATMUL_DTYPE), wl_ref, n_taps=3,
                        pad_l=1, seq=seq, hout=HP, s_idx=s_idx) + bl
    l = jnp.maximum(l, 0.0)
    l = _conv_same_flat(l.astype(MATMUL_DTYPE), wli_ref, n_taps=3,
                        pad_l=1, seq=seq, hout=HP, s_idx=s_idx) + bli
    l = jnp.maximum(l, 0.0)                                        # (M, HP) f32

    # ---- concat([global, local]) -> 1x1 conv(2H -> H) + ReLU ----
    # the (200 -> 100) 1x1 conv splits into two matmuls; the global half is
    # computed once per batch element and broadcast over the sequence.
    gproj = jnp.dot(g.astype(MATMUL_DTYPE), wf1g_ref[...],
                    preferred_element_type=jnp.float32)            # (TB, HP)
    lproj = jnp.dot(l.astype(MATMUL_DTYPE), wf1l_ref[...],
                    preferred_element_type=jnp.float32)            # (M, HP)
    h = lproj.reshape(tb, seq, HP) + gproj[:, None, :] + bf1
    h = jnp.maximum(h, 0.0)                                        # (TB, S, HP) f32

    # ---- final 1x1 conv(H -> 1): per-position logits, kept in f32 ----
    # Computed as a lane-reduce (VPU+XLU) so the logits land directly in the
    # (TB, S) layout needed by the ranking below (no (M,1)->(TB,S) relayout);
    # padded lanes of wf2 are zero.
    logits = jnp.sum(h * wf2, axis=-1) + bf2                       # (TB, S)

    # ---- eval path: rank every position within its batch element ----
    # counts[b, s] = #positions with a strictly larger logit, so
    # (counts <= j) == (logit >= (j+1)-th top-k value), ties included,
    # with no serial top-k dependency chain.
    gt = (logits[:, None, :] > logits[:, :, None]).astype(jnp.float32)
    counts = jnp.sum(gt, axis=-1)                                  # (TB, S)

    o_ref[...] = counts[None, :, :]


def _pack_params(params):
    """Pad logical (H=100) params to HP=128 lanes, concatenate conv taps along
    the output axis, pack small vectors into one (8, HP) block, cast matmul
    weights to MATMUL_DTYPE (the final head + biases stay f32)."""
    H = HID

    def pad_last(w):
        return jnp.pad(w, [(0, 0)] * (w.ndim - 1) + [(0, HP - w.shape[-1])])

    def pad_last2(w):
        return jnp.pad(w, [(0, 0)] * (w.ndim - 2)
                       + [(0, HP - w.shape[-2]), (0, HP - w.shape[-1])])

    def cat_taps(w):                       # (K, Cin, HP) -> (Cin, K*HP)
        k, cin, _ = w.shape
        return jnp.transpose(w, (1, 0, 2)).reshape(cin, k * HP)

    w1_cat = cat_taps(pad_last(params["w1"]))
    wl_cat = cat_taps(pad_last2(params["wl"]))
    wli_cat = cat_taps(pad_last2(params["wli"]))
    wg = pad_last2(params["wg"])
    wf1_g = pad_last2(params["wf1_g"])
    wf1_l = pad_last2(params["wf1_l"])

    const = jnp.zeros((8, HP), jnp.float32)
    const = const.at[0, :H].set(params["b1"])
    const = const.at[1, :H].set(params["bg"])
    const = const.at[2, :H].set(params["bl"])
    const = const.at[3, :H].set(params["bli"])
    const = const.at[4, :H].set(params["bf1"])
    const = const.at[5, :H].set(params["wf2"][:, 0])
    const = const.at[6, 0].set(params["bf2"])

    cast = lambda w: w.astype(MATMUL_DTYPE)
    return dict(w1_cat=cast(w1_cat), wg=cast(wg), wl_cat=cast(wl_cat),
                wli_cat=cast(wli_cat), wf1_g=cast(wf1_g), wf1_l=cast(wf1_l),
                const=const)


def selector_forward(tokens, params, *, batch_tile=None):
    """Eval-mode Selector forward. Returns the (B, k, S) discrete mask."""
    B, S = tokens.shape
    if S < K_TOP:
        raise ValueError(f"sequence length {S} must be >= k={K_TOP}")

    prepared = _pack_params(params)
    Kc = params["w1"].shape[0]
    E = params["embeddings"].shape[1]

    # embedding gather stays in plain XLA (could be moved in-kernel via scalar
    # prefetch for large E/S); cast activations to the matmul dtype.
    emb = jnp.take(params["embeddings"], tokens, axis=0).astype(MATMUL_DTYPE)

    # batch blocking: give the MXU M = TB*S rows per matmul (target >= 256)
    # and amortize per-grid-step overhead over TB batch elements.
    if batch_tile is None:
        batch_tile = max(1, min(B, pl.cdiv(256, S)))
    TB = batch_tile
    G = pl.cdiv(B, TB)
    Bp = G * TB
    if Bp != B:
        emb = jnp.pad(emb, ((0, Bp - B), (0, 0), (0, 0)))

    kernel = functools.partial(selector_kernel, tb=TB, seq=S, kc=Kc)
    counts = pl.pallas_call(
        kernel,
        out_shape=jax.ShapeDtypeStruct((G, TB, S), jnp.float32),
        grid_spec=pltpu.PrefetchScalarGridSpec(
            num_scalar_prefetch=0,
            grid=(G,),
            in_specs=[
                pl.BlockSpec((TB, S, E), lambda g: (g, 0, 0)),   # embedded tokens
                pl.BlockSpec((E, Kc * HP), lambda g: (0, 0)),    # conv1d taps, concatenated
                pl.BlockSpec((HP, HP), lambda g: (0, 0)),        # glob_linear
                pl.BlockSpec((HP, 3 * HP), lambda g: (0, 0)),    # local_conv1d taps
                pl.BlockSpec((HP, 3 * HP), lambda g: (0, 0)),    # local_info_conv1d taps
                pl.BlockSpec((HP, HP), lambda g: (0, 0)),        # final_conv1d, global half
                pl.BlockSpec((HP, HP), lambda g: (0, 0)),        # final_conv1d, local half
                pl.BlockSpec((8, HP), lambda g: (0, 0)),         # packed biases + wf2 + bf2
            ],
            out_specs=pl.BlockSpec((1, TB, S), lambda g: (g, 0, 0)),
        ),
        compiler_params=pltpu.CompilerParams(
            dimension_semantics=("parallel",)),
    )(emb, prepared["w1_cat"], prepared["wg"], prepared["wl_cat"],
      prepared["wli_cat"], prepared["wf1_g"], prepared["wf1_l"],
      prepared["const"])

    counts = counts.reshape(Bp, S)[:B]     # rank (#strictly-larger logits) per position
    ranks = jnp.arange(K_TOP, dtype=counts.dtype)
    # (counts <= j)  <=>  (logit >= (j+1)-th largest logit)  == torch eval mask
    return (counts[:, None, :] <= ranks[None, :, None]).astype(jnp.float32)


def init_params(key, vocab_size, emb_size, kernel_size):
    ks = jax.random.split(key, 14)

    def f(k_, shape, scale=0.1):
        return (scale * jax.random.normal(k_, shape)).astype(jnp.float32)

    H = HID
    return dict(
        embeddings=f(ks[0], (vocab_size, emb_size), 1.0),
        w1=f(ks[1], (kernel_size, emb_size, H)),   # conv1d weight as (tap, in, out)
        b1=f(ks[2], (H,)),
        wg=f(ks[3], (H, H)),                       # glob_linear (in, out)
        bg=f(ks[4], (H,)),
        wl=f(ks[5], (3, H, H)),                    # local_conv1d
        bl=f(ks[6], (H,)),
        wli=f(ks[7], (3, H, H)),                   # local_info_conv1d
        bli=f(ks[8], (H,)),
        wf1_g=f(ks[9], (H, H)),                    # final_conv1d rows 0:100  (global half)
        wf1_l=f(ks[10], (H, H)),                   # final_conv1d rows 100:200 (local half)
        bf1=f(ks[11], (H,)),
        wf2=f(ks[12], (H, 1)),                     # final_conv1d2 weight
        bf2=f(ks[13], ()),                         # final_conv1d2 bias (scalar)
    )


if __name__ == "__main__":
    key = jax.random.PRNGKey(0)
    kp, kx = jax.random.split(key)
    vocab_size, emb_size, kernel_size = 50, 32, 3
    # B=32, S=16 => batch tile TB=16 (TB*S = 256 MXU rows) and a 2-step grid,
    # so on v7x both TensorCores get a grid step.
    B, S = 32, 16

    params = init_params(kp, vocab_size, emb_size, kernel_size)
    tokens = jax.random.randint(kx, (B, S), 0, vocab_size, dtype=jnp.int32)

    out = jax.jit(selector_forward)(tokens, params)
    out = jax.block_until_ready(out)

    assert out.shape == (B, K_TOP, S), out.shape
    assert bool(jnp.all((out == 0.0) | (out == 1.0)))
    # mask row j keeps exactly the j+1 largest-logit positions (no ties in
    # random continuous logits), matching the torch topk-threshold semantics.
    sel = out.sum(axis=-1)
    expected = jnp.arange(1, K_TOP + 1, dtype=jnp.float32)[None, :]
    assert bool(jnp.all(sel == expected)), sel

    print("KERNEL_OK")
</pallas_src>

<mosaic_0001>
module attributes {stable_mosaic.version = 11 : i64} {
  func.func @selector_kernel(%arg0: i32, %arg1: memref<16x16x32xbf16, #tpu.memory_space<vmem>>, %arg2: memref<32x384xbf16, #tpu.memory_space<vmem>>, %arg3: memref<128x128xbf16, #tpu.memory_space<vmem>>, %arg4: memref<128x384xbf16, #tpu.memory_space<vmem>>, %arg5: memref<128x384xbf16, #tpu.memory_space<vmem>>, %arg6: memref<128x128xbf16, #tpu.memory_space<vmem>>, %arg7: memref<128x128xbf16, #tpu.memory_space<vmem>>, %arg8: memref<8x128xf32, #tpu.memory_space<vmem>>, %arg9: memref<1x16x16xf32, #tpu.memory_space<vmem>>) attributes {dimension_semantics = [#tpu.dimension_semantics<parallel>], iteration_bounds = array<i64: 2>, scalar_prefetch = 0 : i64, scratch_operands = 0 : i64, tpu.core_type = #tpu.core_type<tc>, window_params = [{transform_indices = @transform_0, window_bounds = array<i64: 16, 16, 32>}, {pipeline_mode = #tpu.pipeline_mode<synchronous>, transform_indices = @transform_1, window_bounds = array<i64: 32, 384>}, {pipeline_mode = #tpu.pipeline_mode<synchronous>, transform_indices = @transform_2, window_bounds = array<i64: 128, 128>}, {pipeline_mode = #tpu.pipeline_mode<synchronous>, transform_indices = @transform_3, window_bounds = array<i64: 128, 384>}, {pipeline_mode = #tpu.pipeline_mode<synchronous>, transform_indices = @transform_4, window_bounds = array<i64: 128, 384>}, {pipeline_mode = #tpu.pipeline_mode<synchronous>, transform_indices = @transform_5, window_bounds = array<i64: 128, 128>}, {pipeline_mode = #tpu.pipeline_mode<synchronous>, transform_indices = @transform_6, window_bounds = array<i64: 128, 128>}, {pipeline_mode = #tpu.pipeline_mode<synchronous>, transform_indices = @transform_7, window_bounds = array<i64: 8, 128>}, {transform_indices = @transform_8, window_bounds = array<i64: 1, 16, 16>}]} {
    %0 = tpu.iota {dimensions = array<i32: 0>} : vector<256x1xi32>
    %c16_i32 = arith.constant 16 : i32
    %c0_i32 = arith.constant 0 : i32
    %1 = arith.cmpi eq, %c16_i32, %c0_i32 : i32
    %c1_i32 = arith.constant 1 : i32
    %2 = arith.select %1, %c1_i32, %c16_i32 : i32
    %3 = vector.broadcast %2 : i32 to vector<256x1xi32>
    %4 = arith.remsi %0, %3 : vector<256x1xi32>
    %c0_i32_0 = arith.constant 0 : i32
    %5 = vector.broadcast %c0_i32_0 : i32 to vector<256x1xi32>
    %6 = arith.cmpi ne, %4, %5 : vector<256x1xi32>
    %c0_i32_1 = arith.constant 0 : i32
    %7 = vector.broadcast %c0_i32_1 : i32 to vector<256x1xi32>
    %8 = arith.cmpi slt, %4, %7 : vector<256x1xi32>
    %c0_i32_2 = arith.constant 0 : i32
    %9 = arith.cmpi slt, %2, %c0_i32_2 : i32
    %10 = vector.broadcast %9 : i1 to vector<256x1xi1>
    %11 = vector.broadcast %10 : vector<256x1xi1> to vector<256x1xi1>
    %12 = arith.xori %8, %11 : vector<256x1xi1>
    %13 = arith.andi %12, %6 : vector<256x1xi1>
    %14 = vector.broadcast %2 : i32 to vector<256x1xi32>
    %15 = arith.addi %4, %14 : vector<256x1xi32>
    %16 = arith.select %13, %15, %4 : vector<256x1xi1>, vector<256x1xi32>
    %c0 = arith.constant 0 : index
    %c0_3 = arith.constant 0 : index
    %17 = vector.load %arg8[%c0, %c0_3] : memref<8x128xf32, #tpu.memory_space<vmem>>, vector<1x128xf32>
    %c1 = arith.constant 1 : index
    %c0_4 = arith.constant 0 : index
    %18 = vector.load %arg8[%c1, %c0_4] : memref<8x128xf32, #tpu.memory_space<vmem>>, vector<1x128xf32>
    %c2 = arith.constant 2 : index
    %c0_5 = arith.constant 0 : index
    %19 = vector.load %arg8[%c2, %c0_5] : memref<8x128xf32, #tpu.memory_space<vmem>>, vector<1x128xf32>
    %c3 = arith.constant 3 : index
    %c0_6 = arith.constant 0 : index
    %20 = vector.load %arg8[%c3, %c0_6] : memref<8x128xf32, #tpu.memory_space<vmem>>, vector<1x128xf32>
    %c4 = arith.constant 4 : index
    %c0_7 = arith.constant 0 : index
    %21 = vector.load %arg8[%c4, %c0_7] : memref<8x128xf32, #tpu.memory_space<vmem>>, vector<1x128xf32>
    %c5 = arith.constant 5 : index
    %c0_8 = arith.constant 0 : index
    %22 = vector.load %arg8[%c5, %c0_8] : memref<8x128xf32, #tpu.memory_space<vmem>>, vector<1x128xf32>
    %c6 = arith.constant 6 : index
    %c0_9 = arith.constant 0 : index
    %23 = vector.load %arg8[%c6, %c0_9] : memref<8x128xf32, #tpu.memory_space<vmem>>, vector<1x1xf32>
    %c0_10 = arith.constant 0 : index
    %c0_11 = arith.constant 0 : index
    %c0_12 = arith.constant 0 : index
    %24 = vector.load %arg1[%c0_10, %c0_11, %c0_12] : memref<16x16x32xbf16, #tpu.memory_space<vmem>>, vector<16x16x32xbf16>
    %25 = vector.shape_cast %24 : vector<16x16x32xbf16> to vector<256x32xbf16>
    %c0_13 = arith.constant 0 : index
    %c0_14 = arith.constant 0 : index
    %26 = vector.load %arg2[%c0_13, %c0_14] : memref<32x384xbf16, #tpu.memory_space<vmem>>, vector<32x384xbf16>
    %cst = arith.constant dense<0.000000e+00> : vector<256x384xf32>
    %27 = tpu.matmul %25, %26, %cst {dimension_numbers = #tpu.dot_dimension_numbers<[1], [0], [0], [1], [0, 0, 1, 1], [], []>} : vector<256x32xbf16>, vector<32x384xbf16>, vector<256x384xf32> -> vector<256x384xf32>
    %28 = vector.extract_strided_slice %27 {offsets = [0, 0], sizes = [256, 128], strides = [1, 1]} : vector<256x384xf32> to vector<256x128xf32>
    %c1_i32_15 = arith.constant 1 : i32
    %29 = tpu.dynamic_rotate %28 by %c1_i32_15 dim 0 : vector<256x128xf32>, i32 -> vector<256x128xf32>
    %c1_i32_16 = arith.constant 1 : i32
    %30 = vector.broadcast %c1_i32_16 : i32 to vector<256x1xi32>
    %31 = arith.cmpi sge, %16, %30 : vector<256x1xi32>
    %c17_i32 = arith.constant 17 : i32
    %32 = vector.broadcast %c17_i32 : i32 to vector<256x1xi32>
    %33 = arith.cmpi slt, %16, %32 : vector<256x1xi32>
    %34 = arith.andi %31, %33 : vector<256x1xi1>
    %cst_17 = arith.constant 0.000000e+00 : f32
    %35 = vector.shape_cast %34 : vector<256x1xi1> to vector<256x1xi1>
    %36 = vector.broadcast %35 : vector<256x1xi1> to vector<256x128xi1>
    %37 = vector.broadcast %cst_17 : f32 to vector<256x128xf32>
    %38 = arith.select %36, %29, %37 : vector<256x128xi1>, vector<256x128xf32>
    %39 = vector.extract_strided_slice %27 {offsets = [0, 128], sizes = [256, 128], strides = [1, 1]} : vector<256x384xf32> to vector<256x128xf32>
    %40 = arith.addf %38, %39 : vector<256x128xf32>
    %41 = vector.extract_strided_slice %27 {offsets = [0, 256], sizes = [256, 128], strides = [1, 1]} : vector<256x384xf32> to vector<256x128xf32>
    %c255_i32 = arith.constant 255 : i32
    %42 = tpu.dynamic_rotate %41 by %c255_i32 dim 0 : vector<256x128xf32>, i32 -> vector<256x128xf32>
    %c-1_i32 = arith.constant -1 : i32
    %43 = vector.broadcast %c-1_i32 : i32 to vector<256x1xi32>
    %44 = arith.cmpi sge, %16, %43 : vector<256x1xi32>
    %c15_i32 = arith.constant 15 : i32
    %45 = vector.broadcast %c15_i32 : i32 to vector<256x1xi32>
    %46 = arith.cmpi slt, %16, %45 : vector<256x1xi32>
    %47 = arith.andi %44, %46 : vector<256x1xi1>
    %cst_18 = arith.constant 0.000000e+00 : f32
    %48 = vector.shape_cast %47 : vector<256x1xi1> to vector<256x1xi1>
    %49 = vector.broadcast %48 : vector<256x1xi1> to vector<256x128xi1>
    %50 = vector.broadcast %cst_18 : f32 to vector<256x128xf32>
    %51 = arith.select %49, %42, %50 : vector<256x128xi1>, vector<256x128xf32>
    %52 = arith.addf %40, %51 : vector<256x128xf32>
    %53 = vector.broadcast %17 : vector<1x128xf32> to vector<256x128xf32>
    %54 = arith.addf %52, %53 : vector<256x128xf32>
    %cst_19 = arith.constant 0.000000e+00 : f32
    %55 = vector.broadcast %cst_19 : f32 to vector<256x128xf32>
    %56 = arith.maximumf %54, %55 : vector<256x128xf32>
    %57 = vector.shape_cast %56 : vector<256x128xf32> to vector<16x16x128xf32>
    %cst_20 = arith.constant dense<0xFF800000> : vector<16x128xf32>
    %58 = vector.multi_reduction <maximumf>, %57, %cst_20 [1] : vector<16x16x128xf32> to vector<16x128xf32>
    %59 = arith.truncf %58 : vector<16x128xf32> to vector<16x128xbf16>
    %c0_21 = arith.constant 0 : index
    %c0_22 = arith.constant 0 : index
    %60 = vector.load %arg3[%c0_21, %c0_22] : memref<128x128xbf16, #tpu.memory_space<vmem>>, vector<128x128xbf16>
    %cst_23 = arith.constant dense<0.000000e+00> : vector<16x128xf32>
    %61 = tpu.matmul %59, %60, %cst_23 {dimension_numbers = #tpu.dot_dimension_numbers<[1], [0], [0], [1], [0, 0, 1, 1], [], []>} : vector<16x128xbf16>, vector<128x128xbf16>, vector<16x128xf32> -> vector<16x128xf32>
    %62 = vector.broadcast %18 : vector<1x128xf32> to vector<16x128xf32>
    %63 = arith.addf %61, %62 : vector<16x128xf32>
    %cst_24 = arith.constant 0.000000e+00 : f32
    %64 = vector.broadcast %cst_24 : f32 to vector<16x128xf32>
    %65 = arith.maximumf %63, %64 : vector<16x128xf32>
    %66 = arith.truncf %56 : vector<256x128xf32> to vector<256x128xbf16>
    %c0_25 = arith.constant 0 : index
    %c0_26 = arith.constant 0 : index
    %67 = vector.load %arg4[%c0_25, %c0_26] : memref<128x384xbf16, #tpu.memory_space<vmem>>, vector<128x384xbf16>
    %cst_27 = arith.constant dense<0.000000e+00> : vector<256x384xf32>
    %68 = tpu.matmul %66, %67, %cst_27 {dimension_numbers = #tpu.dot_dimension_numbers<[1], [0], [0], [1], [0, 0, 1, 1], [], []>} : vector<256x128xbf16>, vector<128x384xbf16>, vector<256x384xf32> -> vector<256x384xf32>
    %69 = vector.extract_strided_slice %68 {offsets = [0, 0], sizes = [256, 128], strides = [1, 1]} : vector<256x384xf32> to vector<256x128xf32>
    %c1_i32_28 = arith.constant 1 : i32
    %70 = tpu.dynamic_rotate %69 by %c1_i32_28 dim 0 : vector<256x128xf32>, i32 -> vector<256x128xf32>
    %c1_i32_29 = arith.constant 1 : i32
    %71 = vector.broadcast %c1_i32_29 : i32 to vector<256x1xi32>
    %72 = arith.cmpi sge, %16, %71 : vector<256x1xi32>
    %c17_i32_30 = arith.constant 17 : i32
    %73 = vector.broadcast %c17_i32_30 : i32 to vector<256x1xi32>
    %74 = arith.cmpi slt, %16, %73 : vector<256x1xi32>
    %75 = arith.andi %72, %74 : vector<256x1xi1>
    %cst_31 = arith.constant 0.000000e+00 : f32
    %76 = vector.shape_cast %75 : vector<256x1xi1> to vector<256x1xi1>
    %77 = vector.broadcast %76 : vector<256x1xi1> to vector<256x128xi1>
    %78 = vector.broadcast %cst_31 : f32 to vector<256x128xf32>
    %79 = arith.select %77, %70, %78 : vector<256x128xi1>, vector<256x128xf32>
    %80 = vector.extract_strided_slice %68 {offsets = [0, 128], sizes = [256, 128], strides = [1, 1]} : vector<256x384xf32> to vector<256x128xf32>
    %81 = arith.addf %79, %80 : vector<256x128xf32>
    %82 = vector.extract_strided_slice %68 {offsets = [0, 256], sizes = [256, 128], strides = [1, 1]} : vector<256x384xf32> to vector<256x128xf32>
    %c255_i32_32 = arith.constant 255 : i32
    %83 = tpu.dynamic_rotate %82 by %c255_i32_32 dim 0 : vector<256x128xf32>, i32 -> vector<256x128xf32>
    %c-1_i32_33 = arith.constant -1 : i32
    %84 = vector.broadcast %c-1_i32_33 : i32 to vector<256x1xi32>
    %85 = arith.cmpi sge, %16, %84 : vector<256x1xi32>
    %c15_i32_34 = arith.constant 15 : i32
    %86 = vector.broadcast %c15_i32_34 : i32 to vector<256x1xi32>
    %87 = arith.cmpi slt, %16, %86 : vector<256x1xi32>
    %88 = arith.andi %85, %87 : vector<256x1xi1>
    %cst_35 = arith.constant 0.000000e+00 : f32
    %89 = vector.shape_cast %88 : vector<256x1xi1> to vector<256x1xi1>
    %90 = vector.broadcast %89 : vector<256x1xi1> to vector<256x128xi1>
    %91 = vector.broadcast %cst_35 : f32 to vector<256x128xf32>
    %92 = arith.select %90, %83, %91 : vector<256x128xi1>, vector<256x128xf32>
    %93 = arith.addf %81, %92 : vector<256x128xf32>
    %94 = vector.broadcast %19 : vector<1x128xf32> to vector<256x128xf32>
    %95 = arith.addf %93, %94 : vector<256x128xf32>
    %cst_36 = arith.constant 0.000000e+00 : f32
    %96 = vector.broadcast %cst_36 : f32 to vector<256x128xf32>
    %97 = arith.maximumf %95, %96 : vector<256x128xf32>
    %98 = arith.truncf %97 : vector<256x128xf32> to vector<256x128xbf16>
    %c0_37 = arith.constant 0 : index
    %c0_38 = arith.constant 0 : index
    %99 = vector.load %arg5[%c0_37, %c0_38] : memref<128x384xbf16, #tpu.memory_space<vmem>>, vector<128x384xbf16>
    %cst_39 = arith.constant dense<0.000000e+00> : vector<256x384xf32>
    %100 = tpu.matmul %98, %99, %cst_39 {dimension_numbers = #tpu.dot_dimension_numbers<[1], [0], [0], [1], [0, 0, 1, 1], [], []>} : vector<256x128xbf16>, vector<128x384xbf16>, vector<256x384xf32> -> vector<256x384xf32>
    %101 = vector.extract_strided_slice %100 {offsets = [0, 0], sizes = [256, 128], strides = [1, 1]} : vector<256x384xf32> to vector<256x128xf32>
    %c1_i32_40 = arith.constant 1 : i32
    %102 = tpu.dynamic_rotate %101 by %c1_i32_40 dim 0 : vector<256x128xf32>, i32 -> vector<256x128xf32>
    %c1_i32_41 = arith.constant 1 : i32
    %103 = vector.broadcast %c1_i32_41 : i32 to vector<256x1xi32>
    %104 = arith.cmpi sge, %16, %103 : vector<256x1xi32>
    %c17_i32_42 = arith.constant 17 : i32
    %105 = vector.broadcast %c17_i32_42 : i32 to vector<256x1xi32>
    %106 = arith.cmpi slt, %16, %105 : vector<256x1xi32>
    %107 = arith.andi %104, %106 : vector<256x1xi1>
    %cst_43 = arith.constant 0.000000e+00 : f32
    %108 = vector.shape_cast %107 : vector<256x1xi1> to vector<256x1xi1>
    %109 = vector.broadcast %108 : vector<256x1xi1> to vector<256x128xi1>
    %110 = vector.broadcast %cst_43 : f32 to vector<256x128xf32>
    %111 = arith.select %109, %102, %110 : vector<256x128xi1>, vector<256x128xf32>
    %112 = vector.extract_strided_slice %100 {offsets = [0, 128], sizes = [256, 128], strides = [1, 1]} : vector<256x384xf32> to vector<256x128xf32>
    %113 = arith.addf %111, %112 : vector<256x128xf32>
    %114 = vector.extract_strided_slice %100 {offsets = [0, 256], sizes = [256, 128], strides = [1, 1]} : vector<256x384xf32> to vector<256x128xf32>
    %c255_i32_44 = arith.constant 255 : i32
    %115 = tpu.dynamic_rotate %114 by %c255_i32_44 dim 0 : vector<256x128xf32>, i32 -> vector<256x128xf32>
    %c-1_i32_45 = arith.constant -1 : i32
    %116 = vector.broadcast %c-1_i32_45 : i32 to vector<256x1xi32>
    %117 = arith.cmpi sge, %16, %116 : vector<256x1xi32>
    %c15_i32_46 = arith.constant 15 : i32
    %118 = vector.broadcast %c15_i32_46 : i32 to vector<256x1xi32>
    %119 = arith.cmpi slt, %16, %118 : vector<256x1xi32>
    %120 = arith.andi %117, %119 : vector<256x1xi1>
    %cst_47 = arith.constant 0.000000e+00 : f32
    %121 = vector.shape_cast %120 : vector<256x1xi1> to vector<256x1xi1>
    %122 = vector.broadcast %121 : vector<256x1xi1> to vector<256x128xi1>
    %123 = vector.broadcast %cst_47 : f32 to vector<256x128xf32>
    %124 = arith.select %122, %115, %123 : vector<256x128xi1>, vector<256x128xf32>
    %125 = arith.addf %113, %124 : vector<256x128xf32>
    %126 = vector.broadcast %20 : vector<1x128xf32> to vector<256x128xf32>
    %127 = arith.addf %125, %126 : vector<256x128xf32>
    %cst_48 = arith.constant 0.000000e+00 : f32
    %128 = vector.broadcast %cst_48 : f32 to vector<256x128xf32>
    %129 = arith.maximumf %127, %128 : vector<256x128xf32>
    %130 = arith.truncf %65 : vector<16x128xf32> to vector<16x128xbf16>
    %c0_49 = arith.constant 0 : index
    %c0_50 = arith.constant 0 : index
    %131 = vector.load %arg6[%c0_49, %c0_50] : memref<128x128xbf16, #tpu.memory_space<vmem>>, vector<128x128xbf16>
    %cst_51 = arith.constant dense<0.000000e+00> : vector<16x128xf32>
    %132 = tpu.matmul %130, %131, %cst_51 {dimension_numbers = #tpu.dot_dimension_numbers<[1], [0], [0], [1], [0, 0, 1, 1], [], []>} : vector<16x128xbf16>, vector<128x128xbf16>, vector<16x128xf32> -> vector<16x128xf32>
    %133 = arith.truncf %129 : vector<256x128xf32> to vector<256x128xbf16>
    %c0_52 = arith.constant 0 : index
    %c0_53 = arith.constant 0 : index
    %134 = vector.load %arg7[%c0_52, %c0_53] : memref<128x128xbf16, #tpu.memory_space<vmem>>, vector<128x128xbf16>
    %cst_54 = arith.constant dense<0.000000e+00> : vector<256x128xf32>
    %135 = tpu.matmul %133, %134, %cst_54 {dimension_numbers = #tpu.dot_dimension_numbers<[1], [0], [0], [1], [0, 0, 1, 1], [], []>} : vector<256x128xbf16>, vector<128x128xbf16>, vector<256x128xf32> -> vector<256x128xf32>
    %136 = vector.shape_cast %135 : vector<256x128xf32> to vector<16x16x128xf32>
    %137 = vector.shape_cast %132 : vector<16x128xf32> to vector<16x1x128xf32>
    %138 = vector.broadcast %137 : vector<16x1x128xf32> to vector<16x16x128xf32>
    %139 = arith.addf %136, %138 : vector<16x16x128xf32>
    %140 = vector.shape_cast %21 : vector<1x128xf32> to vector<1x1x128xf32>
    %141 = vector.broadcast %140 : vector<1x1x128xf32> to vector<16x16x128xf32>
    %142 = arith.addf %139, %141 : vector<16x16x128xf32>
    %cst_55 = arith.constant 0.000000e+00 : f32
    %143 = vector.broadcast %cst_55 : f32 to vector<16x16x128xf32>
    %144 = arith.maximumf %142, %143 : vector<16x16x128xf32>
    %145 = vector.shape_cast %22 : vector<1x128xf32> to vector<1x1x128xf32>
    %146 = vector.broadcast %145 : vector<1x1x128xf32> to vector<16x16x128xf32>
    %147 = arith.mulf %144, %146 : vector<16x16x128xf32>
    %cst_56 = arith.constant dense<0.000000e+00> : vector<16x16xf32>
    %148 = vector.multi_reduction <add>, %147, %cst_56 [2] : vector<16x16x128xf32> to vector<16x16xf32>
    %149 = vector.broadcast %23 : vector<1x1xf32> to vector<16x16xf32>
    %150 = arith.addf %148, %149 : vector<16x16xf32>
    %151 = vector.shape_cast %150 : vector<16x16xf32> to vector<16x1x16xf32>
    %152 = vector.shape_cast %150 : vector<16x16xf32> to vector<16x16x1xf32>
    %153 = vector.broadcast %151 : vector<16x1x16xf32> to vector<16x16x16xf32>
    %154 = vector.broadcast %152 : vector<16x16x1xf32> to vector<16x16x16xf32>
    %155 = arith.cmpf ogt, %153, %154 : vector<16x16x16xf32>
    %156 = arith.extui %155 : vector<16x16x16xi1> to vector<16x16x16xi32>
    %157 = arith.sitofp %156 : vector<16x16x16xi32> to vector<16x16x16xf32>
    %cst_57 = arith.constant dense<0.000000e+00> : vector<16x16xf32>
    %158 = vector.multi_reduction <add>, %157, %cst_57 [2] : vector<16x16x16xf32> to vector<16x16xf32>
    %159 = vector.shape_cast %158 : vector<16x16xf32> to vector<1x16x16xf32>
    %c0_58 = arith.constant 0 : index
    %c0_59 = arith.constant 0 : index
    %c0_60 = arith.constant 0 : index
    %160 = vector.load %arg9[%c0_58, %c0_59, %c0_60] : memref<1x16x16xf32, #tpu.memory_space<vmem>>, vector<1x16x16xf32>
    tpu.vector_store %arg9[%c0_58, %c0_59, %c0_60], %159 {strides = array<i32>} : memref<1x16x16xf32, #tpu.memory_space<vmem>>, vector<1x16x16xf32>,
    return
  }
  func.func @transform_0(%arg0: i32) -> (i32, i32, i32) {
    %c0_i32 = arith.constant 0 : i32
    %c0_i32_0 = arith.constant 0 : i32
    %c0_i32_1 = arith.constant 0 : i32
    return %arg0, %c0_i32, %c0_i32_0 : i32, i32, i32
  }
  func.func @transform_1(%arg0: i32) -> (i32, i32) {
    %c0_i32 = arith.constant 0 : i32
    %c0_i32_0 = arith.constant 0 : i32
    %c0_i32_1 = arith.constant 0 : i32
    return %c0_i32, %c0_i32_0 : i32, i32
  }
  func.func @transform_2(%arg0: i32) -> (i32, i32) {
    %c0_i32 = arith.constant 0 : i32
    %c0_i32_0 = arith.constant 0 : i32
    %c0_i32_1 = arith.constant 0 : i32
    return %c0_i32, %c0_i32_0 : i32, i32
  }
  func.func @transform_3(%arg0: i32) -> (i32, i32) {
    %c0_i32 = arith.constant 0 : i32
    %c0_i32_0 = arith.constant 0 : i32
    %c0_i32_1 = arith.constant 0 : i32
    return %c0_i32, %c0_i32_0 : i32, i32
  }
  func.func @transform_4(%arg0: i32) -> (i32, i32) {
    %c0_i32 = arith.constant 0 : i32
    %c0_i32_0 = arith.constant 0 : i32
    %c0_i32_1 = arith.constant 0 : i32
    return %c0_i32, %c0_i32_0 : i32, i32
  }
  func.func @transform_5(%arg0: i32) -> (i32, i32) {
    %c0_i32 = arith.constant 0 : i32
    %c0_i32_0 = arith.constant 0 : i32
    %c0_i32_1 = arith.constant 0 : i32
    return %c0_i32, %c0_i32_0 : i32, i32
  }
  func.func @transform_6(%arg0: i32) -> (i32, i32) {
    %c0_i32 = arith.constant 0 : i32
    %c0_i32_0 = arith.constant 0 : i32
    %c0_i32_1 = arith.constant 0 : i32
    return %c0_i32, %c0_i32_0 : i32, i32
  }
  func.func @transform_7(%arg0: i32) -> (i32, i32) {
    %c0_i32 = arith.constant 0 : i32
    %c0_i32_0 = arith.constant 0 : i32
    %c0_i32_1 = arith.constant 0 : i32
    return %c0_i32, %c0_i32_0 : i32, i32
  }
  func.func @transform_8(%arg0: i32) -> (i32, i32, i32) {
    %c0_i32 = arith.constant 0 : i32
    %c0_i32_0 = arith.constant 0 : i32
    %c0_i32_1 = arith.constant 0 : i32
    return %arg0, %c0_i32, %c0_i32_0 : i32, i32, i32
  }
}

</mosaic_0001>

<bundles_post_ra>
// kernel: selector_forward.1
= control target key start
LH: loop header
LB: loop body
LE: loop exit
PB: predicated region body
PF: predicated region fallthrough
CT: control target
= control target key end

     0   :  { %s14963_s27 = smov 0   ;;  %s22082_s0 = inlined_call_operand.vmem [shape: bf16[32,16,32], index: 0, kind: input, shape index: {}]   ;;  %s22083_s1 = inlined_call_operand.vmem [shape: bf16[32,384], index: 1, kind: input, shape index: {}]   ;;  %s22084_s2 = inlined_call_operand.vmem [shape: bf16[128,128], index: 2, kind: input, shape index: {}]   ;;  %s22085_s3 = inlined_call_operand.vmem [shape: bf16[128,384], index: 3, kind: input, shape index: {}]   ;;  %s22086_s4 = inlined_call_operand.vmem [shape: bf16[128,384], index: 4, kind: input, shape index: {}]   ;;  %s22087_s5 = inlined_call_operand.vmem [shape: bf16[128,128], index: 5, kind: input, shape index: {}]   ;;  %s22088_s6 = inlined_call_operand.vmem [shape: bf16[128,128], index: 6, kind: input, shape index: {}]   ;;  %s22089_s7 = inlined_call_operand.vmem [shape: f32[8,128], index: 7, kind: input, shape index: {}]   ;;  %s22090_s8 = inlined_call_operand.vmem [shape: f32[2,16,16], index: 8, kind: output, shape index: {}]  }
   0x1 LB: > { %s14969_s28 = sadd.s32 4294967295, %s14912_s27   ;;  %p12512_p0 = scmp.ge.s32.totalorder %s14912_s27, 1  ;;  %s14912_s27 = sphi %s14963_s27, %s18_s27  }
   0x2   : > { %p264_p1 = scmp.lt.s32.totalorder %s14912_s27, 3 }
   0x4   : > { %p265_p2 = pnand %p12512_p0, %p264_p1 }
   0x6   : > { %268 = sbr.rel (%p265_p2) target bundleno = 2465 (0x9a1), region = 52 }
   0xd   : > { %v14794_v0 = vld [vmem:[%s22083_s1 + $0x4] ss:$12 sps:$4 sm:$0xff]   ;;  %s12513_s9 = sshll.u32 %s14969_s28, 4  ;;  %v14796_v1 = vld [vmem:[%s22083_s1] ss:$12 sps:$4 sm:$0xff]   ;;  %v22094_v2 = vmov 0   ;;  %v22091_v35 = vlaneseq }
   0xe   : > { %969 = vmatprep.mubr.bf16.mxu0 %v22094_v2  ;;  %1079 = vmatprep.mubr.bf16.mxu1 %v22094_v2  ;;  %p300_p3 = scmp.lt.s32.totalorder %s12513_s9, 31  ;;  %v14797_v3 = vld [vmem:[%s22083_s1 + $0x1c] ss:$12 sps:$4 sm:$0xff]   ;;  %v14799_v4 = vld [vmem:[%s22083_s1 + $0x18] ss:$12 sps:$4 sm:$0xff]   ;;  %vm888_vm0 = vcmask 261120  }
   0xf   : > { %937 = vmatprep.subr.bf16.mxu0 %v14794_v0  ;;  %13494 = vmatprep.subr.bf16.mxu1 %v14794_v0  ;;  %v14802_v5 = vld [vmem:[%s22083_s1 + $0x8] ss:$12 sps:$4 sm:$0xff]   ;;  %v14807_v6 = vld [vmem:[%s22083_s1 + $0x20] ss:$12 sps:$4 sm:$0xff]   ;;  %v14820_v25 = vld [vmem:[%s22085_s3 + $0x38] ss:$12 sps:$4 sm:$0xff]  }
  0x10   : > { %938 = vmatpush1.bf16.msra.mxu0 %v14796_v1  ;;  %13496 = vmatpush1.bf16.msra.mxu1 %v14796_v1  ;;  %s23335_s9 = smov (!%p300_p3, %s12513_s9), 31  ;;  %v14818_v23 = vld [vmem:[%s22085_s3 + $0x8] ss:$12 sps:$4 sm:$0xff]   ;;  %v14819_v24 = vld [vmem:[%s22085_s3 + $0x20] ss:$12 sps:$4 sm:$0xff]   ;;  %v22092_v32 = vmov 0.0  }
  0x11   : > { %939 = vmatprep.subr.bf16.mxu0 %v14797_v3  ;;  %13495 = vmatprep.subr.bf16.mxu1 %v14797_v3  ;;  %s13164_s18 = sshll.u32 %s23335_s9, 3  ;;  %v14821_v26 = vld [vmem:[%s22085_s3 + $0x50] ss:$12 sps:$4 sm:$0xff]   ;;  %v14822_v27 = vld [vmem:[%s22085_s3 + $0x68] ss:$12 sps:$4 sm:$0xff]   ;;  %v14826_v31 = vld [vmem:[%s22084_s2] sm:$0xff]  }
  0x12   : > { %13518 = vset.pattern.permute.xlu0 %v22094_v2  ;;  %13512 = vset.pattern.permute.xlu1 %v22094_v2  ;;  %s14996_s21 = scalar_lea.vmem %s22082_s0, %s13164_s18  ;;  %v14823_v28 = vld [vmem:[%s22085_s3 + $0x80] ss:$12 sps:$4 sm:$0xff]   ;;  %v14824_v29 = vld [vmem:[%s22085_s3 + $0x98] ss:$12 sps:$4 sm:$0xff]   ;;  %v14825_v30 = vld [vmem:[%s22085_s3 + $0xb0] ss:$12 sps:$4 sm:$0xff]  }
  0x13   : > { %v14800_v7 = vld [vmem:[%s14996_s21] sm:$0xff]   ;;  %v14801_v8 = vld [vmem:[%s14996_s21 + $0x58] sm:$0xff]   ;;  %v14803_v9 = vld [vmem:[%s14996_s21 + $0x8] sm:$0xff]   ;;  %v15105_v37 = vshrl.u32 %v22091_v35, 7  ;;  %v22227_v1 = vmov 0  ;;  %vm22107_vm8 = vmmov 0  }
  0x14   : > { %940 = vmatpush1.bf16.msra.mxu0 %v14799_v4  ;;  %13497 = vmatpush1.bf16.msra.mxu1 %v14799_v4  ;;  %v14804_v10 = vld [vmem:[%s14996_s21 + $0x60] sm:$0xff]   ;;  %v14805_v11 = vld [vmem:[%s14996_s21 + $0x10] sm:$0xff]   ;;  %v14806_v12 = vld [vmem:[%s14996_s21 + $0x68] sm:$0xff]   ;;  %p306_p4 = scmp.lt.s32.totalorder %s14969_s28, 1 }
  0x15   : > { %13274 = vmatprep.subr.bf16.mxu1 %v14802_v5  ;;  %v14808_v13 = vld [vmem:[%s14996_s21 + $0x18] sm:$0xff]   ;;  %v14809_v14 = vld [vmem:[%s14996_s21 + $0x70] sm:$0xff]   ;;  %v14810_v15 = vld [vmem:[%s14996_s21 + $0x20] sm:$0xff]   ;;  %13330 = vmatprep.subr.bf16.mxu0 %v14818_v23  ;;  %v337_v43 = vadd.s32 192, %v15105_v37  ;;  %v315_v44 = vadd.s32 16, %v15105_v37  ;;  %vm22126_vm1 = vcmp.lt.s32.totalorder %v15105_v37, 1 }
  0x16   : > { %v14811_v16 = vld [vmem:[%s14996_s21 + $0x78] sm:$0xff]   ;;  %v14812_v17 = vld [vmem:[%s14996_s21 + $0x28] sm:$0xff]   ;;  %v14813_v18 = vld [vmem:[%s14996_s21 + $0x30] sm:$0xff]   ;;  %v339_v61 = vadd.s32 208, %v15105_v37  ;;  %v317_v62 = vadd.s32 32, %v15105_v37  ;;  %vm22119_vm13 = vcmp.lt.s32.totalorder %v15105_v37, 7 }
  0x17   : > { %12540 = vmatmul.mubr.msk.bf16.vlgmr.msra.gmra.mrb[0].mxu0 %vm888_vm0, %v14800_v7  ;;  %12551 = vmatmul.mubr.msk.bf16.vlgmr.msra.gmra.mrb[0].mxu1 %vm888_vm0, %v14801_v8  ;;  %v14814_v19 = vld [vmem:[%s14996_s21 + $0x38] sm:$0xff]   ;;  %v14815_v20 = vld [vmem:[%s14996_s21 + $0x40] sm:$0xff]   ;;  %v14816_v21 = vld [vmem:[%s14996_s21 + $0x48] sm:$0xff]   ;;  %v517_v54 = vand.u32 15, %v337_v43  ;;  %v363_v56 = vand.u32 15, %v315_v44  ;;  %s23337_s28 = smov (!%p306_p4, %s14969_s28), 1 }
  0x18   : > { %13275 = vmatpush3.bf16.msra.mxu1 %v14802_v5  ;;  %979 = vmatprep.mubr.bf16.mxu0 %v22094_v2  ;;  %v14817_v22 = vld [vmem:[%s14996_s21 + $0x50] sm:$0xff]   ;;  %v14827_v33 = vld [vmem:[%s22084_s2 + $0x8] sm:$0xff]   ;;  %v14829_v36 = vld [vmem:[%s22084_s2 + $0x18] sm:$0xff]   ;;  %v22230_v5 = vmov 0  ;;  %s13165_s23 = sshll.u32 %s23337_s28, 4 }
  0x19   : > { %1089 = vmatprep.mubr.bf16.mxu1 %v22094_v2  ;;  %13276 = vmatprep.subr.bf16.mxu1 %v14807_v6  ;;  %v14828_v34 = vld [vmem:[%s22084_s2 + $0x10] sm:$0xff]   ;;  %v14830_v52 = vld [vmem:[%s22084_s2 + $0x20] sm:$0xff]   ;;  %vm15138_vm2 = vcmp.ge.s32.totalorder %v517_v54, 1  ;;  %vm15142_vm3 = vcmp.ge.s32.totalorder %v363_v56, 1  ;;  %s22037_s26 = scalar_lea.vmem %s22090_s8, %s13165_s23 }
  0x1a   : > { %13331 = vmatpush3.bf16.msra.mxu0 %v14818_v23  ;;  %v22228_v1 = vsel %vm15138_vm2, 4294967295, %v22227_v1  ;;  %v22231_v5 = vsel %vm15142_vm3, 4294967295, %v22230_v5 }
  0x1b   : > { %13332 = vmatprep.subr.bf16.mxu0 %v14819_v24  ;;  %22229 = vst [vmem:[#allocation2_spill] sm:$0xff] %v22228_v1  ;;  %22232 = vst [vmem:[#allocation3_spill] sm:$0xff] %v22231_v5 }
  0x1c   : > { %13277 = vmatpush3.bf16.msra.mxu1 %v14807_v6 }
  0x1d   : > { %13310 = vmatprep.subr.bf16.mxu1 %v22092_v32 }
  0x1e   : > { %13333 = vmatpush3.bf16.msra.mxu0 %v14819_v24  ;;  %v341_v24 = vadd.s32 224, %v15105_v37 }
  0x1f   : > { %12541 = vmatmul.mubr.msk.bf16.gmra.mrb[4].mxu0 %vm888_vm0, %v14803_v9  ;;  %12552 = vmatmul.mubr.msk.bf16.gmra.mrb[4].mxu1 %vm888_vm0, %v14804_v10 }
  0x20   : > { %989 = vmatprep.mubr.bf16.mxu0 %v22094_v2  ;;  %1099 = vmatprep.mubr.bf16.mxu1 %v22094_v2  ;;  %v545_v44 = vand.u32 15, %v341_v24  ;;  %v314_v24 = vadd.s32 8, %v15105_v37 }
  0x21   : > { %13334 = vmatprep.subr.bf16.mxu0 %v14820_v25 }
  0x22   : > { %13335 = vmatpush3.bf16.msra.mxu0 %v14820_v25  ;;  %v319_v25 = vadd.s32 48, %v15105_v37  ;;  %vm15208_vm6 = vcmp.ge.s32.totalorder %v545_v44, 1 }
  0x23   : > { %13336 = vmatprep.subr.bf16.mxu0 %v14821_v26 }
  0x26   : > { %13337 = vmatpush3.bf16.msra.mxu0 %v14821_v26 }
  0x27   : > { %12542 = vmatmul.mubr.msk.bf16.gmra.mrb[8].mxu0 %vm888_vm0, %v14805_v11  ;;  %12553 = vmatmul.mubr.msk.bf16.gmra.mrb[8].mxu1 %vm888_vm0, %v14806_v12 }
  0x28   : > { %999 = vmatprep.mubr.bf16.mxu0 %v22094_v2  ;;  %1109 = vmatprep.mubr.bf16.mxu1 %v22094_v2 }
  0x29   : > { %13338 = vmatprep.subr.bf16.mxu0 %v14822_v27 }
  0x2a   : > { %13339 = vmatpush3.bf16.msra.mxu0 %v14822_v27  ;;  %v22233_v27 = vmov 0 }
  0x2b   : > { %13340 = vmatprep.subr.bf16.mxu0 %v14823_v28 }
  0x2e   : > { %13341 = vmatpush3.bf16.msra.mxu0 %v14823_v28 }
  0x2f   : > { %12543 = vmatmul.mubr.msk.bf16.gmra.mrb[12].mxu0 %vm888_vm0, %v14808_v13  ;;  %12554 = vmatmul.mubr.msk.bf16.gmra.mrb[12].mxu1 %vm888_vm0, %v14809_v14 }
  0x30   : > { %1009 = vmatprep.mubr.bf16.mxu0 %v22094_v2  ;;  %1119 = vmatprep.mubr.bf16.mxu1 %v22094_v2 }
  0x31   : > { %13342 = vmatprep.subr.bf16.mxu0 %v14824_v29 }
  0x32   : > { %13343 = vmatpush3.bf16.msra.mxu0 %v14824_v29 }
  0x33   : > { %13344 = vmatprep.subr.bf16.mxu0 %v14825_v30 }
  0x36   : > { %13345 = vmatpush3.bf16.msra.mxu0 %v14825_v30 }
  0x37   : > { %12544 = vmatmul.mubr.msk.bf16.gmra.mrb[16].mxu0 %vm888_vm0, %v14810_v15  ;;  %12555 = vmatmul.mubr.msk.bf16.gmra.mrb[16].mxu1 %vm888_vm0, %v14811_v16 }
  0x38   : > { %1019 = vmatprep.mubr.bf16.mxu0 %v22094_v2  ;;  %13278 = vmatprep.mubr.msk.bf16.mxu1 %vm888_vm0, %v14800_v7 }
  0x3f   : > { %12545 = vmatmul.mubr.msk.bf16.gmra.mrb[20].mxu0 %vm888_vm0, %v14812_v17  ;;  %13279 = vmatmul.mubr.msk.bf16.vlgmr.msra.gmra.mrb[20].mxu1 %vm888_vm0, %v14803_v9 }
  0x40   : > { %1029 = vmatprep.mubr.bf16.mxu0 %v22094_v2  ;;  %13282 = vmatprep.mubr.msk.bf16.mxu1 %vm888_vm0, %v14805_v11 }
  0x41   : > { %13311 = vmatpush3.bf16.msra.mxu1 %v14826_v31 }
  0x42   : > { %13312 = vmatprep.subr.bf16.mxu1 %v22092_v32 }
  0x45   : > { %13313 = vmatpush3.bf16.msra.mxu1 %v14827_v33 }
  0x46   : > { %13314 = vmatprep.subr.bf16.mxu1 %v22092_v32 }
  0x47   : > { %12546 = vmatmul.mubr.msk.bf16.gmra.mrb[24].mxu0 %vm888_vm0, %v14813_v18  ;;  %13283 = vmatmul.mubr.msk.bf16.gmra.mrb[24].mxu1 %vm888_vm0, %v14808_v13 }
  0x48   : > { %1039 = vmatprep.mubr.bf16.mxu0 %v22094_v2  ;;  %13286 = vmatprep.mubr.msk.bf16.mxu1 %vm888_vm0, %v14810_v15 }
  0x49   : > { %13315 = vmatpush3.bf16.msra.mxu1 %v14828_v34  ;;  %v22236_v34 = vmov 0 }
  0x4a   : > { %13316 = vmatprep.subr.bf16.mxu1 %v22092_v32 }
  0x4d   : > { %13317 = vmatpush3.bf16.msra.mxu1 %v14829_v36  ;;  %v14831_v36 = vld [vmem:[%s22084_s2 + $0x28] sm:$0xff]  }
  0x4e   : > { %13318 = vmatprep.subr.bf16.mxu1 %v22092_v32 }
  0x4f   : > { %12547 = vmatmul.mubr.msk.bf16.gmra.mrb[28].mxu0 %vm888_vm0, %v14814_v19  ;;  %13287 = vmatmul.mubr.msk.bf16.gmra.mrb[28].mxu1 %vm888_vm0, %v14812_v17  ;;  %v377_v17 = vand.u32 15, %v317_v62 }
  0x50   : > { %1049 = vmatprep.mubr.bf16.mxu0 %v22094_v2  ;;  %13290 = vmatprep.mubr.msk.bf16.mxu1 %vm888_vm0, %v14813_v18 }
  0x51   : > { %13319 = vmatpush3.bf16.msra.mxu1 %v14830_v52  ;;  %vm15172_vm5 = vcmp.ge.s32.totalorder %v377_v17, 1 }
  0x52   : > { %13320 = vmatprep.subr.bf16.mxu1 %v22092_v32  ;;  %v22237_v34 = vsel %vm15172_vm5, 4294967295, %v22236_v34 }
  0x53   : > { %22238 = vst [vmem:[#allocation5_spill] sm:$0xff] %v22237_v34 }
  0x55   : > { %13321 = vmatpush3.bf16.msra.mxu1 %v14831_v36 }
  0x56   : > { %13322 = vmatprep.subr.bf16.mxu1 %v22092_v32 }
  0x57   : > { %12548 = vmatmul.mubr.msk.bf16.gmra.mrb[32].mxu0 %vm888_vm0, %v14815_v20  ;;  %13291 = vmatmul.mubr.msk.bf16.gmra.mrb[32].mxu1 %vm888_vm0, %v14814_v19 }
  0x58   : > { %1059 = vmatprep.mubr.bf16.mxu0 %v22094_v2  ;;  %13294 = vmatprep.mubr.msk.bf16.mxu1 %vm888_vm0, %v14815_v20 }
  0x5f   : > { %12549 = vmatmul.mubr.msk.bf16.gmra.mrb[36].mxu0 %vm888_vm0, %v14816_v21  ;;  %13295 = vmatmul.mubr.msk.bf16.gmra.mrb[36].mxu1 %vm888_vm0, %v14816_v21 }
  0x60   : > { %1069 = vmatprep.mubr.bf16.mxu0 %v22094_v2  ;;  %13298 = vmatprep.mubr.msk.bf16.mxu1 %vm888_vm0, %v14817_v22 }
  0x67   : > { %12550 = vmatmul.mubr.msk.bf16.gmra.mrb[40].mxu0 %vm888_vm0, %v14817_v22  ;;  %13299 = vmatmul.mubr.msk.bf16.gmra.mrb[40].mxu1 %vm888_vm0, %v14801_v8 }
  0x68   : > { %13302 = vmatprep.mubr.msk.bf16.mxu1 %vm888_vm0, %v14804_v10 }
  0x6f   : > { %13303 = vmatmul.mubr.msk.bf16.gmra.mrb[44].mxu1 %vm888_vm0, %v14806_v12 }
  0x70   : > { %13306 = vmatprep.mubr.msk.bf16.mxu1 %vm888_vm0, %v14809_v14 }
  0x77   : > { %13307 = vmatmul.mubr.msk.bf16.gmra.mrb[48].mxu1 %vm888_vm0, %v14811_v16  ;;  %v531_v16 = vand.u32 15, %v339_v61  ;;  %v15193_v61 = vadd.s32 80, %v15105_v37 }
  0x78   : > { %13326 = vmatprep.mubr.msk.bf16.mxu1 %vm22107_vm8, %v22092_v32 }
  0x79   : > { %vm15168_vm4 = vcmp.ge.s32.totalorder %v531_v16, 1 }
  0x7a   : > { %v22234_v27 = vsel %vm15168_vm4, 4294967295, %v22233_v27 }
  0x7b   : > { %22235 = vst [vmem:[#allocation4_spill] sm:$0xff] %v22234_v27 }
  0xea   : > { %v15107_v38 = vpop.f32.mrb[0].mxu1  ;;  %v15109_v39 = vpop.f32.mrb[0].mxu0 }
  0xeb   : > { %v15111_v40 = vpop.f32.mrb[1].mxu1  ;;  %v1291_v41 = vrot.slane %v15109_v39, 7  ;;  %v15114_v42 = vpop.f32.mrb[1].mxu0  ;;  %v22096_v47 = vrot.slane %v15107_v38, 7 }
  0xec   : > { %v1085_v45 = vpop.f32.mrb[2].mxu1  ;;  %v975_v46 = vpop.f32.mrb[2].mxu0 }
  0xed   : > { %v1314_v48 = vrot.slane %v1085_v45, 7  ;;  %v1087_v49 = vpop.f32.mrb[3].mxu1  ;;  %v1292_v50 = vrot.slane %v975_v46, 7  ;;  %v977_v51 = vpop.f32.mrb[3].mxu0  ;;  %v391_v46 = vand.u32 15, %v319_v25  ;;  %v419_v25 = vand.u32 15, %v15193_v61 }
  0xee   : > { %v22250_v61 = vmov 0 }
  0xef   : > { %v1332_v53 = vsel %vm22126_vm1, %v22096_v47, %v1314_v48  ;;  %v1354_v55 = vsel %vm22126_vm1, %v1291_v41, %v1292_v50  ;;  %vm15212_vm7 = vcmp.ge.s32.totalorder %v391_v46, 1  ;;  %vm15284_vm12 = vcmp.ge.s32.totalorder %v419_v25, 1 }
  0xf0   : > { %v15131_v57 = vadd.f32 %v1332_v53, %v1087_v49  ;;  %v15133_v58 = vadd.f32 %v1354_v55, %v977_v51  ;;  %v14832_v55 = vld [vmem:[%s22084_s2 + $0x30] sm:$0xff]   ;;  %v15302_v25 = vadd.s32 136, %v15105_v37  ;;  %v22259_v47 = vmov 0 }
  0xf1   : > { %13323 = vmatpush3.bf16.msra.mxu1 %v14832_v55 }
  0xf2   : > { %v1091_v59 = vpop.f32.mrb[4].mxu1  ;;  %v981_v60 = vpop.f32.mrb[4].mxu0  ;;  %13324 = vmatprep.subr.bf16.mxu1 %v22092_v32 }
  0xf3   : > { %v1315_v63 = vrot.slane %v1091_v59, 7  ;;  %v1093_v0 = vpop.f32.mrb[5].mxu1  ;;  %v1293_v3 = vrot.slane %v981_v60, 7  ;;  %v983_v4 = vpop.f32.mrb[5].mxu0  ;;  %v321_v60 = vadd.s32 64, %v15105_v37 }
  0xf4   : > { %v1095_v6 = vpop.f32.mrb[6].mxu1  ;;  %v985_v7 = vpop.f32.mrb[6].mxu0 }
  0xf5   : > { %v1331_v8 = vsel %vm22126_vm1, %v1314_v48, %v1315_v63  ;;  %v1316_v9 = vrot.slane %v1095_v6, 7  ;;  %v1097_v10 = vpop.f32.mrb[7].mxu1  ;;  %v1353_v11 = vsel %vm22126_vm1, %v1292_v50, %v1293_v3  ;;  %v1294_v12 = vrot.slane %v985_v7, 7  ;;  %v987_v13 = vpop.f32.mrb[7].mxu0 }
  0xf6   : > { %v1540_v14 = vsel %vm15138_vm2, %v1331_v8, 0.0  ;;  %v1518_v15 = vsel %vm15142_vm3, %v1353_v11, 0.0  ;;  %v343_v48 = vadd.s32 240, %v15105_v37  ;;  %v22239_v7 = vmov 0 }
  0xf7   : > { %v15154_v18 = vadd.f32 %v1540_v14, %v1093_v0  ;;  %v1330_v19 = vsel %vm22126_vm1, %v1315_v63, %v1316_v9  ;;  %v15158_v20 = vadd.f32 %v1518_v15, %v983_v4  ;;  %v1352_v21 = vsel %vm22126_vm1, %v1293_v3, %v1294_v12  ;;  %v14836_v15 = vld [vmem:[%s22085_s3 + $0x4] ss:$12 sps:$4 sm:$0xff]  }
  0xf8   : > { %v15162_v22 = vadd.f32 %v1330_v19, %v1097_v10  ;;  %v15164_v23 = vadd.f32 %v1352_v21, %v987_v13  ;;  %v22240_v7 = vsel %vm15208_vm6, 4294967295, %v22239_v7  ;;  %v22242_v8 = vmov 0  ;;  %v14833_v10 = vld [vmem:[%s22084_s2 + $0x38] sm:$0xff]  }
  0xf9   : > { %22241 = vst [vmem:[#allocation6_spill] sm:$0xff] %v22240_v7  ;;  %v22243_v8 = vsel %vm15212_vm7, 4294967295, %v22242_v8  ;;  %v349_v13 = vand.u32 15, %v15105_v37  ;;  %v405_v14 = vand.u32 15, %v321_v60  ;;  %13325 = vmatpush3.bf16.msra.mxu1 %v14833_v10  ;;  %v22247_v60 = vmov 0 }
  0xfa   : > { %v1101_v26 = vpop.f32.mrb[8].mxu1  ;;  %v991_v28 = vpop.f32.mrb[8].mxu0  ;;  %22244 = vst [vmem:[#allocation7_spill] sm:$0xff] %v22243_v8  ;;  %2407 = vmatprep.subr.bf16.mxu1 %v14836_v15  ;;  %v356_v10 = vand.u32 15, %v314_v24  ;;  %v22256_v24 = vmov 0 }
  0xfb   : > { %v1317_v29 = vrot.slane %v1101_v26, 7  ;;  %v1103_v30 = vpop.f32.mrb[9].mxu1  ;;  %v1295_v31 = vrot.slane %v991_v28, 7  ;;  %v993_v33 = vpop.f32.mrb[9].mxu0  ;;  %vm15268_vm10 = vcmp.ge.s32.totalorder %v349_v13, 1  ;;  %vm15274_vm11 = vcmp.ge.s32.totalorder %v405_v14, 1 }
  0xfc   : > { %v1105_v43 = vpop.f32.mrb[10].mxu1  ;;  %v995_v45 = vpop.f32.mrb[10].mxu0  ;;  %v22251_v61 = vsel %vm15268_vm10, 4294967295, %v22250_v61  ;;  %v22257_v24 = vsel %vm15284_vm12, 4294967295, %v22256_v24  ;;  %vm15315_vm14 = vcmp.lt.s32.totalorder %v356_v10, 15 }
  0xfd   : > { %v1329_v49 = vsel %vm22126_vm1, %v1316_v9, %v1317_v29  ;;  %v1318_v50 = vrot.slane %v1105_v43, 7  ;;  %v1107_v51 = vpop.f32.mrb[11].mxu1  ;;  %v1351_v52 = vsel %vm22126_vm1, %v1294_v12, %v1295_v31  ;;  %v1296_v53 = vrot.slane %v995_v45, 7  ;;  %v997_v54 = vpop.f32.mrb[11].mxu0  ;;  %22252 = vst [vmem:[#allocation11_spill] sm:$0xff] %v22251_v61  ;;  %22258 = vst [vmem:[#allocation13_spill] sm:$0xff] %v22257_v24 }
  0xfe   : > { %v1542_v56 = vsel %vm15168_vm4, %v1329_v49, 0.0  ;;  %v1520_v59 = vsel %vm15172_vm5, %v1351_v52, 0.0  ;;  %v559_v9 = vand.u32 15, %v343_v48  ;;  %v15249_v52 = vadd.s32 72, %v15105_v37 }
  0xff   : > { %v15196_v62 = vadd.f32 %v1542_v56, %v1103_v30  ;;  %v1328_v63 = vsel %vm22126_vm1, %v1317_v29, %v1318_v50  ;;  %v15200_v0 = vadd.f32 %v1520_v59, %v993_v33  ;;  %v1350_v3 = vsel %vm22126_vm1, %v1295_v31, %v1296_v53 }
 0x100   : > { %v15204_v4 = vadd.f32 %v1328_v63, %v1107_v51  ;;  %v15206_v6 = vadd.f32 %v1350_v3, %v997_v54  ;;  %v15229_v29 = vadd.s32 24, %v15105_v37  ;;  %v15232_v30 = vadd.s32 40, %v15105_v37 }
 0x101   : > { %v15235_v31 = vadd.s32 96, %v15105_v37  ;;  %v15238_v33 = vadd.s32 56, %v15105_v37  ;;  %v15252_v54 = vadd.s32 112, %v15105_v37  ;;  %vm15264_vm9 = vcmp.ge.s32.totalorder %v559_v9, 1 }
 0x102   : > { %v1111_v11 = vpop.f32.mrb[12].mxu1  ;;  %v1001_v12 = vpop.f32.mrb[12].mxu0  ;;  %v22248_v60 = vsel %vm15264_vm9, 4294967295, %v22247_v60  ;;  %v22253_v3 = vmov 0  ;;  %v22260_v47 = vsel %vm15315_vm14, 4294967295, %v22259_v47  ;;  %v22269_v1 = vand.u32 15, %v15232_v30 }
 0x103   : > { %v1319_v16 = vrot.slane %v1111_v11, 7  ;;  %v1113_v17 = vpop.f32.mrb[13].mxu1  ;;  %v1297_v19 = vrot.slane %v1001_v12, 7  ;;  %v1003_v21 = vpop.f32.mrb[13].mxu0  ;;  %22249 = vst [vmem:[#allocation10_spill] sm:$0xff] %v22248_v60  ;;  %v22254_v3 = vsel %vm15274_vm11, 4294967295, %v22253_v3 }
 0x104   : > { %v1115_v26 = vpop.f32.mrb[14].mxu1  ;;  %v1005_v28 = vpop.f32.mrb[14].mxu0  ;;  %22255 = vst [vmem:[#allocation12_spill] sm:$0xff] %v22254_v3  ;;  %v370_v11 = vand.u32 15, %v15229_v29  ;;  %v15289_v29 = vadd.s32 88, %v15105_v37  ;;  %22261 = vst [vmem:[#allocation14_spill] sm:$0xff] %v22260_v47 }
 0x105   : > { %v1327_v36 = vsel %vm22126_vm1, %v1318_v50, %v1319_v16  ;;  %v1320_v43 = vrot.slane %v1115_v26, 7  ;;  %v1117_v44 = vpop.f32.mrb[15].mxu1  ;;  %v1349_v45 = vsel %vm22126_vm1, %v1296_v53, %v1297_v19  ;;  %v1298_v46 = vrot.slane %v1005_v28, 7  ;;  %v1007_v48 = vpop.f32.mrb[15].mxu0 }
 0x106   : > { %v1544_v49 = vsel %vm15208_vm6, %v1327_v36, 0.0  ;;  %v1522_v51 = vsel %vm15212_vm7, %v1349_v45, 0.0  ;;  %v15292_v36 = vadd.s32 104, %v15105_v37  ;;  %v15296_v45 = vadd.s32 128, %v15105_v37 }
 0x107   : > { %v15254_v50 = vadd.f32 %v1544_v49, %v1113_v17  ;;  %v1326_v53 = vsel %vm22126_vm1, %v1319_v16, %v1320_v43  ;;  %v15258_v55 = vadd.f32 %v1522_v51, %v1003_v21  ;;  %v1348_v56 = vsel %vm22126_vm1, %v1297_v19, %v1298_v46 }
 0x108   : > { %v15262_v59 = vadd.f32 %v1326_v53, %v1117_v44  ;;  %v15272_v63 = vadd.f32 %v1348_v56, %v1007_v48  ;;  %v433_v16 = vand.u32 15, %v15235_v31  ;;  %v15299_v48 = vadd.s32 120, %v15105_v37 }
 0x109   : > { %22245 = vst [vmem:[#allocation8_spill] sm:$0xff] %v15254_v50  ;;  %v15305_v49 = vadd.s32 144, %v15105_v37  ;;  %v15320_v19 = vadd.s32 160, %v15105_v37  ;;  %vm15364_vm0 = vcmp.lt.s32.totalorder %v370_v11, 15  ;;  %vm15385_vm8 = vcmp.lt.s32.totalorder %v22269_v1, 15 }
 0x10a   : > { %22246 = vst [vmem:[#allocation9_spill] sm:$0xff] %v15262_v59  ;;  %v1121_v15 = vpop.f32.mrb[16].mxu1  ;;  %v1011_v9 = vpop.f32.mrb[16].mxu0  ;;  %vm15355_vm15 = vcmp.ge.s32.totalorder %v433_v16, 1  ;;  %v15370_v16 = vadd.s32 184, %v15105_v37  ;;  %v22270_v3 = vmov 0 }
 0x10b   : > { %v1321_v21 = vrot.slane %v1121_v15, 7  ;;  %v1123_v14 = vpop.f32.mrb[17].mxu1  ;;  %v1299_v26 = vrot.slane %v1011_v9, 7  ;;  %v1013_v28 = vpop.f32.mrb[17].mxu0  ;;  %v22271_v3 = vsel %vm15385_vm8, 4294967295, %v22270_v3  ;;  %v15404_v1 = vadd.s32 232, %v15105_v37 }
 0x10c   : > { %v1125_v31 = vpop.f32.mrb[18].mxu1  ;;  %v1015_v44 = vpop.f32.mrb[18].mxu0  ;;  %22272 = vst [vmem:[#allocation18_spill] sm:$0xff] %v22271_v3  ;;  %v22273_v59 = vand.u32 15, %v15238_v33 }
 0x10d   : > { %v1325_v51 = vsel %vm22126_vm1, %v1320_v43, %v1321_v21  ;;  %v1322_v53 = vrot.slane %v1125_v31, 7  ;;  %v1127_v56 = vpop.f32.mrb[19].mxu1  ;;  %v1347_v15 = vsel %vm22126_vm1, %v1298_v46, %v1299_v26  ;;  %v1300_v9 = vrot.slane %v1015_v44, 7  ;;  %v1017_v35 = vpop.f32.mrb[19].mxu0 }
 0x10e   : > { %v1546_v32 = vsel %vm15264_vm9, %v1325_v51, 0.0  ;;  %v1524_v2 = vsel %vm15274_vm11, %v1347_v15, 0.0  ;;  %v15323_v43 = vadd.s32 152, %v15105_v37 }
 0x10f   : > { %v15325_v31 = vadd.f32 %v1546_v32, %v1123_v14  ;;  %v1355_v46 = vsel %vm22126_vm1, %v1322_v53, %v1291_v41  ;;  %v1324_v44 = vsel %vm22126_vm1, %v1321_v21, %v1322_v53  ;;  %v15333_v10 = vadd.f32 %v1524_v2, %v1013_v28 }
 0x110   : > { %v1516_v51 = vsel %vm15268_vm10, %v1355_v46, 0.0  ;;  %v15337_v15 = vadd.f32 %v1324_v44, %v1127_v56  ;;  %v1346_v17 = vsel %vm22126_vm1, %v1299_v26, %v1300_v9  ;;  %v15342_v32 = vadd.s32 176, %v15105_v37 }
 0x111   : > { %v1548_v39 = vadd.f32 %v1516_v51, %v15114_v42  ;;  %v15345_v14 = vadd.f32 %v1346_v17, %v1017_v35  ;;  %v22263_v35 = vmov 0  ;;  %v15362_v53 = vadd.s32 168, %v15105_v37 }
 0x112   : > { %22262 = vst [vmem:[#allocation15_spill] sm:$0xff] %v15337_v15  ;;  %v13280_v21 = vpop.f32.mrb[20].mxu1  ;;  %v1021_v28 = vpop.f32.mrb[20].mxu0  ;;  %v22264_v35 = vsel %vm15355_vm15, 4294967295, %v22263_v35  ;;  %v22266_v46 = vmov 0  ;;  %v15373_v2 = vadd.s32 200, %v15105_v37 }
 0x113   : > { %v15353_v44 = vpop.f32.mrb[21].mxu1  ;;  %v1301_v13 = vrot.slane %v1021_v28, 7  ;;  %v1023_v42 = vpop.f32.mrb[21].mxu0  ;;  %22265 = vst [vmem:[#allocation16_spill] sm:$0xff] %v22264_v35  ;;  %v22267_v46 = vsel %vm15364_vm0, 4294967295, %v22266_v46  ;;  %v15376_v17 = vadd.s32 216, %v15105_v37 }
 0x114   : > { %v13281_v56 = vpop.f32.mrb[22].mxu1  ;;  %22268 = vst [vmem:[#allocation17_spill] sm:$0xff] %v22267_v46  ;;  %v1025_v26 = vpop.f32.mrb[22].mxu0  ;;  %v1582_v51 = vrot.slane %v13280_v21, 1  ;;  %v22118_v7 = vrot.slane %v15353_v44, 1  ;;  %v15390_v21 = vadd.s32 248, %v15105_v37 }
 0x115   : > { %v1583_v41 = vrot.slane %v13281_v56, 1  ;;  %v1167_v12 = vpop.f32.mrb[23].mxu1  ;;  %v1345_v11 = vsel %vm22126_vm1, %v1300_v9, %v1301_v13  ;;  %v1302_v61 = vrot.slane %v1025_v26, 7  ;;  %v1027_v60 = vpop.f32.mrb[23].mxu0  ;;  %v15395_v9 = vld [vmem:[%s22089_s7] ss:$0 sm:$0xff] }
 0x116   : > { %v1581_v28 = vrot.slane %v1167_v12, 1  ;;  %v1526_v27 = vsel %vm15284_vm12, %v1345_v11, 0.0  ;;  %vm22277_vm10 = vcmp.lt.s32.totalorder %v15105_v37, 7  ;;  %v22279_v15 = vmov 0 }
 0x117   : > { %v1641_v12 = vsel %vm22119_vm13, %v1582_v51, %v1583_v41  ;;  %v15399_v56 = vadd.f32 %v1526_v27, %v1023_v42  ;;  %v1344_v30 = vsel %vm22126_vm1, %v1301_v13, %v1302_v61 }
 0x118   : > { %v1839_v26 = vadd.f32 %v1641_v12, %v15158_v20  ;;  %v1642_v11 = vsel %vm22119_vm13, %v1581_v28, %v1582_v51  ;;  %v1643_v24 = vsel %vm22119_vm13, %v22118_v7, %v1581_v28  ;;  %v15413_v8 = vadd.f32 %v1344_v30, %v1027_v60 }
 0x119   : > { %v1806_v27 = vsel %vm15315_vm14, %v1642_v11, 0.0  ;;  %v1837_v42 = vadd.f32 %v1643_v24, %v1548_v39  ;;  %vm15432_vm13 = vcmp.lt.s32.totalorder %v22273_v59, 15  ;;  %v22274_v60 = vmov 0 }
 0x11a   : > { %v15420_v20 = vadd.f32 %v15395_v9, %v1839_v26  ;;  %v1838_v51 = vadd.f32 %v1806_v27, %v15133_v58  ;;  %v13284_v12 = vpop.f32.mrb[24].mxu1  ;;  %v1031_v5 = vpop.f32.mrb[24].mxu0  ;;  %v22275_v60 = vsel %vm15432_vm13, 4294967295, %v22274_v60  ;;  %v22278_v59 = vand.u32 15, %v15249_v52 }
 0x11b   : > { %v1180_v28 = vpop.f32.mrb[25].mxu1  ;;  %v1303_v30 = vrot.slane %v1031_v5, 7  ;;  %v1873_v11 = vadd.f32 %v15395_v9, %v1837_v42  ;;  %v1033_v24 = vpop.f32.mrb[25].mxu0  ;;  %v1586_v34 = vrot.slane %v13284_v12, 1  ;;  %22276 = vst [vmem:[#allocation19_spill] sm:$0xff] %v22275_v60 }
 0x11c   : > { %v1907_v26 = vmax.f32 %v15420_v20, 0.0  ;;  %v1584_v13 = vrot.slane %v1180_v28, 1  ;;  %v13285_v58 = vpop.f32.mrb[26].mxu1  ;;  %v1874_v27 = vadd.f32 %v15395_v9, %v1838_v51  ;;  %v1035_v5 = vpop.f32.mrb[26].mxu0  ;;  %vm15444_vm9 = vcmp.lt.s32.totalorder %v22278_v59, 15 }
 0x11d   : > { %v1587_v42 = vrot.slane %v13285_v58, 1  ;;  %v1183_v47 = vpop.f32.mrb[27].mxu1  ;;  %v1905_v50 = vmax.f32 %v1873_v11, 0.0  ;;  %v1343_v7 = vsel %vm22126_vm1, %v1302_v61, %v1303_v30  ;;  %v1304_v39 = vrot.slane %v1035_v5, 7  ;;  %v1037_v20 = vpop.f32.mrb[27].mxu0  ;;  %vm22282_vm1 = vmmov %vm22277_vm10 }
 0x11e   : > { %v1640_v12 = vsel %vm22277_vm10, %v1583_v41, %v1584_v13  ;;  %v1585_v28 = vrot.slane %v1183_v47, 1  ;;  %v1906_v51 = vmax.f32 %v1874_v27, 0.0  ;;  %v1528_v33 = vsel %vm15355_vm15, %v1343_v7, 0.0  ;;  %vm22284_vm6 = vmmov %vm22282_vm1 }
 0x11f   : > { %v22280_v15 = vsel %vm15444_vm9, 4294967295, %v22279_v15  ;;  %v1808_v11 = vsel %vm15364_vm0, %v1640_v12, 0.0  ;;  %v1637_v61 = vsel %vm22282_vm1, %v1586_v34, %v1587_v42  ;;  %v15452_v58 = vadd.f32 %v1528_v33, %v1033_v24  ;;  %vm22285_vm4 = vmmov %vm22282_vm1 }
 0x120   : > { %22281 = vst [vmem:[#allocation20_spill] sm:$0xff] %v22280_v15  ;;  %vm22283_vm10 = vcmp.lt.s32.totalorder %v15105_v37, 1  ;;  %v1840_v41 = vadd.f32 %v1808_v11, %v15164_v23  ;;  %v1843_v7 = vadd.f32 %v1637_v61, %v15258_v55  ;;  %v1638_v52 = vsel %vm22284_vm6, %v1585_v28, %v1586_v34 }
 0x121   : > { %v1342_v47 = vsel %vm22283_vm10, %v1303_v30, %v1304_v39  ;;  %v1639_v27 = vsel %vm22285_vm4, %v1584_v13, %v1585_v28  ;;  %v22286_v5 = vand.u32 15, %v15252_v54  ;;  %v22287_v12 = vmov 0  ;;  %vm22295_vm4 = vmmov %vm22283_vm10 }
 0x122   : > { %v1810_v24 = vsel %vm15385_vm8, %v1638_v52, 0.0  ;;  %v1841_v30 = vadd.f32 %v1639_v27, %v15200_v0  ;;  %v1937_v23 = vmax.f32 %v1905_v50, %v1906_v51  ;;  %v15471_v33 = vpack.c.bf16 %v1906_v51, %v1905_v50  ;;  %v13288_v59 = vpop.f32.mrb[28].mxu1  ;;  %v15477_v54 = vpop.f32.mrb[28].mxu0  ;;  %vm22297_vm10 = vmmov %vm22284_vm6 }
 0x123   : > { %vm15464_vm2 = vcmp.ge.s32.totalorder %v22286_v5, 1  ;;  %v1876_v55 = vadd.f32 %v15395_v9, %v1840_v41  ;;  %v1842_v34 = vadd.f32 %v1810_v24, %v15206_v6  ;;  %v15475_v13 = vadd.f32 %v1342_v47, %v1037_v20  ;;  %v1196_v0 = vpop.f32.mrb[29].mxu1  ;;  %v1043_v41 = vpop.f32.mrb[29].mxu0 }
 0x124   : > { %v22288_v12 = vsel %vm15464_vm2, 4294967295, %v22287_v12  ;;  %22290 = vst [vmem:[#allocation22_spill] sm:$0xff] %v15471_v33  ;;  %v15480_v28 = vadd.f32 %v15395_v9, %v1843_v7  ;;  %v1590_v11 = vrot.slane %v13288_v59, 1  ;;  %v1938_v61 = vrot.slane %v1937_v23, 4  ;;  %13346 = vmatprep.mubr.bf16.mxu0 %v15471_v33  ;;  %v13289_v27 = vpop.f32.mrb[30].mxu1  ;;  %v15492_v5 = vpop.f32.mrb[30].mxu0 }
 0x125   : > { %22289 = vst [vmem:[#allocation21_spill] sm:$0xff] %v22288_v12  ;;  %v1877_v51 = vadd.f32 %v15395_v9, %v1841_v30  ;;  %v1908_v52 = vmax.f32 %v1876_v55, 0.0  ;;  %v1588_v6 = vrot.slane %v1196_v0, 1  ;;  %v1878_v20 = vadd.f32 %v15395_v9, %v1842_v34  ;;  %v1199_v35 = vpop.f32.mrb[31].mxu1  ;;  %v1047_v34 = vpop.f32.mrb[31].mxu0 }
 0x126   : > { %v22291_v47 = vand.u32 15, %v15289_v29  ;;  %v22292_v7 = vmov 0  ;;  %v1939_v59 = vmax.f32 %v1937_v23, %v1938_v61  ;;  %v1591_v50 = vrot.slane %v13289_v27, 1 }
 0x127   : > { %v1909_v30 = vmax.f32 %v1877_v51, 0.0  ;;  %v22294_v55 = vrot.slane %v15477_v54, 7  ;;  %v1944_v3 = vmax.f32 %v1907_v26, %v1908_v52  ;;  %v15499_v29 = vpack.c.bf16 %v1908_v52, %v1907_v26 }
 0x128   : > { %vm15488_vm1 = vcmp.lt.s32.totalorder %v22291_v47, 15  ;;  %v1636_v47 = vsel %vm22284_vm6, %v1587_v42, %v1588_v6  ;;  %v1589_v46 = vrot.slane %v1199_v35, 1  ;;  %v1940_v33 = vrot.slane %v1939_v59, 2 }
 0x129   : > { %v22293_v7 = vsel %vm15488_vm1, 4294967295, %v22292_v7  ;;  %v1341_v0 = vsel %vm22295_vm4, %v1304_v39, %v22294_v55  ;;  %22296 = vst [vmem:[#allocation23_spill] sm:$0xff] %v15499_v29  ;;  %v1812_v23 = vsel %vm15432_vm13, %v1636_v47, 0.0  ;;  %v1633_v61 = vsel %vm22297_vm10, %v1590_v11, %v1591_v50  ;;  %vm22301_vm4 = vmmov %vm22284_vm6  ;;  %13347 = vmatmul.mubr.bf16.vlgmr.msra.gmra.mrb[44].mxu0 %v15499_v29 }
 0x12a   : > { %v1910_v51 = vmax.f32 %v1878_v20, 0.0  ;;  %v22298_v27 = vand.u32 15, %v15292_v36  ;;  %v22299_v39 = vmov 0  ;;  %v1945_v26 = vrot.slane %v1944_v3, 4  ;;  %vm22306_vm10 = vmmov %vm22301_vm4 }
 0x12b   : > { %v15514_v52 = vadd.f32 %v1812_v23, %v15272_v63  ;;  %v15517_v35 = vadd.f32 %v1633_v61, %v15399_v56  ;;  %v1634_v42 = vsel %vm22301_vm4, %v1589_v46, %v1590_v11  ;;  %v22302_v20 = vand.u32 15, %v15296_v45  ;;  %v13292_v45 = vpop.f32.mrb[32].mxu1 }
 0x12c   : > { %vm15509_vm15 = vcmp.lt.s32.totalorder %v22298_v27, 15  ;;  %v22303_v36 = vmov 0  ;;  %v1941_v55 = vmax.f32 %v1939_v59, %v1940_v33  ;;  %v1635_v47 = vsel %vm22306_vm10, %v1588_v6, %v1589_v46  ;;  %v1212_v6 = vpop.f32.mrb[33].mxu1  ;;  %vm22308_vm10 = vmmov %vm22301_vm4 }
 0x12d   : > { %v22300_v39 = vsel %vm15509_vm15, 4294967295, %v22299_v39  ;;  %vm15524_vm6 = vcmp.ge.s32.totalorder %v22302_v20, 1  ;;  %v1814_v63 = vsel %vm15444_vm9, %v1634_v42, 0.0  ;;  %v1951_v56 = vmax.f32 %v1909_v30, %v1910_v51  ;;  %v1051_v20 = vpop.f32.mrb[32].mxu0 }
 0x12e   : > { %v22304_v36 = vsel %vm15524_vm6, 4294967295, %v22303_v36  ;;  %v1946_v23 = vmax.f32 %v1944_v3, %v1945_v26  ;;  %v15533_v61 = vadd.f32 %v1635_v47, %v15333_v10  ;;  %v15536_v11 = vadd.f32 %v1814_v63, %v15345_v14  ;;  %v1053_v42 = vpop.f32.mrb[33].mxu0  ;;  %v15544_v26 = vpop.f32.mrb[34].mxu1 }
 0x12f   : > { %22305 = vst [vmem:[#allocation24_spill] sm:$0xff] %v22304_v36  ;;  %v15538_v27 = vpack.c.bf16 %v1910_v51, %v1909_v30  ;;  %v1942_v24 = vrot.slane %v1941_v55, 1  ;;  %v1594_v33 = vrot.slane %v13292_v45, 1  ;;  %v1952_v59 = vrot.slane %v1951_v56, 4  ;;  %v15546_v30 = vpop.f32.mrb[34].mxu0  ;;  %v1215_v45 = vpop.f32.mrb[35].mxu1 }
 0x130   : > { %v1530_v46 = vsel %vm15464_vm2, %v1341_v0, 0.0  ;;  %v1947_v15 = vrot.slane %v1946_v23, 2  ;;  %v1592_v10 = vrot.slane %v1212_v6, 1  ;;  %v1306_v14 = vrot.slane %v15492_v5, 7  ;;  %v1057_v12 = vpop.f32.mrb[35].mxu0 }
 0x131   : > { %22307 = vst [vmem:[#allocation25_spill] sm:$0xff] %v15538_v27  ;;  %13350 = vmatprep.mubr.bf16.mxu0 %v15538_v27  ;;  %v1562_v3 = vadd.f32 %v1530_v46, %v1043_v41  ;;  %v1943_v51 = vmax.f32 %v1941_v55, %v1942_v24  ;;  %v1953_v47 = vmax.f32 %v1951_v56, %v1952_v59  ;;  %v1595_v63 = vrot.slane %v15544_v26, 1 }
 0x132   : > { %v1307_v0 = vrot.slane %v1051_v20, 7  ;;  %v1948_v60 = vmax.f32 %v1946_v23, %v1947_v15  ;;  %v1632_v27 = vsel %vm22308_vm10, %v1591_v50, %v1592_v10  ;;  %v22309_v41 = vrot.slane %v15477_v54, 7 }
 0x133   : > { %vm22310_vm2 = vcmp.lt.s32.totalorder %v15105_v37, 1  ;;  %v1593_v46 = vrot.slane %v1215_v45, 1  ;;  %v2049_v6 = vpack.c.bf16 %v1943_v51, %v1943_v51  ;;  %v1954_v29 = vrot.slane %v1953_v47, 2 }
 0x134   : > { %v1340_v5 = vsel %vm22310_vm2, %v22309_v41, %v1306_v14  ;;  %v1816_v24 = vsel %vm15488_vm1, %v1632_v27, 0.0  ;;  %v1629_v55 = vsel %vm22301_vm4, %v1594_v33, %v1595_v63  ;;  %v22311_v56 = vand.u32 15, %v15299_v48  ;;  %vm22315_vm2 = vmmov %vm22301_vm4 }
 0x135   : > { %v22312_v15 = vmov 0  ;;  %v1949_v50 = vrot.slane %v1948_v60, 1  ;;  %v15566_v54 = vadd.f32 %v1816_v24, %v15413_v8  ;;  %v15568_v23 = vadd.f32 %v1629_v55, %v1562_v3  ;;  %vm22316_vm4 = vmmov %vm22315_vm2  ;;  %v13296_v3 = vpop.f32.mrb[36].mxu1 }
 0x136   : > { %vm15561_vm12 = vcmp.lt.s32.totalorder %v22311_v56, 15  ;;  %v1563_v20 = vadd.f32 %v1340_v5, %v1047_v34  ;;  %v2101_v59 = vunpack.c.l.b16 %v2049_v6  ;;  %v1955_v26 = vmax.f32 %v1953_v47, %v1954_v29 }
 0x137   : > { %v22313_v15 = vsel %vm15561_vm12, 4294967295, %v22312_v15  ;;  %v1630_v27 = vsel %vm22315_vm2, %v1593_v46, %v1594_v33  ;;  %v1631_v48 = vsel %vm22316_vm4, %v1592_v10, %v1593_v46  ;;  %v22317_v51 = vand.u32 15, %v15302_v25  ;;  %v15587_v33 = vpop.f32.mrb[36].mxu0  ;;  %v1228_v46 = vpop.f32.mrb[37].mxu1 }
 0x138   : > { %22314 = vst [vmem:[#allocation26_spill] sm:$0xff] %v22313_v15  ;;  %v22318_v45 = vmov 0  ;;  %v1950_v41 = vmax.f32 %v1948_v60, %v1949_v50  ;;  %v1818_v8 = vsel %vm15509_vm15, %v1630_v27, 0.0  ;;  %v15583_v34 = vadd.f32 %v1631_v48, %v15452_v58  ;;  %v15604_v56 = vpop.f32.mrb[38].mxu1 }
 0x139   : > { %vm15576_vm1 = vcmp.lt.s32.totalorder %v22317_v51, 15  ;;  %vm22321_vm10 = vcmp.lt.s32.totalorder %v15105_v37, 1  ;;  %v22322_v10 = vand.u32 15, %v15305_v49  ;;  %v22323_v25 = vmov 0  ;;  %v1231_v51 = vpop.f32.mrb[39].mxu1 }
 0x13a   : > { %v22319_v45 = vsel %vm15576_vm1, 4294967295, %v22318_v45  ;;  %v1339_v29 = vsel %vm22321_vm10, %v1306_v14, %v1307_v0  ;;  %v1956_v47 = vrot.slane %v1955_v26, 1  ;;  %v15596_v60 = vadd.f32 %v1818_v8, %v15475_v13  ;;  %v1063_v14 = vpop.f32.mrb[37].mxu0 }
 0x13b   : > { %22320 = vst [vmem:[#allocation27_spill] sm:$0xff] %v22319_v45  ;;  %vm15591_vm2 = vcmp.ge.s32.totalorder %v22322_v10, 1  ;;  %v1532_v58 = vsel %vm15524_vm6, %v1339_v29, 0.0  ;;  %v1308_v5 = vrot.slane %v15546_v30, 7  ;;  %v2050_v6 = vpack.c.bf16 %v1950_v41, %v1950_v41  ;;  %v15606_v50 = vpop.f32.mrb[38].mxu0 }
 0x13c   : > { %v22324_v25 = vsel %vm15591_vm2, 4294967295, %v22323_v25  ;;  %v1564_v24 = vadd.f32 %v1532_v58, %v1053_v42  ;;  %v1880_v49 = vadd.f32 %v15395_v9, %v15514_v52  ;;  %v1309_v55 = vrot.slane %v15587_v33, 7  ;;  %v1067_v41 = vpop.f32.mrb[39].mxu0 }
 0x13d   : > { %22325 = vst [vmem:[#allocation28_spill] sm:$0xff] %v22324_v25  ;;  %v1957_v13 = vmax.f32 %v1955_v26, %v1956_v47  ;;  %v1338_v27 = vsel %vm22321_vm10, %v1307_v0, %v1308_v5  ;;  %v1598_v48 = vrot.slane %v13296_v3, 1  ;;  %v1881_v30 = vadd.f32 %v15395_v9, %v15533_v61 }
 0x13e   : > { %v2102_v42 = vunpack.c.l.b16 %v2050_v6  ;;  %v1912_v8 = vmax.f32 %v1880_v49, 0.0  ;;  %v1565_v29 = vadd.f32 %v1338_v27, %v1057_v12  ;;  %v1882_v52 = vadd.f32 %v15395_v9, %v15536_v11 }
 0x13f   : > { %v2051_v33 = vpack.c.bf16 %v1957_v13, %v1957_v13  ;;  %v1913_v10 = vmax.f32 %v1881_v30, 0.0  ;;  %v1596_v58 = vrot.slane %v1228_v46, 1  ;;  %v22166_v26 = vrot.slane %v15604_v56, 1 }
 0x140   : > { %vm22326_vm4 = vcmask 1041409   ;;  %v22327_v0 = vmax.f32 %v15480_v28, 0.0  ;;  %v1914_v6 = vmax.f32 %v1882_v52, 0.0  ;;  %vm22329_vm10 = vcmp.lt.s32.totalorder %v15105_v37, 7 }
 0x141   : > { %v2118_v47 = vsel %vm22326_vm4, %v2102_v42, %v2101_v59  ;;  %v2103_v49 = vunpack.c.l.b16 %v2051_v33  ;;  %v1628_v12 = vsel %vm22329_vm10, %v1595_v63, %v1596_v58  ;;  %v1597_v11 = vrot.slane %v1231_v51, 1  ;;  %v15637_v63 = vpop.f32.mrb[40].mxu0  ;;  %v15639_v51 = vpop.f32.mrb[40].mxu1  ;;  %vm22336_vm4 = vmmov %vm22329_vm10 }
 0x142   : > { %v1958_v3 = vmax.f32 %v22327_v0, %v1912_v8  ;;  %v22328_v61 = vmov %v22327_v0  ;;  %vm22330_vm6 = vcmp.lt.s32.totalorder %v15105_v37, 1  ;;  %v22331_v13 = vand.u32 15, %v15320_v19  ;;  %vm22337_vm10 = vmmov %vm22336_vm4  ;;  %v1073_v33 = vpop.f32.mrb[41].mxu0 }
 0x143   : > { %v15620_v36 = vpack.c.bf16 %v1912_v8, %v22328_v61  ;;  %v1337_v46 = vsel %vm22330_vm6, %v1308_v5, %v1309_v55  ;;  %v22332_v59 = vmov 0  ;;  %v1965_v28 = vmax.f32 %v1913_v10, %v1914_v6 }
 0x144   : > { %vm15628_vm15 = vcmp.ge.s32.totalorder %v22331_v13, 1  ;;  %v1959_v27 = vrot.slane %v1958_v3, 4  ;;  %v15633_v30 = vpack.c.bf16 %v1914_v6, %v1913_v10  ;;  %v1820_v42 = vsel %vm15561_vm12, %v1628_v12, 0.0  ;;  %v15650_v10 = vpop.f32.mrb[41].mxu1 }
 0x145   : > { %v22333_v59 = vsel %vm15628_vm15, 4294967295, %v22332_v59  ;;  %13351 = vmatmul.mubr.bf16.gmra.mrb[48].mxu0 %v15620_v36  ;;  %vm22335_vm6 = vcmask 1042434   ;;  %v15644_v19 = vadd.f32 %v1820_v42, %v1563_v20  ;;  %v1626_v8 = vsel %vm22336_vm4, %v1597_v11, %v1598_v48  ;;  %v15657_v20 = vpop.f32.mrb[42].mxu0 }
 0x146   : > { %22334 = vst [vmem:[#allocation29_spill] sm:$0xff] %v22333_v59  ;;  %v15642_v5 = vsel %vm22335_vm6, %v2103_v49, %v2118_v47  ;;  %v1627_v52 = vsel %vm22337_vm10, %v1596_v58, %v1597_v11  ;;  %v1960_v0 = vmax.f32 %v1958_v3, %v1959_v27  ;;  %v1966_v61 = vrot.slane %v1965_v28, 4  ;;  %13354 = vmatprep.mubr.bf16.mxu0 %v15633_v30  ;;  %v15659_v49 = vpop.f32.mrb[42].mxu1  ;;  %vm22338_vm6 = vmmov %vm22336_vm4 }
 0x147   : > { %v1822_v6 = vsel %vm15576_vm1, %v1626_v8, 0.0  ;;  %v15655_v47 = vadd.f32 %v1627_v52, %v1564_v24  ;;  %v1534_v58 = vsel %vm15591_vm2, %v1337_v46, 0.0  ;;  %v1625_v3 = vsel %vm22338_vm6, %v1598_v48, %v22166_v26  ;;  %v15670_v13 = vpop.f32.mrb[43].mxu1  ;;  %v15672_v24 = vpop.f32.mrb[43].mxu0 }
 0x148   : > { %v15661_v12 = vadd.f32 %v1822_v6, %v1565_v29  ;;  %v1310_v11 = vrot.slane %v15606_v50, 7  ;;  %v1961_v27 = vrot.slane %v1960_v0, 2  ;;  %v1967_v42 = vmax.f32 %v1965_v28, %v1966_v61 }
 0x149   : > { %v1566_v8 = vadd.f32 %v1534_v58, %v1063_v14  ;;  %v1883_v29 = vadd.f32 %v15395_v9, %v15517_v35  ;;  %v22339_v52 = vand.u32 15, %v15323_v43  ;;  %v22340_v46 = vmov 0 }
 0x14a   : > { %v22342_v48 = vand.u32 15, %v15342_v32  ;;  %v22343_v50 = vmov 0  ;;  %v1884_v28 = vadd.f32 %v15395_v9, %v15566_v54  ;;  %vm22345_vm2 = vcmp.lt.s32.totalorder %v15105_v37, 1 }
 0x14b   : > { %vm15678_vm4 = vcmp.lt.s32.totalorder %v22339_v52, 15  ;;  %v1336_v14 = vsel %vm22345_vm2, %v1309_v55, %v1310_v11  ;;  %v22171_v35 = vrot.slane %v15637_v63, 7  ;;  %v1962_v61 = vmax.f32 %v1960_v0, %v1961_v27 }
 0x14c   : > { %v22341_v46 = vsel %vm15678_vm4, 4294967295, %v22340_v46  ;;  %vm15684_vm10 = vcmp.ge.s32.totalorder %v22342_v48, 1  ;;  %v1968_v6 = vrot.slane %v1967_v42, 2  ;;  %v1855_v58 = vadd.f32 %v1625_v3, %v1566_v8  ;;  %v15705_v3 = vpop.f32.mrb[44].mxu1 }
 0x14d   : > { %v22344_v50 = vsel %vm15684_vm10, 4294967295, %v22343_v50  ;;  %v1915_v52 = vmax.f32 %v1883_v29, 0.0  ;;  %v1916_v32 = vmax.f32 %v1884_v28, 0.0  ;;  %v1567_v48 = vadd.f32 %v1336_v14, %v1067_v41 }
 0x14e   : > { %v1885_v26 = vadd.f32 %v15395_v9, %v15583_v34  ;;  %v1886_v54 = vadd.f32 %v15395_v9, %v15596_v60  ;;  %v1963_v25 = vrot.slane %v1962_v61, 1  ;;  %v1969_v45 = vmax.f32 %v1967_v42, %v1968_v6  ;;  %v15715_v42 = vpop.f32.mrb[45].mxu1 }
 0x14f   : > { %v15699_v55 = vadd.f32 %v15395_v9, %v1855_v58  ;;  %v1335_v0 = vsel %vm22345_vm2, %v1310_v11, %v22171_v35  ;;  %v1972_v27 = vmax.f32 %v1915_v52, %v1916_v32  ;;  %v15707_v41 = vpack.c.bf16 %v1916_v32, %v1915_v52  ;;  %v15720_v58 = vpop.f32.mrb[46].mxu1  ;;  %vm22350_vm2 = vmmov %vm22338_vm6 }
 0x150   : > { %v1917_v8 = vmax.f32 %v1885_v26, 0.0  ;;  %v1918_v34 = vmax.f32 %v1886_v54, 0.0  ;;  %v22346_v29 = vand.u32 15, %v15362_v53  ;;  %v22347_v60 = vmov 0  ;;  %v15725_v54 = vpop.f32.mrb[47].mxu1 }
 0x151   : > { %v1964_v28 = vmax.f32 %v1962_v61, %v1963_v25  ;;  %v1970_v14 = vrot.slane %v1969_v45, 1  ;;  %v1536_v11 = vsel %vm15628_vm15, %v1335_v0, 0.0  ;;  %v1973_v52 = vrot.slane %v1972_v27, 4  ;;  %13355 = vmatmul.mubr.bf16.gmra.mrb[52].mxu0 %v15707_v41 }
 0x152   : > { %vm15711_vm1 = vcmp.lt.s32.totalorder %v22346_v29, 15  ;;  %v1979_v26 = vmax.f32 %v1917_v8, %v1918_v34  ;;  %v15723_v53 = vpack.c.bf16 %v1918_v34, %v1917_v8  ;;  %v1568_v32 = vadd.f32 %v1536_v11, %v1073_v33 }
 0x153   : > { %v22348_v60 = vsel %vm15711_vm1, 4294967295, %v22347_v60  ;;  %v2052_v29 = vpack.c.bf16 %v1964_v28, %v1964_v28  ;;  %v1971_v35 = vmax.f32 %v1969_v45, %v1970_v14  ;;  %v1600_v25 = vrot.slane %v15650_v10, 1 }
 0x154   : > { %v1312_v61 = vrot.slane %v15657_v20, 7  ;;  %v1974_v6 = vmax.f32 %v1972_v27, %v1973_v52  ;;  %v1980_v43 = vrot.slane %v1979_v26, 4  ;;  %13358 = vmatprep.mubr.bf16.mxu0 %v15723_v53  ;;  %v1603_v0 = vrot.slane %v15659_v49, 1 }
 0x155   : > { %v1601_v59 = vrot.slane %v15670_v13, 1  ;;  %v2104_v15 = vunpack.c.l.b16 %v2052_v29  ;;  %v2053_v8 = vpack.c.bf16 %v1971_v35, %v1971_v35  ;;  %v22349_v33 = vrot.slane %v15604_v56, 1 }
 0x156   : > { %v22351_v45 = vrot.slane %v15107_v38, 7  ;;  %vm22352_vm6 = vcmp.lt.s32.totalorder %v15105_v37, 1  ;;  %v22353_v20 = vand.u32 15, %v15370_v16  ;;  %v22354_v27 = vmov 0  ;;  %v15753_v16 = vpop.f32.mrb[48].mxu1 }
 0x157   : > { %v1624_v34 = vsel %vm22350_vm2, %v22349_v33, %v1600_v25  ;;  %v1975_v49 = vrot.slane %v1974_v6, 2  ;;  %v1981_v13 = vmax.f32 %v1979_v26, %v1980_v43  ;;  %vm22356_vm2 = vcmask 1043459  }
 0x158   : > { %v1333_v10 = vsel %vm22352_vm6, %v1312_v61, %v22351_v45  ;;  %vm15742_vm15 = vcmp.lt.s32.totalorder %v22353_v20, 15  ;;  %v1824_v35 = vsel %vm15678_vm4, %v1624_v34, 0.0  ;;  %v2122_v38 = vsel %vm22356_vm2, %v2104_v15, %v15642_v5  ;;  %v15761_v34 = vpop.f32.mrb[49].mxu1 }
 0x159   : > { %v22355_v27 = vsel %vm15742_vm15, 4294967295, %v22354_v27  ;;  %v1538_v56 = vsel %vm15684_vm10, %v1333_v10, 0.0  ;;  %v2105_v28 = vunpack.c.l.b16 %v2053_v8  ;;  %v1856_v14 = vadd.f32 %v1824_v35, %v1567_v48  ;;  %v15772_v8 = vpop.f32.mrb[50].mxu1 }
 0x15a   : > { %v1570_v11 = vadd.f32 %v1538_v56, %v15111_v40  ;;  %v1976_v52 = vmax.f32 %v1974_v6, %v1975_v49  ;;  %v1982_v29 = vrot.slane %v1981_v13, 2  ;;  %v22357_v33 = vrot.slane %v15639_v51, 1 }
 0x15b   : > { %vm22358_vm6 = vcmp.lt.s32.totalorder %v15105_v37, 7  ;;  %vm22360_vm10 = vcmask 1044484   ;;  %v22361_v48 = vrot.slane %v15637_v63, 7  ;;  %vm22362_vm2 = vcmp.lt.s32.totalorder %v15105_v37, 1  ;;  %v15785_v63 = vpop.f32.mrb[51].mxu1 }
 0x15c   : > { %v1621_v43 = vsel %vm22358_vm6, %v22357_v33, %v1603_v0  ;;  %vm22359_vm4 = vmmov %vm22358_vm6  ;;  %v15764_v15 = vsel %vm22360_vm10, %v2105_v28, %v2122_v38  ;;  %v1977_v45 = vrot.slane %v1976_v52, 1  ;;  %v1983_v10 = vmax.f32 %v1981_v13, %v1982_v29 }
 0x15d   : > { %v1623_v26 = vsel %vm22359_vm4, %v1600_v25, %v1601_v59  ;;  %v15766_v5 = vadd.f32 %v1621_v43, %v1570_v11  ;;  %v1334_v6 = vsel %vm22362_vm2, %v22361_v48, %v1312_v61  ;;  %v22363_v25 = vmov %v22357_v33  ;;  %vm22367_vm6 = vmmov %vm22359_vm4 }
 0x15e   : > { %v1857_v40 = vadd.f32 %v1623_v26, %v1568_v32  ;;  %v1569_v20 = vadd.f32 %v1334_v6, %v15672_v24  ;;  %v1622_v49 = vsel %vm22359_vm4, %v1601_v59, %v22363_v25  ;;  %v22364_v35 = vand.u32 15, %v15373_v2 }
 0x15f   : > { %v22365_v32 = vmov 0  ;;  %v1826_v61 = vsel %vm15711_vm1, %v1622_v49, 0.0  ;;  %v1887_v13 = vadd.f32 %v15395_v9, %v15568_v23  ;;  %v1888_v51 = vadd.f32 %v15395_v9, %v15644_v19  ;;  %vm22375_vm1 = vmmov %vm22367_vm6 }
 0x160   : > { %vm15781_vm10 = vcmp.lt.s32.totalorder %v22364_v35, 15  ;;  %v1606_v24 = vrot.slane %v15705_v3, 1  ;;  %v1978_v59 = vmax.f32 %v1976_v52, %v1977_v45  ;;  %v1984_v56 = vrot.slane %v1983_v10, 1 }
 0x161   : > { %v22366_v32 = vsel %vm15781_vm10, 4294967295, %v22365_v32  ;;  %v1858_v2 = vadd.f32 %v1826_v61, %v1569_v20  ;;  %v1889_v38 = vadd.f32 %v15395_v9, %v15655_v47  ;;  %v1919_v28 = vmax.f32 %v1887_v13, 0.0 }
 0x162   : > { %v1920_v11 = vmax.f32 %v1888_v51, 0.0  ;;  %v1890_v29 = vadd.f32 %v15395_v9, %v15661_v12  ;;  %v1604_v33 = vrot.slane %v15715_v42, 1  ;;  %v2054_v43 = vpack.c.bf16 %v1978_v59, %v1978_v59 }
 0x163   : > { %v1985_v23 = vmax.f32 %v1983_v10, %v1984_v56  ;;  %v1894_v26 = vadd.f32 %v15395_v9, %v1858_v2  ;;  %v1921_v19 = vmax.f32 %v1889_v38, 0.0  ;;  %v22368_v42 = vand.u32 15, %v15376_v17 }
 0x164   : > { %v1986_v48 = vmax.f32 %v1919_v28, %v1920_v11  ;;  %v15800_v3 = vpack.c.bf16 %v1920_v11, %v1919_v28  ;;  %v1922_v52 = vmax.f32 %v1890_v29, 0.0  ;;  %v1620_v6 = vsel %vm22367_vm6, %v1603_v0, %v1604_v33 }
 0x165   : > { %v15804_v47 = vunpack.c.l.b16 %v2054_v43  ;;  %v2055_v45 = vpack.c.bf16 %v1985_v23, %v1985_v23  ;;  %v1926_v20 = vmax.f32 %v1894_v26, 0.0  ;;  %v1828_v12 = vsel %vm15742_vm15, %v1620_v6, 0.0  ;;  %vm22374_vm15 = vmmov %vm22367_vm6 }
 0x166   : > { %vm15810_vm2 = vcmp.lt.s32.totalorder %v22368_v42, 15  ;;  %v22369_v10 = vmov 0  ;;  %v1987_v25 = vrot.slane %v1986_v48, 4  ;;  %13359 = vmatmul.mubr.bf16.gmra.mrb[56].mxu0 %v15800_v3  ;;  %v1993_v49 = vmax.f32 %v1921_v19, %v1922_v52 }
 0x167   : > { %v22370_v10 = vsel %vm15810_vm2, 4294967295, %v22369_v10  ;;  %v15815_v35 = vpack.c.bf16 %v1922_v52, %v1921_v19  ;;  %v1860_v0 = vadd.f32 %v1828_v12, %v15131_v57  ;;  %v22371_v61 = vand.u32 15, %v15390_v21 }
 0x168   : > { %v22372_v13 = vmov 0  ;;  %v15824_v51 = vunpack.c.l.b16 %v2055_v45  ;;  %v1607_v17 = vrot.slane %v15720_v58, 1  ;;  %v1605_v59 = vrot.slane %v15725_v54, 1 }
 0x169   : > { %vm15820_vm4 = vcmp.lt.s32.totalorder %v22371_v61, 15  ;;  %v1892_v56 = vadd.f32 %v15395_v9, %v1856_v14  ;;  %v1988_v2 = vmax.f32 %v1986_v48, %v1987_v25  ;;  %v1994_v38 = vrot.slane %v1993_v49, 4  ;;  %13362 = vmatprep.mubr.bf16.mxu0 %v15815_v35 }
 0x16a   : > { %v22373_v13 = vsel %vm15820_vm4, 4294967295, %v22372_v13  ;;  %v1610_v57 = vrot.slane %v15753_v16, 1  ;;  %v1893_v21 = vadd.f32 %v15395_v9, %v1857_v40  ;;  %v1617_v28 = vsel %vm22367_vm6, %v1606_v24, %v1607_v17  ;;  %vm22383_vm6 = vmmov %vm22375_vm1 }
 0x16b   : > { %v1618_v11 = vsel %vm22374_vm15, %v1605_v59, %v1606_v24  ;;  %v1619_v58 = vsel %vm22375_vm1, %v1604_v33, %v1605_v59  ;;  %v1924_v54 = vmax.f32 %v1892_v56, 0.0  ;;  %v22376_v14 = vand.u32 15, %v15404_v1  ;;  %vm22381_vm15 = vmmov %vm22375_vm1 }
 0x16c   : > { %v22377_v29 = vmov 0  ;;  %v1989_v43 = vrot.slane %v1988_v2, 2  ;;  %v1995_v16 = vmax.f32 %v1993_v49, %v1994_v38  ;;  %v1863_v40 = vadd.f32 %v1617_v28, %v15196_v62 }
 0x16d   : > { %vm15840_vm12 = vcmp.lt.s32.totalorder %v22376_v14, 15  ;;  %v1830_v23 = vsel %vm15781_vm10, %v1618_v11, 0.0  ;;  %v1861_v26 = vadd.f32 %v1619_v58, %v15154_v18  ;;  %v22379_v33 = vmax.f32 %v15699_v55, 0.0  ;;  %v22384_v14 = vld [vmem:[#allocation15_spill] sm:$0xff] }
 0x16e   : > { %v22378_v29 = vsel %vm15840_vm12, 4294967295, %v22377_v29  ;;  %v1862_v24 = vadd.f32 %v1830_v23, %v15162_v22  ;;  %v1990_v52 = vmax.f32 %v1988_v2, %v1989_v43  ;;  %v1996_v6 = vrot.slane %v1995_v16, 2 }
 0x16f   : > { %v2000_v19 = vmax.f32 %v22379_v33, %v1924_v54  ;;  %v22380_v1 = vmov %v22379_v33  ;;  %v1925_v45 = vmax.f32 %v1893_v21, 0.0  ;;  %v1608_v12 = vrot.slane %v15761_v34, 1 }
 0x170   : > { %v15853_v48 = vpack.c.bf16 %v1924_v54, %v22380_v1  ;;  %v1611_v42 = vrot.slane %v15772_v8, 1  ;;  %v1609_v25 = vrot.slane %v15785_v63, 1  ;;  %v1895_v18 = vadd.f32 %v15395_v9, %v15766_v5 }
 0x171   : > { %v2001_v62 = vrot.slane %v2000_v19, 4  ;;  %v1991_v22 = vrot.slane %v1990_v52, 1  ;;  %v1997_v49 = vmax.f32 %v1995_v16, %v1996_v6  ;;  %v2007_v55 = vmax.f32 %v1925_v45, %v1926_v20 }
 0x172   : > { %13363 = vmatmul.mubr.bf16.gmra.mrb[60].mxu0 %v15853_v48  ;;  %v15861_v61 = vpack.c.bf16 %v1926_v20, %v1925_v45  ;;  %v1616_v56 = vsel %vm22381_vm15, %v1607_v17, %v1608_v12  ;;  %v1613_v34 = vsel %vm22375_vm1, %v1610_v57, %v1611_v42  ;;  %v22382_v8 = vrot.slane %v15353_v44, 1  ;;  %vm22385_vm15 = vmmov %vm22375_vm1  ;;  %v22386_v45 = vld [vmem:[#allocation8_spill] sm:$0xff] }
 0x173   : > { %v2002_v59 = vmax.f32 %v2000_v19, %v2001_v62  ;;  %v1992_v5 = vmax.f32 %v1990_v52, %v1991_v22  ;;  %v1998_v2 = vrot.slane %v1997_v49, 1  ;;  %v2008_v38 = vrot.slane %v2007_v55, 4 }
 0x174   : > { %v1644_v63 = vsel %vm22383_vm6, %v1611_v42, %v22382_v8  ;;  %13366 = vmatprep.mubr.bf16.mxu0 %v15861_v61  ;;  %v1832_v20 = vsel %vm15810_vm2, %v1616_v56, 0.0  ;;  %v1867_v11 = vadd.f32 %v1613_v34, %v15325_v31  ;;  %v1614_v23 = vsel %vm22385_vm15, %v1609_v25, %v1610_v57  ;;  %v22387_v42 = vld [vmem:[#allocation9_spill] sm:$0xff] }
 0x175   : > { %v2003_v21 = vrot.slane %v2002_v59, 2  ;;  %v1864_v28 = vadd.f32 %v1832_v20, %v15204_v4  ;;  %v1836_v17 = vsel %vm15820_vm4, %v1644_v63, 0.0  ;;  %v2056_v44 = vpack.c.bf16 %v1992_v5, %v1992_v5 }
 0x176   : > { %v1999_v58 = vmax.f32 %v1997_v49, %v1998_v2  ;;  %v2009_v54 = vmax.f32 %v2007_v55, %v2008_v38  ;;  %v1868_v43 = vadd.f32 %v1836_v17, %v22384_v14  ;;  %v1615_v33 = vsel %vm22375_vm1, %v1608_v12, %v1609_v25 }
 0x177   : > { %v2004_v16 = vmax.f32 %v2002_v59, %v2003_v21  ;;  %v1896_v19 = vadd.f32 %v15395_v9, %v1860_v0  ;;  %v15884_v4 = vunpack.c.l.b16 %v2056_v44  ;;  %v1834_v31 = vsel %vm15840_vm12, %v1614_v23, 0.0 }
 0x178   : > { %v2057_v1 = vpack.c.bf16 %v1999_v58, %v1999_v58  ;;  %v2010_v52 = vrot.slane %v2009_v54, 2  ;;  %v1865_v62 = vadd.f32 %v1615_v33, %v22386_v45  ;;  %v1866_v22 = vadd.f32 %v1834_v31, %v22387_v42 }
 0x179   : > { %v2005_v6 = vrot.slane %v2004_v16, 1  ;;  %v1927_v49 = vmax.f32 %v1895_v18, 0.0  ;;  %v1928_v59 = vmax.f32 %v1896_v19, 0.0  ;;  %v1897_v12 = vadd.f32 %v15395_v9, %v1861_v26 }
 0x17a   : > { %v2109_v55 = vunpack.c.l.b16 %v2057_v1  ;;  %v2011_v57 = vmax.f32 %v2009_v54, %v2010_v52  ;;  %vm22190_vm6 = vcmask 1045509   ;;  %v1898_v25 = vadd.f32 %v15395_v9, %v1862_v24 }
 0x17b   : > { %v2006_v0 = vmax.f32 %v2004_v16, %v2005_v6  ;;  %v1899_v56 = vadd.f32 %v15395_v9, %v1863_v40  ;;  %v1900_v34 = vadd.f32 %v15395_v9, %v1864_v28  ;;  %v2014_v63 = vmax.f32 %v1927_v49, %v1928_v59 }
 0x17c   : > { %v2012_v8 = vrot.slane %v2011_v57, 1  ;;  %v15894_v5 = vpack.c.bf16 %v1928_v59, %v1927_v49  ;;  %v1929_v2 = vmax.f32 %v1897_v12, 0.0  ;;  %v1930_v38 = vmax.f32 %v1898_v25, 0.0 }
 0x17d   : > { %v2058_v18 = vpack.c.bf16 %v2006_v0, %v2006_v0  ;;  %v1931_v20 = vmax.f32 %v1899_v56, 0.0  ;;  %v1932_v21 = vmax.f32 %v1900_v34, 0.0  ;;  %v2015_v17 = vrot.slane %v2014_v63, 4 }
 0x17e   : > { %v2013_v26 = vmax.f32 %v2011_v57, %v2012_v8  ;;  %13367 = vmatmul.mubr.bf16.gmra.mrb[64].mxu0 %v15894_v5  ;;  %v1901_v24 = vadd.f32 %v15395_v9, %v1865_v62  ;;  %v1902_v40 = vadd.f32 %v15395_v9, %v1866_v22  ;;  %v2021_v44 = vmax.f32 %v1929_v2, %v1930_v38 }
 0x17f   : > { %v2110_v28 = vunpack.c.l.b16 %v2058_v18  ;;  %v15899_v58 = vpack.c.bf16 %v1930_v38, %v1929_v2  ;;  %v2028_v54 = vmax.f32 %v1931_v20, %v1932_v21  ;;  %v2016_v16 = vmax.f32 %v2014_v63, %v2015_v17 }
 0x180   : > { %v2059_v14 = vpack.c.bf16 %v2013_v26, %v2013_v26  ;;  %v15901_v23 = vpack.c.bf16 %v1932_v21, %v1931_v20  ;;  %v1933_v33 = vmax.f32 %v1901_v24, 0.0  ;;  %vm22388_vm1 = vcmask 1041409  }
 0x181   : > { %v2131_v19 = vsel %vm22388_vm1, %v2110_v28, %v2109_v55  ;;  %v2022_v1 = vrot.slane %v2021_v44, 4  ;;  %13370 = vmatprep.mubr.bf16.mxu0 %v15899_v58  ;;  %v2029_v52 = vrot.slane %v2028_v54, 4  ;;  %v1934_v31 = vmax.f32 %v1902_v40, 0.0 }
 0x182   : > { %v2111_v6 = vunpack.c.l.b16 %v2059_v14  ;;  %v2017_v45 = vrot.slane %v2016_v16, 2  ;;  %v1903_v62 = vadd.f32 %v15395_v9, %v1867_v11  ;;  %v1904_v42 = vadd.f32 %v15395_v9, %v1868_v43 }
 0x183   : > { %v2023_v22 = vmax.f32 %v2021_v44, %v2022_v1  ;;  %v2030_v49 = vmax.f32 %v2028_v54, %v2029_v52  ;;  %v2035_v57 = vmax.f32 %v1933_v33, %v1934_v31  ;;  %v15907_v59 = vpack.c.bf16 %v1934_v31, %v1933_v33 }
 0x184   : > { %vm22389_vm15 = vcmask 1042434   ;;  %v2018_v0 = vmax.f32 %v2016_v16, %v2017_v45  ;;  %v1935_v55 = vmax.f32 %v1903_v62, 0.0  ;;  %v1936_v25 = vmax.f32 %v1904_v42, 0.0 }
 0x185   : > { %v2132_v12 = vsel %vm22389_vm15, %v2111_v6, %v2131_v19  ;;  %v2024_v56 = vrot.slane %v2023_v22, 2  ;;  %v2031_v34 = vrot.slane %v2030_v49, 2  ;;  %v2036_v8 = vrot.slane %v2035_v57, 4 }
 0x186   : > { %v2126_v63 = vsel %vm22190_vm6, %v15804_v47, %v15764_v15  ;;  %v2019_v11 = vrot.slane %v2018_v0, 1  ;;  %13371 = vmatmul.mubr.bf16.gmra.mrb[68].mxu0 %v15901_v23  ;;  %v2042_v9 = vmax.f32 %v1935_v55, %v1936_v25  ;;  %v15914_v43 = vpack.c.bf16 %v1936_v25, %v1935_v55 }
 0x187   : > { %vm22390_vm1 = vcmask 1046534   ;;  %v2025_v18 = vmax.f32 %v2023_v22, %v2024_v56  ;;  %v2032_v38 = vmax.f32 %v2030_v49, %v2031_v34  ;;  %v2037_v20 = vmax.f32 %v2035_v57, %v2036_v8  ;;  %13374 = vmatprep.mubr.bf16.mxu0 %v15907_v59  ;;  %v14834_v34 = vld [vmem:[%s22085_s3] ss:$12 sps:$4 sm:$0xff]  }
 0x188   : > { %v2128_v2 = vsel %vm22390_vm1, %v15824_v51, %v2126_v63  ;;  %vm22391_vm15 = vcmask 1047559   ;;  %v2020_v26 = vmax.f32 %v2018_v0, %v2019_v11  ;;  %v2043_v17 = vrot.slane %v2042_v9, 4  ;;  %v14839_v11 = vld [vmem:[%s22085_s3 + $0x1c] ss:$12 sps:$4 sm:$0xff]  }
 0x189   : > { %v2130_v21 = vsel %vm22391_vm15, %v15884_v4, %v2128_v2  ;;  %v2026_v15 = vrot.slane %v2025_v18, 1  ;;  %v2033_v47 = vrot.slane %v2032_v38, 1  ;;  %v2038_v24 = vrot.slane %v2037_v20, 2  ;;  %v14842_v2 = vld [vmem:[%s22085_s3 + $0x34] ss:$12 sps:$4 sm:$0xff]  }
 0x18a   : > { %v2060_v40 = vpack.c.bf16 %v2020_v26, %v2020_v26  ;;  %v2044_v28 = vmax.f32 %v2042_v9, %v2043_v17  ;;  %vm22392_vm1 = vcmask 1043459   ;;  %v22393_v62 = vmov 0   ;;  %v14837_v9 = vld [vmem:[%s22085_s3 + $0x18] ss:$12 sps:$4 sm:$0xff]   ;;  %v14846_v26 = vld [vmem:[%s22085_s3 + $0x60] ss:$12 sps:$4 sm:$0xff]  }
 0x18b   : > { %v2027_v44 = vmax.f32 %v2025_v18, %v2026_v15  ;;  %v2034_v54 = vmax.f32 %v2032_v38, %v2033_v47  ;;  %v2039_v14 = vmax.f32 %v2037_v20, %v2038_v24  ;;  %vm22394_vm15 = vcmask 1044484   ;;  %v14840_v18 = vld [vmem:[%s22085_s3 + $0x30] ss:$12 sps:$4 sm:$0xff]   ;;  %v14845_v38 = vld [vmem:[%s22085_s3 + $0x4c] ss:$12 sps:$4 sm:$0xff]  }
 0x18c   : > { %v2112_v16 = vunpack.c.l.b16 %v2060_v40  ;;  %v2045_v51 = vrot.slane %v2044_v28, 2  ;;  %vm22395_vm4 = vcmask 1046534   ;;  %v14843_v20 = vld [vmem:[%s22085_s3 + $0x48] ss:$12 sps:$4 sm:$0xff]   ;;  %v14849_v15 = vld [vmem:[%s22085_s3 + $0x78] ss:$12 sps:$4 sm:$0xff]  }
 0x18d   : > { %v2061_v33 = vpack.c.bf16 %v2027_v44, %v2027_v44  ;;  %v2062_v19 = vpack.c.bf16 %v2034_v54, %v2034_v54  ;;  %v2040_v1 = vrot.slane %v2039_v14, 1  ;;  %v14851_v17 = vld [vmem:[%s22085_s3 + $0x7c] ss:$12 sps:$4 sm:$0xff]   ;;  %v14854_v47 = vld [vmem:[%s22085_s3 + $0x94] ss:$12 sps:$4 sm:$0xff]  }
 0x18e   : > { %v2133_v52 = vsel %vm22392_vm1, %v2112_v16, %v2132_v12  ;;  %v2046_v31 = vmax.f32 %v2044_v28, %v2045_v51  ;;  %13375 = vmatmul.mubr.bf16.gmra.mrb[72].mxu0 %v15914_v43  ;;  %vm22396_vm1 = vcmask 1047559   ;;  %v14852_v24 = vld [vmem:[%s22085_s3 + $0x90] ss:$12 sps:$4 sm:$0xff]   ;;  %v14857_v40 = vld [vmem:[%s22085_s3 + $0xac] ss:$12 sps:$4 sm:$0xff]   ;;  %v22397_v44 = vld [vmem:[#allocation22_spill] sm:$0xff] }
 0x18f   : > { %v2113_v4 = vunpack.c.l.b16 %v2061_v33  ;;  %v2114_v6 = vunpack.c.l.b16 %v2062_v19  ;;  %v2041_v45 = vmax.f32 %v2039_v14, %v2040_v1  ;;  %3293 = vmatprep.mubr.bf16.mxu0 %v22393_v62  ;;  %v14855_v28 = vld [vmem:[%s22085_s3 + $0xa8] ss:$12 sps:$4 sm:$0xff]   ;;  %v22399_v14 = vld [vmem:[#allocation25_spill] sm:$0xff] }
 0x190   : > { %v2047_v42 = vrot.slane %v2046_v31, 1  ;;  %v22398_v54 = vld [vmem:[#allocation23_spill] sm:$0xff] }
 0x191   : > { %v2134_v22 = vsel %vm22394_vm15, %v2113_v4, %v2133_v52  ;;  %v2063_v49 = vpack.c.bf16 %v2041_v45, %v2041_v45 }
 0x192   : > { %v2048_v57 = vmax.f32 %v2046_v31, %v2047_v42  ;;  %v2135_v0 = vsel %vm22190_vm6, %v2114_v6, %v2134_v22 }
 0x193   : > { %v2115_v55 = vunpack.c.l.b16 %v2063_v49 }
 0x194   : > { %v2064_v25 = vpack.c.bf16 %v2048_v57, %v2048_v57 }
 0x195   : > { %v2136_v56 = vsel %vm22395_vm4, %v2115_v55, %v2135_v0  ;;  %vm22400_vm4 = vcmp.lt.s32.totalorder %v15105_v37, 7 }
 0x196   : > { %v2116_v12 = vunpack.c.l.b16 %v2064_v25  ;;  %vm22401_vm15 = vmmov %vm22400_vm4 }
 0x198   : > { %v2137_v8 = vsel %vm22396_vm1, %v2116_v12, %v2136_v56  ;;  %vm22402_vm1 = vmmov %vm22400_vm4 }
 0x199   : > { %v2138_v63 = vpack.c.b16 %v2137_v8, %v2130_v21  ;;  %v14848_v21 = vld [vmem:[%s22085_s3 + $0x64] ss:$12 sps:$4 sm:$0xff]   ;;  %vm22405_vm6 = vmmov %vm22402_vm1 }
 0x19a   : > { %vm22424_vm12 = vmmov %vm22402_vm1 }
 0x19b   : > { %13327 = vmatmul.mubr.bf16.vlgmr.msra.gmra.mrb[52].mxu1 %v2138_v63 }
 0x19c   : > { %2408 = vmatpush1.bf16.msra.mxu1 %v14834_v34  ;;  %2439 = vmatprep.mubr.bf16.mxu1 %v22393_v62 }
 0x19d   : > { %2409 = vmatprep.subr.bf16.mxu1 %v14839_v11 }
 0x1a0   : > { %2410 = vmatpush1.bf16.msra.mxu1 %v14837_v9 }
 0x1a1   : > { %2411 = vmatprep.subr.bf16.mxu1 %v14842_v2 }
 0x1a4   : > { %2412 = vmatpush1.bf16.msra.mxu1 %v14840_v18 }
 0x1a5   : > { %2413 = vmatprep.subr.bf16.mxu1 %v14845_v38 }
 0x1a8   : > { %2414 = vmatpush1.bf16.msra.mxu1 %v14843_v20 }
 0x1a9   : > { %2415 = vmatprep.subr.bf16.mxu1 %v14848_v21 }
 0x1ac   : > { %2416 = vmatpush1.bf16.msra.mxu1 %v14846_v26 }
 0x1ad   : > { %2417 = vmatprep.subr.bf16.mxu1 %v14851_v17 }
 0x1b0   : > { %2418 = vmatpush1.bf16.msra.mxu1 %v14849_v15 }
 0x1b1   : > { %2419 = vmatprep.subr.bf16.mxu1 %v14854_v47 }
 0x1b4   : > { %2420 = vmatpush1.bf16.msra.mxu1 %v14852_v24 }
 0x1b5   : > { %2421 = vmatprep.subr.bf16.mxu1 %v14857_v40 }
 0x1b8   : > { %2422 = vmatpush1.bf16.msra.mxu1 %v14855_v28 }
 0x1bb   : > { %2440 = vmatmul.mubr.bf16.vlgmr.msra.gmra.mrb[56].mxu1 %v22397_v44 }
 0x1bc   : > { %2449 = vmatprep.mubr.bf16.mxu1 %v22393_v62 }
 0x1c3   : > { %2450 = vmatmul.mubr.bf16.gmra.mrb[60].mxu1 %v22398_v54 }
 0x1c4   : > { %2459 = vmatprep.mubr.bf16.mxu1 %v22393_v62 }
 0x1cb   : > { %2460 = vmatmul.mubr.bf16.gmra.mrb[64].mxu1 %v22399_v14 }
 0x1cc   : > { %2469 = vmatprep.mubr.bf16.mxu1 %v22393_v62 }
 0x1d3   : > { %2470 = vmatmul.mubr.bf16.gmra.mrb[68].mxu1 %v15620_v36 }
 0x1d4   : > { %2479 = vmatprep.mubr.bf16.mxu1 %v22393_v62 }
 0x1db   : > { %2480 = vmatmul.mubr.bf16.gmra.mrb[72].mxu1 %v15633_v30 }
 0x1dc   : > { %2489 = vmatprep.mubr.bf16.mxu1 %v22393_v62 }
 0x1e3   : > { %2490 = vmatmul.mubr.bf16.gmra.mrb[76].mxu1 %v15707_v41 }
 0x1e4   : > { %2499 = vmatprep.mubr.bf16.mxu1 %v22393_v62 }
 0x1eb   : > { %2500 = vmatmul.mubr.bf16.gmra.mrb[80].mxu1 %v15723_v53 }
 0x1ec   : > { %2509 = vmatprep.mubr.bf16.mxu1 %v22393_v62 }
 0x1f3   : > { %2510 = vmatmul.mubr.bf16.gmra.mrb[84].mxu1 %v15800_v3 }
 0x1f4   : > { %2519 = vmatprep.mubr.bf16.mxu1 %v22393_v62 }
 0x1fb   : > { %2520 = vmatmul.mubr.bf16.gmra.mrb[88].mxu1 %v15815_v35 }
 0x1fc   : > { %2529 = vmatprep.mubr.bf16.mxu1 %v22393_v62  ;;  %v13348_v36 = vpop.f32.mrb[44].mxu0 }
 0x1fd   : > { %v15996_v30 = vpop.f32.mrb[45].mxu0  ;;  %v2891_v53 = vrot.slane %v13348_v36, 1 }
 0x1fe   : > { %v13349_v41 = vpop.f32.mrb[46].mxu0  ;;  %v2889_v16 = vrot.slane %v15996_v30, 1  ;;  %v14863_v30 = vld [vmem:[%s22086_s4 + $0x1c] ss:$12 sps:$4 sm:$0xff]  }
 0x1ff   : > { %v2892_v3 = vrot.slane %v13349_v41, 1  ;;  %v2637_v35 = vpop.f32.mrb[47].mxu0 }
 0x201   : > { %v16003_v51 = vsel %vm22400_vm4, %v2891_v53, %v2892_v3  ;;  %vm22403_vm4 = vmmov %vm22402_vm1 }
 0x203   : > { %2530 = vmatmul.mubr.bf16.gmra.mrb[92].mxu1 %v15853_v48  ;;  %v2890_v48 = vrot.slane %v2637_v35, 1 }
 0x204   : > { %2539 = vmatprep.mubr.bf16.mxu1 %v22393_v62 }
 0x20b   : > { %2540 = vmatmul.mubr.bf16.gmra.mrb[96].mxu1 %v15861_v61  ;;  %v16009_v61 = vsel %vm22401_vm15, %v2889_v16, %v2890_v48  ;;  %vm22404_vm15 = vmmov %vm22402_vm1 }
 0x20c   : > { %2549 = vmatprep.mubr.bf16.mxu1 %v22393_v62 }
 0x213   : > { %2550 = vmatmul.mubr.bf16.gmra.mrb[100].mxu1 %v15894_v5  ;;  %v16013_v5 = vsel %vm22402_vm1, %v2890_v48, %v2891_v53 }
 0x214   : > { %2559 = vmatprep.mubr.bf16.mxu1 %v22393_v62 }
 0x218   : > { %v13352_v33 = vpop.f32.mrb[48].mxu0 }
 0x219   : > { %v2650_v19 = vpop.f32.mrb[49].mxu0  ;;  %v2895_v31 = vrot.slane %v13352_v33, 1 }
 0x21a   : > { %v2893_v1 = vrot.slane %v2650_v19, 1  ;;  %v13353_v52 = vpop.f32.mrb[50].mxu0 }
 0x21b   : > { %2560 = vmatmul.mubr.bf16.gmra.mrb[104].mxu1 %v15899_v58  ;;  %v2896_v4 = vrot.slane %v13353_v52, 1  ;;  %v2653_v6 = vpop.f32.mrb[51].mxu0 }
 0x21c   : > { %2569 = vmatprep.mubr.bf16.mxu1 %v22393_v62  ;;  %v2894_v45 = vrot.slane %v2653_v6, 1  ;;  %v16021_v42 = vsel %vm22403_vm4, %v2892_v3, %v2893_v1  ;;  %vm22406_vm4 = vmmov %vm22402_vm1 }
 0x21d   : > { %v16025_v58 = vsel %vm22404_vm15, %v2895_v31, %v2896_v4  ;;  %vm22408_vm15 = vmmov %vm22402_vm1 }
 0x21e   : > { %v16033_v22 = vsel %vm22405_vm6, %v2894_v45, %v2895_v31  ;;  %vm22407_vm6 = vmmov %vm22402_vm1 }
 0x223   : > { %2570 = vmatmul.mubr.bf16.gmra.mrb[108].mxu1 %v15901_v23  ;;  %v16029_v23 = vsel %vm22402_vm1, %v2893_v1, %v2894_v45 }
 0x224   : > { %2579 = vmatprep.mubr.bf16.mxu1 %v22393_v62  ;;  %v13356_v49 = vpop.f32.mrb[52].mxu0 }
 0x225   : > { %v2666_v57 = vpop.f32.mrb[53].mxu0  ;;  %v2899_v25 = vrot.slane %v13356_v49, 1 }
 0x226   : > { %v2897_v0 = vrot.slane %v2666_v57, 1  ;;  %v13357_v55 = vpop.f32.mrb[54].mxu0 }
 0x227   : > { %v2900_v56 = vrot.slane %v13357_v55, 1  ;;  %v2669_v12 = vpop.f32.mrb[55].mxu0 }
 0x228   : > { %v2898_v34 = vrot.slane %v2669_v12, 1  ;;  %v16039_v8 = vsel %vm22406_vm4, %v2896_v4, %v2897_v0  ;;  %vm22409_vm4 = vmmov %vm22402_vm1 }
 0x229   : > { %v16044_v63 = vsel %vm22407_vm6, %v2899_v25, %v2900_v56  ;;  %vm22410_vm6 = vmmov %vm22402_vm1 }
 0x22a   : > { %v16052_v11 = vsel %vm22402_vm1, %v2898_v34, %v2899_v25 }
 0x22b   : > { %2580 = vmatmul.mubr.bf16.gmra.mrb[112].mxu1 %v15907_v59  ;;  %v16048_v59 = vsel %vm22408_vm15, %v2897_v0, %v2898_v34  ;;  %vm22411_vm15 = vmmov %vm22402_vm1 }
 0x22c   : > { %2589 = vmatprep.mubr.bf16.mxu1 %v22393_v62 }
 0x233   : > { %2590 = vmatmul.mubr.bf16.gmra.mrb[116].mxu1 %v15914_v43 }
 0x239   : > { %v13360_v9 = vpop.f32.mrb[56].mxu0 }
 0x23a   : > { %v2682_v2 = vpop.f32.mrb[57].mxu0  ;;  %v2903_v20 = vrot.slane %v13360_v9, 1 }
 0x23b   : > { %v2901_v18 = vrot.slane %v2682_v2, 1  ;;  %v13361_v38 = vpop.f32.mrb[58].mxu0 }
 0x23c   : > { %v2904_v21 = vrot.slane %v13361_v38, 1  ;;  %v2685_v26 = vpop.f32.mrb[59].mxu0 }
 0x23d   : > { %v2902_v43 = vrot.slane %v2685_v26, 1  ;;  %v16056_v17 = vsel %vm22409_vm4, %v2900_v56, %v2901_v18  ;;  %vm22412_vm4 = vmmov %vm22402_vm1 }
 0x23e   : > { %v16060_v15 = vsel %vm22410_vm6, %v2903_v20, %v2904_v21  ;;  %vm22413_vm6 = vmmov %vm22402_vm1 }
 0x23f   : > { %v16064_v47 = vsel %vm22411_vm15, %v2901_v18, %v2902_v43  ;;  %v16068_v24 = vsel %vm22402_vm1, %v2902_v43, %v2903_v20  ;;  %vm22414_vm15 = vmmov %vm22402_vm1 }
 0x245   : > { %v13364_v40 = vpop.f32.mrb[60].mxu0 }
 0x246   : > { %v2698_v28 = vpop.f32.mrb[61].mxu0  ;;  %v2907_v14 = vrot.slane %v13364_v40, 1 }
 0x247   : > { %v2905_v44 = vrot.slane %v2698_v28, 1  ;;  %v13365_v54 = vpop.f32.mrb[62].mxu0 }
 0x248   : > { %v2908_v36 = vrot.slane %v13365_v54, 1  ;;  %v2701_v41 = vpop.f32.mrb[63].mxu0  ;;  %v14860_v54 = vld [vmem:[%s22086_s4 + $0x4] ss:$12 sps:$4 sm:$0xff]  }
 0x249   : > { %v2906_v53 = vrot.slane %v2701_v41, 1  ;;  %v16072_v3 = vsel %vm22412_vm4, %v2904_v21, %v2905_v44  ;;  %vm22415_vm4 = vmmov %vm22402_vm1  ;;  %3261 = vmatprep.subr.bf16.mxu0 %v14860_v54 }
 0x24a   : > { %v16076_v35 = vsel %vm22413_vm6, %v2907_v14, %v2908_v36  ;;  %vm22416_vm6 = vmmov %vm22402_vm1 }
 0x24b   : > { %v16080_v48 = vsel %vm22414_vm15, %v2905_v44, %v2906_v53  ;;  %v16084_v33 = vsel %vm22402_vm1, %v2906_v53, %v2907_v14  ;;  %vm22417_vm15 = vmmov %vm22402_vm1  ;;  %v14858_v44 = vld [vmem:[%s22086_s4] ss:$12 sps:$4 sm:$0xff]  }
 0x24c   : > { %3262 = vmatpush1.bf16.msra.mxu0 %v14858_v44 }
 0x24d   : > { %3263 = vmatprep.subr.bf16.mxu0 %v14863_v30  ;;  %v14877_v30 = vld [vmem:[%s22086_s4 + $0x7c] ss:$12 sps:$4 sm:$0xff]  }
 0x251   : > { %v13368_v19 = vpop.f32.mrb[64].mxu0 }
 0x252   : > { %v2714_v1 = vpop.f32.mrb[65].mxu0  ;;  %v2911_v4 = vrot.slane %v13368_v19, 1 }
 0x253   : > { %v2909_v52 = vrot.slane %v2714_v1, 1  ;;  %v13369_v31 = vpop.f32.mrb[66].mxu0 }
 0x254   : > { %v2912_v6 = vrot.slane %v13369_v31, 1  ;;  %v2717_v45 = vpop.f32.mrb[67].mxu0 }
 0x255   : > { %v2910_v49 = vrot.slane %v2717_v45, 1  ;;  %v16088_v57 = vsel %vm22415_vm4, %v2908_v36, %v2909_v52  ;;  %vm22418_vm4 = vmmov %vm22402_vm1 }
 0x256   : > { %v16092_v0 = vsel %vm22416_vm6, %v2911_v4, %v2912_v6  ;;  %vm22419_vm6 = vmmov %vm22402_vm1 }
 0x257   : > { %v16096_v55 = vsel %vm22417_vm15, %v2909_v52, %v2910_v49  ;;  %v16100_v25 = vsel %vm22402_vm1, %v2910_v49, %v2911_v4  ;;  %vm22420_vm15 = vmmov %vm22402_vm1 }
 0x259   : > { %v13372_v56 = vpop.f32.mrb[68].mxu0 }
 0x25a   : > { %v2730_v12 = vpop.f32.mrb[69].mxu0  ;;  %v2915_v2 = vrot.slane %v13372_v56, 1  ;;  %v14861_v56 = vld [vmem:[%s22086_s4 + $0x18] ss:$12 sps:$4 sm:$0xff]  }
 0x25b   : > { %v2913_v34 = vrot.slane %v2730_v12, 1  ;;  %v13373_v9 = vpop.f32.mrb[70].mxu0  ;;  %3264 = vmatpush1.bf16.msra.mxu0 %v14861_v56  ;;  %v14875_v56 = vld [vmem:[%s22086_s4 + $0x78] ss:$12 sps:$4 sm:$0xff]  }
 0x25c   : > { %v2916_v18 = vrot.slane %v13373_v9, 1  ;;  %v2733_v38 = vpop.f32.mrb[71].mxu0 }
 0x25d   : > { %v2914_v20 = vrot.slane %v2733_v38, 1  ;;  %v16104_v21 = vsel %vm22418_vm4, %v2912_v6, %v2913_v34  ;;  %vm22421_vm4 = vmmov %vm22402_vm1 }
 0x25e   : > { %v16108_v26 = vsel %vm22419_vm6, %v2915_v2, %v2916_v18  ;;  %vm22422_vm6 = vmmov %vm22402_vm1 }
 0x25f   : > { %v16112_v43 = vsel %vm22420_vm15, %v2913_v34, %v2914_v20  ;;  %v16116_v40 = vsel %vm22402_vm1, %v2914_v20, %v2915_v2  ;;  %vm22423_vm15 = vmmov %vm22402_vm1  ;;  %v14864_v20 = vld [vmem:[%s22086_s4 + $0x30] ss:$12 sps:$4 sm:$0xff]  }
 0x261   : > { %v13376_v28 = vpop.f32.mrb[72].mxu0 }
 0x262   : > { %v2746_v14 = vpop.f32.mrb[73].mxu0  ;;  %v2919_v53 = vrot.slane %v13376_v28, 1  ;;  %v14866_v28 = vld [vmem:[%s22086_s4 + $0x34] ss:$12 sps:$4 sm:$0xff]  }
 0x263   : > { %v2917_v36 = vrot.slane %v2746_v14, 1  ;;  %v13377_v41 = vpop.f32.mrb[74].mxu0  ;;  %3265 = vmatprep.subr.bf16.mxu0 %v14866_v28  ;;  %v14880_v28 = vld [vmem:[%s22086_s4 + $0x90] ss:$12 sps:$4 sm:$0xff]  }
 0x264   : > { %v2920_v19 = vrot.slane %v13377_v41, 1  ;;  %v2749_v1 = vpop.f32.mrb[75].mxu0  ;;  %3266 = vmatpush1.bf16.msra.mxu0 %v14864_v20  ;;  %v14869_v41 = vld [vmem:[%s22086_s4 + $0x4c] ss:$12 sps:$4 sm:$0xff]  }
 0x265   : > { %v2918_v52 = vrot.slane %v2749_v1, 1  ;;  %v16126_v31 = vsel %vm22421_vm4, %v2916_v18, %v2917_v36  ;;  %3267 = vmatprep.subr.bf16.mxu0 %v14869_v41  ;;  %v14873_v1 = vld [vmem:[%s22086_s4 + $0x8] ss:$12 sps:$4 sm:$0xff]   ;;  %v14884_v41 = vld [vmem:[%s22086_s4 + $0x80] ss:$12 sps:$4 sm:$0xff]  }
 0x266   : > { %v16130_v4 = vsel %vm22422_vm6, %v2919_v53, %v2920_v19  ;;  %v16136_v6 = vsel %vm22423_vm15, %v2920_v19, %v2889_v16  ;;  %v12573_v16 = vld [vmem:[%s22089_s7 + $0x1] ss:$0 sm:$0xff]  ;;  %v14872_v19 = vld [vmem:[%s22086_s4 + $0x64] ss:$12 sps:$4 sm:$0xff]   ;;  %13378 = vmatprep.subr.bf16.mxu1 %v14873_v1 }
 0x267   : > { %v16140_v45 = vsel %vm22402_vm1, %v2917_v36, %v2918_v52  ;;  %v16144_v49 = vsel %vm22424_vm12, %v2918_v52, %v2919_v53  ;;  %v14867_v36 = vld [vmem:[%s22086_s4 + $0x48] ss:$12 sps:$4 sm:$0xff]   ;;  %v14870_v53 = vld [vmem:[%s22086_s4 + $0x60] ss:$12 sps:$4 sm:$0xff]   ;;  %13379 = vmatpush3.bf16.msra.mxu1 %v14873_v1  ;;  %vm22426_vm12 = vcmp.lt.s32.totalorder %v15105_v37, 1 }
 0x268   : > { %3268 = vmatpush1.bf16.msra.mxu0 %v14867_v36  ;;  %v14874_v52 = vld [vmem:[%s22086_s4 + $0x20] ss:$12 sps:$4 sm:$0xff]   ;;  %v14883_v36 = vld [vmem:[%s22086_s4 + $0x68] ss:$12 sps:$4 sm:$0xff]   ;;  %vm22428_vm4 = vmmov %vm22426_vm12 }
 0x269   : > { %3269 = vmatprep.subr.bf16.mxu0 %v14872_v19  ;;  %13380 = vmatprep.subr.bf16.mxu1 %v14874_v52  ;;  %v14885_v19 = vld [vmem:[%s22086_s4 + $0xa8] ss:$12 sps:$4 sm:$0xff]   ;;  %v14887_v1 = vld [vmem:[%s22086_s4 + $0xac] ss:$12 sps:$4 sm:$0xff]   ;;  %vm22430_vm6 = vmmov %vm22428_vm4 }
 0x26a   : > { %vm22432_vm15 = vmmov %vm22428_vm4 }
 0x26b   : > { %13381 = vmatpush3.bf16.msra.mxu1 %v14874_v52  ;;  %vm22434_vm1 = vmmov %vm22428_vm4 }
 0x26c   : > { %3270 = vmatpush1.bf16.msra.mxu0 %v14870_v53 }
 0x26d   : > { %3271 = vmatprep.subr.bf16.mxu0 %v14877_v30 }
 0x26e   : > { %v2222_v12 = vpop.f32.mrb[52].mxu1 }
 0x26f   : > { %v2223_v34 = vadd.f32 %v12573_v16, %v2222_v12  ;;  %v13328_v9 = vpop.f32.mrb[53].mxu1  ;;  %v14879_v12 = vld [vmem:[%s22086_s4 + $0x50] ss:$12 sps:$4 sm:$0xff]  }
 0x270   : > { %v2225_v2 = vpop.f32.mrb[54].mxu1  ;;  %3272 = vmatpush1.bf16.msra.mxu0 %v14875_v56  ;;  %v2954_v56 = vsel %vm15315_vm14, %v16013_v5, 0.0 }
 0x271   : > { %v2226_v18 = vadd.f32 %v12573_v16, %v2225_v2  ;;  %v13329_v38 = vpop.f32.mrb[55].mxu1  ;;  %v2229_v44 = vmax.f32 %v2223_v34, 0.0  ;;  %v14878_v16 = vld [vmem:[%s22086_s4 + $0x38] ss:$12 sps:$4 sm:$0xff]  }
 0x272   : > { %13382 = vmatprep.subr.bf16.mxu1 %v14878_v16 }
 0x273   : > { %v2230_v54 = vmax.f32 %v2226_v18, 0.0  ;;  %13383 = vmatpush3.bf16.msra.mxu1 %v14878_v16 }
 0x274   : > { %13384 = vmatprep.subr.bf16.mxu1 %v14879_v12 }
 0x275   : > { %v16161_v14 = vpack.c.bf16 %v2230_v54, %v2229_v44  ;;  %v14882_v44 = vld [vmem:[%s22086_s4 + $0x94] ss:$12 sps:$4 sm:$0xff]  }
 0x276   : > { %3273 = vmatprep.subr.bf16.mxu0 %v14882_v44 }
 0x277   : > { %22425 = vst [vmem:[#allocation15_spill] sm:$0xff] %v16161_v14  ;;  %13385 = vmatpush3.bf16.msra.mxu1 %v14879_v12  ;;  %3274 = vmatpush1.bf16.msra.mxu0 %v14880_v28 }
 0x278   : > { %13386 = vmatprep.subr.bf16.mxu1 %v14883_v36  ;;  %3275 = vmatprep.subr.bf16.mxu0 %v14887_v1 }
 0x27b   : > { %13387 = vmatpush3.bf16.msra.mxu1 %v14883_v36  ;;  %3276 = vmatpush1.bf16.msra.mxu0 %v14885_v19 }
 0x27c   : > { %13388 = vmatprep.subr.bf16.mxu1 %v14884_v41 }
 0x27f   : > { %13389 = vmatpush3.bf16.msra.mxu1 %v14884_v41  ;;  %v16244_v41 = vld [vmem:[%s22089_s7 + $0x2] ss:$0 sm:$0xff] }
 0x28e   : > { %v16193_v34 = vpop.f32.mrb[56].mxu1 }
 0x28f   : > { %v16195_v9 = vpop.f32.mrb[57].mxu1  ;;  %v22193_v2 = vrot.slane %v16193_v34, 7 }
 0x290   : > { %v2445_v18 = vpop.f32.mrb[58].mxu1 }
 0x291   : > { %v2762_v38 = vrot.slane %v2445_v18, 7  ;;  %v2447_v20 = vpop.f32.mrb[59].mxu1 }
 0x293   : > { %v2823_v54 = vsel %vm22426_vm12, %v22193_v2, %v2762_v38  ;;  %vm22437_vm12 = vmmov %vm22434_vm1 }
 0x294   : > { %v2858_v53 = vadd.f32 %v2823_v54, %v2447_v20  ;;  %v14888_v20 = vld [vmem:[%s22086_s4 + $0x98] ss:$12 sps:$4 sm:$0xff]  }
 0x295   : > { %13390 = vmatprep.subr.bf16.mxu1 %v14888_v20 }
 0x296   : > { %v16223_v30 = vadd.f32 %v2954_v56, %v2858_v53  ;;  %v2451_v16 = vpop.f32.mrb[60].mxu1  ;;  %v14889_v56 = vld [vmem:[%s22086_s4 + $0xb0] ss:$12 sps:$4 sm:$0xff]   ;;  %13391 = vmatpush3.bf16.msra.mxu1 %v14888_v20 }
 0x297   : > { %v2763_v12 = vrot.slane %v2451_v16, 7  ;;  %v2453_v18 = vpop.f32.mrb[61].mxu1  ;;  %13392 = vmatprep.subr.bf16.mxu1 %v14889_v56 }
 0x298   : > { %v2455_v28 = vpop.f32.mrb[62].mxu1 }
 0x299   : > { %v2822_v44 = vsel %vm22428_vm4, %v2762_v38, %v2763_v12  ;;  %v2764_v54 = vrot.slane %v2455_v28, 7  ;;  %v2457_v5 = vpop.f32.mrb[63].mxu1  ;;  %v2956_v28 = vsel %vm15364_vm0, %v16021_v42, 0.0  ;;  %vm22439_vm4 = vmmov %vm22434_vm1 }
 0x29a   : > { %v2827_v53 = vsel %vm15142_vm3, %v2822_v44, 0.0  ;;  %13393 = vmatpush3.bf16.msra.mxu1 %v14889_v56 }
 0x29b   : > { %v2859_v36 = vadd.f32 %v2827_v53, %v2453_v18  ;;  %v2821_v1 = vsel %vm22430_vm6, %v2763_v12, %v2764_v54  ;;  %vm22441_vm6 = vmmov %vm22434_vm1 }
 0x29c   : > { %v2860_v16 = vadd.f32 %v2821_v1, %v2457_v5 }
 0x29d   : > { %v2987_v19 = vadd.f32 %v16003_v51, %v2859_v36 }
 0x29e   : > { %v2988_v18 = vadd.f32 %v2956_v28, %v2860_v16  ;;  %v2461_v44 = vpop.f32.mrb[64].mxu1  ;;  %v22435_v28 = vmov 0.0  }
 0x29f   : > { %v3023_v12 = vadd.f32 %v16244_v41, %v2987_v19  ;;  %v2765_v53 = vrot.slane %v2461_v44, 7  ;;  %v2463_v2 = vpop.f32.mrb[65].mxu1  ;;  %13426 = vmatprep.subr.bf16.mxu1 %v22435_v28 }
 0x2a0   : > { %v3024_v5 = vadd.f32 %v16244_v41, %v2988_v18  ;;  %v2465_v51 = vpop.f32.mrb[66].mxu1 }
 0x2a1   : > { %v3055_v36 = vmax.f32 %v3023_v12, 0.0  ;;  %v2820_v42 = vsel %vm22432_vm15, %v2764_v54, %v2765_v53  ;;  %v2766_v1 = vrot.slane %v2465_v51, 7  ;;  %v2467_v38 = vpop.f32.mrb[67].mxu1  ;;  %v2958_v51 = vsel %vm15385_vm8, %v16033_v22, 0.0  ;;  %vm22443_vm15 = vmmov %vm22434_vm1 }
 0x2a2   : > { %v3056_v52 = vmax.f32 %v3024_v5, 0.0  ;;  %v2829_v16 = vsel %vm15172_vm5, %v2820_v42, 0.0 }
 0x2a3   : > { %v2861_v20 = vadd.f32 %v2829_v16, %v2463_v2  ;;  %v2819_v19 = vsel %vm22434_vm1, %v2765_v53, %v2766_v1 }
 0x2a4   : > { %v16255_v44 = vpack.c.bf16 %v3056_v52, %v3055_v36  ;;  %v2862_v18 = vadd.f32 %v2819_v19, %v2467_v38 }
 0x2a5   : > { %v2989_v12 = vadd.f32 %v16029_v23, %v2861_v20 }
 0x2a6   : > { %v2990_v5 = vadd.f32 %v2958_v51, %v2862_v18  ;;  %v2471_v62 = vpop.f32.mrb[68].mxu1 }
 0x2a7   : > { %v3025_v42 = vadd.f32 %v16244_v41, %v2989_v12  ;;  %v2767_v56 = vrot.slane %v2471_v62, 7  ;;  %v2473_v2 = vpop.f32.mrb[69].mxu1 }
 0x2a8   : > { %v3026_v16 = vadd.f32 %v16244_v41, %v2990_v5  ;;  %v2475_v53 = vpop.f32.mrb[70].mxu1 }
 0x2a9   : > { %v3057_v14 = vmax.f32 %v3025_v42, 0.0  ;;  %v2818_v52 = vsel %vm22437_vm12, %v2766_v1, %v2767_v56  ;;  %v2768_v38 = vrot.slane %v2475_v53, 7  ;;  %v2477_v36 = vpop.f32.mrb[71].mxu1  ;;  %v2960_v42 = vsel %vm15432_vm13, %v16039_v8, 0.0 }
 0x2aa   : > { %v3058_v23 = vmax.f32 %v3026_v16, 0.0  ;;  %v2831_v19 = vsel %vm15212_vm7, %v2818_v52, 0.0 }
 0x2ab   : > { %v2863_v22 = vadd.f32 %v2831_v19, %v2473_v2  ;;  %v2817_v18 = vsel %vm22439_vm4, %v2767_v56, %v2768_v38  ;;  %vm22447_vm4 = vmmov %vm22434_vm1 }
 0x2ac   : > { %v2864_v12 = vadd.f32 %v2817_v18, %v2477_v36  ;;  %v16269_v62 = vpack.c.bf16 %v3058_v23, %v3057_v14 }
 0x2ad   : > { %v2991_v51 = vadd.f32 %v16025_v58, %v2863_v22 }
 0x2ae   : > { %v2992_v1 = vadd.f32 %v2960_v42, %v2864_v12  ;;  %v2481_v53 = vpop.f32.mrb[72].mxu1 }
 0x2af   : > { %v3027_v16 = vadd.f32 %v16244_v41, %v2991_v51  ;;  %v2769_v54 = vrot.slane %v2481_v53, 7  ;;  %v2483_v20 = vpop.f32.mrb[73].mxu1  ;;  %v2962_v53 = vsel %vm15444_vm9, %v16052_v11, 0.0 }
 0x2b0   : > { %v3028_v2 = vadd.f32 %v16244_v41, %v2992_v1  ;;  %v2485_v52 = vpop.f32.mrb[74].mxu1 }
 0x2b1   : > { %v3059_v19 = vmax.f32 %v3027_v16, 0.0  ;;  %v2816_v14 = vsel %vm22441_vm6, %v2768_v38, %v2769_v54  ;;  %v2770_v56 = vrot.slane %v2485_v52, 7  ;;  %v2487_v36 = vpop.f32.mrb[75].mxu1  ;;  %vm22448_vm6 = vnez %v22293_v7 }
 0x2b2   : > { %v3060_v58 = vmax.f32 %v3028_v2, 0.0  ;;  %v2833_v22 = vsel %vm15274_vm11, %v2816_v14, 0.0 }
 0x2b3   : > { %v2865_v8 = vadd.f32 %v2833_v22, %v2483_v20  ;;  %v2815_v18 = vsel %vm22443_vm15, %v2769_v54, %v2770_v56  ;;  %vm22449_vm15 = vmmov %vm22434_vm1 }
 0x2b4   : > { %v2866_v12 = vadd.f32 %v2815_v18, %v2487_v36  ;;  %v16283_v51 = vpack.c.bf16 %v3060_v58, %v3059_v19  ;;  %v22445_v58 = vld [vmem:[#allocation13_spill] sm:$0xff] }
 0x2b5   : > { %v2993_v42 = vadd.f32 %v16048_v59, %v2865_v8  ;;  %vm22446_vm12 = vnez %v22445_v58 }
 0x2b6   : > { %v2994_v38 = vadd.f32 %v2962_v53, %v2866_v12  ;;  %v2491_v16 = vpop.f32.mrb[76].mxu1 }
 0x2b7   : > { %v3029_v2 = vadd.f32 %v16244_v41, %v2993_v42  ;;  %v2771_v52 = vrot.slane %v2491_v16, 7  ;;  %v2493_v23 = vpop.f32.mrb[77].mxu1 }
 0x2b8   : > { %v3030_v20 = vadd.f32 %v16244_v41, %v2994_v38  ;;  %v2495_v14 = vpop.f32.mrb[78].mxu1  ;;  %v2964_v38 = vsel %vm22448_vm6, %v16056_v17, 0.0  ;;  %vm22452_vm6 = vnez %v22300_v39 }
 0x2b9   : > { %v3061_v22 = vmax.f32 %v3029_v2, 0.0  ;;  %v2814_v54 = vsel %vm22434_vm1, %v2770_v56, %v2771_v52  ;;  %v2772_v19 = vrot.slane %v2495_v14, 7  ;;  %v2497_v36 = vpop.f32.mrb[79].mxu1 }
 0x2ba   : > { %v3062_v59 = vmax.f32 %v3030_v20, 0.0  ;;  %v2835_v8 = vsel %vm22446_vm12, %v2814_v54, 0.0 }
 0x2bb   : > { %v2867_v11 = vadd.f32 %v2835_v8, %v2493_v23  ;;  %v2813_v18 = vsel %vm22447_vm4, %v2771_v52, %v2772_v19 }
 0x2bc   : > { %v2868_v12 = vadd.f32 %v2813_v18, %v2497_v36  ;;  %v16297_v42 = vpack.c.bf16 %v3062_v59, %v3061_v22  ;;  %v22450_v59 = vld [vmem:[#allocation16_spill] sm:$0xff] }
 0x2bd   : > { %v2995_v53 = vadd.f32 %v16044_v63, %v2867_v11  ;;  %vm22451_vm1 = vnez %v22450_v59 }
 0x2be   : > { %v2996_v56 = vadd.f32 %v2964_v38, %v2868_v12  ;;  %v2501_v16 = vpop.f32.mrb[80].mxu1 }
 0x2bf   : > { %v3031_v2 = vadd.f32 %v16244_v41, %v2995_v53  ;;  %v2773_v20 = vrot.slane %v2501_v16, 7  ;;  %v2503_v14 = vpop.f32.mrb[81].mxu1 }
 0x2c0   : > { %v3032_v23 = vadd.f32 %v16244_v41, %v2996_v56  ;;  %v2505_v54 = vpop.f32.mrb[82].mxu1  ;;  %v2966_v56 = vsel %vm22452_vm6, %v16068_v24, 0.0 }
 0x2c1   : > { %v3063_v8 = vmax.f32 %v3031_v2, 0.0  ;;  %v2812_v52 = vsel %vm22449_vm15, %v2772_v19, %v2773_v20  ;;  %v2774_v22 = vrot.slane %v2505_v54, 7  ;;  %v2507_v36 = vpop.f32.mrb[83].mxu1  ;;  %vm22453_vm15 = vmmov %vm22447_vm4 }
 0x2c2   : > { %v3064_v63 = vmax.f32 %v3032_v23, 0.0  ;;  %v2837_v11 = vsel %vm22451_vm1, %v2812_v52, 0.0  ;;  %vm22456_vm6 = vmmov %vm22453_vm15 }
 0x2c3   : > { %v2869_v17 = vadd.f32 %v2837_v11, %v2503_v14  ;;  %v2811_v18 = vsel %vm22447_vm4, %v2773_v20, %v2774_v22 }
 0x2c4   : > { %v2870_v12 = vadd.f32 %v2811_v18, %v2507_v36  ;;  %v16311_v53 = vpack.c.bf16 %v3064_v63, %v3063_v8  ;;  %v22454_v63 = vld [vmem:[#allocation21_spill] sm:$0xff] }
 0x2c5   : > { %v2997_v38 = vadd.f32 %v16064_v47, %v2869_v17  ;;  %vm22455_vm4 = vnez %v22454_v63 }
 0x2c6   : > { %v2998_v19 = vadd.f32 %v2966_v56, %v2870_v12  ;;  %v2511_v16 = vpop.f32.mrb[84].mxu1 }
 0x2c7   : > { %v3033_v2 = vadd.f32 %v16244_v41, %v2997_v38  ;;  %v2775_v23 = vrot.slane %v2511_v16, 7  ;;  %v2513_v54 = vpop.f32.mrb[85].mxu1 }
 0x2c8   : > { %v3034_v14 = vadd.f32 %v16244_v41, %v2998_v19  ;;  %v2515_v52 = vpop.f32.mrb[86].mxu1  ;;  %v22457_v19 = vld [vmem:[#allocation26_spill] sm:$0xff] }
 0x2c9   : > { %v3065_v11 = vmax.f32 %v3033_v2, 0.0  ;;  %v2810_v20 = vsel %vm22453_vm15, %v2774_v22, %v2775_v23  ;;  %v2776_v8 = vrot.slane %v2515_v52, 7  ;;  %v2517_v36 = vpop.f32.mrb[87].mxu1  ;;  %vm22458_vm1 = vnez %v22457_v19 }
 0x2ca   : > { %v3066_v47 = vmax.f32 %v3034_v14, 0.0  ;;  %v2839_v17 = vsel %vm22455_vm4, %v2810_v20, 0.0  ;;  %v2968_v16 = vsel %vm22458_vm1, %v16072_v3, 0.0  ;;  %vm22461_vm1 = vmmov %vm22456_vm6 }
 0x2cb   : > { %v2871_v24 = vadd.f32 %v2839_v17, %v2513_v54  ;;  %v2809_v18 = vsel %vm22456_vm6, %v2775_v23, %v2776_v8 }
 0x2cc   : > { %v2872_v12 = vadd.f32 %v2809_v18, %v2517_v36  ;;  %v16325_v38 = vpack.c.bf16 %v3066_v47, %v3065_v11  ;;  %v22459_v47 = vld [vmem:[#allocation24_spill] sm:$0xff] }
 0x2cd   : > { %v2999_v56 = vadd.f32 %v16060_v15, %v2871_v24  ;;  %vm22460_vm15 = vnez %v22459_v47 }
 0x2ce   : > { %v3000_v22 = vadd.f32 %v2968_v16, %v2872_v12  ;;  %v2521_v2 = vpop.f32.mrb[88].mxu1 }
 0x2cf   : > { %v3035_v14 = vadd.f32 %v16244_v41, %v2999_v56  ;;  %v2777_v52 = vrot.slane %v2521_v2, 7  ;;  %v2523_v63 = vpop.f32.mrb[89].mxu1 }
 0x2d0   : > { %v3036_v54 = vadd.f32 %v16244_v41, %v3000_v22  ;;  %v2525_v20 = vpop.f32.mrb[90].mxu1  ;;  %v22462_v22 = vld [vmem:[#allocation27_spill] sm:$0xff] }
 0x2d1   : > { %v3067_v17 = vmax.f32 %v3035_v14, 0.0  ;;  %v2808_v23 = vsel %vm22456_vm6, %v2776_v8, %v2777_v52  ;;  %v2778_v11 = vrot.slane %v2525_v20, 7  ;;  %v2527_v36 = vpop.f32.mrb[91].mxu1  ;;  %vm22463_vm4 = vnez %v22462_v22 }
 0x2d2   : > { %v3068_v15 = vmax.f32 %v3036_v54, 0.0  ;;  %v2841_v24 = vsel %vm22460_vm15, %v2808_v23, 0.0  ;;  %v2970_v2 = vsel %vm22463_vm4, %v16084_v33, 0.0  ;;  %vm22466_vm4 = vmmov %vm22461_vm1  ;;  %vm22467_vm15 = vnez %v22341_v46 }
 0x2d3   : > { %v2873_v3 = vadd.f32 %v2841_v24, %v2523_v63  ;;  %v2807_v18 = vsel %vm22461_vm1, %v2777_v52, %v2778_v11 }
 0x2d4   : > { %v2874_v12 = vadd.f32 %v2807_v18, %v2527_v36  ;;  %v16339_v56 = vpack.c.bf16 %v3068_v15, %v3067_v17  ;;  %v22464_v15 = vld [vmem:[#allocation28_spill] sm:$0xff] }
 0x2d5   : > { %v3001_v16 = vadd.f32 %v16080_v48, %v2873_v3  ;;  %vm22465_vm6 = vnez %v22464_v15 }
 0x2d6   : > { %v3002_v8 = vadd.f32 %v2970_v2, %v2874_v12  ;;  %v2531_v14 = vpop.f32.mrb[92].mxu1 }
 0x2d7   : > { %v3037_v54 = vadd.f32 %v16244_v41, %v3001_v16  ;;  %v2779_v20 = vrot.slane %v2531_v14, 7  ;;  %v2533_v47 = vpop.f32.mrb[93].mxu1 }
 0x2d8   : > { %v3038_v63 = vadd.f32 %v16244_v41, %v3002_v8  ;;  %v2535_v23 = vpop.f32.mrb[94].mxu1  ;;  %v2972_v8 = vsel %vm22467_vm15, %v16088_v57, 0.0 }
 0x2d9   : > { %v3069_v24 = vmax.f32 %v3037_v54, 0.0  ;;  %v2806_v52 = vsel %vm22461_vm1, %v2778_v11, %v2779_v20  ;;  %v2780_v17 = vrot.slane %v2535_v23, 7  ;;  %v2537_v36 = vpop.f32.mrb[95].mxu1 }
 0x2da   : > { %v3070_v48 = vmax.f32 %v3038_v63, 0.0  ;;  %v2843_v3 = vsel %vm22465_vm6, %v2806_v52, 0.0  ;;  %vm22472_vm6 = vnez %v22348_v60 }
 0x2db   : > { %v2875_v33 = vadd.f32 %v2843_v3, %v2533_v47  ;;  %v2805_v18 = vsel %vm22466_vm4, %v2779_v20, %v2780_v17  ;;  %vm22468_vm4 = vmmov %vm22461_vm1 }
 0x2dc   : > { %v2876_v12 = vadd.f32 %v2805_v18, %v2537_v36  ;;  %v16353_v16 = vpack.c.bf16 %v3070_v48, %v3069_v24  ;;  %v22469_v48 = vld [vmem:[#allocation29_spill] sm:$0xff]  ;;  %vm22471_vm15 = vmmov %vm22468_vm4 }
 0x2dd   : > { %v3003_v2 = vadd.f32 %v16076_v35, %v2875_v33  ;;  %vm22470_vm1 = vnez %v22469_v48 }
 0x2de   : > { %v3004_v11 = vadd.f32 %v2972_v8, %v2876_v12  ;;  %v2541_v14 = vpop.f32.mrb[96].mxu1 }
 0x2df   : > { %v3039_v54 = vadd.f32 %v16244_v41, %v3003_v2  ;;  %v2781_v63 = vrot.slane %v2541_v14, 7  ;;  %v2543_v23 = vpop.f32.mrb[97].mxu1 }
 0x2e0   : > { %v3040_v47 = vadd.f32 %v16244_v41, %v3004_v11  ;;  %v2545_v52 = vpop.f32.mrb[98].mxu1  ;;  %v2974_v11 = vsel %vm22472_vm6, %v16100_v25, 0.0 }
 0x2e1   : > { %v3071_v3 = vmax.f32 %v3039_v54, 0.0  ;;  %v2804_v20 = vsel %vm22468_vm4, %v2780_v17, %v2781_v63  ;;  %v2782_v24 = vrot.slane %v2545_v52, 7  ;;  %v2547_v36 = vpop.f32.mrb[99].mxu1 }
 0x2e2   : > { %v3072_v35 = vmax.f32 %v3040_v47, 0.0  ;;  %v2845_v33 = vsel %vm22470_vm1, %v2804_v20, 0.0  ;;  %vm22476_vm1 = vnez %v22355_v27 }
 0x2e3   : > { %v2877_v57 = vadd.f32 %v2845_v33, %v2543_v23  ;;  %v2803_v18 = vsel %vm22471_vm15, %v2781_v63, %v2782_v24  ;;  %vm22473_vm15 = vmmov %vm22468_vm4  ;;  %vm22474_vm4 = vnez %v22344_v50 }
 0x2e4   : > { %v2878_v12 = vadd.f32 %v2803_v18, %v2547_v36  ;;  %v16367_v2 = vpack.c.bf16 %v3072_v35, %v3071_v3  ;;  %vm22475_vm6 = vmmov %vm22473_vm15 }
 0x2e5   : > { %v3005_v8 = vadd.f32 %v16096_v55, %v2877_v57 }
 0x2e6   : > { %v3006_v17 = vadd.f32 %v2974_v11, %v2878_v12  ;;  %v2551_v14 = vpop.f32.mrb[100].mxu1  ;;  %v2976_v11 = vsel %vm22476_vm1, %v16104_v21, 0.0  ;;  %vm22479_vm1 = vmmov %vm22475_vm6 }
 0x2e7   : > { %v3041_v54 = vadd.f32 %v16244_v41, %v3005_v8  ;;  %v2783_v47 = vrot.slane %v2551_v14, 7  ;;  %v2553_v52 = vpop.f32.mrb[101].mxu1 }
 0x2e8   : > { %v3042_v23 = vadd.f32 %v16244_v41, %v3006_v17  ;;  %v2555_v20 = vpop.f32.mrb[102].mxu1 }
 0x2e9   : > { %v3073_v33 = vmax.f32 %v3041_v54, 0.0  ;;  %v2802_v63 = vsel %vm22473_vm15, %v2782_v24, %v2783_v47  ;;  %v2784_v3 = vrot.slane %v2555_v20, 7  ;;  %v2557_v36 = vpop.f32.mrb[103].mxu1 }
 0x2ea   : > { %v3074_v55 = vmax.f32 %v3042_v23, 0.0  ;;  %v2847_v35 = vsel %vm22474_vm4, %v2802_v63, 0.0 }
 0x2eb   : > { %v2879_v25 = vadd.f32 %v2847_v35, %v2553_v52  ;;  %v2801_v57 = vsel %vm22475_vm6, %v2783_v47, %v2784_v3 }
 0x2ec   : > { %v2880_v18 = vadd.f32 %v2801_v57, %v2557_v36  ;;  %v16381_v12 = vpack.c.bf16 %v3074_v55, %v3073_v33  ;;  %v22477_v55 = vld [vmem:[#allocation2_spill] sm:$0xff] }
 0x2ed   : > { %v3007_v8 = vadd.f32 %v16092_v0, %v2879_v25  ;;  %vm22478_vm15 = vnez %v22477_v55 }
 0x2ee   : > { %v3008_v24 = vadd.f32 %v2976_v11, %v2880_v18  ;;  %v2561_v17 = vpop.f32.mrb[104].mxu1  ;;  %v2978_v11 = vsel %vm15781_vm10, %v16116_v40, 0.0  ;;  %vm22482_vm10 = vmmov %vm22479_vm1 }
 0x2ef   : > { %v3043_v14 = vadd.f32 %v16244_v41, %v3007_v8  ;;  %v2785_v54 = vrot.slane %v2561_v17, 7  ;;  %v2563_v23 = vpop.f32.mrb[105].mxu1 }
 0x2f0   : > { %v3044_v52 = vadd.f32 %v16244_v41, %v3008_v24  ;;  %v2565_v20 = vpop.f32.mrb[106].mxu1 }
 0x2f1   : > { %v3075_v63 = vmax.f32 %v3043_v14, 0.0  ;;  %v2800_v47 = vsel %vm22475_vm6, %v2784_v3, %v2785_v54  ;;  %v2786_v33 = vrot.slane %v2565_v20, 7  ;;  %v2567_v36 = vpop.f32.mrb[107].mxu1 }
 0x2f2   : > { %v3076_v0 = vmax.f32 %v3044_v52, 0.0  ;;  %v2849_v35 = vsel %vm22478_vm15, %v2800_v47, 0.0 }
 0x2f3   : > { %v2881_v21 = vadd.f32 %v2849_v35, %v2563_v23  ;;  %v2799_v25 = vsel %vm22479_vm1, %v2785_v54, %v2786_v33 }
 0x2f4   : > { %v2882_v57 = vadd.f32 %v2799_v25, %v2567_v36  ;;  %v16395_v18 = vpack.c.bf16 %v3076_v0, %v3075_v63  ;;  %v22480_v0 = vld [vmem:[#allocation4_spill] sm:$0xff] }
 0x2f5   : > { %v3009_v8 = vadd.f32 %v16112_v43, %v2881_v21  ;;  %vm22481_vm6 = vnez %v22480_v0 }
 0x2f6   : > { %v3010_v3 = vadd.f32 %v2978_v11, %v2882_v57  ;;  %v2571_v24 = vpop.f32.mrb[108].mxu1  ;;  %v2980_v11 = vsel %vm15810_vm2, %v16126_v31, 0.0 }
 0x2f7   : > { %v3045_v17 = vadd.f32 %v16244_v41, %v3009_v8  ;;  %v2787_v14 = vrot.slane %v2571_v24, 7  ;;  %v2573_v52 = vpop.f32.mrb[109].mxu1 }
 0x2f8   : > { %v3046_v23 = vadd.f32 %v16244_v41, %v3010_v3  ;;  %v2575_v20 = vpop.f32.mrb[110].mxu1 }
 0x2f9   : > { %v3077_v47 = vmax.f32 %v3045_v17, 0.0  ;;  %v2798_v54 = vsel %vm22479_vm1, %v2786_v33, %v2787_v14  ;;  %v2788_v63 = vrot.slane %v2575_v20, 7  ;;  %v2577_v36 = vpop.f32.mrb[111].mxu1 }
 0x2fa   : > { %v3078_v43 = vmax.f32 %v3046_v23, 0.0  ;;  %v2851_v35 = vsel %vm22481_vm6, %v2798_v54, 0.0  ;;  %vm22487_vm6 = vnez %v22378_v29 }
 0x2fb   : > { %v2883_v40 = vadd.f32 %v2851_v35, %v2573_v52  ;;  %v2797_v21 = vsel %vm22482_vm10, %v2787_v14, %v2788_v63  ;;  %vm22483_vm10 = vmmov %vm22479_vm1 }
 0x2fc   : > { %v2884_v25 = vadd.f32 %v2797_v21, %v2577_v36  ;;  %v16409_v57 = vpack.c.bf16 %v3078_v43, %v3077_v47  ;;  %v22484_v43 = vld [vmem:[#allocation6_spill] sm:$0xff]  ;;  %vm22486_vm2 = vmmov %vm22483_vm10 }
 0x2fd   : > { %v3011_v8 = vadd.f32 %v16108_v26, %v2883_v40  ;;  %vm22485_vm1 = vnez %v22484_v43 }
 0x2fe   : > { %v3012_v33 = vadd.f32 %v2980_v11, %v2884_v25  ;;  %v2581_v3 = vpop.f32.mrb[112].mxu1  ;;  %v2982_v11 = vsel %vm22487_vm6, %v16144_v49, 0.0  ;;  %vm22491_vm6 = vmmov %vm22486_vm2 }
 0x2ff   : > { %v3047_v24 = vadd.f32 %v16244_v41, %v3011_v8  ;;  %v2789_v17 = vrot.slane %v2581_v3, 7  ;;  %v2583_v23 = vpop.f32.mrb[113].mxu1 }
 0x300   : > { %v3048_v52 = vadd.f32 %v16244_v41, %v3012_v33  ;;  %v2585_v20 = vpop.f32.mrb[114].mxu1 }
 0x301   : > { %v3079_v54 = vmax.f32 %v3047_v24, 0.0  ;;  %v2796_v14 = vsel %vm22483_vm10, %v2788_v63, %v2789_v17  ;;  %v2790_v47 = vrot.slane %v2585_v20, 7  ;;  %v2587_v36 = vpop.f32.mrb[115].mxu1 }
 0x302   : > { %v3080_v26 = vmax.f32 %v3048_v52, 0.0  ;;  %v2853_v35 = vsel %vm22485_vm1, %v2796_v14, 0.0  ;;  %vm22492_vm1 = vmmov %vm22486_vm2 }
 0x303   : > { %v2885_v31 = vadd.f32 %v2853_v35, %v2583_v23  ;;  %v2795_v40 = vsel %vm22486_vm2, %v2789_v17, %v2790_v47 }
 0x304   : > { %v2886_v21 = vadd.f32 %v2795_v40, %v2587_v36  ;;  %v16423_v25 = vpack.c.bf16 %v3080_v26, %v3079_v54  ;;  %v22488_v26 = vld [vmem:[#allocation10_spill] sm:$0xff] }
 0x305   : > { %v3013_v8 = vadd.f32 %v16140_v45, %v2885_v31  ;;  %vm22489_vm10 = vnez %v22488_v26  ;;  %v22490_v31 = vrot.slane %v16193_v34, 7 }
 0x306   : > { %v3014_v63 = vadd.f32 %v2982_v11, %v2886_v21  ;;  %v2591_v33 = vpop.f32.mrb[116].mxu1 }
 0x307   : > { %v3049_v3 = vadd.f32 %v16244_v41, %v3013_v8  ;;  %v2791_v24 = vrot.slane %v2591_v33, 7  ;;  %v2593_v52 = vpop.f32.mrb[117].mxu1  ;;  %v22493_v8 = vld [vmem:[#allocation11_spill] sm:$0xff] }
 0x308   : > { %v3050_v23 = vadd.f32 %v16244_v41, %v3014_v63  ;;  %v2595_v20 = vpop.f32.mrb[118].mxu1  ;;  %vm22494_vm15 = vnez %v22493_v8 }
 0x309   : > { %v3081_v14 = vmax.f32 %v3049_v3, 0.0  ;;  %v2794_v17 = vsel %vm22486_vm2, %v2790_v47, %v2791_v24  ;;  %v2792_v54 = vrot.slane %v2595_v20, 7  ;;  %v2597_v36 = vpop.f32.mrb[119].mxu1  ;;  %vm22495_vm2 = vnez %v22373_v13 }
 0x30a   : > { %v3082_v45 = vmax.f32 %v3050_v23, 0.0  ;;  %v2855_v35 = vsel %vm22489_vm10, %v2794_v17, 0.0  ;;  %v2984_v34 = vsel %vm22495_vm2, %v16136_v6, 0.0  ;;  %v3022_v23 = vadd.f32 %v16244_v41, %v16223_v30  ;;  %v14890_v6 = vld [vmem:[%s22087_s5] sm:$0xff]   ;;  %v14891_v30 = vld [vmem:[%s22087_s5 + $0x8] sm:$0xff]  }
 0x30b   : > { %v2887_v49 = vadd.f32 %v2855_v35, %v2593_v52  ;;  %v2824_v40 = vsel %vm22491_vm6, %v2792_v54, %v22490_v31  ;;  %v2793_v21 = vsel %vm22492_vm1, %v2791_v24, %v2792_v54  ;;  %v14894_v31 = vld [vmem:[%s22087_s5 + $0x20] sm:$0xff]   ;;  %vm22497_vm6 = vmmov 0  }
 0x30c   : > { %v2825_v11 = vsel %vm22494_vm15, %v2824_v40, 0.0  ;;  %v2888_v63 = vadd.f32 %v2793_v21, %v2597_v36  ;;  %v16443_v47 = vpack.c.bf16 %v3082_v45, %v3081_v14  ;;  %v3054_v36 = vmax.f32 %v3022_v23, 0.0  ;;  %v14896_v40 = vld [vmem:[%s22087_s5 + $0x30] sm:$0xff]  }
 0x30d   : > { %v3015_v33 = vadd.f32 %v16130_v4, %v2887_v49  ;;  %v2857_v3 = vadd.f32 %v2825_v11, %v16195_v9  ;;  %v14893_v49 = vld [vmem:[%s22087_s5 + $0x18] sm:$0xff]  }
 0x30e   : > { %v3016_v52 = vadd.f32 %v2984_v34, %v2888_v63  ;;  %v14905_v34 = vld [vmem:[%s22088_s6 + $0x38] sm:$0xff]  }
 0x30f   : > { %v3051_v24 = vadd.f32 %v16244_v41, %v3015_v33  ;;  %v2985_v20 = vadd.f32 %v16009_v61, %v2857_v3  ;;  %v22496_v61 = vmov 0  }
 0x310   : > { %v3052_v17 = vadd.f32 %v16244_v41, %v3016_v52 }
 0x311   : > { %v3083_v14 = vmax.f32 %v3051_v24, 0.0  ;;  %v3021_v54 = vadd.f32 %v16244_v41, %v2985_v20  ;;  %v14892_v41 = vld [vmem:[%s22087_s5 + $0x10] sm:$0xff]  }
 0x312   : > { %v3084_v4 = vmax.f32 %v3052_v17, 0.0 }
 0x313   : > { %v3053_v9 = vmax.f32 %v3021_v54, 0.0 }
 0x314   : > { %v16456_v45 = vpack.c.bf16 %v3084_v4, %v3083_v14 }
 0x315   : > { %v3085_v35 = vpack.c.bf16 %v3054_v36, %v3053_v9 }
 0x317   : > { %3294 = vmatmul.mubr.bf16.vlgmr.msra.gmra.mrb[76].mxu0 %v3085_v35  ;;  %13394 = vmatprep.mubr.bf16.mxu1 %v3085_v35 }
 0x318   : > { %13395 = vmatmul.mubr.bf16.vlgmr.msra.gmra.mrb[120].mxu1 %v16255_v44  ;;  %3303 = vmatprep.mubr.bf16.mxu0 %v22496_v61 }
 0x319   : > { %13398 = vmatprep.mubr.bf16.mxu1 %v16269_v62  ;;  %13427 = vmatpush3.bf16.msra.mxu1 %v14890_v6 }
 0x31a   : > { %13428 = vmatprep.subr.bf16.mxu1 %v22435_v28 }
 0x31d   : > { %13429 = vmatpush3.bf16.msra.mxu1 %v14891_v30 }
 0x31e   : > { %13430 = vmatprep.subr.bf16.mxu1 %v22435_v28 }
 0x31f   : > { %3304 = vmatmul.mubr.bf16.gmra.mrb[80].mxu0 %v16255_v44  ;;  %v14895_v44 = vld [vmem:[%s22087_s5 + $0x28] sm:$0xff]  }
 0x320   : > { %13399 = vmatmul.mubr.bf16.gmra.mrb[124].mxu1 %v16283_v51  ;;  %3313 = vmatprep.mubr.bf16.mxu0 %v22496_v61 }
 0x321   : > { %13402 = vmatprep.mubr.bf16.mxu1 %v16297_v42  ;;  %13431 = vmatpush3.bf16.msra.mxu1 %v14892_v41 }
 0x322   : > { %13432 = vmatprep.subr.bf16.mxu1 %v22435_v28 }
 0x325   : > { %13433 = vmatpush3.bf16.msra.mxu1 %v14893_v49 }
 0x326   : > { %13434 = vmatprep.subr.bf16.mxu1 %v22435_v28 }
 0x327   : > { %3314 = vmatmul.mubr.bf16.gmra.mrb[84].mxu0 %v16269_v62  ;;  %v14897_v62 = vld [vmem:[%s22087_s5 + $0x38] sm:$0xff]  }
 0x328   : > { %13403 = vmatmul.mubr.bf16.gmra.mrb[128].mxu1 %v16311_v53  ;;  %3323 = vmatprep.mubr.bf16.mxu0 %v22496_v61 }
 0x329   : > { %13406 = vmatprep.mubr.bf16.mxu1 %v16325_v38  ;;  %13435 = vmatpush3.bf16.msra.mxu1 %v14894_v31 }
 0x32a   : > { %13436 = vmatprep.subr.bf16.mxu1 %v22435_v28 }
 0x32d   : > { %13437 = vmatpush3.bf16.msra.mxu1 %v14895_v44 }
 0x32e   : > { %13438 = vmatprep.subr.bf16.mxu1 %v22435_v28 }
 0x32f   : > { %3324 = vmatmul.mubr.bf16.gmra.mrb[88].mxu0 %v16283_v51  ;;  %v22498_v51 = vld [vmem:[#allocation15_spill] sm:$0xff] }
 0x330   : > { %13407 = vmatmul.mubr.bf16.gmra.mrb[132].mxu1 %v16339_v56  ;;  %3333 = vmatprep.mubr.bf16.mxu0 %v22496_v61 }
 0x331   : > { %13410 = vmatprep.mubr.bf16.mxu1 %v16353_v16  ;;  %13439 = vmatpush3.bf16.msra.mxu1 %v14896_v40 }
 0x332   : > { %13440 = vmatprep.subr.bf16.mxu1 %v22435_v28 }
 0x335   : > { %13441 = vmatpush3.bf16.msra.mxu1 %v14897_v62 }
 0x337   : > { %3334 = vmatmul.mubr.bf16.gmra.mrb[92].mxu0 %v16297_v42  ;;  %v14898_v42 = vld [vmem:[%s22088_s6] sm:$0xff]  }
 0x338   : > { %13411 = vmatmul.mubr.bf16.gmra.mrb[136].mxu1 %v16367_v2  ;;  %3343 = vmatprep.mubr.bf16.mxu0 %v22496_v61 }
 0x339   : > { %13414 = vmatprep.mubr.bf16.mxu1 %v16381_v12  ;;  %13446 = vmatprep.subr.bf16.mxu0 %v14898_v42 }
 0x33a   : > { %13447 = vmatpush3.bf16.msra.mxu0 %v14898_v42 }
 0x33f   : > { %3344 = vmatmul.mubr.bf16.gmra.mrb[96].mxu0 %v16311_v53  ;;  %v14899_v53 = vld [vmem:[%s22088_s6 + $0x8] sm:$0xff]  }
 0x340   : > { %13415 = vmatmul.mubr.bf16.gmra.mrb[140].mxu1 %v16395_v18  ;;  %3353 = vmatprep.mubr.bf16.mxu0 %v22496_v61 }
 0x341   : > { %13418 = vmatprep.mubr.bf16.mxu1 %v16409_v57  ;;  %13448 = vmatprep.subr.bf16.mxu0 %v14899_v53 }
 0x342   : > { %13449 = vmatpush3.bf16.msra.mxu0 %v14899_v53 }
 0x347   : > { %3354 = vmatmul.mubr.bf16.gmra.mrb[100].mxu0 %v16325_v38  ;;  %v14900_v38 = vld [vmem:[%s22088_s6 + $0x10] sm:$0xff]  }
 0x348   : > { %13419 = vmatmul.mubr.bf16.gmra.mrb[144].mxu1 %v16423_v25  ;;  %3363 = vmatprep.mubr.bf16.mxu0 %v22496_v61 }
 0x349   : > { %13422 = vmatprep.mubr.bf16.mxu1 %v16443_v47  ;;  %13450 = vmatprep.subr.bf16.mxu0 %v14900_v38 }
 0x34a   : > { %13451 = vmatpush3.bf16.msra.mxu0 %v14900_v38 }
 0x34f   : > { %3364 = vmatmul.mubr.bf16.gmra.mrb[104].mxu0 %v16339_v56  ;;  %v14901_v56 = vld [vmem:[%s22088_s6 + $0x18] sm:$0xff]  }
 0x350   : > { %13423 = vmatmul.mubr.bf16.gmra.mrb[148].mxu1 %v16456_v45  ;;  %3373 = vmatprep.mubr.bf16.mxu0 %v22496_v61 }
 0x351   : > { %13442 = vmatprep.mubr.msk.bf16.mxu1 %vm22497_vm6, %v22435_v28  ;;  %13452 = vmatprep.subr.bf16.mxu0 %v14901_v56  ;;  %vm22499_vm6 = vcmp.lt.s32.totalorder %v15105_v37, 7 }
 0x352   : > { %13453 = vmatpush3.bf16.msra.mxu0 %v14901_v56  ;;  %vm22500_vm2 = vmmov %vm22499_vm6 }
 0x353   : > { %vm22501_vm15 = vmmov %vm22500_vm2 }
 0x357   : > { %3374 = vmatmul.mubr.bf16.gmra.mrb[108].mxu0 %v16353_v16  ;;  %v14902_v16 = vld [vmem:[%s22088_s6 + $0x20] sm:$0xff]  }
 0x358   : > { %13443 = vmatmul.mubr.bf16.vlgmr.msra.gmra.mrb[152].mxu1 %v22498_v51  ;;  %3383 = vmatprep.mubr.bf16.mxu0 %v22496_v61 }
 0x359   : > { %13454 = vmatprep.subr.bf16.mxu0 %v14902_v16 }
 0x35a   : > { %13455 = vmatpush3.bf16.msra.mxu0 %v14902_v16 }
 0x35f   : > { %3384 = vmatmul.mubr.bf16.gmra.mrb[112].mxu0 %v16367_v2  ;;  %v14903_v2 = vld [vmem:[%s22088_s6 + $0x28] sm:$0xff]  }
 0x360   : > { %3393 = vmatprep.mubr.bf16.mxu0 %v22496_v61  ;;  %13456 = vmatprep.subr.bf16.mxu0 %v14903_v2 }
 0x361   : > { %13457 = vmatpush3.bf16.msra.mxu0 %v14903_v2 }
 0x367   : > { %3394 = vmatmul.mubr.bf16.gmra.mrb[116].mxu0 %v16381_v12  ;;  %v14904_v12 = vld [vmem:[%s22088_s6 + $0x30] sm:$0xff]  }
 0x368   : > { %3403 = vmatprep.mubr.bf16.mxu0 %v22496_v61  ;;  %13458 = vmatprep.subr.bf16.mxu0 %v14904_v12 }
 0x369   : > { %13459 = vmatpush3.bf16.msra.mxu0 %v14904_v12 }
 0x36a   : > { %13460 = vmatprep.subr.bf16.mxu0 %v14905_v34 }
 0x36d   : > { %13461 = vmatpush3.bf16.msra.mxu0 %v14905_v34 }
 0x36f   : > { %3404 = vmatmul.mubr.bf16.gmra.mrb[120].mxu0 %v16395_v18 }
 0x370   : > { %3413 = vmatprep.mubr.bf16.mxu0 %v22496_v61 }
 0x377   : > { %3414 = vmatmul.mubr.bf16.gmra.mrb[124].mxu0 %v16409_v57 }
 0x378   : > { %3423 = vmatprep.mubr.bf16.mxu0 %v22496_v61 }
 0x37f   : > { %3424 = vmatmul.mubr.bf16.gmra.mrb[128].mxu0 %v16423_v25 }
 0x380   : > { %3433 = vmatprep.mubr.bf16.mxu0 %v22496_v61 }
 0x387   : > { %3434 = vmatmul.mubr.bf16.gmra.mrb[132].mxu0 %v16443_v47 }
 0x388   : > { %3443 = vmatprep.mubr.bf16.mxu0 %v22496_v61 }
 0x38f   : > { %3444 = vmatmul.mubr.bf16.gmra.mrb[136].mxu0 %v16456_v45 }
 0x3ea   : > { %v16558_v18 = vpop.f32.mrb[76].mxu0 }
 0x3eb   : > { %v16560_v57 = vpop.f32.mrb[77].mxu0  ;;  %v13396_v25 = vpop.f32.mrb[120].mxu1  ;;  %v22197_v63 = vrot.slane %v16558_v18, 7 }
 0x3ec   : > { %v3299_v21 = vpop.f32.mrb[78].mxu0  ;;  %v16562_v11 = vpop.f32.mrb[121].mxu1  ;;  %v3745_v52 = vrot.slane %v13396_v25, 1 }
 0x3ed   : > { %v3616_v47 = vrot.slane %v3299_v21, 7  ;;  %v3301_v33 = vpop.f32.mrb[79].mxu0  ;;  %v13397_v3 = vpop.f32.mrb[122].mxu1  ;;  %v22198_v20 = vrot.slane %v16562_v11, 1 }
 0x3ee   : > { %v3746_v23 = vrot.slane %v13397_v3, 1  ;;  %v3491_v24 = vpop.f32.mrb[123].mxu1 }
 0x3ef   : > { %v3677_v17 = vsel %vm22492_vm1, %v22197_v63, %v3616_v47  ;;  %v3744_v14 = vrot.slane %v3491_v24, 1 }
 0x3f0   : > { %v3712_v54 = vadd.f32 %v3677_v17, %v3301_v33  ;;  %v3803_v4 = vsel %vm22499_vm6, %v3745_v52, %v3746_v23  ;;  %vm22508_vm6 = vmmov %vm22500_vm2 }
 0x3f1   : > { %v3804_v36 = vsel %vm22500_vm2, %v3744_v14, %v3745_v52  ;;  %v16581_v9 = vsel %vm22501_vm15, %v22198_v20, %v3744_v14  ;;  %vm22505_vm15 = vmmov %vm22500_vm2 }
 0x3f2   : > { %v3808_v35 = vsel %vm15315_vm14, %v3804_v36, 0.0  ;;  %v3305_v6 = vpop.f32.mrb[80].mxu0  ;;  %vm22504_vm14 = vmmov %vm22492_vm1 }
 0x3f3   : > { %v16585_v61 = vadd.f32 %v3808_v35, %v3712_v54  ;;  %v3617_v30 = vrot.slane %v3305_v6, 7  ;;  %v3307_v41 = vpop.f32.mrb[81].mxu0  ;;  %v13400_v49 = vpop.f32.mrb[124].mxu1 }
 0x3f4   : > { %v3309_v31 = vpop.f32.mrb[82].mxu0  ;;  %v3504_v44 = vpop.f32.mrb[125].mxu1  ;;  %v3749_v16 = vrot.slane %v13400_v49, 1 }
 0x3f5   : > { %v3676_v40 = vsel %vm22492_vm1, %v3616_v47, %v3617_v30  ;;  %v3618_v62 = vrot.slane %v3309_v31, 7  ;;  %v3747_v51 = vrot.slane %v3504_v44, 1  ;;  %v3311_v42 = vpop.f32.mrb[83].mxu0  ;;  %v13401_v53 = vpop.f32.mrb[126].mxu1 }
 0x3f6   : > { %v3681_v56 = vsel %vm15142_vm3, %v3676_v40, 0.0  ;;  %v3750_v2 = vrot.slane %v13401_v53, 1  ;;  %v3507_v12 = vpop.f32.mrb[127].mxu1  ;;  %vm22507_vm3 = vmmov %vm22500_vm2 }
 0x3f7   : > { %v3713_v25 = vadd.f32 %v3681_v56, %v3307_v41  ;;  %v3675_v21 = vsel %vm22504_vm14, %v3617_v30, %v3618_v62  ;;  %v3802_v33 = vsel %vm22505_vm15, %v3746_v23, %v3747_v51  ;;  %v3748_v3 = vrot.slane %v3507_v12, 1  ;;  %v16608_v23 = vld [vmem:[%s22089_s7 + $0x3] ss:$0 sm:$0xff]  ;;  %vm22512_vm14 = vmmov %vm22500_vm2 }
 0x3f8   : > { %v3714_v34 = vadd.f32 %v3675_v21, %v3311_v42  ;;  %v3810_v52 = vsel %vm15364_vm0, %v3802_v33, 0.0  ;;  %v16599_v24 = vsel %vm22500_vm2, %v3749_v16, %v3750_v2  ;;  %vm22509_vm0 = vmmov %vm22492_vm1 }
 0x3f9   : > { %v3841_v17 = vadd.f32 %v3803_v4, %v3713_v25  ;;  %v3801_v14 = vsel %vm22507_vm3, %v3747_v51, %v3748_v3  ;;  %v3800_v54 = vsel %vm22508_vm6, %v3748_v3, %v3749_v16  ;;  %vm22511_vm1 = vmmov %vm22509_vm0 }
 0x3fa   : > { %v3842_v36 = vadd.f32 %v3810_v52, %v3714_v34  ;;  %v3315_v45 = vpop.f32.mrb[84].mxu0  ;;  %vm22513_vm15 = vmmov %vm22500_vm2 }
 0x3fb   : > { %v3877_v35 = vadd.f32 %v16608_v23, %v3841_v17  ;;  %v3619_v6 = vrot.slane %v3315_v45, 7  ;;  %v3317_v30 = vpop.f32.mrb[85].mxu0  ;;  %v13404_v41 = vpop.f32.mrb[128].mxu1  ;;  %vm22518_vm3 = vmmov %vm22509_vm0 }
 0x3fc   : > { %v3878_v4 = vadd.f32 %v16608_v23, %v3842_v36  ;;  %v3319_v49 = vpop.f32.mrb[86].mxu0  ;;  %v3520_v31 = vpop.f32.mrb[129].mxu1  ;;  %v3753_v25 = vrot.slane %v13404_v41, 1  ;;  %v3812_v41 = vsel %vm15385_vm8, %v3800_v54, 0.0  ;;  %vm22516_vm8 = vmmov %vm22509_vm0 }
 0x3fd   : > { %v3909_v44 = vmax.f32 %v3877_v35, 0.0  ;;  %v3674_v40 = vsel %vm22509_vm0, %v3618_v62, %v3619_v6  ;;  %v3620_v51 = vrot.slane %v3319_v49, 7  ;;  %v3751_v42 = vrot.slane %v3520_v31, 1  ;;  %v3321_v53 = vpop.f32.mrb[87].mxu0  ;;  %v13405_v38 = vpop.f32.mrb[130].mxu1  ;;  %vm22519_vm6 = vmmov %vm22500_vm2 }
 0x3fe   : > { %v3910_v56 = vmax.f32 %v3878_v4, 0.0  ;;  %v3683_v12 = vsel %vm15172_vm5, %v3674_v40, 0.0  ;;  %v3754_v21 = vrot.slane %v13405_v38, 1  ;;  %v3523_v33 = vpop.f32.mrb[131].mxu1  ;;  %vm22515_vm5 = vmmov %vm22500_vm2 }
 0x3ff   : > { %v3715_v3 = vadd.f32 %v3683_v12, %v3317_v30  ;;  %v3673_v34 = vsel %vm22511_vm1, %v3619_v6, %v3620_v51  ;;  %v3752_v47 = vrot.slane %v3523_v33, 1  ;;  %v3798_v52 = vsel %vm22512_vm14, %v3750_v2, %v3751_v42  ;;  %vm22520_vm0 = vmmov %vm22500_vm2 }
 0x400   : > { %v16620_v62 = vpack.c.bf16 %v3910_v56, %v3909_v44  ;;  %v3716_v17 = vadd.f32 %v3673_v34, %v3321_v53  ;;  %v16624_v36 = vsel %vm22513_vm15, %v3753_v25, %v3754_v21  ;;  %vm22522_vm1 = vmmov %vm22520_vm0 }
 0x401   : > { %v3843_v45 = vadd.f32 %v3801_v14, %v3715_v3  ;;  %v3797_v30 = vsel %vm22515_vm5, %v3751_v42, %v3752_v47  ;;  %v16632_v6 = vsel %vm22500_vm2, %v3752_v47, %v3753_v25  ;;  %vm22525_vm14 = vmmov %vm22518_vm3 }
 0x402   : > { %v3844_v4 = vadd.f32 %v3812_v41, %v3716_v17  ;;  %v3325_v2 = vpop.f32.mrb[88].mxu0  ;;  %vm22526_vm15 = vmmov %vm22520_vm0 }
 0x403   : > { %v3879_v49 = vadd.f32 %v16608_v23, %v3843_v45  ;;  %v3621_v31 = vrot.slane %v3325_v2, 7  ;;  %v3327_v44 = vpop.f32.mrb[89].mxu0  ;;  %v13408_v40 = vpop.f32.mrb[132].mxu1  ;;  %vm22527_vm5 = vmmov %vm22520_vm0 }
 0x404   : > { %v3880_v53 = vadd.f32 %v16608_v23, %v3844_v4  ;;  %v3329_v14 = vpop.f32.mrb[90].mxu0  ;;  %v3536_v38 = vpop.f32.mrb[133].mxu1  ;;  %v3757_v47 = vrot.slane %v13408_v40, 1  ;;  %vm22529_vm2 = vmmov %vm22520_vm0 }
 0x405   : > { %v3911_v56 = vmax.f32 %v3879_v49, 0.0  ;;  %v3672_v54 = vsel %vm22516_vm8, %v3620_v51, %v3621_v31  ;;  %v3622_v42 = vrot.slane %v3329_v14, 7  ;;  %v3755_v16 = vrot.slane %v3536_v38, 1  ;;  %v3331_v12 = vpop.f32.mrb[91].mxu0  ;;  %v13409_v25 = vpop.f32.mrb[134].mxu1  ;;  %vm22531_vm8 = vmmov %vm22518_vm3 }
 0x406   : > { %v3912_v33 = vmax.f32 %v3880_v53, 0.0  ;;  %v3685_v34 = vsel %vm15212_vm7, %v3672_v54, 0.0  ;;  %v3758_v17 = vrot.slane %v13409_v25, 1  ;;  %v3539_v45 = vpop.f32.mrb[135].mxu1  ;;  %vm22521_vm7 = vmmov %vm22520_vm0 }
 0x407   : > { %v3717_v35 = vadd.f32 %v3685_v34, %v3327_v44  ;;  %v3671_v41 = vsel %vm22518_vm3, %v3621_v31, %v3622_v42  ;;  %v3756_v4 = vrot.slane %v3539_v45, 1  ;;  %v16644_v2 = vsel %vm22519_vm6, %v3754_v21, %v3755_v16  ;;  %vm22533_vm6 = vmmov %vm22520_vm0 }
 0x408   : > { %v3718_v51 = vadd.f32 %v3671_v41, %v3331_v12  ;;  %v16648_v49 = vsel %vm22520_vm0, %v3757_v47, %v3758_v17  ;;  %v16650_v53 = vpack.c.bf16 %v3912_v33, %v3911_v56  ;;  %v3814_v44 = vsel %vm15432_vm13, %v3798_v52, 0.0  ;;  %vm22523_vm13 = vmmov %vm22518_vm3 }
 0x409   : > { %v3845_v40 = vadd.f32 %v16599_v24, %v3717_v35  ;;  %v16657_v31 = vsel %vm22521_vm7, %v3755_v16, %v3756_v4  ;;  %v16661_v21 = vsel %vm22522_vm1, %v3756_v4, %v3757_v47  ;;  %vm22536_vm7 = vmmov %vm22520_vm0 }
 0x40a   : > { %v3846_v14 = vadd.f32 %v3814_v44, %v3718_v51  ;;  %v3335_v38 = vpop.f32.mrb[92].mxu0  ;;  %vm22537_vm1 = vmmov %vm22531_vm8 }
 0x40b   : > { %v3881_v54 = vadd.f32 %v16608_v23, %v3845_v40  ;;  %v3623_v12 = vrot.slane %v3335_v38, 7  ;;  %v3337_v56 = vpop.f32.mrb[93].mxu0  ;;  %v13412_v25 = vpop.f32.mrb[136].mxu1 }
 0x40c   : > { %v3882_v24 = vadd.f32 %v16608_v23, %v3846_v14  ;;  %v3339_v33 = vpop.f32.mrb[94].mxu0  ;;  %v3552_v5 = vpop.f32.mrb[137].mxu1  ;;  %v3761_v51 = vrot.slane %v13412_v25, 1 }
 0x40d   : > { %v3913_v52 = vmax.f32 %v3881_v54, 0.0  ;;  %v3670_v16 = vsel %vm22523_vm13, %v3622_v42, %v3623_v12  ;;  %v3624_v3 = vrot.slane %v3339_v33, 7  ;;  %v3759_v34 = vrot.slane %v3552_v5, 1  ;;  %v3341_v45 = vpop.f32.mrb[95].mxu0  ;;  %v13413_v47 = vpop.f32.mrb[138].mxu1 }
 0x40e   : > { %v3914_v35 = vmax.f32 %v3882_v24, 0.0  ;;  %v3687_v4 = vsel %vm15274_vm11, %v3670_v16, 0.0  ;;  %v3762_v40 = vrot.slane %v13413_v47, 1  ;;  %v3555_v44 = vpop.f32.mrb[139].mxu1  ;;  %vm22528_vm11 = vmmov %vm22520_vm0  ;;  %vm22538_vm13 = vnez %v22450_v59 }
 0x40f   : > { %v3719_v38 = vadd.f32 %v3687_v4, %v3337_v56  ;;  %v3669_v14 = vsel %vm22525_vm14, %v3623_v12, %v3624_v3  ;;  %v3760_v63 = vrot.slane %v3555_v44, 1  ;;  %v16673_v54 = vsel %vm22526_vm15, %v3758_v17, %v3759_v34  ;;  %vm22539_vm14 = vmmov %vm22537_vm1 }
 0x410   : > { %v3720_v42 = vadd.f32 %v3669_v14, %v3341_v45  ;;  %v16677_v33 = vsel %vm22527_vm5, %v3761_v51, %v3762_v40  ;;  %v16679_v24 = vpack.c.bf16 %v3914_v35, %v3913_v52  ;;  %v3816_v56 = vsel %vm15444_vm9, %v16632_v6, 0.0  ;;  %vm22530_vm9 = vmmov %vm22518_vm3 }
 0x411   : > { %v3847_v5 = vadd.f32 %v3797_v30, %v3719_v38  ;;  %v16686_v12 = vsel %vm22528_vm11, %v3759_v34, %v3760_v63  ;;  %v16690_v17 = vsel %vm22529_vm2, %v3760_v63, %v3761_v51  ;;  %vm22532_vm3 = vmmov %vm22520_vm0  ;;  %vm22543_vm11 = vnez %v22300_v39 }
 0x412   : > { %v3848_v25 = vadd.f32 %v3816_v56, %v3720_v42  ;;  %v3345_v16 = vpop.f32.mrb[96].mxu0  ;;  %vm22540_vm15 = vmmov %vm22520_vm0 }
 0x413   : > { %v3883_v45 = vadd.f32 %v16608_v23, %v3847_v5  ;;  %v3625_v47 = vrot.slane %v3345_v16, 7  ;;  %v3347_v52 = vpop.f32.mrb[97].mxu0  ;;  %v13416_v35 = vpop.f32.mrb[140].mxu1  ;;  %vm22541_vm5 = vmmov %vm22520_vm0 }
 0x414   : > { %v3884_v30 = vadd.f32 %v16608_v23, %v3848_v25  ;;  %v3349_v41 = vpop.f32.mrb[98].mxu0  ;;  %v3568_v1 = vpop.f32.mrb[141].mxu1  ;;  %v3765_v42 = vrot.slane %v13416_v35, 1  ;;  %vm22544_vm2 = vmmov %vm22520_vm0 }
 0x415   : > { %v3915_v6 = vmax.f32 %v3883_v45, 0.0  ;;  %v3668_v34 = vsel %vm22530_vm9, %v3624_v3, %v3625_v47  ;;  %v3626_v4 = vrot.slane %v3349_v41, 7  ;;  %v3763_v44 = vrot.slane %v3568_v1, 1  ;;  %v3351_v38 = vpop.f32.mrb[99].mxu0  ;;  %v13417_v63 = vpop.f32.mrb[142].mxu1  ;;  %vm22545_vm9 = vmmov %vm22520_vm0 }
 0x416   : > { %v3916_v51 = vmax.f32 %v3884_v30, 0.0  ;;  %v3689_v14 = vsel %vm22446_vm12, %v3668_v34, 0.0  ;;  %v3766_v5 = vrot.slane %v13417_v63, 1  ;;  %v3571_v56 = vpop.f32.mrb[143].mxu1  ;;  %vm22535_vm12 = vnez %v22293_v7 }
 0x417   : > { %v3721_v16 = vadd.f32 %v3689_v14, %v3347_v52  ;;  %v3667_v25 = vsel %vm22531_vm8, %v3625_v47, %v3626_v4  ;;  %v3764_v20 = vrot.slane %v3571_v56, 1  ;;  %v16702_v45 = vsel %vm22532_vm3, %v3762_v40, %v3763_v44  ;;  %vm22546_vm8 = vmmov %vm22537_vm1 }
 0x418   : > { %v3722_v3 = vadd.f32 %v3667_v25, %v3351_v38  ;;  %v16706_v41 = vsel %vm22533_vm6, %v3765_v42, %v3766_v5  ;;  %v16708_v30 = vpack.c.bf16 %v3916_v51, %v3915_v6  ;;  %v3818_v52 = vsel %vm22535_vm12, %v16644_v2, 0.0  ;;  %vm22549_vm6 = vmmov %vm22537_vm1 }
 0x419   : > { %v3849_v58 = vadd.f32 %v16624_v36, %v3721_v16  ;;  %v16716_v47 = vsel %vm22520_vm0, %v3763_v44, %v3764_v20  ;;  %v16720_v40 = vsel %vm22536_vm7, %v3764_v20, %v3765_v42  ;;  %vm22550_vm12 = vmmov %vm22520_vm0 }
 0x41a   : > { %22534 = vst [vmem:[#allocation8_spill] sm:$0xff] %v16708_v30  ;;  %v3850_v35 = vadd.f32 %v3818_v52, %v3722_v3  ;;  %v3355_v1 = vpop.f32.mrb[100].mxu0  ;;  %vm22552_vm7 = vmmov %vm22520_vm0 }
 0x41b   : > { %v3885_v34 = vadd.f32 %v16608_v23, %v3849_v58  ;;  %v3627_v6 = vrot.slane %v3355_v1, 7  ;;  %v3357_v38 = vpop.f32.mrb[101].mxu0  ;;  %v13420_v63 = vpop.f32.mrb[144].mxu1 }
 0x41c   : > { %v3886_v36 = vadd.f32 %v16608_v23, %v3850_v35  ;;  %v3359_v51 = vpop.f32.mrb[102].mxu0  ;;  %v3584_v7 = vpop.f32.mrb[145].mxu1  ;;  %v3769_v3 = vrot.slane %v13420_v63, 1 }
 0x41d   : > { %v3917_v2 = vmax.f32 %v3885_v34, 0.0  ;;  %v3666_v44 = vsel %vm22537_vm1, %v3626_v4, %v3627_v6  ;;  %v3628_v14 = vrot.slane %v3359_v51, 7  ;;  %v3767_v56 = vrot.slane %v3584_v7, 1  ;;  %v3361_v16 = vpop.f32.mrb[103].mxu0  ;;  %v13421_v20 = vpop.f32.mrb[146].mxu1 }
 0x41e   : > { %v3918_v42 = vmax.f32 %v3886_v36, 0.0  ;;  %v3691_v25 = vsel %vm22538_vm13, %v3666_v44, 0.0  ;;  %v3770_v58 = vrot.slane %v13421_v20, 1  ;;  %v3587_v52 = vpop.f32.mrb[147].mxu1  ;;  %vm22553_vm1 = vnez %v22457_v19  ;;  %vm22554_vm13 = vmmov %vm22520_vm0 }
 0x41f   : > { %v3723_v1 = vadd.f32 %v3691_v25, %v3357_v38  ;;  %v3665_v35 = vsel %vm22539_vm14, %v3627_v6, %v3628_v14  ;;  %v3768_v28 = vrot.slane %v3587_v52, 1  ;;  %v16732_v34 = vsel %vm22540_vm15, %v3766_v5, %v3767_v56  ;;  %vm22555_vm14 = vmmov %vm22520_vm0 }
 0x420   : > { %v3724_v4 = vadd.f32 %v3665_v35, %v3361_v16  ;;  %v16736_v51 = vsel %vm22541_vm5, %v3769_v3, %v3770_v58  ;;  %v16738_v36 = vpack.c.bf16 %v3918_v42, %v3917_v2  ;;  %v3820_v38 = vsel %vm22543_vm11, %v16661_v21, 0.0  ;;  %vm22556_vm15 = vmmov %vm22549_vm6 }
 0x421   : > { %v3851_v59 = vadd.f32 %v16657_v31, %v3723_v1  ;;  %v16746_v6 = vsel %vm22544_vm2, %v3767_v56, %v3768_v28  ;;  %v16750_v5 = vsel %vm22545_vm9, %v3768_v28, %v3769_v3  ;;  %vm22559_vm11 = vmmov %vm22549_vm6  ;;  %vm22560_vm2 = vnez %v22462_v22 }
 0x422   : > { %22542 = vst [vmem:[#allocation9_spill] sm:$0xff] %v16738_v36  ;;  %v3852_v63 = vadd.f32 %v3820_v38, %v3724_v4  ;;  %v3365_v7 = vpop.f32.mrb[104].mxu0  ;;  %v22547_v4 = vld [vmem:[#allocation21_spill] sm:$0xff]  ;;  %vm22561_vm9 = vmmov %vm22549_vm6 }
 0x423   : > { %v3887_v44 = vadd.f32 %v16608_v23, %v3851_v59  ;;  %v3629_v2 = vrot.slane %v3365_v7, 7  ;;  %v3367_v16 = vpop.f32.mrb[105].mxu0  ;;  %v13424_v20 = vpop.f32.mrb[148].mxu1  ;;  %vm22548_vm3 = vnez %v22547_v4 }
 0x424   : > { %v3888_v31 = vadd.f32 %v16608_v23, %v3852_v63  ;;  %v3369_v42 = vpop.f32.mrb[106].mxu0  ;;  %v3600_v39 = vpop.f32.mrb[149].mxu1  ;;  %v3773_v56 = vrot.slane %v13424_v20, 1 }
 0x425   : > { %v3664_v21 = vsel %vm22546_vm8, %v3628_v14, %v3629_v2  ;;  %v3630_v25 = vrot.slane %v3369_v42, 7  ;;  %v3771_v52 = vrot.slane %v3600_v39, 1  ;;  %v3371_v1 = vpop.f32.mrb[107].mxu0  ;;  %v13425_v28 = vpop.f32.mrb[150].mxu1  ;;  %v3919_v3 = vmax.f32 %v3887_v44, 0.0 }
 0x426   : > { %v3920_v35 = vmax.f32 %v3888_v31, 0.0  ;;  %v3693_v59 = vsel %vm22548_vm3, %v3664_v21, 0.0  ;;  %v3774_v38 = vrot.slane %v13425_v28, 1  ;;  %v3603_v7 = vpop.f32.mrb[151].mxu1  ;;  %v22551_v44 = vrot.slane %v16562_v11, 1  ;;  %vm22563_vm3 = vmmov %vm22549_vm6 }
 0x427   : > { %v3725_v36 = vadd.f32 %v3693_v59, %v3367_v16  ;;  %v3663_v63 = vsel %vm22549_vm6, %v3629_v2, %v3630_v25  ;;  %v3772_v30 = vrot.slane %v3603_v7, 1  ;;  %v16762_v14 = vsel %vm22550_vm12, %v3770_v58, %v3771_v52  ;;  %vm22565_vm12 = vmmov %vm22563_vm3 }
 0x428   : > { %v3726_v20 = vadd.f32 %v3663_v63, %v3371_v1  ;;  %v16766_v42 = vsel %vm22520_vm0, %v3773_v56, %v3774_v38  ;;  %v16772_v31 = vsel %vm22552_vm7, %v3774_v38, %v22551_v44  ;;  %v3822_v2 = vsel %vm22553_vm1, %v16673_v54, 0.0  ;;  %vm22567_vm7 = vmmov %vm22563_vm3 }
 0x429   : > { %v3853_v16 = vadd.f32 %v16648_v49, %v3725_v36  ;;  %v16780_v58 = vsel %vm22554_vm13, %v3771_v52, %v3772_v30  ;;  %v16784_v39 = vsel %vm22555_vm14, %v3772_v30, %v3773_v56  ;;  %v16786_v1 = vpack.c.bf16 %v3920_v35, %v3919_v3  ;;  %v22557_v35 = vld [vmem:[#allocation24_spill] sm:$0xff]  ;;  %vm22569_vm13 = vmmov %vm22563_vm3 }
 0x42a   : > { %v3854_v21 = vadd.f32 %v3822_v2, %v3726_v20  ;;  %v3375_v11 = vpop.f32.mrb[108].mxu0  ;;  %vm22558_vm5 = vnez %v22557_v35  ;;  %vm22562_vm8 = vnez %v22464_v15  ;;  %vm22564_vm6 = vnez %v22341_v46  ;;  %vm22570_vm14 = vmmov %vm22563_vm3 }
 0x42b   : > { %v3889_v28 = vadd.f32 %v16608_v23, %v3853_v16  ;;  %v3631_v4 = vrot.slane %v3375_v11, 7  ;;  %v3377_v49 = vpop.f32.mrb[109].mxu0  ;;  %v16789_v36 = vpop.f32.mrb[152].mxu1  ;;  %vm22566_vm0 = vnez %v22469_v48  ;;  %vm22568_vm1 = vnez %v22348_v60 }
 0x42c   : > { %v3890_v19 = vadd.f32 %v16608_v23, %v3854_v21  ;;  %v3379_v54 = vpop.f32.mrb[110].mxu0  ;;  %v13444_v59 = vpop.f32.mrb[153].mxu1 }
 0x42d   : > { %v3921_v52 = vmax.f32 %v3889_v28, 0.0  ;;  %v3662_v38 = vsel %vm22556_vm15, %v3630_v25, %v3631_v4  ;;  %v3632_v30 = vrot.slane %v3379_v54, 7  ;;  %v3381_v56 = vpop.f32.mrb[111].mxu0  ;;  %v16794_v7 = vpop.f32.mrb[154].mxu1  ;;  %v3824_v25 = vsel %vm22560_vm2, %v16690_v17, 0.0 }
 0x42e   : > { %v3922_v3 = vmax.f32 %v3890_v19, 0.0  ;;  %v3695_v63 = vsel %vm22558_vm5, %v3662_v38, 0.0  ;;  %v13445_v20 = vpop.f32.mrb[155].mxu1  ;;  %vm22571_vm15 = vnez %v22355_v27  ;;  %vm22573_vm5 = vnez %v22477_v55 }
 0x42f   : > { %v3727_v44 = vadd.f32 %v3695_v63, %v3377_v49  ;;  %v3661_v16 = vsel %vm22559_vm11, %v3631_v4, %v3632_v30  ;;  %vm22574_vm11 = vmmov %vm22563_vm3  ;;  %vm22575_vm2 = vnez %v22366_v32 }
 0x430   : > { %v3728_v2 = vadd.f32 %v3661_v16, %v3381_v56  ;;  %v16800_v21 = vpack.c.bf16 %v3922_v3, %v3921_v52 }
 0x431   : > { %v3855_v11 = vadd.f32 %v16686_v12, %v3727_v44 }
 0x432   : > { %v3856_v28 = vadd.f32 %v3824_v25, %v3728_v2  ;;  %v3385_v54 = vpop.f32.mrb[112].mxu0  ;;  %v3826_v2 = vsel %vm22564_vm6, %v16702_v45, 0.0  ;;  %vm22578_vm6 = vnez %v22370_v10 }
 0x433   : > { %v3891_v19 = vadd.f32 %v16608_v23, %v3855_v11  ;;  %v3633_v59 = vrot.slane %v3385_v54, 7  ;;  %v3387_v38 = vpop.f32.mrb[113].mxu0 }
 0x434   : > { %v3892_v49 = vadd.f32 %v16608_v23, %v3856_v28  ;;  %v3389_v35 = vpop.f32.mrb[114].mxu0 }
 0x435   : > { %v3923_v63 = vmax.f32 %v3891_v19, 0.0  ;;  %v3660_v4 = vsel %vm22561_vm9, %v3632_v30, %v3633_v59  ;;  %v3634_v52 = vrot.slane %v3389_v35, 7  ;;  %v3391_v56 = vpop.f32.mrb[115].mxu0  ;;  %vm22576_vm9 = vmmov %vm22563_vm3 }
 0x436   : > { %v3924_v12 = vmax.f32 %v3892_v49, 0.0  ;;  %v3697_v22 = vsel %vm22562_vm8, %v3660_v4, 0.0  ;;  %vm22577_vm8 = vnez %v22480_v0 }
 0x437   : > { %v3729_v17 = vadd.f32 %v3697_v22, %v3387_v38  ;;  %v3659_v3 = vsel %vm22563_vm3, %v3633_v59, %v3634_v52  ;;  %v3828_v22 = vsel %vm22568_vm1, %v16720_v40, 0.0  ;;  %vm22582_vm1 = vnez %v22378_v29 }
 0x438   : > { %v3730_v20 = vadd.f32 %v3659_v3, %v3391_v56  ;;  %v16814_v44 = vpack.c.bf16 %v3924_v12, %v3923_v63 }
 0x439   : > { %v3857_v16 = vadd.f32 %v16677_v33, %v3729_v17 }
 0x43a   : > { %v3858_v30 = vadd.f32 %v3826_v2, %v3730_v20  ;;  %v3395_v11 = vpop.f32.mrb[116].mxu0 }
 0x43b   : > { %v3893_v25 = vadd.f32 %v16608_v23, %v3857_v16  ;;  %v3635_v28 = vrot.slane %v3395_v11, 7  ;;  %v3397_v15 = vpop.f32.mrb[117].mxu0 }
 0x43c   : > { %v3894_v54 = vadd.f32 %v16608_v23, %v3858_v30  ;;  %v3399_v19 = vpop.f32.mrb[118].mxu0 }
 0x43d   : > { %v3925_v38 = vmax.f32 %v3893_v25, 0.0  ;;  %v3658_v59 = vsel %vm22565_vm12, %v3634_v52, %v3635_v28  ;;  %v3636_v49 = vrot.slane %v3399_v19, 7  ;;  %v3401_v35 = vpop.f32.mrb[119].mxu0  ;;  %vm22579_vm12 = vmmov %vm22563_vm3 }
 0x43e   : > { %v3926_v33 = vmax.f32 %v3894_v54, 0.0  ;;  %v3699_v46 = vsel %vm22566_vm0, %v3658_v59, 0.0  ;;  %v3830_v59 = vsel %vm22571_vm15, %v16732_v34, 0.0  ;;  %vm22580_vm0 = vnez %v22484_v43  ;;  %vm22586_vm15 = vmmov %vm22563_vm3 }
 0x43f   : > { %v3731_v45 = vadd.f32 %v3699_v46, %v3397_v15  ;;  %v3657_v63 = vsel %vm22567_vm7, %v3635_v28, %v3636_v49  ;;  %vm22581_vm7 = vmmov %vm22563_vm3 }
 0x440   : > { %v3732_v4 = vadd.f32 %v3657_v63, %v3401_v35  ;;  %v16828_v56 = vpack.c.bf16 %v3926_v33, %v3925_v38 }
 0x441   : > { %v3859_v12 = vadd.f32 %v16716_v47, %v3731_v45 }
 0x442   : > { %v3860_v52 = vadd.f32 %v3828_v22, %v3732_v4  ;;  %v3405_v17 = vpop.f32.mrb[120].mxu0 }
 0x443   : > { %v3895_v3 = vadd.f32 %v16608_v23, %v3859_v12  ;;  %v3637_v20 = vrot.slane %v3405_v17, 7  ;;  %v3407_v48 = vpop.f32.mrb[121].mxu0 }
 0x444   : > { %v3896_v16 = vadd.f32 %v16608_v23, %v3860_v52  ;;  %v3409_v2 = vpop.f32.mrb[122].mxu0 }
 0x445   : > { %v3927_v30 = vmax.f32 %v3895_v3, 0.0  ;;  %v3656_v11 = vsel %vm22569_vm13, %v3636_v49, %v3637_v20  ;;  %v3638_v25 = vrot.slane %v3409_v2, 7  ;;  %v3411_v28 = vpop.f32.mrb[123].mxu0  ;;  %vm22583_vm13 = vmmov %vm22563_vm3 }
 0x446   : > { %v3928_v47 = vmax.f32 %v3896_v16, 0.0  ;;  %v3701_v60 = vsel %vm22474_vm4, %v3656_v11, 0.0  ;;  %vm22572_vm4 = vmmov %vm22563_vm3  ;;  %v3832_v16 = vsel %vm22575_vm2, %v16750_v5, 0.0 }
 0x447   : > { %v3733_v40 = vadd.f32 %v3701_v60, %v3407_v48  ;;  %v3655_v15 = vsel %vm22570_vm14, %v3637_v20, %v3638_v25  ;;  %vm22585_vm14 = vmmov %vm22563_vm3 }
 0x448   : > { %v3734_v54 = vadd.f32 %v3655_v15, %v3411_v28  ;;  %v16842_v19 = vpack.c.bf16 %v3928_v47, %v3927_v30 }
 0x449   : > { %v3861_v38 = vadd.f32 %v16706_v41, %v3733_v40 }
 0x44a   : > { %v3862_v49 = vadd.f32 %v3830_v59, %v3734_v54  ;;  %v3415_v35 = vpop.f32.mrb[124].mxu0 }
 0x44b   : > { %v3897_v33 = vadd.f32 %v16608_v23, %v3861_v38  ;;  %v3639_v46 = vrot.slane %v3415_v35, 7  ;;  %v3417_v50 = vpop.f32.mrb[125].mxu0 }
 0x44c   : > { %v3898_v45 = vadd.f32 %v16608_v23, %v3862_v49  ;;  %v3419_v63 = vpop.f32.mrb[126].mxu0 }
 0x44d   : > { %v3929_v4 = vmax.f32 %v3897_v33, 0.0  ;;  %v3654_v12 = vsel %vm22572_vm4, %v3638_v25, %v3639_v46  ;;  %v3640_v22 = vrot.slane %v3419_v63, 7  ;;  %v3421_v52 = vpop.f32.mrb[127].mxu0  ;;  %v3834_v33 = vsel %vm22578_vm6, %v16762_v14, 0.0 }
 0x44e   : > { %v3930_v41 = vmax.f32 %v3898_v45, 0.0  ;;  %v3703_v27 = vsel %vm22573_vm5, %v3654_v12, 0.0  ;;  %vm22587_vm4 = vnez %v22493_v8 }
 0x44f   : > { %v3735_v34 = vadd.f32 %v3703_v27, %v3417_v50  ;;  %v3653_v17 = vsel %vm22574_vm11, %v3639_v46, %v3640_v22 }
 0x450   : > { %v3736_v3 = vadd.f32 %v3653_v17, %v3421_v52  ;;  %v16856_v20 = vpack.c.bf16 %v3930_v41, %v3929_v4 }
 0x451   : > { %v3863_v48 = vadd.f32 %v16746_v6, %v3735_v34 }
 0x452   : > { %v3864_v2 = vadd.f32 %v3832_v16, %v3736_v3  ;;  %v3425_v30 = vpop.f32.mrb[128].mxu0  ;;  %v3836_v16 = vsel %vm22582_vm1, %v16784_v39, 0.0 }
 0x453   : > { %v3899_v11 = vadd.f32 %v16608_v23, %v3863_v48  ;;  %v3641_v25 = vrot.slane %v3425_v30, 7  ;;  %v3427_v55 = vpop.f32.mrb[129].mxu0 }
 0x454   : > { %v3900_v28 = vadd.f32 %v16608_v23, %v3864_v2  ;;  %v3429_v47 = vpop.f32.mrb[130].mxu0 }
 0x455   : > { %v3931_v60 = vmax.f32 %v3899_v11, 0.0  ;;  %v3652_v40 = vsel %vm22576_vm9, %v3640_v22, %v3641_v25  ;;  %v3642_v15 = vrot.slane %v3429_v47, 7  ;;  %v3431_v54 = vpop.f32.mrb[131].mxu0 }
 0x456   : > { %v3932_v6 = vmax.f32 %v3900_v28, 0.0  ;;  %v3705_v32 = vsel %vm22577_vm8, %v3652_v40, 0.0 }
 0x457   : > { %v3737_v5 = vadd.f32 %v3705_v32, %v3427_v55  ;;  %v3651_v38 = vsel %vm22563_vm3, %v3641_v25, %v3642_v15 }
 0x458   : > { %v3738_v59 = vadd.f32 %v3651_v38, %v3431_v54  ;;  %v16870_v49 = vpack.c.bf16 %v3932_v6, %v3931_v60  ;;  %v22584_v54 = vrot.slane %v16558_v18, 7 }
 0x459   : > { %v3865_v35 = vadd.f32 %v16736_v51, %v3737_v5 }
 0x45a   : > { %v3866_v46 = vadd.f32 %v3834_v33, %v3738_v59  ;;  %v3435_v50 = vpop.f32.mrb[132].mxu0 }
 0x45b   : > { %v3901_v45 = vadd.f32 %v16608_v23, %v3865_v35  ;;  %v3643_v63 = vrot.slane %v3435_v50, 7  ;;  %v3437_v0 = vpop.f32.mrb[133].mxu0 }
 0x45c   : > { %v3902_v4 = vadd.f32 %v16608_v23, %v3866_v46  ;;  %v3439_v12 = vpop.f32.mrb[134].mxu0 }
 0x45d   : > { %v3933_v22 = vmax.f32 %v3901_v45, 0.0  ;;  %v3650_v52 = vsel %vm22579_vm12, %v3642_v15, %v3643_v63  ;;  %v3644_v41 = vrot.slane %v3439_v12, 7  ;;  %v3441_v27 = vpop.f32.mrb[135].mxu0  ;;  %v3876_v45 = vadd.f32 %v16608_v23, %v16585_v61  ;;  %v735_v61 = vld [vmem:[%s22089_s7 + $0x6] sm:$0x1] }
 0x45e   : > { %v3934_v51 = vmax.f32 %v3902_v4, 0.0  ;;  %v3707_v10 = vsel %vm22580_vm0, %v3650_v52, 0.0  ;;  %13498 = vpush %v735_v61 }
 0x45f   : > { %v3739_v14 = vadd.f32 %v3707_v10, %v3437_v0  ;;  %v3649_v34 = vsel %vm22581_vm7, %v3643_v63, %v3644_v41 }
 0x460   : > { %v3740_v17 = vadd.f32 %v3649_v34, %v3441_v27  ;;  %v4058_v3 = vpack.c.bf16 %v3934_v51, %v3933_v22 }
 0x461   : > { %v3867_v48 = vadd.f32 %v16780_v58, %v3739_v14 }
 0x462   : > { %v3868_v2 = vadd.f32 %v3836_v16, %v3740_v17  ;;  %v3445_v30 = vpop.f32.mrb[136].mxu0 }
 0x463   : > { %v3903_v11 = vadd.f32 %v16608_v23, %v3867_v48  ;;  %v3645_v25 = vrot.slane %v3445_v30, 7  ;;  %v3447_v55 = vpop.f32.mrb[137].mxu0 }
 0x464   : > { %v3904_v43 = vadd.f32 %v16608_v23, %v3868_v2  ;;  %v3449_v28 = vpop.f32.mrb[138].mxu0  ;;  %v16952_v2 = vld [vmem:[%s22089_s7 + $0x5] ss:$0 sm:$0xff] }
 0x465   : > { %v3935_v47 = vmax.f32 %v3903_v11, 0.0  ;;  %v3648_v60 = vsel %vm22583_vm13, %v3644_v41, %v3645_v25  ;;  %v3646_v40 = vrot.slane %v3449_v28, 7  ;;  %v3451_v15 = vpop.f32.mrb[139].mxu0  ;;  %v16945_v41 = vld [vmem:[%s22089_s7 + $0x4] ss:$0 sm:$0xff] }
 0x466   : > { %v3936_v58 = vmax.f32 %v3904_v43, 0.0  ;;  %v3709_v29 = vsel %vm22489_vm10, %v3648_v60, 0.0  ;;  %vm22588_vm10 = vnez %v22373_v13  ;;  %v22589_v13 = vld [vmem:[#allocation8_spill] sm:$0xff] }
 0x467   : > { %v3741_v39 = vadd.f32 %v3709_v29, %v3447_v55  ;;  %v3678_v6 = vsel %vm22585_vm14, %v3646_v40, %v22584_v54  ;;  %v3647_v32 = vsel %vm22586_vm15, %v3645_v25, %v3646_v40  ;;  %v3838_v26 = vsel %vm22588_vm10, %v16772_v31, 0.0 }
 0x468   : > { %v3679_v5 = vsel %vm22587_vm4, %v3678_v6, 0.0  ;;  %v3742_v38 = vadd.f32 %v3647_v32, %v3451_v15  ;;  %v4059_v59 = vpack.c.bf16 %v3936_v58, %v3935_v47 }
 0x469   : > { %v3869_v35 = vadd.f32 %v16766_v42, %v3741_v39  ;;  %v3711_v33 = vadd.f32 %v3679_v5, %v16560_v57  ;;  %v3908_v57 = vmax.f32 %v3876_v45, 0.0 }
 0x46a   : > { %v3870_v18 = vadd.f32 %v3838_v26, %v3742_v38 }
 0x46b   : > { %v3905_v46 = vadd.f32 %v16608_v23, %v3869_v35  ;;  %v3839_v50 = vadd.f32 %v16581_v9, %v3711_v33  ;;  %v22590_v9 = vld [vmem:[#allocation9_spill] sm:$0xff] }
 0x46c   : > { %v3906_v8 = vadd.f32 %v16608_v23, %v3870_v18 }
 0x46d   : > { %v3937_v63 = vmax.f32 %v3905_v46, 0.0  ;;  %v3875_v0 = vadd.f32 %v16608_v23, %v3839_v50  ;;  %v14917_v23 = vmov 1966171168  }
 0x46e   : > { %v3938_v42 = vmax.f32 %v3906_v8, 0.0 }
 0x46f   : > { %v3907_v4 = vmax.f32 %v3875_v0, 0.0 }
 0x470   : > { %v4060_v12 = vpack.c.bf16 %v3938_v42, %v3937_v63 }
 0x471   : > { %v4045_v22 = vpack.c.bf16 %v3908_v57, %v3907_v4 }
 0x473   : > { %13462 = vmatprep.mubr.bf16.mxu0 %v4045_v22 }
 0x474   : > { %13463 = vmatmul.mubr.bf16.vlgmr.msra.gmra.mrb[140].mxu0 %v16620_v62  ;;  %v4290_v62 = vunpack.c.l.s4 %v14917_v23 }
 0x475   : > { %13466 = vmatprep.mubr.bf16.mxu0 %v16650_v53 }
 0x476   : > { %v4291_v53 = vunpack.c.0.s8 %v4290_v62 }
 0x47c   : > { %13467 = vmatmul.mubr.bf16.gmra.mrb[144].mxu0 %v16679_v24  ;;  %v16929_v24 = vsub.s32 %v4291_v53, %v15105_v37 }
 0x47d   : > { %13470 = vmatprep.mubr.bf16.mxu0 %v22589_v13 }
 0x47e   : > { %v4295_v31 = vrot.slane %v16789_v36, %v16929_v24 }
 0x484   : > { %13471 = vmatmul.mubr.bf16.gmra.mrb[148].mxu0 %v22590_v9 }
 0x485   : > { %13474 = vmatprep.mubr.bf16.mxu0 %v16786_v1  ;;  %v4303_v1 = vcombine.high %v4295_v31, %v4295_v31 }
 0x48c   : > { %13475 = vmatmul.mubr.bf16.gmra.mrb[152].mxu0 %v16800_v21  ;;  %v4325_v21 = vrot.slane %v4303_v1, %v16929_v24 }
 0x48d   : > { %13478 = vmatprep.mubr.bf16.mxu0 %v16814_v44  ;;  %v4311_v44 = vrot.slane %v4295_v31, %v16929_v24 }
 0x48e   : > { %v4335_v48 = vcombine.high %v4325_v21, %v4325_v21 }
 0x48f   : > { %v4333_v30 = vcombine.high %v4311_v44, %v4311_v44  ;;  %s13499_s22 = spop %13498 }
 0x494   : > { %13479 = vmatmul.mubr.bf16.gmra.mrb[156].mxu0 %v16828_v56  ;;  %v16936_v56 = vsub.s32 0, %v15105_v37 }
 0x495   : > { %13482 = vmatprep.mubr.bf16.mxu0 %v16842_v19  ;;  %v4288_v19 = vcombine.high %v16789_v36, %v16789_v36 }
 0x496   : > { %v4389_v52 = vrot.slane %v4311_v44, %v16936_v56  ;;  %v4401_v40 = vrot.slane %v4335_v48, %v16936_v56  ;;  %v4397_v39 = vrot.slane %v4333_v30, %v16936_v56 }
 0x497   : > { %v4302_v34 = vrot.slane %v4288_v19, %v16929_v24 }
 0x499   : > { %v4304_v47 = vcombine.high %v4302_v34, %v4302_v34  ;;  %v4318_v8 = vrot.slane %v4302_v34, %v16929_v24 }
 0x49b   : > { %v4332_v18 = vrot.slane %v4304_v47, %v16929_v24  ;;  %v4405_v9 = vrot.slane %v4318_v8, %v16936_v56 }
 0x49c   : > { %13483 = vmatmul.mubr.bf16.gmra.mrb[160].mxu0 %v16856_v20  ;;  %v4393_v20 = vrot.slane %v4325_v21, %v16936_v56  ;;  %v4344_v21 = vrot.slane %v16794_v7, %v16929_v24 }
 0x49d   : > { %13486 = vmatprep.mubr.bf16.mxu0 %v16870_v49  ;;  %v4409_v57 = vrot.slane %v4332_v18, %v16936_v56 }
 0x49e   : > { %v4352_v48 = vcombine.high %v4344_v21, %v4344_v21 }
 0x4a4   : > { %13487 = vmatmul.mubr.bf16.gmra.mrb[164].mxu0 %v4058_v3 }
 0x4a5   : > { %13490 = vmatprep.mubr.bf16.mxu0 %v4059_v59 }
 0x4ac   : > { %13491 = vmatmul.mubr.bf16.gmra.mrb[168].mxu0 %v4060_v12 }
 0x547   : > { %v13464_v49 = vpop.f32.mrb[140].mxu0 }
 0x548   : > { %v4468_v27 = vadd.f32 %v13464_v49, %v4393_v20  ;;  %v4159_v51 = vpop.f32.mrb[141].mxu0  ;;  %v4336_v49 = vcombine.high %v4332_v18, %v4332_v18  ;;  %v4337_v18 = vcombine.high %v16794_v7, %v16794_v7 }
 0x549   : > { %v4466_v10 = vadd.f32 %v4389_v52, %v4159_v51  ;;  %v13465_v14 = vpop.f32.mrb[142].mxu0 }
 0x54a   : > { %v4469_v17 = vadd.f32 %v13465_v14, %v4393_v20  ;;  %v4162_v3 = vpop.f32.mrb[143].mxu0  ;;  %v4504_v36 = vadd.f32 %v16945_v41, %v4468_v27  ;;  %v4351_v7 = vrot.slane %v4337_v18, %v16929_v24 }
 0x54b   : > { %v4467_v16 = vadd.f32 %v4389_v52, %v4162_v3  ;;  %v4502_v11 = vadd.f32 %v16945_v41, %v4466_v10  ;;  %v4334_v10 = vcombine.high %v4318_v8, %v4318_v8 }
 0x54c   : > { %v4505_v25 = vadd.f32 %v16945_v41, %v4469_v17  ;;  %v4536_v55 = vmax.f32 %v4504_v36, 0.0 }
 0x54d   : > { %v4503_v43 = vadd.f32 %v16945_v41, %v4467_v16  ;;  %v4534_v28 = vmax.f32 %v4502_v11, 0.0  ;;  %v4417_v16 = vrot.slane %v4336_v49, %v16936_v56 }
 0x54e   : > { %v4537_v60 = vmax.f32 %v4505_v25, 0.0  ;;  %v4572_v15 = vmul.f32 %v16952_v2, %v4536_v55  ;;  %v4413_v55 = vrot.slane %v4334_v10, %v16936_v56 }
 0x54f   : > { %v4535_v58 = vmax.f32 %v4503_v43, 0.0  ;;  %v13468_v29 = vpop.f32.mrb[144].mxu0  ;;  %v4570_v54 = vmul.f32 %v16952_v2, %v4534_v28 }
 0x550   : > { %v4472_v6 = vadd.f32 %v13468_v29, %v4401_v40  ;;  %4606 = vadd.xlane.f32.xlu1 %v4572_v15  ;;  %v4175_v32 = vpop.f32.mrb[145].mxu0  ;;  %v4573_v26 = vmul.f32 %v16952_v2, %v4537_v60 }
 0x551   : > { %v4470_v5 = vadd.f32 %v4397_v39, %v4175_v32  ;;  %4602 = vadd.xlane.f32.xlu0 %v4570_v54  ;;  %v13469_v38 = vpop.f32.mrb[146].mxu0  ;;  %v4571_v45 = vmul.f32 %v16952_v2, %v4535_v58  ;;  %v4374_v54 = vrot.slane %v4352_v48, %v16929_v24 }
 0x552   : > { %v4508_v59 = vadd.f32 %v16945_v41, %v4472_v6  ;;  %v4473_v35 = vadd.f32 %v13469_v38, %v4401_v40  ;;  %v4178_v33 = vpop.f32.mrb[147].mxu0  ;;  %v4360_v6 = vrot.slane %v4344_v21, %v16929_v24 }
 0x553   : > { %v4506_v46 = vadd.f32 %v16945_v41, %v4470_v5  ;;  %v4471_v50 = vadd.f32 %v4397_v39, %v4178_v33 }
 0x554   : > { %v4540_v63 = vmax.f32 %v4508_v59, 0.0  ;;  %v4509_v0 = vadd.f32 %v16945_v41, %v4473_v35  ;;  %4608 = vadd.xlane.f32.xlu1 %v4573_v26  ;;  %v4382_v21 = vcombine.high %v4360_v6, %v4360_v6 }
 0x555   : > { %v4507_v42 = vadd.f32 %v16945_v41, %v4471_v50  ;;  %4604 = vadd.xlane.f32.xlu0 %v4571_v45  ;;  %v4538_v22 = vmax.f32 %v4506_v46, 0.0  ;;  %v4425_v50 = vrot.slane %v4374_v54, %v16936_v56 }
 0x556   : > { %v4541_v4 = vmax.f32 %v4509_v0, 0.0  ;;  %v4576_v12 = vmul.f32 %v16952_v2, %v4540_v63  ;;  %v4421_v0 = vrot.slane %v4360_v6, %v16936_v56 }
 0x557   : > { %v13472_v13 = vpop.f32.mrb[148].mxu0  ;;  %v4539_v61 = vmax.f32 %v4507_v42, 0.0  ;;  %v4574_v51 = vmul.f32 %v16952_v2, %v4538_v22 }
 0x558   : > { %v4476_v23 = vadd.f32 %v13472_v13, %v4409_v57  ;;  %v4191_v62 = vpop.f32.mrb[149].mxu0  ;;  %v4577_v53 = vmul.f32 %v16952_v2, %v4541_v4 }
 0x559   : > { %v4474_v31 = vadd.f32 %v4405_v9, %v4191_v62  ;;  %4614 = vadd.xlane.f32.xlu0 %v4576_v12  ;;  %v13473_v1 = vpop.f32.mrb[150].mxu0  ;;  %v4575_v17 = vmul.f32 %v16952_v2, %v4539_v61  ;;  %v4384_v62 = vcombine.high %v4374_v54, %v4374_v54 }
 0x55a   : > { %v4512_v44 = vadd.f32 %v16945_v41, %v4476_v23  ;;  %v4477_v19 = vadd.f32 %v13473_v1, %v4409_v57  ;;  %4616 = vadd.xlane.f32.xlu1 %v4577_v53  ;;  %v4194_v20 = vpop.f32.mrb[151].mxu0 }
 0x55b   : > { %v4510_v52 = vadd.f32 %v16945_v41, %v4474_v31  ;;  %v4475_v27 = vadd.f32 %v4405_v9, %v4194_v20 }
 0x55c   : > { %v4544_v14 = vmax.f32 %v4512_v44, 0.0  ;;  %v4513_v34 = vadd.f32 %v16945_v41, %v4477_v19 }
 0x55d   : > { %v4511_v3 = vadd.f32 %v16945_v41, %v4475_v27  ;;  %4610 = vadd.xlane.f32.xlu0 %v4574_v51  ;;  %v4542_v11 = vmax.f32 %v4510_v52, 0.0  ;;  %v4353_v52 = vcombine.high %v4351_v7, %v4351_v7  ;;  %v4433_v51 = vrot.slane %v4384_v62, %v16936_v56 }
 0x55e   : > { %v4545_v36 = vmax.f32 %v4513_v34, 0.0  ;;  %4612 = vadd.xlane.f32.xlu1 %v4575_v17  ;;  %v4580_v30 = vmul.f32 %v16952_v2, %v4544_v14  ;;  %v4429_v17 = vrot.slane %v4382_v21, %v16936_v56 }
 0x55f   : > { %v13476_v25 = vpop.f32.mrb[152].mxu0  ;;  %v4543_v43 = vmax.f32 %v4511_v3, 0.0  ;;  %v4578_v38 = vmul.f32 %v16952_v2, %v4542_v11 }
 0x560   : > { %v4480_v28 = vadd.f32 %v13476_v25, %v4417_v16  ;;  %v4207_v47 = vpop.f32.mrb[153].mxu0  ;;  %v4581_v60 = vmul.f32 %v16952_v2, %v4545_v36 }
 0x561   : > { %v4478_v40 = vadd.f32 %v4413_v55, %v4207_v47  ;;  %4622 = vadd.xlane.f32.xlu0 %v4580_v30  ;;  %v13477_v15 = vpop.f32.mrb[154].mxu0  ;;  %v4579_v33 = vmul.f32 %v16952_v2, %v4543_v43 }
 0x562   : > { %v4516_v58 = vadd.f32 %v16945_v41, %v4480_v28  ;;  %v4481_v29 = vadd.f32 %v13477_v15, %v4417_v16  ;;  %4624 = vadd.xlane.f32.xlu1 %v4581_v60  ;;  %v4210_v39 = vpop.f32.mrb[155].mxu0  ;;  %v4381_v28 = vrot.slane %v4353_v52, %v16929_v24  ;;  %v4367_v15 = vrot.slane %v4351_v7, %v16929_v24 }
 0x563   : > { %v4514_v32 = vadd.f32 %v16945_v41, %v4478_v40  ;;  %v4479_v5 = vadd.f32 %v4413_v55, %v4210_v39 }
 0x564   : > { %v4548_v59 = vmax.f32 %v4516_v58, 0.0  ;;  %v4517_v35 = vadd.f32 %v16945_v41, %v4481_v29 }
 0x565   : > { %v4515_v26 = vadd.f32 %v16945_v41, %v4479_v5  ;;  %4618 = vadd.xlane.f32.xlu0 %v4578_v38  ;;  %v4546_v8 = vmax.f32 %v4514_v32, 0.0  ;;  %v4441_v32 = vrot.slane %v4381_v28, %v16936_v56 }
 0x566   : > { %v4549_v46 = vmax.f32 %v4517_v35, 0.0  ;;  %4620 = vadd.xlane.f32.xlu1 %v4579_v33  ;;  %v4584_v45 = vmul.f32 %v16952_v2, %v4548_v59  ;;  %v4437_v35 = vrot.slane %v4367_v15, %v16936_v56 }
 0x567   : > { %v13480_v63 = vpop.f32.mrb[156].mxu0  ;;  %v4547_v42 = vmax.f32 %v4515_v26, 0.0  ;;  %v4582_v1 = vmul.f32 %v16952_v2, %v4546_v8 }
 0x568   : > { %v4484_v4 = vadd.f32 %v13480_v63, %v4425_v50  ;;  %v4223_v57 = vpop.f32.mrb[157].mxu0  ;;  %v4585_v12 = vmul.f32 %v16952_v2, %v4549_v46 }
 0x569   : > { %v4482_v22 = vadd.f32 %v4421_v0, %v4223_v57  ;;  %4630 = vadd.xlane.f32.xlu0 %v4584_v45  ;;  %v13481_v13 = vpop.f32.mrb[158].mxu0  ;;  %v4583_v20 = vmul.f32 %v16952_v2, %v4547_v42 }
 0x56a   : > { %v4520_v9 = vadd.f32 %v16945_v41, %v4484_v4  ;;  %v4485_v61 = vadd.f32 %v13481_v13, %v4425_v50  ;;  %4632 = vadd.xlane.f32.xlu1 %v4585_v12  ;;  %v4226_v23 = vpop.f32.mrb[159].mxu0  ;;  %v4383_v12 = vcombine.high %v4367_v15, %v4367_v15  ;;  %v17046_v15 = vsub.s32 1, %v15105_v37 }
 0x56b   : > { %v4518_v53 = vadd.f32 %v16945_v41, %v4482_v22  ;;  %v4483_v31 = vadd.f32 %v4421_v0, %v4226_v23  ;;  %v4385_v0 = vcombine.high %v4381_v28, %v4381_v28 }
 0x56c   : > { %v4552_v44 = vmax.f32 %v4520_v9, 0.0  ;;  %v4521_v19 = vadd.f32 %v16945_v41, %v4485_v61 }
 0x56d   : > { %v4519_v49 = vadd.f32 %v16945_v41, %v4483_v31  ;;  %4626 = vadd.xlane.f32.xlu0 %v4582_v1  ;;  %v4550_v14 = vmax.f32 %v4518_v53, 0.0  ;;  %v4449_v23 = vrot.slane %v4385_v0, %v16936_v56  ;;  %v4445_v1 = vrot.slane %v4383_v12, %v16936_v56 }
 0x56e   : > { %v4553_v27 = vmax.f32 %v4521_v19, 0.0  ;;  %4628 = vadd.xlane.f32.xlu1 %v4583_v20  ;;  %v4588_v10 = vmul.f32 %v16952_v2, %v4552_v44  ;;  %v22593_v0 = vmov 0.0  }
 0x56f   : > { %v13484_v34 = vpop.f32.mrb[160].mxu0  ;;  %v4551_v3 = vmax.f32 %v4519_v49, 0.0  ;;  %v4586_v40 = vmul.f32 %v16952_v2, %v4550_v14 }
 0x570   : > { %v4488_v48 = vadd.f32 %v13484_v34, %v4433_v51  ;;  %v4239_v36 = vpop.f32.mrb[161].mxu0  ;;  %v4589_v16 = vmul.f32 %v16952_v2, %v4553_v27 }
 0x571   : > { %v4486_v30 = vadd.f32 %v4429_v17, %v4239_v36  ;;  %4638 = vadd.xlane.f32.xlu0 %v4588_v10  ;;  %v13485_v11 = vpop.f32.mrb[162].mxu0  ;;  %v4587_v39 = vmul.f32 %v16952_v2, %v4551_v3 }
 0x572   : > { %v4524_v25 = vadd.f32 %v16945_v41, %v4488_v48  ;;  %v4489_v55 = vadd.f32 %v13485_v11, %v4433_v51  ;;  %4640 = vadd.xlane.f32.xlu1 %v4589_v16  ;;  %v4242_v43 = vpop.f32.mrb[163].mxu0 }
 0x573   : > { %v4522_v47 = vadd.f32 %v16945_v41, %v4486_v30  ;;  %v4487_v60 = vadd.f32 %v4429_v17, %v4242_v43 }
 0x574   : > { %v4556_v58 = vmax.f32 %v4524_v25, 0.0  ;;  %v4525_v29 = vadd.f32 %v16945_v41, %v4489_v55 }
 0x575   : > { %v4523_v54 = vadd.f32 %v16945_v41, %v4487_v60  ;;  %4634 = vadd.xlane.f32.xlu0 %v4586_v40  ;;  %v4554_v38 = vmax.f32 %v4522_v47, 0.0  ;;  %v22591_v60 = vlaneseq  ;;  %v17043_v40 = vstv %s13499_s22 }
 0x576   : > { %v4557_v6 = vmax.f32 %v4525_v29, 0.0  ;;  %4636 = vadd.xlane.f32.xlu1 %v4587_v39  ;;  %v4592_v5 = vmul.f32 %v16952_v2, %v4556_v58  ;;  %v17049_v58 = vsub.s32 3, %v15105_v37 }
 0x577   : > { %v13488_v59 = vpop.f32.mrb[164].mxu0  ;;  %v4555_v33 = vmax.f32 %v4523_v54, 0.0  ;;  %v4590_v57 = vmul.f32 %v16952_v2, %v4554_v38  ;;  %v17052_v54 = vsub.s32 2, %v15105_v37  ;;  %v17064_v38 = vsub.s32 7, %v15105_v37 }
 0x578   : > { %v4492_v24 = vadd.f32 %v13488_v59, %v4441_v32  ;;  %v4255_v26 = vpop.f32.mrb[165].mxu0  ;;  %v4593_v18 = vmul.f32 %v16952_v2, %v4557_v6 }
 0x579   : > { %v4490_v46 = vadd.f32 %v4437_v35, %v4255_v26  ;;  %4646 = vadd.xlane.f32.xlu0 %v4592_v5  ;;  %v13489_v50 = vpop.f32.mrb[166].mxu0  ;;  %v4591_v7 = vmul.f32 %v16952_v2, %v4555_v33  ;;  %v17061_v5 = vsub.s32 4, %v15105_v37 }
 0x57a   : > { %v4528_v45 = vadd.f32 %v16945_v41, %v4492_v24  ;;  %v4493_v8 = vadd.f32 %v13489_v50, %v4441_v32  ;;  %4648 = vadd.xlane.f32.xlu1 %v4593_v18  ;;  %v4258_v63 = vpop.f32.mrb[167].mxu0  ;;  %v17058_v32 = vsub.s32 5, %v15105_v37  ;;  %v17081_v50 = vsub.s32 6, %v15105_v37 }
 0x57b   : > { %v4526_v42 = vadd.f32 %v16945_v41, %v4490_v46  ;;  %v4491_v4 = vadd.f32 %v4437_v35, %v4258_v63 }
 0x57c   : > { %v4560_v22 = vmax.f32 %v4528_v45, 0.0  ;;  %v4529_v13 = vadd.f32 %v16945_v41, %v4493_v8  ;;  %22592 = vst [vmem:[#allocation22_spill] sm:$0xff] %v17081_v50 }
 0x57d   : > { %v4527_v9 = vadd.f32 %v16945_v41, %v4491_v4  ;;  %4642 = vadd.xlane.f32.xlu0 %v4590_v57  ;;  %v4558_v53 = vmax.f32 %v4526_v42, 0.0 }
 0x57e   : > { %v4561_v61 = vmax.f32 %v4529_v13, 0.0  ;;  %4644 = vadd.xlane.f32.xlu1 %v4591_v7  ;;  %v4596_v62 = vmul.f32 %v16952_v2, %v4560_v22 }
 0x57f   : > { %v13492_v31 = vpop.f32.mrb[168].mxu0  ;;  %v4559_v21 = vmax.f32 %v4527_v9, 0.0  ;;  %v4594_v17 = vmul.f32 %v16952_v2, %v4558_v53 }
 0x580   : > { %v4496_v44 = vadd.f32 %v13492_v31, %v4449_v23  ;;  %v4271_v19 = vpop.f32.mrb[169].mxu0  ;;  %v4597_v20 = vmul.f32 %v16952_v2, %v4561_v61 }
 0x581   : > { %v4494_v49 = vadd.f32 %v4445_v1, %v4271_v19  ;;  %4654 = vadd.xlane.f32.xlu0 %v4596_v62  ;;  %v13493_v52 = vpop.f32.mrb[170].mxu0  ;;  %v4595_v36 = vmul.f32 %v16952_v2, %v4559_v21 }
 0x582   : > { %v4532_v27 = vadd.f32 %v16945_v41, %v4496_v44  ;;  %v4497_v51 = vadd.f32 %v13493_v52, %v4449_v23  ;;  %4656 = vadd.xlane.f32.xlu1 %v4597_v20  ;;  %v4274_v10 = vpop.f32.mrb[171].mxu0 }
 0x583   : > { %v4530_v14 = vadd.f32 %v16945_v41, %v4494_v49  ;;  %v4495_v34 = vadd.f32 %v4445_v1, %v4274_v10 }
 0x584   : > { %v4564_v3 = vmax.f32 %v4532_v27, 0.0  ;;  %v4533_v48 = vadd.f32 %v16945_v41, %v4497_v51 }
 0x585   : > { %v4531_v16 = vadd.f32 %v16945_v41, %v4495_v34  ;;  %4650 = vadd.xlane.f32.xlu0 %v4594_v17  ;;  %v4562_v25 = vmax.f32 %v4530_v14, 0.0  ;;  %v9599_v41 = vand.u32 127, %v22591_v60 }
 0x586   : > { %v4565_v30 = vmax.f32 %v4533_v48, 0.0  ;;  %4652 = vadd.xlane.f32.xlu1 %v4595_v36  ;;  %v4600_v11 = vmul.f32 %v16952_v2, %v4564_v3 }
 0x587   : > { %v4563_v55 = vmax.f32 %v4531_v16, 0.0  ;;  %v4598_v28 = vmul.f32 %v16952_v2, %v4562_v25  ;;  %v9604_v29 = vadd.s32 4294967288, %v9599_v41  ;;  %v17073_v24 = vsub.s32 %v9599_v41, %v15105_v37 }
 0x588   : > { %v4601_v43 = vmul.f32 %v16952_v2, %v4565_v30 }
 0x589   : > { %4662 = vadd.xlane.f32.xlu0 %v4600_v11  ;;  %v4599_v47 = vmul.f32 %v16952_v2, %v4563_v55  ;;  %v17076_v26 = vsub.s32 %v9604_v29, %v15105_v37 }
 0x58a   : > { %4664 = vadd.xlane.f32.xlu1 %v4601_v43 }
 0x58d   : > { %4658 = vadd.xlane.f32.xlu0 %v4598_v28 }
 0x58e   : > { %4660 = vadd.xlane.f32.xlu1 %v4599_v47 }
 0x5dd   : > { %v4607_v39 = vpop.xlane.xlu1 %4606 }
 0x5de   : > { %v17055_v2 = vadd.f32 %v17043_v40, %v4607_v39  ;;  %v4603_v6 = vpop.xlane.xlu0 %4602 }
 0x5df   : > { %v17105_v7 = vadd.f32 %v17043_v40, %v4603_v6 }
 0x5e0   : > { %v4805_v59 = vrot.slane %v17055_v2, %v17046_v15  ;;  %v4801_v35 = vrot.slane %v17055_v2, %v16936_v56  ;;  %v4813_v33 = vrot.slane %v17055_v2, %v17049_v58  ;;  %v4809_v46 = vrot.slane %v17055_v2, %v17052_v54 }
 0x5e1   : > { %v4609_v18 = vpop.xlane.xlu1 %4608  ;;  %v4821_v63 = vrot.slane %v17055_v2, %v17058_v32  ;;  %v4817_v4 = vrot.slane %v17055_v2, %v17061_v5  ;;  %v4829_v37 = vrot.slane %v17055_v2, %v17064_v38  ;;  %v4825_v19 = vrot.slane %v17055_v2, %v17081_v50 }
 0x5e2   : > { %v17084_v45 = vadd.f32 %v17043_v40, %v4609_v18  ;;  %v4605_v8 = vpop.xlane.xlu0 %4604  ;;  %vm6048_vm5 = vcmp.gt.f32.partialorder %v17055_v2, %v4805_v59  ;;  %vm6046_vm11 = vcmp.gt.f32.partialorder %v17055_v2, %v4801_v35  ;;  %vm6052_vm2 = vcmp.gt.f32.partialorder %v17055_v2, %v4813_v33 }
 0x5e3   : > { %v12684_v42 = vsel %vm6048_vm5, 1.0, %v22593_v0  ;;  %v12682_v57 = vsel %vm6046_vm11, 1.0, %v22593_v0  ;;  %vm6050_vm12 = vcmp.gt.f32.partialorder %v17055_v2, %v4809_v46  ;;  %v12688_v53 = vsel %vm6052_vm2, 1.0, %v22593_v0 }
 0x5e4   : > { %vm6049_vm9 = vcmp.gt.f32.partialorder %v17084_v45, %v4805_v59  ;;  %vm6047_vm8 = vcmp.gt.f32.partialorder %v17084_v45, %v4801_v35  ;;  %vm6053_vm3 = vcmp.gt.f32.partialorder %v17084_v45, %v4813_v33  ;;  %vm6051_vm6 = vcmp.gt.f32.partialorder %v17084_v45, %v4809_v46 }
 0x5e5   : > { %v12685_v12 = vsel %vm6049_vm9, 1.0, %v22593_v0  ;;  %v12683_v22 = vsel %vm6047_vm8, 1.0, %v22593_v0  ;;  %v12689_v13 = vsel %vm6053_vm3, 1.0, %v22593_v0  ;;  %v12687_v31 = vsel %vm6051_vm6, 1.0, %v22593_v0 }
 0x5e6   : > { %v4615_v9 = vpop.xlane.xlu0 %4614  ;;  %v13519_v61 = vpack.i.bf16 %v12685_v12, %v12684_v42  ;;  %v13513_v23 = vpack.i.bf16 %v12683_v22, %v12682_v57  ;;  %vm6056_vm0 = vcmp.gt.f32.partialorder %v17055_v2, %v4821_v63  ;;  %vm6057_vm7 = vcmp.gt.f32.partialorder %v17084_v45, %v4821_v63 }
 0x5e7   : > { %v4617_v62 = vpop.xlane.xlu1 %4616  ;;  %v17115_v1 = vadd.f32 %v17043_v40, %v4605_v8  ;;  %v13529_v21 = vpack.i.bf16 %v12689_v13, %v12688_v53  ;;  %v12693_v44 = vsel %vm6057_vm7, 1.0, %v22593_v0  ;;  %v12686_v20 = vsel %vm6050_vm12, 1.0, %v22593_v0 }
 0x5e8   : > { %13520 = vperm.xlu0 %13518, %v13519_v61   ;;  %13514 = vperm.xlu1 %13512, %v13513_v23   ;;  %vm6054_vm1 = vcmp.gt.f32.partialorder %v17055_v2, %v4817_v4  ;;  %vm6055_vm13 = vcmp.gt.f32.partialorder %v17084_v45, %v4817_v4  ;;  %vm6060_vm14 = vcmp.gt.f32.partialorder %v17055_v2, %v4829_v37  ;;  %v12692_v51 = vsel %vm6056_vm0, 1.0, %v22593_v0 }
 0x5e9   : > { %v17125_v49 = vadd.f32 %v17043_v40, %v4615_v9  ;;  %v13524_v27 = vpack.i.bf16 %v12687_v31, %v12686_v20  ;;  %vm6061_vm15 = vcmp.gt.f32.partialorder %v17084_v45, %v4829_v37  ;;  %v17130_v10 = vadd.f32 %v17043_v40, %v4617_v62 }
 0x5ea   : > { %v4611_v52 = vpop.xlane.xlu0 %4610  ;;  %v13539_v34 = vpack.i.bf16 %v12693_v44, %v12692_v51  ;;  %v12691_v17 = vsel %vm6055_vm13, 1.0, %v22593_v0  ;;  %v12697_v3 = vsel %vm6061_vm15, 1.0, %v22593_v0  ;;  %v12690_v48 = vsel %vm6054_vm1, 1.0, %v22593_v0 }
 0x5eb   : > { %v4613_v14 = vpop.xlane.xlu1 %4612  ;;  %v12696_v36 = vsel %vm6060_vm14, 1.0, %v22593_v0  ;;  %vm6058_vm4 = vcmp.gt.f32.partialorder %v17055_v2, %v4825_v19  ;;  %vm6059_vm10 = vcmp.gt.f32.partialorder %v17084_v45, %v4825_v19  ;;  %v17139_v16 = vadd.f32 %v17043_v40, %v4611_v52 }
 0x5ec   : > { %13530 = vperm.xlu0 %13518, %v13529_v21   ;;  %13525 = vperm.xlu1 %13512, %v13524_v27   ;;  %v4737_v30 = vrot.slane %v17105_v7, %v16936_v56  ;;  %v4741_v11 = vrot.slane %v17105_v7, %v17046_v15  ;;  %v4837_v25 = vrot.slane %v17084_v45, %v17046_v15  ;;  %v12695_v60 = vsel %vm6059_vm10, 1.0, %v22593_v0 }
 0x5ed   : > { %v17148_v55 = vadd.f32 %v17043_v40, %v4613_v14  ;;  %v13534_v28 = vpack.i.bf16 %v12691_v17, %v12690_v48  ;;  %v13549_v47 = vpack.i.bf16 %v12697_v3, %v12696_v36  ;;  %v12694_v29 = vsel %vm6058_vm4, 1.0, %v22593_v0 }
 0x5ee   : > { %v4623_v43 = vpop.xlane.xlu0 %4622  ;;  %vm6014_vm5 = vcmp.gt.f32.partialorder %v17105_v7, %v4737_v30  ;;  %vm6015_vm11 = vcmp.gt.f32.partialorder %v17115_v1, %v4737_v30  ;;  %v4745_v39 = vrot.slane %v17105_v7, %v17052_v54  ;;  %vm6016_vm2 = vcmp.gt.f32.partialorder %v17105_v7, %v4741_v11 }
 0x5ef   : > { %v4625_v41 = vpop.xlane.xlu1 %4624  ;;  %v12651_v6 = vsel %vm6015_vm11, 1.0, %v22593_v0  ;;  %vm6017_vm9 = vcmp.gt.f32.partialorder %v17115_v1, %v4741_v11  ;;  %v4845_v59 = vrot.slane %v17084_v45, %v17049_v58  ;;  %v13544_v35 = vpack.i.bf16 %v12695_v60, %v12694_v29 }
 0x5f0   : > { %13540 = vperm.xlu0 %13518, %v13539_v34   ;;  %13535 = vperm.xlu1 %13512, %v13534_v28   ;;  %v12653_v33 = vsel %vm6017_vm9, 1.0, %v22593_v0  ;;  %vm6064_vm8 = vcmp.gt.f32.partialorder %v17055_v2, %v4837_v25  ;;  %v4749_v18 = vrot.slane %v17105_v7, %v17049_v58  ;;  %v17166_v46 = vadd.f32 %v17043_v40, %v4623_v43 }
 0x5f1   : > { %v17169_v8 = vadd.f32 %v17043_v40, %v4625_v41  ;;  %v12650_v42 = vsel %vm6014_vm5, 1.0, %v22593_v0  ;;  %vm6065_vm3 = vcmp.gt.f32.partialorder %v17084_v45, %v4837_v25  ;;  %v12652_v57 = vsel %vm6016_vm2, 1.0, %v22593_v0 }
 0x5f2   : > { %v4619_v63 = vpop.xlane.xlu0 %4618  ;;  %v13554_v37 = vpack.i.bf16 %v12651_v6, %v12650_v42  ;;  %vm6018_vm6 = vcmp.gt.f32.partialorder %v17105_v7, %v4745_v39  ;;  %vm6019_vm12 = vcmp.gt.f32.partialorder %v17115_v1, %v4745_v39  ;;  %v13559_v22 = vpack.i.bf16 %v12653_v33, %v12652_v57 }
 0x5f3   : > { %v4621_v4 = vpop.xlane.xlu1 %4620  ;;  %v17179_v12 = vadd.f32 %v17043_v40, %v4619_v63  ;;  %v12700_v13 = vsel %vm6064_vm8, 1.0, %v22593_v0  ;;  %vm6068_vm0 = vcmp.gt.f32.partialorder %v17055_v2, %v4845_v59  ;;  %v12701_v9 = vsel %vm6065_vm3, 1.0, %v22593_v0 }
 0x5f4   : > { %13550 = vperm.xlu0 %13518, %v13549_v47   ;;  %13545 = vperm.xlu1 %13512, %v13544_v35   ;;  %v12655_v61 = vsel %vm6019_vm12, 1.0, %v22593_v0  ;;  %vm6069_vm7 = vcmp.gt.f32.partialorder %v17084_v45, %v4845_v59  ;;  %vm6020_vm1 = vcmp.gt.f32.partialorder %v17105_v7, %v4749_v18  ;;  %v17190_v23 = vadd.f32 %v17043_v40, %v4621_v4 }
 0x5f5   : > { %v12654_v53 = vsel %vm6018_vm6, 1.0, %v22593_v0  ;;  %vm6021_vm13 = vcmp.gt.f32.partialorder %v17115_v1, %v4749_v18  ;;  %v4853_v31 = vrot.slane %v17084_v45, %v17058_v32  ;;  %v12704_v44 = vsel %vm6068_vm0, 1.0, %v22593_v0 }
 0x5f6   : > { %v4631_v62 = vpop.xlane.xlu0 %4630  ;;  %v12705_v19 = vsel %vm6069_vm7, 1.0, %v22593_v0  ;;  %v12657_v20 = vsel %vm6021_vm13, 1.0, %v22593_v0  ;;  %v4753_v52 = vrot.slane %v17105_v7, %v17061_v5  ;;  %v13599_v27 = vpack.i.bf16 %v12701_v9, %v12700_v13 }
 0x5f7   : > { %v4633_v21 = vpop.xlane.xlu1 %4632  ;;  %v13564_v51 = vpack.i.bf16 %v12655_v61, %v12654_v53  ;;  %v12656_v14 = vsel %vm6020_vm1, 1.0, %v22593_v0  ;;  %vm6072_vm14 = vcmp.gt.f32.partialorder %v17055_v2, %v4853_v31  ;;  %v17204_v34 = vadd.f32 %v17043_v40, %v4631_v62 }
 0x5f8   : > { %13555 = vperm.xlu0 %13518, %v13554_v37   ;;  %13560 = vperm.xlu1 %13512, %v13559_v22   ;;  %vm6073_vm15 = vcmp.gt.f32.partialorder %v17084_v45, %v4853_v31  ;;  %vm6022_vm4 = vcmp.gt.f32.partialorder %v17105_v7, %v4753_v52  ;;  %vm6023_vm10 = vcmp.gt.f32.partialorder %v17115_v1, %v4753_v52  ;;  %v12708_v25 = vsel %vm6072_vm14, 1.0, %v22593_v0 }
 0x5f9   : > { %v17210_v17 = vadd.f32 %v17043_v40, %v4633_v21  ;;  %v13609_v48 = vpack.i.bf16 %v12705_v19, %v12704_v44  ;;  %v13569_v36 = vpack.i.bf16 %v12657_v20, %v12656_v14  ;;  %v4861_v30 = vrot.slane %v17084_v45, %v17064_v38 }
 0x5fa   : > { %v4627_v3 = vpop.xlane.xlu0 %4626  ;;  %v12709_v43 = vsel %vm6073_vm15, 1.0, %v22593_v0  ;;  %v12659_v28 = vsel %vm6023_vm10, 1.0, %v22593_v0  ;;  %v4757_v47 = vrot.slane %v17105_v7, %v17058_v32  ;;  %v12658_v41 = vsel %vm6022_vm4, 1.0, %v22593_v0 }
 0x5fb   : > { %v4629_v11 = vpop.xlane.xlu1 %4628  ;;  %v17220_v60 = vadd.f32 %v17043_v40, %v4627_v3  ;;  %vm6076_vm5 = vcmp.gt.f32.partialorder %v17055_v2, %v4861_v30  ;;  %vm6077_vm11 = vcmp.gt.f32.partialorder %v17084_v45, %v4861_v30  ;;  %v13619_v35 = vpack.i.bf16 %v12709_v43, %v12708_v25 }
 0x5fc   : > { %13600 = vperm.xlu0 %13518, %v13599_v27   ;;  %13565 = vperm.xlu1 %13512, %v13564_v51   ;;  %v12712_v29 = vsel %vm6076_vm5, 1.0, %v22593_v0  ;;  %v12713_v39 = vsel %vm6077_vm11, 1.0, %v22593_v0  ;;  %vm6024_vm2 = vcmp.gt.f32.partialorder %v17105_v7, %v4757_v47  ;;  %vm6025_vm9 = vcmp.gt.f32.partialorder %v17115_v1, %v4757_v47 }
 0x5fd   : > { %22594 = vst [vmem:[#allocation23_spill] sm:$0xff] %v17220_v60  ;;  %v17230_v6 = vadd.f32 %v17043_v40, %v4629_v11  ;;  %v13574_v33 = vpack.i.bf16 %v12659_v28, %v12658_v41  ;;  %v4773_v18 = vrot.slane %v17115_v1, %v17046_v15  ;;  %v13629_v42 = vpack.i.bf16 %v12713_v39, %v12712_v29 }
 0x5fe   : > { %v4639_v59 = vpop.xlane.xlu0 %4638  ;;  %v12661_v4 = vsel %vm6025_vm9, 1.0, %v22593_v0  ;;  %v4761_v37 = vrot.slane %v17105_v7, %v17081_v50  ;;  %v4781_v57 = vrot.slane %v17115_v1, %v17049_v58  ;;  %v12660_v13 = vsel %vm6024_vm2, 1.0, %v22593_v0 }
 0x5ff   : > { %22595 = vst [vmem:[#allocation25_spill] sm:$0xff] %v17230_v6  ;;  %v4641_v63 = vpop.xlane.xlu1 %4640  ;;  %v17240_v22 = vadd.f32 %v17043_v40, %v4639_v59  ;;  %vm6032_vm8 = vcmp.gt.f32.partialorder %v17105_v7, %v4773_v18  ;;  %vm6033_vm3 = vcmp.gt.f32.partialorder %v17115_v1, %v4773_v18  ;;  %v13579_v31 = vpack.i.bf16 %v12661_v4, %v12660_v13 }
 0x600   : > { %13610 = vperm.xlu0 %13518, %v13609_v48   ;;  %13570 = vperm.xlu1 %13512, %v13569_v36   ;;  %v12668_v9 = vsel %vm6032_vm8, 1.0, %v22593_v0  ;;  %v12669_v61 = vsel %vm6033_vm3, 1.0, %v22593_v0  ;;  %vm6026_vm6 = vcmp.gt.f32.partialorder %v17105_v7, %v4761_v37  ;;  %vm6027_vm12 = vcmp.gt.f32.partialorder %v17115_v1, %v4761_v37 }
 0x601   : > { %22596 = vst [vmem:[#allocation19_spill] sm:$0xff] %v17240_v22  ;;  %v17250_v62 = vadd.f32 %v17043_v40, %v4641_v63  ;;  %v12663_v21 = vsel %vm6027_vm12, 1.0, %v22593_v0  ;;  %vm6036_vm0 = vcmp.gt.f32.partialorder %v17105_v7, %v4781_v57  ;;  %v13639_v20 = vpack.i.bf16 %v12669_v61, %v12668_v9 }
 0x602   : > { %v4635_v53 = vpop.xlane.xlu0 %4634  ;;  %v12662_v52 = vsel %vm6026_vm6, 1.0, %v22593_v0  ;;  %vm6037_vm7 = vcmp.gt.f32.partialorder %v17115_v1, %v4781_v57  ;;  %v12672_v27 = vsel %vm6036_vm0, 1.0, %v22593_v0  ;;  %v4765_v14 = vrot.slane %v17105_v7, %v17064_v38 }
 0x603   : > { %22597 = vst [vmem:[#allocation20_spill] sm:$0xff] %v17250_v62  ;;  %v17255_v44 = vadd.f32 %v17043_v40, %v4635_v53  ;;  %v4637_v19 = vpop.xlane.xlu1 %4636  ;;  %v12673_v51 = vsel %vm6037_vm7, 1.0, %v22593_v0  ;;  %v4789_v3 = vrot.slane %v17115_v1, %v17058_v32  ;;  %v13584_v48 = vpack.i.bf16 %v12663_v21, %v12662_v52 }
 0x604   : > { %13620 = vperm.xlu0 %13518, %v13619_v35   ;;  %13575 = vperm.xlu1 %13512, %v13574_v33   ;;  %v4833_v36 = vrot.slane %v17084_v45, %v16936_v56  ;;  %v4797_v30 = vrot.slane %v17115_v1, %v17064_v38  ;;  %v4841_v11 = vrot.slane %v17084_v45, %v17052_v54 }
 0x605   : > { %22598 = vst [vmem:[#allocation13_spill] sm:$0xff] %v17255_v44  ;;  %vm6028_vm1 = vcmp.gt.f32.partialorder %v17105_v7, %v4765_v14  ;;  %vm6029_vm13 = vcmp.gt.f32.partialorder %v17115_v1, %v4765_v14  ;;  %vm6040_vm14 = vcmp.gt.f32.partialorder %v17105_v7, %v4789_v3  ;;  %vm6041_vm15 = vcmp.gt.f32.partialorder %v17115_v1, %v4789_v3 }
 0x606   : > { %v4647_v25 = vpop.xlane.xlu0 %4646  ;;  %v17276_v43 = vadd.f32 %v17043_v40, %v4637_v19  ;;  %v13649_v41 = vpack.i.bf16 %v12673_v51, %v12672_v27  ;;  %v12665_v29 = vsel %vm6029_vm13, 1.0, %v22593_v0  ;;  %v12664_v39 = vsel %vm6028_vm1, 1.0, %v22593_v0 }
 0x607   : > { %v17279_v28 = vadd.f32 %v17043_v40, %v4647_v25  ;;  %v4649_v47 = vpop.xlane.xlu1 %4648  ;;  %v12676_v59 = vsel %vm6040_vm14, 1.0, %v22593_v0  ;;  %v12677_v35 = vsel %vm6041_vm15, 1.0, %v22593_v0  ;;  %vm6062_vm4 = vcmp.gt.f32.partialorder %v17055_v2, %v4833_v36 }
 0x608   : > { %22599 = vst [vmem:[#allocation16_spill] sm:$0xff] %v17276_v43  ;;  %13630 = vperm.xlu0 %13518, %v13629_v42   ;;  %13580 = vperm.xlu1 %13512, %v13579_v31   ;;  %v17287_v33 = vadd.f32 %v17043_v40, %v4649_v47  ;;  %vm6063_vm10 = vcmp.gt.f32.partialorder %v17084_v45, %v4833_v36  ;;  %v12698_v18 = vsel %vm6062_vm4, 1.0, %v22593_v0 }
 0x609   : > { %22600 = vst [vmem:[#allocation26_spill] sm:$0xff] %v17279_v28  ;;  %vm6044_vm5 = vcmp.gt.f32.partialorder %v17105_v7, %v4797_v30  ;;  %v13589_v42 = vpack.i.bf16 %v12665_v29, %v12664_v39  ;;  %v12699_v4 = vsel %vm6063_vm10, 1.0, %v22593_v0  ;;  %vm6045_vm11 = vcmp.gt.f32.partialorder %v17115_v1, %v4797_v30 }
 0x60a   : > { %22601 = vst [vmem:[#allocation27_spill] sm:$0xff] %v17287_v33  ;;  %v4643_v63 = vpop.xlane.xlu0 %4642  ;;  %vm6066_vm2 = vcmp.gt.f32.partialorder %v17055_v2, %v4841_v11  ;;  %v13659_v57 = vpack.i.bf16 %v12677_v35, %v12676_v59  ;;  %v17296_v13 = vsel %vm6044_vm5, 1.0, %v22593_v0  ;;  %v17299_v9 = vsel %vm6045_vm11, 1.0, %v22593_v0 }
 0x60b   : > { %v4645_v37 = vpop.xlane.xlu1 %4644  ;;  %vm6067_vm9 = vcmp.gt.f32.partialorder %v17084_v45, %v4841_v11  ;;  %v17303_v61 = vadd.f32 %v17043_v40, %v4643_v63  ;;  %v13594_v53 = vpack.i.bf16 %v12699_v4, %v12698_v18  ;;  %v12702_v31 = vsel %vm6066_vm2, 1.0, %v22593_v0 }
 0x60c   : > { %13640 = vperm.xlu0 %13518, %v13639_v20   ;;  %13585 = vperm.xlu1 %13512, %v13584_v48   ;;  %v12703_v21 = vsel %vm6067_vm9, 1.0, %v22593_v0  ;;  %v17308_v19 = vadd.f32 %v17043_v40, %v4645_v37  ;;  %v4933_v52 = vrot.slane %v17125_v49, %v17046_v15  ;;  %v4849_v27 = vrot.slane %v17084_v45, %v17061_v5 }
 0x60d   : > { %22602 = vst [vmem:[#allocation28_spill] sm:$0xff] %v17303_v61  ;;  %v4941_v51 = vrot.slane %v17125_v49, %v17049_v58  ;;  %v13669_v20 = vpack.i.bf16 %v17299_v9, %v17296_v13  ;;  %v13604_v3 = vpack.i.bf16 %v12703_v21, %v12702_v31  ;;  %v4857_v48 = vrot.slane %v17084_v45, %v17081_v50 }
 0x60e   : > { %22603 = vst [vmem:[#allocation29_spill] sm:$0xff] %v17308_v19  ;;  %v4655_v14 = vpop.xlane.xlu0 %4654  ;;  %v4949_v36 = vrot.slane %v17125_v49, %v17058_v32  ;;  %vm6112_vm8 = vcmp.gt.f32.partialorder %v17125_v49, %v4933_v52  ;;  %vm6113_vm3 = vcmp.gt.f32.partialorder %v17130_v10, %v4933_v52  ;;  %vm6070_vm6 = vcmp.gt.f32.partialorder %v17055_v2, %v4849_v27 }
 0x60f   : > { %v4657_v30 = vpop.xlane.xlu1 %4656  ;;  %v4769_v11 = vrot.slane %v17115_v1, %v16936_v56  ;;  %v12748_v25 = vsel %vm6112_vm8, 1.0, %v22593_v0  ;;  %v12749_v47 = vsel %vm6113_vm3, 1.0, %v22593_v0  ;;  %vm6071_vm12 = vcmp.gt.f32.partialorder %v17084_v45, %v4849_v27 }
 0x610   : > { %13650 = vperm.xlu0 %13518, %v13649_v41   ;;  %13590 = vperm.xlu1 %13512, %v13589_v42   ;;  %v4957_v29 = vrot.slane %v17125_v49, %v17064_v38  ;;  %v17333_v39 = vadd.f32 %v17043_v40, %v4655_v14  ;;  %v12706_v59 = vsel %vm6070_vm6, 1.0, %v22593_v0  ;;  %v12707_v35 = vsel %vm6071_vm12, 1.0, %v22593_v0 }
 0x611   : > { %vm6116_vm0 = vcmp.gt.f32.partialorder %v17125_v49, %v4941_v51  ;;  %v17339_v41 = vadd.f32 %v17043_v40, %v4657_v30  ;;  %v13679_v63 = vpack.i.bf16 %v12749_v47, %v12748_v25  ;;  %vm6117_vm7 = vcmp.gt.f32.partialorder %v17130_v10, %v4941_v51 }
 0x612   : > { %22604 = vst [vmem:[#allocation2_spill] sm:$0xff] %v17333_v39  ;;  %v4651_v18 = vpop.xlane.xlu0 %4650  ;;  %vm6074_vm1 = vcmp.gt.f32.partialorder %v17055_v2, %v4857_v48  ;;  %v13614_v4 = vpack.i.bf16 %v12707_v35, %v12706_v59  ;;  %v12752_v37 = vsel %vm6116_vm0, 1.0, %v22593_v0  ;;  %v12753_v13 = vsel %vm6117_vm7, 1.0, %v22593_v0 }
 0x613   : > { %22605 = vst [vmem:[#allocation4_spill] sm:$0xff] %v17339_v41  ;;  %v4653_v42 = vpop.xlane.xlu1 %4652  ;;  %vm6075_vm13 = vcmp.gt.f32.partialorder %v17084_v45, %v4857_v48  ;;  %v17347_v9 = vadd.f32 %v17043_v40, %v4651_v18  ;;  %v12710_v31 = vsel %vm6074_vm1, 1.0, %v22593_v0  ;;  %vm6120_vm14 = vcmp.gt.f32.partialorder %v17125_v49, %v4949_v36 }
 0x614   : > { %13660 = vperm.xlu0 %13518, %v13659_v57   ;;  %13595 = vperm.xlu1 %13512, %v13594_v53   ;;  %v12711_v21 = vsel %vm6075_vm13, 1.0, %v22593_v0  ;;  %v17353_v2 = vadd.f32 %v17043_v40, %v4653_v42  ;;  %vm6121_vm15 = vcmp.gt.f32.partialorder %v17130_v10, %v4949_v36  ;;  %v17357_v52 = vsel %vm6120_vm14, 1.0, %v22593_v0 }
 0x615   : > { %22606 = vst [vmem:[#allocation6_spill] sm:$0xff] %v17347_v9  ;;  %vm6030_vm4 = vcmp.gt.f32.partialorder %v17105_v7, %v4769_v11  ;;  %v13689_v27 = vpack.i.bf16 %v12753_v13, %v12752_v37  ;;  %v17361_v57 = vsel %vm6121_vm15, 1.0, %v22593_v0  ;;  %vm6031_vm10 = vcmp.gt.f32.partialorder %v17115_v1, %v4769_v11 }
 0x616   : > { %22607 = vst [vmem:[#allocation10_spill] sm:$0xff] %v17353_v2  ;;  %v4663_v45 = vpop.xlane.xlu0 %4662  ;;  %vm6124_vm5 = vcmp.gt.f32.partialorder %v17125_v49, %v4957_v29  ;;  %v13624_v51 = vpack.i.bf16 %v12711_v21, %v12710_v31  ;;  %v12666_v14 = vsel %vm6030_vm4, 1.0, %v22593_v0  ;;  %v12667_v48 = vsel %vm6031_vm10, 1.0, %v22593_v0 }
 0x617   : > { %v4665_v53 = vpop.xlane.xlu1 %4664  ;;  %vm6125_vm11 = vcmp.gt.f32.partialorder %v17130_v10, %v4957_v29  ;;  %v17369_v36 = vadd.f32 %v17043_v40, %v4663_v45  ;;  %v13699_v30 = vpack.i.bf16 %v17361_v57, %v17357_v52  ;;  %v17374_v11 = vsel %vm6124_vm5, 1.0, %v22593_v0 }
 0x618   : > { %13670 = vperm.xlu0 %13518, %v13669_v20   ;;  %13605 = vperm.xlu1 %13512, %v13604_v3   ;;  %v17377_v25 = vsel %vm6125_vm11, 1.0, %v22593_v0  ;;  %v17380_v47 = vadd.f32 %v17043_v40, %v4665_v53  ;;  %v4777_v29 = vrot.slane %v17115_v1, %v17052_v54  ;;  %v4869_v59 = vrot.slane %v17139_v16, %v17046_v15 }
 0x619   : > { %22608 = vst [vmem:[#allocation11_spill] sm:$0xff] %v17369_v36  ;;  %v4785_v20 = vrot.slane %v17115_v1, %v17061_v5  ;;  %v13634_v35 = vpack.i.bf16 %v12667_v48, %v12666_v14  ;;  %v13709_v18 = vpack.i.bf16 %v17377_v25, %v17374_v11  ;;  %v4877_v42 = vrot.slane %v17139_v16, %v17049_v58 }
 0x61a   : > { %22609 = vst [vmem:[#allocation15_spill] sm:$0xff] %v17380_v47  ;;  %v4659_v3 = vpop.xlane.xlu0 %4658  ;;  %v4793_v37 = vrot.slane %v17115_v1, %v17081_v50  ;;  %vm6034_vm2 = vcmp.gt.f32.partialorder %v17105_v7, %v4777_v29  ;;  %vm6035_vm9 = vcmp.gt.f32.partialorder %v17115_v1, %v4777_v29  ;;  %vm6080_vm8 = vcmp.gt.f32.partialorder %v17139_v16, %v4869_v59 }
 0x61b   : > { %v4885_v13 = vrot.slane %v17139_v16, %v17058_v32  ;;  %v17400_v31 = vadd.f32 %v17043_v40, %v4659_v3  ;;  %vm6081_vm3 = vcmp.gt.f32.partialorder %v17148_v55, %v4869_v59  ;;  %v4929_v21 = vrot.slane %v17125_v49, %v16936_v56  ;;  %v4661_v52 = vpop.xlane.xlu1 %4660 }
 0x61c   : > { %13680 = vperm.xlu0 %13518, %v13679_v63   ;;  %13615 = vperm.xlu1 %13512, %v13614_v4   ;;  %v12670_v45 = vsel %vm6034_vm2, 1.0, %v22593_v0  ;;  %v12671_v57 = vsel %vm6035_vm9, 1.0, %v22593_v0  ;;  %v17408_v53 = vsel %vm6080_vm8, 1.0, %v22593_v0  ;;  %vm6038_vm6 = vcmp.gt.f32.partialorder %v17105_v7, %v4785_v20 }
 0x61d   : > { %22610 = vst [vmem:[#allocation14_spill] sm:$0xff] %v17400_v31  ;;  %v12717_v14 = vsel %vm6081_vm3, 1.0, %v22593_v0  ;;  %vm6039_vm12 = vcmp.gt.f32.partialorder %v17115_v1, %v4785_v20  ;;  %v12674_v63 = vsel %vm6038_vm6, 1.0, %v22593_v0  ;;  %vm6084_vm0 = vcmp.gt.f32.partialorder %v17139_v16, %v4877_v42 }
 0x61e   : > { %v12675_v4 = vsel %vm6039_vm12, 1.0, %v22593_v0  ;;  %vm6085_vm7 = vcmp.gt.f32.partialorder %v17148_v55, %v4877_v42  ;;  %v17418_v48 = vsel %vm6084_vm0, 1.0, %v22593_v0  ;;  %vm6042_vm1 = vcmp.gt.f32.partialorder %v17105_v7, %v4793_v37 }
 0x61f   : > { %v17422_v11 = vadd.f32 %v17043_v40, %v4661_v52  ;;  %v17425_v25 = vsel %vm6085_vm7, 1.0, %v22593_v0  ;;  %vm6043_vm13 = vcmp.gt.f32.partialorder %v17115_v1, %v4793_v37  ;;  %v17429_v29 = vsel %vm6042_vm1, 1.0, %v22593_v0 }
 0x620   : > { %13690 = vperm.xlu0 %13518, %v13689_v27   ;;  %13625 = vperm.xlu1 %13512, %v13624_v51   ;;  %v13644_v59 = vpack.i.bf16 %v12671_v57, %v12670_v45  ;;  %v17432_v20 = vsel %vm6043_vm13, 1.0, %v22593_v0  ;;  %vm6088_vm14 = vcmp.gt.f32.partialorder %v17139_v16, %v4885_v13  ;;  %vm6089_vm15 = vcmp.gt.f32.partialorder %v17148_v55, %v4885_v13 }
 0x621   : > { %22611 = vst [vmem:[#allocation3_spill] sm:$0xff] %v17422_v11  ;;  %v13719_v40 = vpack.i.bf16 %v12717_v14, %v17408_v53  ;;  %v13654_v7 = vpack.i.bf16 %v12675_v4, %v12674_v63  ;;  %v13729_v27 = vpack.i.bf16 %v17425_v25, %v17418_v48  ;;  %vm6110_vm4 = vcmp.gt.f32.partialorder %v17125_v49, %v4929_v21 }
 0x622   : > { %v13664_v1 = vpack.i.bf16 %v17432_v20, %v17429_v29  ;;  %v17443_v51 = vsel %vm6088_vm14, 1.0, %v22593_v0  ;;  %vm6111_vm10 = vcmp.gt.f32.partialorder %v17130_v10, %v4929_v21  ;;  %v4893_v3 = vrot.slane %v17139_v16, %v17064_v38 }
 0x623   : > { %v17449_v42 = vsel %vm6089_vm15, 1.0, %v22593_v0  ;;  %v4937_v37 = vrot.slane %v17125_v49, %v17052_v54  ;;  %v4965_v13 = vrot.slane %v17130_v10, %v17046_v15  ;;  %v4945_v52 = vrot.slane %v17125_v49, %v17061_v5 }
 0x624   : > { %13700 = vperm.xlu0 %13518, %v13699_v30   ;;  %13635 = vperm.xlu1 %13512, %v13634_v35   ;;  %v17458_v45 = vsel %vm6110_vm4, 1.0, %v22593_v0  ;;  %vm6092_vm5 = vcmp.gt.f32.partialorder %v17139_v16, %v4893_v3  ;;  %vm6093_vm11 = vcmp.gt.f32.partialorder %v17148_v55, %v4893_v3  ;;  %v4973_v30 = vrot.slane %v17130_v10, %v17049_v58 }
 0x625   : > { %v12747_v35 = vsel %vm6111_vm10, 1.0, %v22593_v0  ;;  %v17466_v21 = vsel %vm6092_vm5, 1.0, %v22593_v0  ;;  %vm6114_vm2 = vcmp.gt.f32.partialorder %v17125_v49, %v4937_v37  ;;  %vm6115_vm9 = vcmp.gt.f32.partialorder %v17130_v10, %v4937_v37 }
 0x626   : > { %v17471_v57 = vsel %vm6093_vm11, 1.0, %v22593_v0  ;;  %v17474_v53 = vsel %vm6114_vm2, 1.0, %v22593_v0  ;;  %v17477_v14 = vsel %vm6115_vm9, 1.0, %v22593_v0  ;;  %vm6128_vm8 = vcmp.gt.f32.partialorder %v17125_v49, %v4965_v13 }
 0x627   : > { %v13739_v63 = vpack.i.bf16 %v17449_v42, %v17443_v51  ;;  %vm6129_vm3 = vcmp.gt.f32.partialorder %v17130_v10, %v4965_v13  ;;  %v17484_v4 = vsel %vm6128_vm8, 1.0, %v22593_v0  ;;  %vm6118_vm6 = vcmp.gt.f32.partialorder %v17125_v49, %v4945_v52 }
 0x628   : > { %13710 = vperm.xlu0 %13518, %v13709_v18   ;;  %13645 = vperm.xlu1 %13512, %v13644_v59   ;;  %v13674_v48 = vpack.i.bf16 %v12747_v35, %v17458_v45  ;;  %v17489_v25 = vsel %vm6129_vm3, 1.0, %v22593_v0  ;;  %vm6119_vm12 = vcmp.gt.f32.partialorder %v17130_v10, %v4945_v52  ;;  %vm6132_vm0 = vcmp.gt.f32.partialorder %v17125_v49, %v4973_v30 }
 0x629   : > { %v13749_v18 = vpack.i.bf16 %v17471_v57, %v17466_v21  ;;  %v13684_v29 = vpack.i.bf16 %v17477_v14, %v17474_v53  ;;  %v17498_v59 = vsel %vm6118_vm6, 1.0, %v22593_v0  ;;  %vm6133_vm7 = vcmp.gt.f32.partialorder %v17130_v10, %v4973_v30 }
 0x62a   : > { %v17504_v51 = vsel %vm6119_vm12, 1.0, %v22593_v0  ;;  %v4953_v3 = vrot.slane %v17125_v49, %v17081_v50  ;;  %v4981_v42 = vrot.slane %v17130_v10, %v17058_v32  ;;  %v17511_v37 = vsel %vm6132_vm0, 1.0, %v22593_v0 }
 0x62b   : > { %v17514_v13 = vsel %vm6133_vm7, 1.0, %v22593_v0  ;;  %v4865_v52 = vrot.slane %v17139_v16, %v16936_v56  ;;  %v4989_v45 = vrot.slane %v17130_v10, %v17064_v38  ;;  %v13694_v21 = vpack.i.bf16 %v17504_v51, %v17498_v59 }
 0x62c   : > { %13720 = vperm.xlu0 %13518, %v13719_v40   ;;  %13655 = vperm.xlu1 %13512, %v13654_v7   ;;  %vm6122_vm1 = vcmp.gt.f32.partialorder %v17125_v49, %v4953_v3  ;;  %vm6123_vm13 = vcmp.gt.f32.partialorder %v17130_v10, %v4953_v3  ;;  %vm6136_vm14 = vcmp.gt.f32.partialorder %v17125_v49, %v4981_v42 }
 0x62d   : > { %vm6137_vm15 = vcmp.gt.f32.partialorder %v17130_v10, %v4981_v42  ;;  %v17525_v40 = vsel %vm6122_vm1, 1.0, %v22593_v0  ;;  %v17528_v7 = vsel %vm6123_vm13, 1.0, %v22593_v0  ;;  %v17531_v30 = vsel %vm6136_vm14, 1.0, %v22593_v0 }
 0x62e   : > { %v17534_v35 = vsel %vm6137_vm15, 1.0, %v22593_v0  ;;  %vm6078_vm4 = vcmp.gt.f32.partialorder %v17139_v16, %v4865_v52  ;;  %vm6079_vm10 = vcmp.gt.f32.partialorder %v17148_v55, %v4865_v52  ;;  %vm6140_vm5 = vcmp.gt.f32.partialorder %v17125_v49, %v4989_v45 }
 0x62f   : > { %vm6141_vm11 = vcmp.gt.f32.partialorder %v17130_v10, %v4989_v45  ;;  %v17549_v59 = vsel %vm6078_vm4, 1.0, %v22593_v0  ;;  %v17552_v51 = vsel %vm6079_vm10, 1.0, %v22593_v0  ;;  %v4901_v3 = vrot.slane %v17148_v55, %v17046_v15 }
 0x630   : > { %13730 = vperm.xlu0 %13518, %v13729_v27   ;;  %13665 = vperm.xlu1 %13512, %v13664_v1   ;;  %v4873_v27 = vrot.slane %v17139_v16, %v17052_v54  ;;  %v17557_v1 = vsel %vm6140_vm5, 1.0, %v22593_v0  ;;  %v4881_v42 = vrot.slane %v17139_v16, %v17061_v5  ;;  %v4909_v52 = vrot.slane %v17148_v55, %v17049_v58 }
 0x631   : > { %v17566_v45 = vsel %vm6141_vm11, 1.0, %v22593_v0  ;;  %v4889_v14 = vrot.slane %v17139_v16, %v17081_v50  ;;  %vm6096_vm8 = vcmp.gt.f32.partialorder %v17139_v16, %v4901_v3  ;;  %vm6097_vm3 = vcmp.gt.f32.partialorder %v17148_v55, %v4901_v3 }
 0x632   : > { %vm6082_vm2 = vcmp.gt.f32.partialorder %v17139_v16, %v4873_v27  ;;  %vm6083_vm9 = vcmp.gt.f32.partialorder %v17148_v55, %v4873_v27  ;;  %v4917_v57 = vrot.slane %v17148_v55, %v17058_v32  ;;  %v17583_v27 = vsel %vm6096_vm8, 1.0, %v22593_v0 }
 0x633   : > { %v17573_v53 = vsel %vm6082_vm2, 1.0, %v22593_v0  ;;  %v17580_v20 = vsel %vm6083_vm9, 1.0, %v22593_v0  ;;  %v17586_v11 = vsel %vm6097_vm3, 1.0, %v22593_v0  ;;  %vm6086_vm6 = vcmp.gt.f32.partialorder %v17139_v16, %v4881_v42 }
 0x634   : > { %13740 = vperm.xlu0 %13518, %v13739_v63   ;;  %13675 = vperm.xlu1 %13512, %v13674_v48   ;;  %v13714_v63 = vpack.i.bf16 %v17552_v51, %v17549_v59  ;;  %vm6087_vm12 = vcmp.gt.f32.partialorder %v17148_v55, %v4881_v42  ;;  %v17593_v48 = vsel %vm6086_vm6, 1.0, %v22593_v0  ;;  %vm6100_vm0 = vcmp.gt.f32.partialorder %v17139_v16, %v4909_v52 }
 0x635   : > { %v17599_v31 = vsel %vm6087_vm12, 1.0, %v22593_v0  ;;  %vm6101_vm7 = vcmp.gt.f32.partialorder %v17148_v55, %v4909_v52  ;;  %vm6090_vm1 = vcmp.gt.f32.partialorder %v17139_v16, %v4889_v14  ;;  %vm6091_vm13 = vcmp.gt.f32.partialorder %v17148_v55, %v4889_v14 }
 0x636   : > { %v17611_v3 = vsel %vm6100_vm0, 1.0, %v22593_v0  ;;  %vm6104_vm14 = vcmp.gt.f32.partialorder %v17139_v16, %v4917_v57  ;;  %vm6105_vm15 = vcmp.gt.f32.partialorder %v17148_v55, %v4917_v57  ;;  %v17622_v52 = vsel %vm6091_vm13, 1.0, %v22593_v0 }
 0x637   : > { %v4961_v14 = vrot.slane %v17130_v10, %v16936_v56  ;;  %v17627_v42 = vsel %vm6104_vm14, 1.0, %v22593_v0  ;;  %v4925_v51 = vrot.slane %v17148_v55, %v17064_v38  ;;  %v4969_v57 = vrot.slane %v17130_v10, %v17052_v54 }
 0x638   : > { %13750 = vperm.xlu0 %13518, %v13749_v18   ;;  %13685 = vperm.xlu1 %13512, %v13684_v29   ;;  %v17616_v18 = vsel %vm6101_vm7, 1.0, %v22593_v0  ;;  %v17619_v29 = vsel %vm6090_vm1, 1.0, %v22593_v0  ;;  %v5061_v59 = vrot.slane %v17166_v46, %v17046_v15  ;;  %v22612_v47 = vpack.i.bf16 %v17489_v25, %v17484_v4 }
 0x639   : > { %v17639_v36 = vsel %vm6105_vm15, 1.0, %v22593_v0  ;;  %vm6126_vm4 = vcmp.gt.f32.partialorder %v17125_v49, %v4961_v14  ;;  %vm6127_vm10 = vcmp.gt.f32.partialorder %v17130_v10, %v4961_v14  ;;  %v4977_v2 = vrot.slane %v17130_v10, %v17061_v5 }
 0x63a   : > { %v17646_v9 = vsel %vm6126_vm4, 1.0, %v22593_v0  ;;  %v17649_v41 = vsel %vm6127_vm10, 1.0, %v22593_v0  ;;  %vm6108_vm5 = vcmp.gt.f32.partialorder %v17139_v16, %v4925_v51  ;;  %vm6109_vm11 = vcmp.gt.f32.partialorder %v17148_v55, %v4925_v51 }
 0x63b   : > { %v17656_v4 = vsel %vm6108_vm5, 1.0, %v22593_v0  ;;  %v17659_v25 = vsel %vm6109_vm11, 1.0, %v22593_v0  ;;  %vm6130_vm2 = vcmp.gt.f32.partialorder %v17125_v49, %v4969_v57  ;;  %vm6131_vm9 = vcmp.gt.f32.partialorder %v17130_v10, %v4969_v57 }
 0x63c   : > { %13760 = vperm.xlu0 %13518, %v22612_v47   ;;  %13695 = vperm.xlu1 %13512, %v13694_v21   ;;  %vm6176_vm8 = vcmp.gt.f32.partialorder %v17166_v46, %v5061_v59  ;;  %v22613_v51 = vpack.i.bf16 %v17514_v13, %v17511_v37  ;;  %v22614_v47 = vpack.i.bf16 %v17528_v7, %v17525_v40  ;;  %v17679_v14 = vsel %vm6130_vm2, 1.0, %v22593_v0 }
 0x63d   : > { %vm6134_vm3 = vcmp.gt.f32.partialorder %v17125_v49, %v4977_v2  ;;  %v17683_v57 = vsel %vm6131_vm9, 1.0, %v22593_v0  ;;  %vm6177_vm6 = vcmp.gt.f32.partialorder %v17169_v8, %v5061_v59  ;;  %vm6135_vm12 = vcmp.gt.f32.partialorder %v17130_v10, %v4977_v2 }
 0x63e   : > { %v17688_v37 = vsel %vm6134_vm3, 1.0, %v22593_v0  ;;  %v17691_v13 = vsel %vm6176_vm8, 1.0, %v22593_v0  ;;  %v17694_v40 = vsel %vm6135_vm12, 1.0, %v22593_v0  ;;  %v5069_v7 = vrot.slane %v17166_v46, %v17049_v58 }
 0x63f   : > { %v5077_v2 = vrot.slane %v17166_v46, %v17058_v32  ;;  %v5085_v21 = vrot.slane %v17166_v46, %v17064_v38  ;;  %v22615_v39 = vpack.i.bf16 %v17534_v35, %v17531_v30  ;;  %v17712_v19 = vsel %vm6177_vm6, 1.0, %v22593_v0 }
 0x640   : > { %13770 = vperm.xlu0 %13518, %v22613_v51   ;;  %13705 = vperm.xlu1 %13512, %v22614_v47   ;;  %v4985_v47 = vrot.slane %v17130_v10, %v17081_v50  ;;  %v4897_v51 = vrot.slane %v17148_v55, %v16936_v56  ;;  %vm6180_vm0 = vcmp.gt.f32.partialorder %v17166_v46, %v5069_v7 }
 0x641   : > { %vm6181_vm7 = vcmp.gt.f32.partialorder %v17169_v8, %v5069_v7  ;;  %v17718_v59 = vsel %vm6180_vm0, 1.0, %v22593_v0  ;;  %vm6184_vm14 = vcmp.gt.f32.partialorder %v17166_v46, %v5077_v2  ;;  %vm6185_vm15 = vcmp.gt.f32.partialorder %v17169_v8, %v5077_v2 }
 0x642   : > { %vm6138_vm1 = vcmp.gt.f32.partialorder %v17125_v49, %v4985_v47  ;;  %v17721_v61 = vsel %vm6181_vm7, 1.0, %v22593_v0  ;;  %vm6139_vm13 = vcmp.gt.f32.partialorder %v17130_v10, %v4985_v47  ;;  %vm6094_vm4 = vcmp.gt.f32.partialorder %v17139_v16, %v4897_v51 }
 0x643   : > { %v17730_v35 = vsel %vm6139_vm13, 1.0, %v22593_v0  ;;  %v22616_v7 = vpack.i.bf16 %v17566_v45, %v17557_v1  ;;  %v22617_v47 = vpack.i.bf16 %v17580_v20, %v17573_v53  ;;  %v17748_v2 = vsel %vm6184_vm14, 1.0, %v22593_v0 }
 0x644   : > { %13780 = vperm.xlu0 %13518, %v22615_v39   ;;  %13715 = vperm.xlu1 %13512, %v13714_v63   ;;  %v17725_v39 = vsel %vm6138_vm1, 1.0, %v22593_v0  ;;  %v17751_v49 = vsel %vm6185_vm15, 1.0, %v22593_v0  ;;  %vm6095_vm10 = vcmp.gt.f32.partialorder %v17148_v55, %v4897_v51  ;;  %vm6188_vm5 = vcmp.gt.f32.partialorder %v17166_v46, %v5085_v21 }
 0x645   : > { %v17756_v10 = vsel %vm6094_vm4, 1.0, %v22593_v0  ;;  %v17759_v1 = vsel %vm6095_vm10, 1.0, %v22593_v0  ;;  %vm6189_vm11 = vcmp.gt.f32.partialorder %v17169_v8, %v5085_v21  ;;  %v4905_v20 = vrot.slane %v17148_v55, %v17052_v54 }
 0x646   : > { %v17765_v53 = vsel %vm6188_vm5, 1.0, %v22593_v0  ;;  %v17768_v45 = vsel %vm6189_vm11, 1.0, %v22593_v0  ;;  %v4997_v51 = vrot.slane %v17179_v12, %v17046_v15  ;;  %v5005_v21 = vrot.slane %v17179_v12, %v17049_v58 }
 0x647   : > { %vm6098_vm2 = vcmp.gt.f32.partialorder %v17139_v16, %v4905_v20  ;;  %vm6099_vm9 = vcmp.gt.f32.partialorder %v17148_v55, %v4905_v20  ;;  %v22618_v63 = vpack.i.bf16 %v17586_v11, %v17583_v27  ;;  %v22619_v30 = vpack.i.bf16 %v17599_v31, %v17593_v48 }
 0x648   : > { %13790 = vperm.xlu0 %13518, %v22616_v7   ;;  %13725 = vperm.xlu1 %13512, %v22617_v47   ;;  %v4913_v7 = vrot.slane %v17148_v55, %v17061_v5  ;;  %v17787_v33 = vsel %vm6098_vm2, 1.0, %v22593_v0  ;;  %v17790_v47 = vsel %vm6099_vm9, 1.0, %v22593_v0  ;;  %vm6144_vm8 = vcmp.gt.f32.partialorder %v17179_v12, %v4997_v51 }
 0x649   : > { %vm6145_vm3 = vcmp.gt.f32.partialorder %v17190_v23, %v4997_v51  ;;  %v17802_v27 = vsel %vm6144_vm8, 1.0, %v22593_v0  ;;  %vm6148_vm0 = vcmp.gt.f32.partialorder %v17179_v12, %v5005_v21  ;;  %vm6149_vm7 = vcmp.gt.f32.partialorder %v17190_v23, %v5005_v21 }
 0x64a   : > { %vm6102_vm6 = vcmp.gt.f32.partialorder %v17139_v16, %v4913_v7  ;;  %v17805_v48 = vsel %vm6145_vm3, 1.0, %v22593_v0  ;;  %vm6103_vm12 = vcmp.gt.f32.partialorder %v17148_v55, %v4913_v7  ;;  %v4921_v51 = vrot.slane %v17148_v55, %v17081_v50 }
 0x64b   : > { %v22620_v31 = vpack.i.bf16 %v17616_v18, %v17611_v3  ;;  %v22621_v7 = vpack.i.bf16 %v17622_v52, %v17619_v29  ;;  %v5013_v20 = vrot.slane %v17179_v12, %v17058_v32  ;;  %v5057_v28 = vrot.slane %v17166_v46, %v16936_v56 }
 0x64c   : > { %13800 = vperm.xlu0 %13518, %v22618_v63   ;;  %13735 = vperm.xlu1 %13512, %v22619_v30   ;;  %v17809_v30 = vsel %vm6102_vm6, 1.0, %v22593_v0  ;;  %v17812_v63 = vsel %vm6103_vm12, 1.0, %v22593_v0  ;;  %vm6106_vm1 = vcmp.gt.f32.partialorder %v17139_v16, %v4921_v51  ;;  %vm6107_vm13 = vcmp.gt.f32.partialorder %v17148_v55, %v4921_v51 }
 0x64d   : > { %v5021_v3 = vrot.slane %v17179_v12, %v17064_v38  ;;  %v17837_v18 = vsel %vm6106_vm1, 1.0, %v22593_v0  ;;  %v17840_v29 = vsel %vm6107_vm13, 1.0, %v22593_v0  ;;  %vm6152_vm14 = vcmp.gt.f32.partialorder %v17179_v12, %v5013_v20 }
 0x64e   : > { %vm6153_vm15 = vcmp.gt.f32.partialorder %v17190_v23, %v5013_v20  ;;  %v17847_v52 = vsel %vm6148_vm0, 1.0, %v22593_v0  ;;  %v17852_v16 = vsel %vm6149_vm7, 1.0, %v22593_v0  ;;  %vm6174_vm4 = vcmp.gt.f32.partialorder %v17166_v46, %v5057_v28 }
 0x64f   : > { %v22623_v20 = vpack.i.bf16 %v17649_v41, %v17646_v9  ;;  %v17864_v51 = vsel %vm6152_vm14, 1.0, %v22593_v0  ;;  %v17867_v21 = vsel %vm6153_vm15, 1.0, %v22593_v0  ;;  %vm6175_vm10 = vcmp.gt.f32.partialorder %v17169_v8, %v5057_v28 }
 0x650   : > { %13810 = vperm.xlu0 %13518, %v22620_v31   ;;  %13745 = vperm.xlu1 %13512, %v22621_v7   ;;  %v22622_v31 = vpack.i.bf16 %v17639_v36, %v17627_v42  ;;  %vm6156_vm5 = vcmp.gt.f32.partialorder %v17179_v12, %v5021_v3  ;;  %v17872_v7 = vsel %vm6174_vm4, 1.0, %v22593_v0  ;;  %v17875_v36 = vsel %vm6175_vm10, 1.0, %v22593_v0 }
 0x651   : > { %vm6157_vm11 = vcmp.gt.f32.partialorder %v17190_v23, %v5021_v3  ;;  %v5065_v41 = vrot.slane %v17166_v46, %v17052_v54  ;;  %v17881_v9 = vsel %vm6156_vm5, 1.0, %v22593_v0  ;;  %v5093_v28 = vrot.slane %v17169_v8, %v17046_v15 }
 0x652   : > { %v17884_v42 = vsel %vm6157_vm11, 1.0, %v22593_v0  ;;  %v5101_v3 = vrot.slane %v17169_v8, %v17049_v58  ;;  %v22624_v55 = vpack.i.bf16 %v17659_v25, %v17656_v4  ;;  %v22625_v11 = vpack.i.bf16 %v17683_v57, %v17679_v14 }
 0x653   : > { %vm6178_vm2 = vcmp.gt.f32.partialorder %v17166_v46, %v5065_v41  ;;  %vm6179_vm9 = vcmp.gt.f32.partialorder %v17169_v8, %v5065_v41  ;;  %vm6192_vm8 = vcmp.gt.f32.partialorder %v17166_v46, %v5093_v28  ;;  %vm6193_vm3 = vcmp.gt.f32.partialorder %v17169_v8, %v5093_v28 }
 0x654   : > { %13820 = vperm.xlu0 %13518, %v22622_v31   ;;  %13755 = vperm.xlu1 %13512, %v22623_v20   ;;  %v5073_v31 = vrot.slane %v17166_v46, %v17061_v5  ;;  %v17903_v43 = vsel %vm6178_vm2, 1.0, %v22593_v0  ;;  %v17906_v20 = vsel %vm6179_vm9, 1.0, %v22593_v0  ;;  %v17920_v57 = vsel %vm6192_vm8, 1.0, %v22593_v0 }
 0x655   : > { %vm6196_vm0 = vcmp.gt.f32.partialorder %v17166_v46, %v5101_v3  ;;  %v5081_v25 = vrot.slane %v17166_v46, %v17081_v50  ;;  %v22626_v14 = vpack.i.bf16 %v17712_v19, %v17691_v13  ;;  %v22627_v4 = vpack.i.bf16 %v17694_v40, %v17688_v37 }
 0x656   : > { %vm6182_vm6 = vcmp.gt.f32.partialorder %v17166_v46, %v5073_v31  ;;  %vm6183_vm12 = vcmp.gt.f32.partialorder %v17169_v8, %v5073_v31  ;;  %vm6197_vm7 = vcmp.gt.f32.partialorder %v17169_v8, %v5101_v3  ;;  %v5109_v31 = vrot.slane %v17169_v8, %v17058_v32 }
 0x657   : > { %v17930_v28 = vsel %vm6183_vm12, 1.0, %v22593_v0  ;;  %v4993_v41 = vrot.slane %v17179_v12, %v16936_v56  ;;  %vm6186_vm1 = vcmp.gt.f32.partialorder %v17166_v46, %v5081_v25  ;;  %vm6187_vm13 = vcmp.gt.f32.partialorder %v17169_v8, %v5081_v25 }
 0x658   : > { %13830 = vperm.xlu0 %13518, %v22624_v55   ;;  %13765 = vperm.xlu1 %13512, %v22625_v11   ;;  %v17923_v11 = vsel %vm6193_vm3, 1.0, %v22593_v0  ;;  %v17927_v55 = vsel %vm6182_vm6, 1.0, %v22593_v0  ;;  %v5117_v19 = vrot.slane %v17169_v8, %v17064_v38  ;;  %v17955_v13 = vsel %vm6196_vm0, 1.0, %v22593_v0 }
 0x659   : > { %vm6200_vm14 = vcmp.gt.f32.partialorder %v17166_v46, %v5109_v31  ;;  %vm6201_vm15 = vcmp.gt.f32.partialorder %v17169_v8, %v5109_v31  ;;  %v17960_v40 = vsel %vm6197_vm7, 1.0, %v22593_v0  ;;  %v17963_v3 = vsel %vm6186_vm1, 1.0, %v22593_v0 }
 0x65a   : > { %vm6142_vm4 = vcmp.gt.f32.partialorder %v17179_v12, %v4993_v41  ;;  %v22628_v25 = vpack.i.bf16 %v17721_v61, %v17718_v59  ;;  %v17976_v31 = vsel %vm6200_vm14, 1.0, %v22593_v0  ;;  %v17979_v37 = vsel %vm6201_vm15, 1.0, %v22593_v0 }
 0x65b   : > { %vm6143_vm10 = vcmp.gt.f32.partialorder %v17190_v23, %v4993_v41  ;;  %vm6204_vm5 = vcmp.gt.f32.partialorder %v17166_v46, %v5117_v19  ;;  %v17984_v44 = vsel %vm6142_vm4, 1.0, %v22593_v0  ;;  %vm6205_vm11 = vcmp.gt.f32.partialorder %v17169_v8, %v5117_v19 }
 0x65c   : > { %13840 = vperm.xlu0 %13518, %v22626_v14   ;;  %13775 = vperm.xlu1 %13512, %v22627_v4   ;;  %v17966_v4 = vsel %vm6187_vm13, 1.0, %v22593_v0  ;;  %v22629_v14 = vpack.i.bf16 %v17730_v35, %v17725_v39  ;;  %v17987_v61 = vsel %vm6143_vm10, 1.0, %v22593_v0  ;;  %v5001_v59 = vrot.slane %v17179_v12, %v17052_v54 }
 0x65d   : > { %v17993_v39 = vsel %vm6204_vm5, 1.0, %v22593_v0  ;;  %v17996_v35 = vsel %vm6205_vm11, 1.0, %v22593_v0  ;;  %v5029_v41 = vrot.slane %v17190_v23, %v17046_v15  ;;  %v5037_v19 = vrot.slane %v17190_v23, %v17049_v58 }
 0x65e   : > { %22630 = vst [vmem:[#allocation17_spill] sm:$0xff] %v17993_v39  ;;  %22631 = vst [vmem:[#allocation5_spill] sm:$0xff] %v17996_v35  ;;  %vm6146_vm2 = vcmp.gt.f32.partialorder %v17179_v12, %v5001_v59  ;;  %vm6147_vm9 = vcmp.gt.f32.partialorder %v17190_v23, %v5001_v59  ;;  %v22632_v62 = vpack.i.bf16 %v17751_v49, %v17748_v2  ;;  %vm9609_vm8 = vcmask 130112  }
 0x65f   : > { %v22633_v22 = vpack.i.bf16 %v17759_v1, %v17756_v10  ;;  %v18015_v6 = vsel %vm6146_vm2, 1.0, %v22593_v0  ;;  %vm6160_vm3 = vcmp.gt.f32.partialorder %v17179_v12, %v5029_v41  ;;  %vm6161_vm6 = vcmp.gt.f32.partialorder %v17190_v23, %v5029_v41 }
 0x660   : > { %13850 = vperm.xlu0 %13518, %v22628_v25   ;;  %13785 = vperm.xlu1 %13512, %v22629_v14   ;;  %v5009_v25 = vrot.slane %v17179_v12, %v17061_v5  ;;  %22634 = vst [vmem:[#allocation18_spill] sm:$0xff] %v18015_v6  ;;  %v18018_v14 = vsel %vm6147_vm9, 1.0, %v22593_v0  ;;  %vm6164_vm7 = vcmp.gt.f32.partialorder %v17179_v12, %v5037_v19  ;;  %v18036_v41 = vsel %vm6160_vm3, 1.0, %v22593_v0 }
 0x661   : > { %22635 = vst [vmem:[#allocation7_spill] sm:$0xff] %v18018_v14  ;;  %22636 = vst [vmem:[#allocation12_spill] sm:$0xff] %v18036_v41  ;;  %vm6165_vm1 = vcmp.gt.f32.partialorder %v17190_v23, %v5037_v19  ;;  %v5017_v49 = vrot.slane %v17179_v12, %v17081_v50  ;;  %v22639_v6 = vpack.i.bf16 %v17790_v47, %v17787_v33  ;;  %v18057_v39 = vsel %vm6164_vm7, 1.0, %v22593_v0 }
 0x662   : > { %vm6150_vm12 = vcmp.gt.f32.partialorder %v17179_v12, %v5009_v25  ;;  %vm6151_vm0 = vcmp.gt.f32.partialorder %v17190_v23, %v5009_v25  ;;  %v22638_v25 = vpack.i.bf16 %v17768_v45, %v17765_v53  ;;  %22640 = vst [vmem:[#allocation24_spill] sm:$0xff] %v18057_v39  ;;  %v5045_v35 = vrot.slane %v17190_v23, %v17058_v32 }
 0x663   : > { %v18051_v14 = vsel %vm6150_vm12, 1.0, %v22593_v0  ;;  %v18054_v19 = vsel %vm6151_vm0, 1.0, %v22593_v0  ;;  %vm6154_vm13 = vcmp.gt.f32.partialorder %v17179_v12, %v5017_v49  ;;  %vm6155_vm14 = vcmp.gt.f32.partialorder %v17190_v23, %v5017_v49 }
 0x664   : > { %13860 = vperm.xlu0 %13518, %v22632_v62   ;;  %13795 = vperm.xlu1 %13512, %v22633_v22   ;;  %v18039_v62 = vsel %vm6161_vm6, 1.0, %v22593_v0  ;;  %v22641_v53 = vpack.i.bf16 %v17805_v48, %v17802_v27  ;;  %v22642_v41 = vpack.i.bf16 %v17812_v63, %v17809_v30  ;;  %v18090_v27 = vsel %vm6155_vm14, 1.0, %v22593_v0 }
 0x665   : > { %22637 = vst [vmem:[#allocation21_spill] sm:$0xff] %v18039_v62  ;;  %vm6168_vm15 = vcmp.gt.f32.partialorder %v17179_v12, %v5045_v35  ;;  %vm6169_vm4 = vcmp.gt.f32.partialorder %v17190_v23, %v5045_v35  ;;  %vm22645_vm10 = vcmask 1041409   ;;  %vm22646_vm11 = vcmask 1042434  }
 0x666   : > { %v18107_v35 = vsel %vm6168_vm15, 1.0, %v22593_v0  ;;  %vm22659_vm15 = vmmov %vm22646_vm11 }
 0x667   : > { %v13521_v2 = vpop.permute.xlu0 %13520  ;;  %v13515_v1 = vpop.permute.xlu1 %13514 }
 0x668   : > { %v13523_v10 = vunpack.i.h.bf16 %v13521_v2  ;;  %v13522_v22 = vunpack.i.l.bf16 %v13521_v2  ;;  %v13517_v59 = vunpack.i.h.bf16 %v13515_v1  ;;  %v13516_v60 = vunpack.i.l.bf16 %v13515_v1  ;;  %13870 = vperm.xlu0 %13518, %v22638_v25   ;;  %13805 = vperm.xlu1 %13512, %v22639_v6  }
 0x669   : > { %v18060_v2 = vsel %vm6165_vm1, 1.0, %v22593_v0  ;;  %vm22656_vm1 = vmmov %vm22645_vm10 }
 0x66a   : > { %v9762_v1 = vrot.slane %v13523_v10, %v17076_v26  ;;  %v9758_v6 = vrot.slane %v13522_v22, %v17073_v24  ;;  %v9753_v33 = vrot.slane %v13517_v59, %v17076_v26  ;;  %v9749_v45 = vrot.slane %v13516_v60, %v17073_v24 }
 0x66b   : > { %v13531_v47 = vpop.permute.xlu0 %13530  ;;  %v13526_v25 = vpop.permute.xlu1 %13525 }
 0x66c   : > { %v13533_v50 = vunpack.i.h.bf16 %v13531_v47  ;;  %v13532_v10 = vunpack.i.l.bf16 %v13531_v47  ;;  %13880 = vperm.xlu0 %13518, %v22641_v53   ;;  %13815 = vperm.xlu1 %13512, %v22642_v41   ;;  %v13528_v22 = vunpack.i.h.bf16 %v13526_v25  ;;  %v13527_v62 = vunpack.i.l.bf16 %v13526_v25 }
 0x66d   : > { %v18085_v47 = vsel %vm6154_vm13, 1.0, %v22593_v0  ;;  %v9763_v63 = vsel %vm9609_vm8, %v9762_v1, %v9758_v6  ;;  %v9754_v41 = vsel %vm9609_vm8, %v9753_v33, %v9749_v45  ;;  %v18110_v1 = vsel %vm6169_vm4, 1.0, %v22593_v0 }
 0x66e   : > { %v9780_v48 = vrot.slane %v13533_v50, %v17076_v26  ;;  %v9776_v30 = vrot.slane %v13532_v10, %v17073_v24  ;;  %v9771_v53 = vrot.slane %v13528_v22, %v17076_v26  ;;  %v9767_v25 = vrot.slane %v13527_v62, %v17073_v24 }
 0x66f   : > { %v13541_v60 = vpop.permute.xlu0 %13540  ;;  %v13536_v49 = vpop.permute.xlu1 %13535  ;;  %v22643_v50 = vpack.i.bf16 %v17852_v16, %v17847_v52  ;;  %v22644_v10 = vpack.i.bf16 %v17840_v29, %v17837_v18  ;;  %v5089_v45 = vrot.slane %v17169_v8, %v16936_v56  ;;  %v11920_v52 = vsel %vm22645_vm10, %v9763_v63, %v9754_v41 }
 0x670   : > { %v13543_v59 = vunpack.i.h.bf16 %v13541_v60  ;;  %v13538_v39 = vunpack.i.h.bf16 %v13536_v49  ;;  %v9772_v62 = vsel %vm9609_vm8, %v9771_v53, %v9767_v25  ;;  %v13542_v6 = vunpack.i.l.bf16 %v13541_v60 }
 0x671   : > { %13890 = vperm.xlu0 %13518, %v22643_v50   ;;  %13825 = vperm.xlu1 %13512, %v22644_v10   ;;  %v13537_v33 = vunpack.i.l.bf16 %v13536_v49  ;;  %v18117_v16 = vsel %vm9609_vm8, %v9780_v48, %v9776_v30  ;;  %vm6190_vm5 = vcmp.gt.f32.partialorder %v17166_v46, %v5089_v45  ;;  %v5053_v63 = vrot.slane %v17190_v23, %v17064_v38 }
 0x672   : > { %v9789_v18 = vrot.slane %v13538_v39, %v17076_v26  ;;  %v18129_v48 = vsel %vm22646_vm11, %v9772_v62, %v11920_v52  ;;  %v18132_v39 = vrot.slane %v13543_v59, %v17076_v26  ;;  %v22647_v30 = vpack.i.bf16 %v17867_v21, %v17864_v51 }
 0x673   : > { %v9785_v22 = vrot.slane %v13537_v33, %v17073_v24  ;;  %v13551_v50 = vpop.permute.xlu0 %13550  ;;  %v13546_v10 = vpop.permute.xlu1 %13545  ;;  %v22648_v41 = vpack.i.bf16 %v17875_v36, %v17872_v7  ;;  %vm6191_vm2 = vcmp.gt.f32.partialorder %v17169_v8, %v5089_v45  ;;  %v18142_v53 = vrot.slane %v13542_v6, %v17073_v24 }
 0x674   : > { %v13553_v25 = vunpack.i.h.bf16 %v13551_v50  ;;  %v13552_v49 = vunpack.i.l.bf16 %v13551_v50  ;;  %vm6172_vm9 = vcmp.gt.f32.partialorder %v17179_v12, %v5053_v63  ;;  %v13548_v62 = vunpack.i.h.bf16 %v13546_v10 }
 0x675   : > { %13900 = vperm.xlu0 %13518, %v22647_v30   ;;  %13835 = vperm.xlu1 %13512, %v22648_v41   ;;  %v18146_v59 = vsel %vm9609_vm8, %v9789_v18, %v9785_v22  ;;  %v13547_v33 = vunpack.i.l.bf16 %v13546_v10  ;;  %v18149_v51 = vsel %vm6190_vm5, 1.0, %v22593_v0  ;;  %v18152_v36 = vsel %vm6191_vm2, 1.0, %v22593_v0 }
 0x676   : > { %22649 = vst [vmem:[#allocation8_spill] sm:$0xff] %v18146_v59  ;;  %vm6173_vm3 = vcmp.gt.f32.partialorder %v17190_v23, %v5053_v63  ;;  %v18156_v6 = vsel %vm6172_vm9, 1.0, %v22593_v0  ;;  %v5097_v45 = vrot.slane %v17169_v8, %v17052_v54  ;;  %v22650_v10 = vpack.i.bf16 %v17884_v42, %v17881_v9 }
 0x677   : > { %v13556_v21 = vpop.permute.xlu0 %13555  ;;  %v13561_v7 = vpop.permute.xlu1 %13560  ;;  %v22651_v30 = vpack.i.bf16 %v17906_v20, %v17903_v43  ;;  %v18167_v63 = vsel %vm6173_vm3, 1.0, %v22593_v0  ;;  %v5189_v41 = vrot.slane %v17204_v34, %v17046_v15  ;;  %v18178_v43 = vrot.slane %v13553_v25, %v17076_v26 }
 0x678   : > { %v13558_v52 = vunpack.i.h.bf16 %v13556_v21  ;;  %v13557_v18 = vunpack.i.l.bf16 %v13556_v21  ;;  %v13563_v22 = vunpack.i.h.bf16 %v13561_v7  ;;  %v13562_v50 = vunpack.i.l.bf16 %v13561_v7 }
 0x679   : > { %13910 = vperm.xlu0 %13518, %v22650_v10   ;;  %13845 = vperm.xlu1 %13512, %v22651_v30   ;;  %vm6194_vm6 = vcmp.gt.f32.partialorder %v17166_v46, %v5097_v45  ;;  %vm6195_vm12 = vcmp.gt.f32.partialorder %v17169_v8, %v5097_v45  ;;  %v18181_v20 = vrot.slane %v13552_v49, %v17073_v24 }
 0x67a   : > { %v9608_v21 = vrot.slane %v13558_v52, %v17076_v26  ;;  %v9603_v7 = vrot.slane %v13557_v18, %v17073_v24  ;;  %v9618_v9 = vrot.slane %v13563_v22, %v17076_v26  ;;  %v9614_v42 = vrot.slane %v13562_v50, %v17073_v24 }
 0x67b   : > { %v18184_v10 = vrot.slane %v13548_v62, %v17076_v26  ;;  %v18187_v30 = vrot.slane %v13547_v33, %v17073_v24  ;;  %v13601_v60 = vpop.permute.xlu0 %13600  ;;  %v13566_v52 = vpop.permute.xlu1 %13565  ;;  %v22652_v22 = vpack.i.bf16 %v17923_v11, %v17920_v57  ;;  %v22653_v25 = vpack.i.bf16 %v17930_v28, %v17927_v55 }
 0x67c   : > { %v13603_v29 = vunpack.i.h.bf16 %v13601_v60  ;;  %v13602_v18 = vunpack.i.l.bf16 %v13601_v60  ;;  %v13568_v33 = vunpack.i.h.bf16 %v13566_v52  ;;  %v13567_v50 = vunpack.i.l.bf16 %v13566_v52 }
 0x67d   : > { %13920 = vperm.xlu0 %13518, %v22652_v22   ;;  %13855 = vperm.xlu1 %13512, %v22653_v25   ;;  %v18202_v60 = vsel %vm6194_vm6, 1.0, %v22593_v0  ;;  %v18207_v57 = vsel %vm6195_vm12, 1.0, %v22593_v0  ;;  %v9610_v11 = vsel %vm9609_vm8, %v9608_v21, %v9603_v7  ;;  %v9619_v55 = vsel %vm9609_vm8, %v9618_v9, %v9614_v42 }
 0x67e   : > { %vm6240_vm0 = vcmp.gt.f32.partialorder %v17204_v34, %v5189_v41  ;;  %vm6241_vm7 = vcmp.gt.f32.partialorder %v17210_v17, %v5189_v41  ;;  %v9834_v28 = vrot.slane %v13603_v29, %v17076_v26  ;;  %v9627_v52 = vrot.slane %v13568_v33, %v17076_v26 }
 0x67f   : > { %v9623_v22 = vrot.slane %v13567_v50, %v17073_v24  ;;  %v13611_v25 = vpop.permute.xlu0 %13610  ;;  %v13571_v62 = vpop.permute.xlu1 %13570  ;;  %v5105_v45 = vrot.slane %v17169_v8, %v17061_v5  ;;  %v9830_v49 = vrot.slane %v13602_v18, %v17073_v24  ;;  %v22654_v42 = vpack.i.bf16 %v17960_v40, %v17955_v13 }
 0x680   : > { %v13613_v21 = vunpack.i.h.bf16 %v13611_v25  ;;  %v13612_v7 = vunpack.i.l.bf16 %v13611_v25  ;;  %v13573_v9 = vunpack.i.h.bf16 %v13571_v62  ;;  %v22655_v29 = vpack.i.bf16 %v17966_v4, %v17963_v3 }
 0x681   : > { %13930 = vperm.xlu0 %13518, %v22654_v42   ;;  %v11906_v33 = vsel %vm22656_vm1, %v9619_v55, %v9610_v11  ;;  %v13572_v50 = vunpack.i.l.bf16 %v13571_v62  ;;  %v18229_v59 = vsel %vm6240_vm0, 1.0, %v22593_v0  ;;  %v18234_v18 = vsel %vm6241_vm7, 1.0, %v22593_v0 }
 0x682   : > { %13865 = vperm.xlu1 %13512, %v22655_v29   ;;  %v9628_v13 = vsel %vm9609_vm8, %v9627_v52, %v9623_v22  ;;  %v9852_v40 = vrot.slane %v13613_v21, %v17076_v26  ;;  %v9848_v3 = vrot.slane %v13612_v7, %v17073_v24  ;;  %vm6198_vm13 = vcmp.gt.f32.partialorder %v17166_v46, %v5105_v45  ;;  %v22667_v7 = vld [vmem:[#allocation7_spill] sm:$0xff] }
 0x683   : > { %v9636_v4 = vrot.slane %v13573_v9, %v17076_v26  ;;  %v9632_v62 = vrot.slane %v13572_v50, %v17073_v24  ;;  %v13621_v11 = vpop.permute.xlu0 %13620  ;;  %v13576_v55 = vpop.permute.xlu1 %13575  ;;  %vm6199_vm14 = vcmp.gt.f32.partialorder %v17169_v8, %v5105_v45  ;;  %v5197_v41 = vrot.slane %v17204_v34, %v17049_v58 }
 0x684   : > { %v18246_v25 = vsel %vm9609_vm8, %v9834_v28, %v9830_v49  ;;  %v13578_v52 = vunpack.i.h.bf16 %v13576_v55  ;;  %v22657_v22 = vpack.i.bf16 %v17979_v37, %v17976_v31  ;;  %v22658_v21 = vpack.i.bf16 %v17987_v61, %v17984_v44 }
 0x685   : > { %v18259_v42 = vsel %vm22659_vm15, %v9628_v13, %v11906_v33  ;;  %v13623_v49 = vunpack.i.h.bf16 %v13621_v11  ;;  %v13622_v28 = vunpack.i.l.bf16 %v13621_v11  ;;  %v13577_v29 = vunpack.i.l.bf16 %v13576_v55 }
 0x686   : > { %13940 = vperm.xlu0 %13518, %v22657_v22   ;;  %13875 = vperm.xlu1 %13512, %v22658_v21   ;;  %22660 = vst [vmem:[#allocation9_spill] sm:$0xff] %v18259_v42  ;;  %v18262_v50 = vsel %vm9609_vm8, %v9852_v40, %v9848_v3  ;;  %v9645_v37 = vrot.slane %v13578_v52, %v17076_v26  ;;  %v18268_v44 = vsel %vm6198_vm13, 1.0, %v22593_v0  ;;  %v18271_v31 = vsel %vm6199_vm14, 1.0, %v22593_v0  ;;  %v22663_v40 = vld [vmem:[#allocation22_spill] sm:$0xff]  ;;  %v22664_v22 = vld [vmem:[#allocation5_spill] sm:$0xff] }
 0x687   : > { %22661 = vst [vmem:[#allocation30_spill] sm:$0xff] %v18262_v50  ;;  %v18274_v61 = vsel %vm9609_vm8, %v9636_v4, %v9632_v62  ;;  %v9641_v33 = vrot.slane %v13577_v29, %v17073_v24  ;;  %v13631_v13 = vpop.permute.xlu0 %13630  ;;  %v13581_v11 = vpop.permute.xlu1 %13580  ;;  %vm6244_vm4 = vcmp.gt.f32.partialorder %v17204_v34, %v5197_v41  ;;  %v5113_v3 = vrot.slane %v17169_v8, %v22663_v40  ;;  %v22665_v21 = vld [vmem:[#allocation17_spill] sm:$0xff]  ;;  %v22668_v50 = vld [vmem:[#allocation18_spill] sm:$0xff] }
 0x688   : > { %22662 = vst [vmem:[#allocation31_spill] sm:$0xff] %v18274_v61  ;;  %v13633_v55 = vunpack.i.h.bf16 %v13631_v13  ;;  %v13632_v52 = vunpack.i.l.bf16 %v13631_v13  ;;  %v13583_v45 = vunpack.i.h.bf16 %v13581_v11  ;;  %v22666_v9 = vpack.i.bf16 %v22664_v22, %v22665_v21  ;;  %v22677_v13 = vld [vmem:[#allocation12_spill] sm:$0xff] }
 0x689   : > { %v22669_v4 = vpack.i.bf16 %v22667_v7, %v22668_v50  ;;  %vm6245_vm10 = vcmp.gt.f32.partialorder %v17210_v17, %v5197_v41  ;;  %v18288_v62 = vrot.slane %v13623_v49, %v17076_v26  ;;  %v18291_v29 = vrot.slane %v13622_v28, %v17073_v24 }
 0x68a   : > { %13950 = vperm.xlu0 %13518, %v22666_v9   ;;  %vm6202_vm5 = vcmp.gt.f32.partialorder %v17166_v46, %v5113_v3  ;;  %v18297_v22 = vsel %vm9609_vm8, %v9645_v37, %v9641_v33  ;;  %v13582_v9 = vunpack.i.l.bf16 %v13581_v11  ;;  %v18300_v7 = vsel %vm6244_vm4, 1.0, %v22593_v0 }
 0x68b   : > { %13885 = vperm.xlu1 %13512, %v22669_v4   ;;  %22670 = vst [vmem:[#allocation22_spill] sm:$0xff] %v18288_v62  ;;  %22671 = vst [vmem:[#allocation5_spill] sm:$0xff] %v18291_v29  ;;  %vm6203_vm11 = vcmp.gt.f32.partialorder %v17169_v8, %v5113_v3  ;;  %v18304_v41 = vrot.slane %v13633_v55, %v17076_v26  ;;  %v18307_v49 = vrot.slane %v13632_v52, %v17073_v24  ;;  %v13641_v28 = vpop.permute.xlu0 %13640  ;;  %v13586_v50 = vpop.permute.xlu1 %13585  ;;  %v22676_v8 = vld [vmem:[#allocation21_spill] sm:$0xff]  ;;  %vm22699_vm15 = vcmask 1041409  }
 0x68c   : > { %22672 = vst [vmem:[#allocation17_spill] sm:$0xff] %v18297_v22  ;;  %v18310_v21 = vsel %vm6245_vm10, 1.0, %v22593_v0  ;;  %v5205_v37 = vrot.slane %v17204_v34, %v17058_v32  ;;  %v18315_v33 = vrot.slane %v13583_v45, %v17076_v26  ;;  %v13643_v11 = vunpack.i.h.bf16 %v13641_v28 }
 0x68d   : > { %22673 = vst [vmem:[#allocation7_spill] sm:$0xff] %v18304_v41  ;;  %22674 = vst [vmem:[#allocation18_spill] sm:$0xff] %v18307_v49  ;;  %v13642_v4 = vunpack.i.l.bf16 %v13641_v28  ;;  %v22678_v55 = vpack.i.bf16 %v22676_v8, %v22677_v13  ;;  %v22679_v52 = vpack.i.bf16 %v18054_v19, %v18051_v14  ;;  %v18326_v41 = vsel %vm6202_vm5, 1.0, %v22593_v0 }
 0x68e   : > { %22675 = vst [vmem:[#allocation32_spill] sm:$0xff] %v18315_v33  ;;  %v13588_v49 = vunpack.i.h.bf16 %v13586_v50  ;;  %v13587_v62 = vunpack.i.l.bf16 %v13586_v50  ;;  %v18329_v45 = vsel %vm6203_vm11, 1.0, %v22593_v0  ;;  %v5025_v28 = vrot.slane %v17190_v23, %v16936_v56 }
 0x68f   : > { %13960 = vperm.xlu0 %13518, %v22678_v55   ;;  %13895 = vperm.xlu1 %13512, %v22679_v52   ;;  %v9690_v13 = vrot.slane %v13643_v11, %v17076_v26  ;;  %v9686_v8 = vrot.slane %v13642_v4, %v17073_v24  ;;  %vm6248_vm2 = vcmp.gt.f32.partialorder %v17204_v34, %v5205_v37  ;;  %v13651_v14 = vpop.permute.xlu0 %13650  ;;  %v13591_v19 = vpop.permute.xlu1 %13590  ;;  %v22681_v4 = vld [vmem:[#allocation24_spill] sm:$0xff]  ;;  %vm22704_vm5 = vcmask 1042434  }
 0x690   : > { %vm6249_vm9 = vcmp.gt.f32.partialorder %v17210_v17, %v5205_v37  ;;  %v18338_v46 = vrot.slane %v13582_v9, %v17073_v24  ;;  %vm6158_vm3 = vcmp.gt.f32.partialorder %v17179_v12, %v5025_v28  ;;  %vm6159_vm6 = vcmp.gt.f32.partialorder %v17190_v23, %v5025_v28 }
 0x691   : > { %v13653_v50 = vunpack.i.h.bf16 %v13651_v14  ;;  %v13652_v11 = vunpack.i.l.bf16 %v13651_v14  ;;  %v13593_v55 = vunpack.i.h.bf16 %v13591_v19  ;;  %v22682_v52 = vpack.i.bf16 %v18060_v2, %v22681_v4 }
 0x692   : > { %22680 = vst [vmem:[#allocation21_spill] sm:$0xff] %v18338_v46  ;;  %v22683_v9 = vpack.i.bf16 %v18090_v27, %v18085_v47  ;;  %v18353_v3 = vrot.slane %v13588_v49, %v17076_v26  ;;  %v18356_v22 = vrot.slane %v13587_v62, %v17073_v24  ;;  %v18361_v28 = vsel %vm6248_vm2, 1.0, %v22593_v0 }
 0x693   : > { %13970 = vperm.xlu0 %13518, %v22682_v52   ;;  %v18366_v2 = vsel %vm6249_vm9, 1.0, %v22593_v0  ;;  %v18369_v47 = vsel %vm9609_vm8, %v9690_v13, %v9686_v8  ;;  %v13592_v27 = vunpack.i.l.bf16 %v13591_v19  ;;  %v18372_v49 = vsel %vm6158_vm3, 1.0, %v22593_v0  ;;  %v13661_v52 = vpop.permute.xlu0 %13660 }
 0x694   : > { %13905 = vperm.xlu1 %13512, %v22683_v9   ;;  %22684 = vst [vmem:[#allocation12_spill] sm:$0xff] %v18353_v3  ;;  %22685 = vst [vmem:[#allocation24_spill] sm:$0xff] %v18356_v22  ;;  %v18375_v62 = vsel %vm6159_vm6, 1.0, %v22593_v0  ;;  %v9708_v14 = vrot.slane %v13653_v50, %v17076_v26  ;;  %v9704_v4 = vrot.slane %v13652_v11, %v17073_v24  ;;  %v13596_v9 = vpop.permute.xlu1 %13595  ;;  %v13663_v19 = vunpack.i.h.bf16 %v13661_v52 }
 0x695   : > { %v5213_v37 = vrot.slane %v17204_v34, %v17064_v38  ;;  %v5033_v13 = vrot.slane %v17190_v23, %v17052_v54  ;;  %v18384_v8 = vrot.slane %v13593_v55, %v17076_v26  ;;  %v13598_v29 = vunpack.i.h.bf16 %v13596_v9 }
 0x696   : > { %v22687_v61 = vpack.i.bf16 %v18110_v1, %v18107_v35  ;;  %v22688_v50 = vpack.i.bf16 %v18152_v36, %v18149_v51  ;;  %v13662_v42 = vunpack.i.l.bf16 %v13661_v52  ;;  %v13597_v3 = vunpack.i.l.bf16 %v13596_v9  ;;  %v22689_v35 = vld [vmem:[#allocation23_spill] sm:$0xff] }
 0x697   : > { %22686 = vst [vmem:[#allocation33_spill] sm:$0xff] %v18384_v8  ;;  %vm6252_vm12 = vcmp.gt.f32.partialorder %v17204_v34, %v5213_v37  ;;  %vm6253_vm0 = vcmp.gt.f32.partialorder %v17210_v17, %v5213_v37  ;;  %v9825_v55 = vrot.slane %v13598_v29, %v17076_v26  ;;  %vm6162_vm7 = vcmp.gt.f32.partialorder %v17179_v12, %v5033_v13  ;;  %v13671_v52 = vpop.permute.xlu0 %13670 }
 0x698   : > { %13980 = vperm.xlu0 %13518, %v22687_v61   ;;  %13915 = vperm.xlu1 %13512, %v22688_v50   ;;  %v5125_v1 = vrot.slane %v22689_v35, %v17046_v15  ;;  %v18403_v51 = vsel %vm9609_vm8, %v9708_v14, %v9704_v4  ;;  %v18406_v36 = vrot.slane %v13592_v27, %v17073_v24  ;;  %v13606_v9 = vpop.permute.xlu1 %13605  ;;  %v18410_v29 = vsel %vm6252_vm12, 1.0, %v22593_v0  ;;  %vm22715_vm12 = vmmov %vm22699_vm15 }
 0x699   : > { %22690 = vst [vmem:[#allocation23_spill] sm:$0xff] %v18403_v51  ;;  %v9821_v61 = vrot.slane %v13597_v3, %v17073_v24  ;;  %v13608_v37 = vunpack.i.h.bf16 %v13606_v9  ;;  %v13607_v50 = vunpack.i.l.bf16 %v13606_v9  ;;  %v22692_v8 = vpack.i.bf16 %v18167_v63, %v18156_v6  ;;  %v22797_v51 = vld [vmem:[#allocation27_spill] sm:$0xff] }
 0x69a   : > { %22691 = vst [vmem:[#allocation34_spill] sm:$0xff] %v18406_v36  ;;  %v22693_v14 = vpack.i.bf16 %v18207_v57, %v18202_v60  ;;  %v18419_v27 = vsel %vm6253_vm0, 1.0, %v22593_v0  ;;  %vm6163_vm1 = vcmp.gt.f32.partialorder %v17190_v23, %v5033_v13  ;;  %v18423_v3 = vrot.slane %v13663_v19, %v17076_v26  ;;  %v22696_v13 = vld [vmem:[#allocation25_spill] sm:$0xff] }
 0x69b   : > { %v18426_v4 = vrot.slane %v13662_v42, %v17073_v24  ;;  %v13673_v9 = vunpack.i.h.bf16 %v13671_v52  ;;  %v18431_v6 = vsel %vm6162_vm7, 1.0, %v22593_v0  ;;  %v9826_v63 = vsel %vm9609_vm8, %v9825_v55, %v9821_v61  ;;  %v13681_v19 = vpop.permute.xlu0 %13680 }
 0x69c   : > { %13990 = vperm.xlu0 %13518, %v22692_v8   ;;  %13925 = vperm.xlu1 %13512, %v22693_v14   ;;  %22694 = vst [vmem:[#allocation35_spill] sm:$0xff] %v18423_v3  ;;  %v13672_v60 = vunpack.i.l.bf16 %v13671_v52  ;;  %v9843_v57 = vrot.slane %v13608_v37, %v17076_v26  ;;  %vm6208_vm13 = vcmp.gt.f32.partialorder %v22689_v35, %v5125_v1  ;;  %v13616_v14 = vpop.permute.xlu1 %13615  ;;  %v18440_v11 = vsel %vm6163_vm1, 1.0, %v22593_v0 }
 0x69d   : > { %22695 = vst [vmem:[#allocation36_spill] sm:$0xff] %v18426_v4  ;;  %v9839_v8 = vrot.slane %v13607_v50, %v17073_v24  ;;  %vm6209_vm14 = vcmp.gt.f32.partialorder %v22696_v13, %v5125_v1  ;;  %v13683_v36 = vunpack.i.h.bf16 %v13681_v19  ;;  %v13682_v22 = vunpack.i.l.bf16 %v13681_v19 }
 0x69e   : > { %v13618_v55 = vunpack.i.h.bf16 %v13616_v14  ;;  %v13617_v61 = vunpack.i.l.bf16 %v13616_v14  ;;  %v22697_v52 = vpack.i.bf16 %v18234_v18, %v18229_v59  ;;  %v22698_v37 = vpack.i.bf16 %v18271_v31, %v18268_v44 }
 0x69f   : > { %v11927_v50 = vsel %vm22699_vm15, %v18246_v25, %v9826_v63  ;;  %v9844_v42 = vsel %vm9609_vm8, %v9843_v57, %v9839_v8  ;;  %v18453_v33 = vsel %vm6208_vm13, 1.0, %v22593_v0  ;;  %v5041_v1 = vrot.slane %v17190_v23, %v17061_v5  ;;  %v13691_v25 = vpop.permute.xlu0 %13690 }
 0x6a0   : > { %14000 = vperm.xlu0 %13518, %v22697_v52   ;;  %13935 = vperm.xlu1 %13512, %v22698_v37   ;;  %v10050_v19 = vrot.slane %v13683_v36, %v17076_v26  ;;  %v10046_v59 = vrot.slane %v13682_v22, %v17073_v24  ;;  %v9861_v18 = vrot.slane %v13618_v55, %v17076_v26  ;;  %v18461_v44 = vsel %vm6209_vm14, 1.0, %v22593_v0  ;;  %v13626_v63 = vpop.permute.xlu1 %13625  ;;  %vm22718_vm14 = vmmov %vm22704_vm5 }
 0x6a1   : > { %v9857_v31 = vrot.slane %v13617_v61, %v17073_v24  ;;  %vm6166_vm4 = vcmp.gt.f32.partialorder %v17179_v12, %v5041_v1  ;;  %vm6167_vm10 = vcmp.gt.f32.partialorder %v17190_v23, %v5041_v1  ;;  %v5133_v57 = vrot.slane %v22689_v35, %v17049_v58 }
 0x6a2   : > { %v18469_v36 = vrot.slane %v13673_v9, %v17076_v26  ;;  %v18472_v22 = vrot.slane %v13672_v60, %v17073_v24  ;;  %v13693_v8 = vunpack.i.h.bf16 %v13691_v25  ;;  %v13692_v14 = vunpack.i.l.bf16 %v13691_v25 }
 0x6a3   : > { %v22702_v55 = vpack.i.bf16 %v18310_v21, %v18300_v7  ;;  %v22703_v61 = vpack.i.bf16 %v18329_v45, %v18326_v41  ;;  %v18481_v52 = vsel %vm22704_vm5, %v9844_v42, %v11927_v50  ;;  %v13628_v37 = vunpack.i.h.bf16 %v13626_v63  ;;  %v13701_v42 = vpop.permute.xlu0 %13700 }
 0x6a4   : > { %22700 = vst [vmem:[#allocation25_spill] sm:$0xff] %v18469_v36  ;;  %22701 = vst [vmem:[#allocation37_spill] sm:$0xff] %v18472_v22  ;;  %v13964_v9 = vpack.i.bf16 %v18440_v11, %v18431_v6  ;;  %v14039_v60 = vpack.i.bf16 %v18461_v44, %v18453_v33  ;;  %v18488_v1 = vsel %vm9609_vm8, %v10050_v19, %v10046_v59  ;;  %v12802_v21 = vsel %vm6166_vm4, 1.0, %v22593_v0  ;;  %v13636_v50 = vpop.permute.xlu1 %13635 }
 0x6a5   : > { %14010 = vperm.xlu0 %13518, %v22702_v55   ;;  %13945 = vperm.xlu1 %13512, %v22703_v61   ;;  %22705 = vst [vmem:[#allocation38_spill] sm:$0xff] %v18481_v52  ;;  %v18491_v7 = vsel %vm9609_vm8, %v9861_v18, %v9857_v31  ;;  %v12803_v41 = vsel %vm6167_vm10, 1.0, %v22593_v0  ;;  %v13627_v45 = vunpack.i.l.bf16 %v13626_v63  ;;  %vm6212_vm11 = vcmp.gt.f32.partialorder %v22689_v35, %v5133_v57 }
 0x6a6   : > { %22706 = vst [vmem:[#allocation39_spill] sm:$0xff] %v18491_v7  ;;  %vm6213_vm2 = vcmp.gt.f32.partialorder %v22696_v13, %v5133_v57  ;;  %v5049_v33 = vrot.slane %v17190_v23, %v22663_v40  ;;  %v10068_v11 = vrot.slane %v13693_v8, %v17076_v26  ;;  %v10064_v6 = vrot.slane %v13692_v14, %v17073_v24 }
 0x6a7   : > { %v13703_v19 = vunpack.i.h.bf16 %v13701_v42  ;;  %v13638_v59 = vunpack.i.h.bf16 %v13636_v50  ;;  %v22707_v18 = vpack.i.bf16 %v18366_v2, %v18361_v28  ;;  %v22708_v44 = vpack.i.bf16 %v18375_v62, %v18372_v49  ;;  %v13711_v49 = vpop.permute.xlu0 %13710 }
 0x6a8   : > { %v18508_v31 = vrot.slane %v13628_v37, %v17076_v26  ;;  %v13702_v25 = vunpack.i.l.bf16 %v13701_v42  ;;  %v13637_v63 = vunpack.i.l.bf16 %v13636_v50  ;;  %v13974_v57 = vpack.i.bf16 %v12803_v41, %v12802_v21  ;;  %v13646_v62 = vpop.permute.xlu1 %13645 }
 0x6a9   : > { %14020 = vperm.xlu0 %13518, %v22707_v18   ;;  %13955 = vperm.xlu1 %13512, %v22708_v44   ;;  %v9681_v8 = vrot.slane %v13638_v59, %v17076_v26  ;;  %v12848_v14 = vsel %vm6212_vm11, 1.0, %v22593_v0  ;;  %v12849_v55 = vsel %vm6213_vm2, 1.0, %v22593_v0  ;;  %vm6170_vm9 = vcmp.gt.f32.partialorder %v17179_v12, %v5049_v33 }
 0x6aa   : > { %22709 = vst [vmem:[#allocation40_spill] sm:$0xff] %v18508_v31  ;;  %v18515_v28 = vrot.slane %v13627_v45, %v17073_v24  ;;  %v9677_v2 = vrot.slane %v13637_v63, %v17073_v24  ;;  %vm6171_vm3 = vcmp.gt.f32.partialorder %v17190_v23, %v5049_v33  ;;  %v5141_v61 = vrot.slane %v22689_v35, %v17058_v32 }
 0x6ab   : > { %v18522_v37 = vsel %vm9609_vm8, %v10068_v11, %v10064_v6  ;;  %v18525_v21 = vrot.slane %v13703_v19, %v17076_v26  ;;  %v13648_v41 = vunpack.i.h.bf16 %v13646_v62  ;;  %v13647_v42 = vunpack.i.l.bf16 %v13646_v62  ;;  %v13721_v44 = vpop.permute.xlu0 %13720 }
 0x6ac   : > { %22710 = vst [vmem:[#allocation41_spill] sm:$0xff] %v18515_v28  ;;  %22711 = vst [vmem:[#allocation42_spill] sm:$0xff] %v18522_v37  ;;  %v22713_v45 = vpack.i.bf16 %v18419_v27, %v18410_v29  ;;  %v18531_v50 = vrot.slane %v13702_v25, %v17073_v24  ;;  %v9682_v23 = vsel %vm9609_vm8, %v9681_v8, %v9677_v2  ;;  %v12806_v11 = vsel %vm6170_vm9, 1.0, %v22593_v0  ;;  %v13656_v25 = vpop.permute.xlu1 %13655 }
 0x6ad   : > { %22712 = vst [vmem:[#allocation43_spill] sm:$0xff] %v18525_v21  ;;  %13965 = vperm.xlu1 %13512, %v13964_v9   ;;  %v14049_v59 = vpack.i.bf16 %v12849_v55, %v12848_v14  ;;  %v13713_v6 = vunpack.i.h.bf16 %v13711_v49  ;;  %v9699_v19 = vrot.slane %v13648_v41, %v17076_v26  ;;  %v12807_v18 = vsel %vm6171_vm3, 1.0, %v22593_v0  ;;  %vm22724_vm3 = vmmov %vm22715_vm12 }
 0x6ae   : > { %14030 = vperm.xlu0 %13518, %v22713_v45   ;;  %22714 = vst [vmem:[#allocation44_spill] sm:$0xff] %v18531_v50  ;;  %vm6216_vm6 = vcmp.gt.f32.partialorder %v22689_v35, %v5141_v61  ;;  %v11913_v29 = vsel %vm22715_vm12, %v18369_v47, %v9682_v23  ;;  %v13712_v27 = vunpack.i.l.bf16 %v13711_v49  ;;  %v9695_v9 = vrot.slane %v13647_v42, %v17073_v24 }
 0x6af   : > { %vm6217_vm0 = vcmp.gt.f32.partialorder %v22696_v13, %v5141_v61  ;;  %v13723_v63 = vunpack.i.h.bf16 %v13721_v44  ;;  %v13722_v12 = vunpack.i.l.bf16 %v13721_v44  ;;  %v13658_v33 = vunpack.i.h.bf16 %v13656_v25  ;;  %v13731_v42 = vpop.permute.xlu0 %13730 }
 0x6b0   : > { %v13657_v8 = vunpack.i.l.bf16 %v13656_v25  ;;  %v13984_v14 = vpack.i.bf16 %v12807_v18, %v12806_v11  ;;  %v12852_v55 = vsel %vm6216_vm6, 1.0, %v22593_v0  ;;  %v5185_v2 = vrot.slane %v17204_v34, %v16936_v56  ;;  %v13666_v45 = vpop.permute.xlu1 %13665  ;;  %vm22727_vm6 = vmmov %vm22718_vm14 }
 0x6b1   : > { %13975 = vperm.xlu1 %13512, %v13974_v57   ;;  %v5149_v47 = vrot.slane %v22689_v35, %v17064_v38  ;;  %v9700_v49 = vsel %vm9609_vm8, %v9699_v19, %v9695_v9  ;;  %v9906_v62 = vrot.slane %v13723_v63, %v17076_v26  ;;  %v9902_v61 = vrot.slane %v13722_v12, %v17073_v24 }
 0x6b2   : > { %14040 = vperm.xlu0 %13518, %v14039_v60   ;;  %v12853_v41 = vsel %vm6217_vm0, 1.0, %v22593_v0  ;;  %v9717_v60 = vrot.slane %v13658_v33, %v17076_v26  ;;  %v9713_v57 = vrot.slane %v13657_v8, %v17073_v24  ;;  %vm6238_vm7 = vcmp.gt.f32.partialorder %v17204_v34, %v5185_v2 }
 0x6b3   : > { %vm6239_vm1 = vcmp.gt.f32.partialorder %v17210_v17, %v5185_v2  ;;  %v18558_v23 = vrot.slane %v13713_v6, %v17076_v26  ;;  %v13733_v11 = vunpack.i.h.bf16 %v13731_v42  ;;  %v13732_v19 = vunpack.i.l.bf16 %v13731_v42  ;;  %v13741_v8 = vpop.permute.xlu0 %13740 }
 0x6b4   : > { %vm6220_vm13 = vcmp.gt.f32.partialorder %v22689_v35, %v5149_v47  ;;  %v18562_v18 = vrot.slane %v13712_v27, %v17073_v24  ;;  %v14059_v9 = vpack.i.bf16 %v12853_v41, %v12852_v55  ;;  %v12874_v44 = vsel %vm6238_vm7, 1.0, %v22593_v0 }
 0x6b5   : > { %22716 = vst [vmem:[#allocation45_spill] sm:$0xff] %v18558_v23  ;;  %13985 = vperm.xlu1 %13512, %v13984_v14   ;;  %v12875_v25 = vsel %vm6239_vm1, 1.0, %v22593_v0  ;;  %v18567_v63 = vsel %vm22718_vm14, %v9700_v49, %v11913_v29  ;;  %v18570_v6 = vsel %vm9609_vm8, %v9906_v62, %v9902_v61  ;;  %v13668_v12 = vunpack.i.h.bf16 %v13666_v45  ;;  %v13676_v14 = vpop.permute.xlu1 %13675 }
 0x6b6   : > { %14050 = vperm.xlu0 %13518, %v14049_v59   ;;  %22717 = vst [vmem:[#allocation46_spill] sm:$0xff] %v18562_v18  ;;  %22719 = vst [vmem:[#allocation47_spill] sm:$0xff] %v18567_v63  ;;  %v13994_v33 = vpack.i.bf16 %v12875_v25, %v12874_v44  ;;  %v18573_v59 = vsel %vm9609_vm8, %v9717_v60, %v9713_v57  ;;  %vm6221_vm15 = vcmp.gt.f32.partialorder %v22696_v13, %v5149_v47 }
 0x6b7   : > { %22720 = vst [vmem:[#allocation48_spill] sm:$0xff] %v18573_v59  ;;  %v12856_v27 = vsel %vm6220_vm13, 1.0, %v22593_v0  ;;  %v5193_v55 = vrot.slane %v17204_v34, %v17052_v54  ;;  %v9924_v29 = vrot.slane %v13733_v11, %v17076_v26  ;;  %v9920_v2 = vrot.slane %v13732_v19, %v17073_v24  ;;  %v13751_v44 = vpop.permute.xlu0 %13750 }
 0x6b8   : > { %v13667_v49 = vunpack.i.l.bf16 %v13666_v45  ;;  %v13678_v62 = vunpack.i.h.bf16 %v13676_v14  ;;  %v13677_v61 = vunpack.i.l.bf16 %v13676_v14  ;;  %v12857_v41 = vsel %vm6221_vm15, 1.0, %v22593_v0 }
 0x6b9   : > { %13995 = vperm.xlu1 %13512, %v13994_v33   ;;  %vm6242_vm4 = vcmp.gt.f32.partialorder %v17204_v34, %v5193_v55  ;;  %vm6243_vm10 = vcmp.gt.f32.partialorder %v17210_v17, %v5193_v55  ;;  %v13743_v47 = vunpack.i.h.bf16 %v13741_v8  ;;  %v13742_v60 = vunpack.i.l.bf16 %v13741_v8  ;;  %v13686_v19 = vpop.permute.xlu1 %13685 }
 0x6ba   : > { %14060 = vperm.xlu0 %13518, %v14059_v9   ;;  %v10041_v57 = vrot.slane %v13678_v62, %v17076_v26  ;;  %v14069_v42 = vpack.i.bf16 %v12857_v41, %v12856_v27  ;;  %v10037_v11 = vrot.slane %v13677_v61, %v17073_v24  ;;  %v12878_v45 = vsel %vm6242_vm4, 1.0, %v22593_v0 }
 0x6bb   : > { %v12879_v9 = vsel %vm6243_vm10, 1.0, %v22593_v0  ;;  %v5221_v25 = vrot.slane %v17210_v17, %v17046_v15  ;;  %v18591_v33 = vrot.slane %v13668_v12, %v17076_v26  ;;  %v18594_v14 = vrot.slane %v13667_v49, %v17073_v24 }
 0x6bc   : > { %v13688_v8 = vunpack.i.h.bf16 %v13686_v19  ;;  %v13687_v55 = vunpack.i.l.bf16 %v13686_v19  ;;  %v18597_v27 = vsel %vm9609_vm8, %v9924_v29, %v9920_v2  ;;  %v14004_v62 = vpack.i.bf16 %v12879_v9, %v12878_v45  ;;  %v13761_v29 = vpop.permute.xlu0 %13760 }
 0x6bd   : > { %22721 = vst [vmem:[#allocation49_spill] sm:$0xff] %v18597_v27  ;;  %vm6256_vm5 = vcmp.gt.f32.partialorder %v17204_v34, %v5221_v25  ;;  %vm6257_vm11 = vcmp.gt.f32.partialorder %v17210_v17, %v5221_v25  ;;  %v18602_v61 = vrot.slane %v13743_v47, %v17076_v26  ;;  %v18605_v12 = vrot.slane %v13742_v60, %v17073_v24  ;;  %v13696_v2 = vpop.permute.xlu1 %13695 }
 0x6be   : > { %14070 = vperm.xlu0 %13518, %v14069_v42   ;;  %v10042_v49 = vsel %vm9609_vm8, %v10041_v57, %v10037_v11  ;;  %v10059_v41 = vrot.slane %v13688_v8, %v17076_v26  ;;  %v10055_v42 = vrot.slane %v13687_v55, %v17073_v24  ;;  %14005 = vperm.xlu1 %13512, %v14004_v62   ;;  %v12892_v19 = vsel %vm6256_vm5, 1.0, %v22593_v0 }
 0x6bf   : > { %22722 = vst [vmem:[#allocation50_spill] sm:$0xff] %v18602_v61  ;;  %22723 = vst [vmem:[#allocation51_spill] sm:$0xff] %v18605_v12  ;;  %v12893_v45 = vsel %vm6257_vm11, 1.0, %v22593_v0  ;;  %v5201_v47 = vrot.slane %v17204_v34, %v17061_v5  ;;  %v13753_v9 = vunpack.i.h.bf16 %v13751_v44  ;;  %v13752_v25 = vunpack.i.l.bf16 %v13751_v44 }
 0x6c0   : > { %v13763_v60 = vunpack.i.h.bf16 %v13761_v29  ;;  %v13762_v7 = vunpack.i.l.bf16 %v13761_v29  ;;  %v13698_v52 = vunpack.i.h.bf16 %v13696_v2  ;;  %v14079_v57 = vpack.i.bf16 %v12893_v45, %v12892_v19  ;;  %v13771_v19 = vpop.permute.xlu0 %13770 }
 0x6c1   : > { %vm6246_vm2 = vcmp.gt.f32.partialorder %v17204_v34, %v5201_v47  ;;  %vm6247_vm9 = vcmp.gt.f32.partialorder %v17210_v17, %v5201_v47  ;;  %v11948_v11 = vsel %vm22724_vm3, %v18488_v1, %v10042_v49  ;;  %v10060_v8 = vsel %vm9609_vm8, %v10059_v41, %v10055_v42  ;;  %v13706_v45 = vpop.permute.xlu1 %13705 }
 0x6c2   : > { %v10122_v55 = vrot.slane %v13763_v60, %v17076_v26  ;;  %v13697_v62 = vunpack.i.l.bf16 %v13696_v2  ;;  %v10118_v31 = vrot.slane %v13762_v7, %v17073_v24  ;;  %14080 = vperm.xlu0 %13518, %v14079_v57   ;;  %v12882_v44 = vsel %vm6246_vm2, 1.0, %v22593_v0 }
 0x6c3   : > { %v12883_v29 = vsel %vm6247_vm9, 1.0, %v22593_v0  ;;  %v5229_v47 = vrot.slane %v17210_v17, %v17049_v58  ;;  %v18626_v28 = vrot.slane %v13753_v9, %v17076_v26  ;;  %v13773_v49 = vunpack.i.h.bf16 %v13771_v19  ;;  %vm22735_vm9 = vmmov %vm22724_vm3 }
 0x6c4   : > { %v14014_v1 = vpack.i.bf16 %v12883_v29, %v12882_v44  ;;  %v13772_v41 = vunpack.i.l.bf16 %v13771_v19  ;;  %v18629_v42 = vrot.slane %v13752_v25, %v17073_v24  ;;  %v18632_v7 = vsel %vm22727_vm6, %v10060_v8, %v11948_v11 }
 0x6c5   : > { %22725 = vst [vmem:[#allocation52_spill] sm:$0xff] %v18626_v28  ;;  %22728 = vst [vmem:[#allocation54_spill] sm:$0xff] %v18632_v7  ;;  %v10077_v2 = vrot.slane %v13698_v52, %v17076_v26  ;;  %vm6260_vm12 = vcmp.gt.f32.partialorder %v17204_v34, %v5229_v47  ;;  %v10073_v60 = vrot.slane %v13697_v62, %v17073_v24  ;;  %v13708_v57 = vunpack.i.h.bf16 %v13706_v45  ;;  %v13781_v52 = vpop.permute.xlu0 %13780  ;;  %v13716_v8 = vpop.permute.xlu1 %13715 }
 0x6c6   : > { %22726 = vst [vmem:[#allocation53_spill] sm:$0xff] %v18629_v42  ;;  %14015 = vperm.xlu1 %13512, %v14014_v1   ;;  %vm6261_vm0 = vcmp.gt.f32.partialorder %v17210_v17, %v5229_v47  ;;  %v12896_v9 = vsel %vm6260_vm12, 1.0, %v22593_v0  ;;  %v18640_v44 = vsel %vm9609_vm8, %v10122_v55, %v10118_v31  ;;  %v13707_v25 = vunpack.i.l.bf16 %v13706_v45 }
 0x6c7   : > { %v12897_v29 = vsel %vm6261_vm0, 1.0, %v22593_v0  ;;  %v5209_v11 = vrot.slane %v17204_v34, %v22663_v40  ;;  %v10140_v19 = vrot.slane %v13773_v49, %v17076_v26  ;;  %v10136_v62 = vrot.slane %v13772_v41, %v17073_v24 }
 0x6c8   : > { %v14089_v1 = vpack.i.bf16 %v12897_v29, %v12896_v9  ;;  %v13783_v46 = vunpack.i.h.bf16 %v13781_v52  ;;  %v13718_v31 = vunpack.i.h.bf16 %v13716_v8  ;;  %v13717_v55 = vunpack.i.l.bf16 %v13716_v8 }
 0x6c9   : > { %vm6250_vm7 = vcmp.gt.f32.partialorder %v17204_v34, %v5209_v11  ;;  %vm6251_vm1 = vcmp.gt.f32.partialorder %v17210_v17, %v5209_v11  ;;  %v18650_v45 = vsel %vm9609_vm8, %v10077_v2, %v10073_v60  ;;  %v18653_v47 = vrot.slane %v13708_v57, %v17076_v26  ;;  %v18662_v8 = vpop.permute.xlu0 %13790  ;;  %v13726_v2 = vpop.permute.xlu1 %13725 }
 0x6ca   : > { %22729 = vst [vmem:[#allocation55_spill] sm:$0xff] %v18650_v45  ;;  %14090 = vperm.xlu0 %13518, %v14089_v1   ;;  %v12886_v28 = vsel %vm6250_vm7, 1.0, %v22593_v0  ;;  %v12887_v49 = vsel %vm6251_vm1, 1.0, %v22593_v0  ;;  %v18658_v41 = vrot.slane %v13707_v25, %v17073_v24  ;;  %v13782_v29 = vunpack.i.l.bf16 %v13781_v52 }
 0x6cb   : > { %22730 = vst [vmem:[#allocation56_spill] sm:$0xff] %v18653_v47  ;;  %v14024_v9 = vpack.i.bf16 %v12887_v49, %v12886_v28  ;;  %v5237_v11 = vrot.slane %v17210_v17, %v17058_v32  ;;  %v18665_v60 = vsel %vm9609_vm8, %v10140_v19, %v10136_v62  ;;  %v9897_v57 = vrot.slane %v13718_v31, %v17076_v26 }
 0x6cc   : > { %22731 = vst [vmem:[#allocation57_spill] sm:$0xff] %v18658_v41  ;;  %22732 = vst [vmem:[#allocation58_spill] sm:$0xff] %v18665_v60  ;;  %v9893_v1 = vrot.slane %v13717_v55, %v17073_v24  ;;  %v5121_v42 = vrot.slane %v22689_v35, %v16936_v56  ;;  %v18672_v28 = vrot.slane %v13783_v46, %v17076_v26  ;;  %v13728_v25 = vunpack.i.h.bf16 %v13726_v2 }
 0x6cd   : > { %14025 = vperm.xlu1 %13512, %v14024_v9   ;;  %vm6264_vm13 = vcmp.gt.f32.partialorder %v17204_v34, %v5237_v11  ;;  %vm6265_vm14 = vcmp.gt.f32.partialorder %v17210_v17, %v5237_v11  ;;  %v13727_v62 = vunpack.i.l.bf16 %v13726_v2  ;;  %v18680_v31 = vrot.slane %v13782_v29, %v17073_v24  ;;  %v13801_v49 = vpop.permute.xlu0 %13800  ;;  %v13736_v9 = vpop.permute.xlu1 %13735 }
 0x6ce   : > { %22733 = vst [vmem:[#allocation59_spill] sm:$0xff] %v18672_v28  ;;  %v12900_v52 = vsel %vm6264_vm13, 1.0, %v22593_v0  ;;  %v12901_v19 = vsel %vm6265_vm14, 1.0, %v22593_v0  ;;  %vm6206_vm15 = vcmp.gt.f32.partialorder %v22689_v35, %v5121_v42  ;;  %vm6207_vm4 = vcmp.gt.f32.partialorder %v22696_v13, %v5121_v42 }
 0x6cf   : > { %22734 = vst [vmem:[#allocation60_spill] sm:$0xff] %v18680_v31  ;;  %v14099_v55 = vpack.i.bf16 %v12901_v19, %v12900_v52  ;;  %v12842_v46 = vsel %vm6206_vm15, 1.0, %v22593_v0  ;;  %v9898_v11 = vsel %vm9609_vm8, %v9897_v57, %v9893_v1  ;;  %v12843_v28 = vsel %vm6207_vm4, 1.0, %v22593_v0 }
 0x6d0   : > { %v13793_v60 = vunpack.i.h.bf16 %v18662_v8  ;;  %v13792_v61 = vunpack.i.l.bf16 %v18662_v8  ;;  %v14034_v2 = vpack.i.bf16 %v12843_v28, %v12842_v46  ;;  %v9915_v29 = vrot.slane %v13728_v25, %v17076_v26 }
 0x6d1   : > { %14100 = vperm.xlu0 %13518, %v14099_v55   ;;  %v5245_v52 = vrot.slane %v17210_v17, %v17064_v38  ;;  %v5129_v42 = vrot.slane %v22689_v35, %v17052_v54  ;;  %v9911_v19 = vrot.slane %v13727_v62, %v17073_v24  ;;  %v13803_v31 = vunpack.i.h.bf16 %v13801_v49  ;;  %v13811_v28 = vpop.permute.xlu0 %13810  ;;  %v18697_v25 = vpop.permute.xlu1 %13745 }
 0x6d2   : > { %v13802_v57 = vunpack.i.l.bf16 %v13801_v49  ;;  %v13738_v1 = vunpack.i.h.bf16 %v13736_v9  ;;  %14035 = vperm.xlu1 %13512, %v14034_v2   ;;  %v13737_v8 = vunpack.i.l.bf16 %v13736_v9  ;;  %v11934_v49 = vsel %vm22735_vm9, %v18570_v6, %v9898_v11 }
 0x6d3   : > { %vm6268_vm10 = vcmp.gt.f32.partialorder %v17204_v34, %v5245_v52  ;;  %vm6269_vm5 = vcmp.gt.f32.partialorder %v17210_v17, %v5245_v52  ;;  %vm6210_vm11 = vcmp.gt.f32.partialorder %v22689_v35, %v5129_v42  ;;  %vm6211_vm2 = vcmp.gt.f32.partialorder %v22696_v13, %v5129_v42 }
 0x6d4   : > { %v12904_v55 = vsel %vm6268_vm10, 1.0, %v22593_v0  ;;  %v12905_v46 = vsel %vm6269_vm5, 1.0, %v22593_v0  ;;  %v12846_v62 = vsel %vm6210_vm11, 1.0, %v22593_v0  ;;  %v18706_v2 = vrot.slane %v13793_v60, %v17076_v26 }
 0x6d5   : > { %v14109_v52 = vpack.i.bf16 %v12905_v46, %v12904_v55  ;;  %v12847_v9 = vsel %vm6211_vm2, 1.0, %v22593_v0  ;;  %v9916_v12 = vsel %vm9609_vm8, %v9915_v29, %v9911_v19  ;;  %v9978_v23 = vrot.slane %v13803_v31, %v17076_v26  ;;  %v18718_v11 = vpop.permute.xlu0 %13820  ;;  %v13756_v55 = vpop.permute.xlu1 %13755  ;;  %vm22746_vm2 = vmmov %vm22735_vm9 }
 0x6d6   : > { %22736 = vst [vmem:[#allocation61_spill] sm:$0xff] %v18706_v2  ;;  %v14044_v27 = vpack.i.bf16 %v12847_v9, %v12846_v62  ;;  %v5157_v18 = vrot.slane %v22696_v13, %v17046_v15  ;;  %v9974_v42 = vrot.slane %v13802_v57, %v17073_v24  ;;  %v9933_v45 = vrot.slane %v13738_v1, %v17076_v26 }
 0x6d7   : > { %14110 = vperm.xlu0 %13518, %v14109_v52   ;;  %v9929_v6 = vrot.slane %v13737_v8, %v17073_v24  ;;  %v5137_v60 = vrot.slane %v22689_v35, %v17061_v5  ;;  %v13813_v31 = vunpack.i.h.bf16 %v13811_v28  ;;  %v13812_v29 = vunpack.i.l.bf16 %v13811_v28 }
 0x6d8   : > { %14045 = vperm.xlu1 %13512, %v14044_v27   ;;  %vm6224_vm3 = vcmp.gt.f32.partialorder %v22689_v35, %v5157_v18  ;;  %vm6225_vm6 = vcmp.gt.f32.partialorder %v22696_v13, %v5157_v18  ;;  %v18727_v1 = vrot.slane %v13792_v61, %v17073_v24  ;;  %vm22738_vm7 = vcmask 1042434  }
 0x6d9   : > { %v12860_v19 = vsel %vm6224_vm3, 1.0, %v22593_v0  ;;  %v12861_v57 = vsel %vm6225_vm6, 1.0, %v22593_v0  ;;  %vm6214_vm12 = vcmp.gt.f32.partialorder %v22689_v35, %v5137_v60  ;;  %vm6215_vm0 = vcmp.gt.f32.partialorder %v22696_v13, %v5137_v60  ;;  %v18740_v9 = vpop.permute.xlu0 %13830  ;;  %v13766_v60 = vpop.permute.xlu1 %13765 }
 0x6da   : > { %22737 = vst [vmem:[#allocation62_spill] sm:$0xff] %v18727_v1  ;;  %v14119_v8 = vpack.i.bf16 %v12861_v57, %v12860_v19  ;;  %v12850_v27 = vsel %vm6214_vm12, 1.0, %v22593_v0  ;;  %v12851_v46 = vsel %vm6215_vm0, 1.0, %v22593_v0  ;;  %v18732_v18 = vsel %vm22738_vm7, %v9916_v12, %v11934_v49 }
 0x6db   : > { %22739 = vst [vmem:[#allocation63_spill] sm:$0xff] %v18732_v18  ;;  %v18735_v28 = vsel %vm9609_vm8, %v9978_v23, %v9974_v42  ;;  %v18738_v62 = vsel %vm9609_vm8, %v9933_v45, %v9929_v6  ;;  %v14054_v52 = vpack.i.bf16 %v12851_v46, %v12850_v27  ;;  %v9996_v61 = vrot.slane %v13813_v31, %v17076_v26 }
 0x6dc   : > { %22740 = vst [vmem:[#allocation64_spill] sm:$0xff] %v18738_v62  ;;  %14120 = vperm.xlu0 %13518, %v14119_v8   ;;  %v13748_v19 = vunpack.i.h.bf16 %v18697_v25  ;;  %v5165_v57 = vrot.slane %v22696_v13, %v17049_v58  ;;  %v5145_v12 = vrot.slane %v22689_v35, %v22663_v40  ;;  %v9992_v23 = vrot.slane %v13812_v29, %v17073_v24 }
 0x6dd   : > { %14055 = vperm.xlu1 %13512, %v14054_v52   ;;  %v13747_v45 = vunpack.i.l.bf16 %v18697_v25  ;;  %v13758_v49 = vunpack.i.h.bf16 %v13756_v55  ;;  %v13757_v42 = vunpack.i.l.bf16 %v13756_v55  ;;  %v18758_v27 = vpop.permute.xlu0 %13840  ;;  %v18760_v25 = vpop.permute.xlu1 %13775  ;;  %v5173_v1 = vrot.slane %v22696_v13, %v17058_v32 }
 0x6de   : > { %vm6228_vm1 = vcmp.gt.f32.partialorder %v22689_v35, %v5165_v57  ;;  %vm6229_vm13 = vcmp.gt.f32.partialorder %v22696_v13, %v5165_v57  ;;  %vm6218_vm14 = vcmp.gt.f32.partialorder %v22689_v35, %v5145_v12  ;;  %vm6219_vm15 = vcmp.gt.f32.partialorder %v22696_v13, %v5145_v12 }
 0x6df   : > { %v12864_v6 = vsel %vm6228_vm1, 1.0, %v22593_v0  ;;  %v12865_v31 = vsel %vm6229_vm13, 1.0, %v22593_v0  ;;  %v12854_v8 = vsel %vm6218_vm14, 1.0, %v22593_v0  ;;  %v12855_v29 = vsel %vm6219_vm15, 1.0, %v22593_v0 }
 0x6e0   : > { %v18763_v55 = vrot.slane %v13748_v19, %v17076_v26  ;;  %v14129_v46 = vpack.i.bf16 %v12865_v31, %v12864_v6  ;;  %v14064_v52 = vpack.i.bf16 %v12855_v29, %v12854_v8  ;;  %v13823_v57 = vunpack.i.h.bf16 %v18718_v11 }
 0x6e1   : > { %v10113_v12 = vrot.slane %v13758_v49, %v17076_v26  ;;  %v10109_v2 = vrot.slane %v13757_v42, %v17073_v24  ;;  %v5217_v62 = vrot.slane %v17210_v17, %v16936_v56  ;;  %v18773_v18 = vsel %vm9609_vm8, %v9996_v61, %v9992_v23  ;;  %v18782_v42 = vpop.permute.xlu0 %13850  ;;  %v18784_v8 = vpop.permute.xlu1 %13785 }
 0x6e2   : > { %22741 = vst [vmem:[#allocation65_spill] sm:$0xff] %v18763_v55  ;;  %22742 = vst [vmem:[#allocation66_spill] sm:$0xff] %v18773_v18  ;;  %v18776_v19 = vrot.slane %v13747_v45, %v17073_v24  ;;  %14130 = vperm.xlu0 %13518, %v14129_v46   ;;  %14065 = vperm.xlu1 %13512, %v14064_v52   ;;  %v13822_v6 = vunpack.i.l.bf16 %v18718_v11  ;;  %v13768_v31 = vunpack.i.h.bf16 %v13766_v60  ;;  %v13767_v49 = vunpack.i.l.bf16 %v13766_v60 }
 0x6e3   : > { %vm6232_vm4 = vcmp.gt.f32.partialorder %v22689_v35, %v5173_v1  ;;  %vm6233_vm10 = vcmp.gt.f32.partialorder %v22696_v13, %v5173_v1  ;;  %vm6254_vm5 = vcmp.gt.f32.partialorder %v17204_v34, %v5217_v62  ;;  %v10114_v61 = vsel %vm9609_vm8, %v10113_v12, %v10109_v2 }
 0x6e4   : > { %22743 = vst [vmem:[#allocation67_spill] sm:$0xff] %v18776_v19  ;;  %v12868_v23 = vsel %vm6232_vm4, 1.0, %v22593_v0  ;;  %v12869_v45 = vsel %vm6233_vm10, 1.0, %v22593_v0  ;;  %vm6255_vm11 = vcmp.gt.f32.partialorder %v17210_v17, %v5217_v62  ;;  %v18791_v11 = vrot.slane %v13823_v57, %v17076_v26 }
 0x6e5   : > { %v14139_v29 = vpack.i.bf16 %v12869_v45, %v12868_v23  ;;  %v12890_v1 = vsel %vm6254_vm5, 1.0, %v22593_v0  ;;  %v12891_v60 = vsel %vm6255_vm11, 1.0, %v22593_v0  ;;  %v18796_v46 = vrot.slane %v13822_v6, %v17073_v24  ;;  %v18807_v45 = vpop.permute.xlu0 %13860  ;;  %v18809_v6 = vpop.permute.xlu1 %13795 }
 0x6e6   : > { %22744 = vst [vmem:[#allocation68_spill] sm:$0xff] %v18791_v11  ;;  %v14074_v52 = vpack.i.bf16 %v12891_v60, %v12890_v1  ;;  %v13833_v2 = vunpack.i.h.bf16 %v18740_v9  ;;  %v13832_v12 = vunpack.i.l.bf16 %v18740_v9  ;;  %v11955_v18 = vsel %vm22746_vm2, %v18640_v44, %v10114_v61  ;;  %v22747_v61 = vld [vmem:[#allocation19_spill] sm:$0xff] }
 0x6e7   : > { %22745 = vst [vmem:[#allocation69_spill] sm:$0xff] %v18796_v46  ;;  %14140 = vperm.xlu0 %13518, %v14139_v29   ;;  %v10131_v62 = vrot.slane %v13768_v31, %v17076_v26  ;;  %v5181_v57 = vrot.slane %v22696_v13, %v17064_v38  ;;  %v5225_v23 = vrot.slane %v17210_v17, %v17052_v54  ;;  %v13843_v9 = vunpack.i.h.bf16 %v18758_v27 }
 0x6e8   : > { %14075 = vperm.xlu1 %13512, %v14074_v52   ;;  %v10127_v1 = vrot.slane %v13767_v49, %v17073_v24  ;;  %v13842_v44 = vunpack.i.l.bf16 %v18758_v27  ;;  %v5317_v31 = vrot.slane %v22747_v61, %v17046_v15  ;;  %v13778_v29 = vunpack.i.h.bf16 %v18760_v25 }
 0x6e9   : > { %vm6236_vm9 = vcmp.gt.f32.partialorder %v22689_v35, %v5181_v57  ;;  %vm6237_vm3 = vcmp.gt.f32.partialorder %v22696_v13, %v5181_v57  ;;  %vm6258_vm6 = vcmp.gt.f32.partialorder %v17204_v34, %v5225_v23  ;;  %vm6259_vm12 = vcmp.gt.f32.partialorder %v17210_v17, %v5225_v23  ;;  %v18829_v55 = vpop.permute.xlu0 %13870  ;;  %v18831_v19 = vpop.permute.xlu1 %13805  ;;  %v22749_v23 = vld [vmem:[#allocation20_spill] sm:$0xff] }
 0x6ea   : > { %v12872_v60 = vsel %vm6236_vm9, 1.0, %v22593_v0  ;;  %v12873_v52 = vsel %vm6237_vm3, 1.0, %v22593_v0  ;;  %v12894_v49 = vsel %vm6258_vm6, 1.0, %v22593_v0  ;;  %v18825_v27 = vrot.slane %v13833_v2, %v17076_v26 }
 0x6eb   : > { %v14149_v11 = vpack.i.bf16 %v12873_v52, %v12872_v60  ;;  %v12895_v46 = vsel %vm6259_vm12, 1.0, %v22593_v0  ;;  %v13777_v57 = vunpack.i.l.bf16 %v18760_v25  ;;  %v10132_v37 = vsel %vm9609_vm8, %v10131_v62, %v10127_v1 }
 0x6ec   : > { %22748 = vst [vmem:[#allocation19_spill] sm:$0xff] %v18825_v27  ;;  %v14084_v7 = vpack.i.bf16 %v12895_v46, %v12894_v49  ;;  %v10338_v47 = vrot.slane %v13843_v9, %v17076_v26  ;;  %vm6304_vm0 = vcmp.gt.f32.partialorder %v22747_v61, %v5317_v31  ;;  %v10334_v2 = vrot.slane %v13842_v44, %v17073_v24 }
 0x6ed   : > { %14150 = vperm.xlu0 %13518, %v14149_v11   ;;  %vm6305_vm7 = vcmp.gt.f32.partialorder %v22749_v23, %v5317_v31  ;;  %v12940_v60 = vsel %vm6304_vm0, 1.0, %v22593_v0  ;;  %v5233_v25 = vrot.slane %v17210_v17, %v17061_v5  ;;  %v10149_v52 = vrot.slane %v13778_v29, %v17076_v26  ;;  %v18848_v44 = vpop.permute.xlu0 %13880  ;;  %v18850_v31 = vpop.permute.xlu1 %13815 }
 0x6ee   : > { %14085 = vperm.xlu1 %13512, %v14084_v7   ;;  %v12941_v62 = vsel %vm6305_vm7, 1.0, %v22593_v0  ;;  %v13853_v46 = vunpack.i.h.bf16 %v18782_v42  ;;  %v13852_v1 = vunpack.i.l.bf16 %v18782_v42  ;;  %v10145_v11 = vrot.slane %v13777_v57, %v17073_v24 }
 0x6ef   : > { %v14159_v9 = vpack.i.bf16 %v12941_v62, %v12940_v60  ;;  %vm6262_vm1 = vcmp.gt.f32.partialorder %v17204_v34, %v5233_v25  ;;  %vm6263_vm13 = vcmp.gt.f32.partialorder %v17210_v17, %v5233_v25  ;;  %v18853_v7 = vrot.slane %v13832_v12, %v17073_v24 }
 0x6f0   : > { %vm22751_vm14 = vcmask 1042434   ;;  %v12898_v49 = vsel %vm6262_vm1, 1.0, %v22593_v0  ;;  %v12899_v42 = vsel %vm6263_vm13, 1.0, %v22593_v0  ;;  %v18861_v57 = vsel %vm9609_vm8, %v10338_v47, %v10334_v2 }
 0x6f1   : > { %22750 = vst [vmem:[#allocation20_spill] sm:$0xff] %v18853_v7  ;;  %v18856_v29 = vsel %vm22751_vm14, %v10132_v37, %v11955_v18  ;;  %14160 = vperm.xlu0 %13518, %v14159_v9   ;;  %v14094_v60 = vpack.i.bf16 %v12899_v42, %v12898_v49  ;;  %v13788_v25 = vunpack.i.h.bf16 %v18784_v8  ;;  %v5325_v62 = vrot.slane %v22747_v61, %v17049_v58  ;;  %v18877_v2 = vpop.permute.xlu0 %13890 }
 0x6f2   : > { %22752 = vst [vmem:[#allocation70_spill] sm:$0xff] %v18856_v29  ;;  %v10356_v12 = vrot.slane %v13853_v46, %v17076_v26  ;;  %v10352_v27 = vrot.slane %v13852_v1, %v17073_v24  ;;  %v13787_v37 = vunpack.i.l.bf16 %v18784_v8  ;;  %v5241_v18 = vrot.slane %v17210_v17, %v22663_v40  ;;  %v18879_v46 = vpop.permute.xlu1 %13825 }
 0x6f3   : > { %v18872_v7 = vsel %vm9609_vm8, %v10149_v52, %v10145_v11  ;;  %14095 = vperm.xlu1 %13512, %v14094_v60   ;;  %vm6308_vm15 = vcmp.gt.f32.partialorder %v22747_v61, %v5325_v62  ;;  %vm6309_vm4 = vcmp.gt.f32.partialorder %v22749_v23, %v5325_v62  ;;  %v13863_v47 = vunpack.i.h.bf16 %v18807_v45 }
 0x6f4   : > { %22753 = vst [vmem:[#allocation71_spill] sm:$0xff] %v18872_v7  ;;  %v12944_v1 = vsel %vm6308_vm15, 1.0, %v22593_v0  ;;  %v12945_v8 = vsel %vm6309_vm4, 1.0, %v22593_v0  ;;  %vm6266_vm10 = vcmp.gt.f32.partialorder %v17204_v34, %v5241_v18  ;;  %vm6267_vm5 = vcmp.gt.f32.partialorder %v17210_v17, %v5241_v18 }
 0x6f5   : > { %v18886_v52 = vrot.slane %v13788_v25, %v17076_v26  ;;  %v14169_v11 = vpack.i.bf16 %v12945_v8, %v12944_v1  ;;  %v12902_v9 = vsel %vm6266_vm10, 1.0, %v22593_v0  ;;  %v12903_v49 = vsel %vm6267_vm5, 1.0, %v22593_v0  ;;  %v18903_v1 = vpop.permute.xlu0 %13900 }
 0x6f6   : > { %v18891_v42 = vsel %vm9609_vm8, %v10356_v12, %v10352_v27  ;;  %v18894_v60 = vrot.slane %v13787_v37, %v17073_v24  ;;  %v14104_v62 = vpack.i.bf16 %v12903_v49, %v12902_v9  ;;  %v13862_v7 = vunpack.i.l.bf16 %v18807_v45  ;;  %v18905_v27 = vpop.permute.xlu1 %13835 }
 0x6f7   : > { %22754 = vst [vmem:[#allocation72_spill] sm:$0xff] %v18886_v52  ;;  %22755 = vst [vmem:[#allocation73_spill] sm:$0xff] %v18891_v42  ;;  %14170 = vperm.xlu0 %13518, %v14169_v11   ;;  %v13798_v34 = vunpack.i.h.bf16 %v18809_v6  ;;  %v13797_v17 = vunpack.i.l.bf16 %v18809_v6  ;;  %v5333_v25 = vrot.slane %v22747_v61, %v17058_v32  ;;  %v5153_v18 = vrot.slane %v22696_v13, %v16936_v56 }
 0x6f8   : > { %22756 = vst [vmem:[#allocation74_spill] sm:$0xff] %v18894_v60  ;;  %14105 = vperm.xlu1 %13512, %v14104_v62   ;;  %v18908_v12 = vrot.slane %v13863_v47, %v17076_v26  ;;  %v13808_v45 = vunpack.i.h.bf16 %v18831_v19  ;;  %v13807_v37 = vunpack.i.l.bf16 %v18831_v19  ;;  %v5341_v6 = vrot.slane %v22747_v61, %v17064_v38 }
 0x6f9   : > { %vm6312_vm11 = vcmp.gt.f32.partialorder %v22747_v61, %v5333_v25  ;;  %vm6313_vm2 = vcmp.gt.f32.partialorder %v22749_v23, %v5333_v25  ;;  %vm6222_vm9 = vcmp.gt.f32.partialorder %v22689_v35, %v5153_v18  ;;  %vm6223_vm3 = vcmp.gt.f32.partialorder %v22696_v13, %v5153_v18  ;;  %v18927_v29 = vpop.permute.xlu0 %13910 }
 0x6fa   : > { %22757 = vst [vmem:[#allocation75_spill] sm:$0xff] %v18908_v12  ;;  %v18919_v8 = vrot.slane %v13862_v7, %v17073_v24  ;;  %v12948_v47 = vsel %vm6312_vm11, 1.0, %v22593_v0  ;;  %v12949_v11 = vsel %vm6313_vm2, 1.0, %v22593_v0  ;;  %v12858_v19 = vsel %vm6222_vm9, 1.0, %v22593_v0  ;;  %v18929_v52 = vpop.permute.xlu1 %13845 }
 0x6fb   : > { %v9969_v9 = vrot.slane %v13798_v34, %v17076_v26  ;;  %v9965_v49 = vrot.slane %v13797_v17, %v17073_v24  ;;  %v14179_v62 = vpack.i.bf16 %v12949_v11, %v12948_v47  ;;  %v12859_v25 = vsel %vm6223_vm3, 1.0, %v22593_v0 }
 0x6fc   : > { %22758 = vst [vmem:[#allocation76_spill] sm:$0xff] %v18919_v8  ;;  %v14114_v18 = vpack.i.bf16 %v12859_v25, %v12858_v19  ;;  %v13873_v7 = vunpack.i.h.bf16 %v18829_v55  ;;  %v9987_v60 = vrot.slane %v13808_v45, %v17076_v26  ;;  %v9983_v12 = vrot.slane %v13807_v37, %v17073_v24 }
 0x6fd   : > { %14180 = vperm.xlu0 %13518, %v14179_v62   ;;  %vm6316_vm6 = vcmp.gt.f32.partialorder %v22747_v61, %v5341_v6  ;;  %vm6317_vm12 = vcmp.gt.f32.partialorder %v22749_v23, %v5341_v6  ;;  %v5161_v34 = vrot.slane %v22696_v13, %v17052_v54  ;;  %v13883_v17 = vunpack.i.h.bf16 %v18848_v44  ;;  %v18946_v6 = vpop.permute.xlu0 %13920 }
 0x6fe   : > { %14115 = vperm.xlu1 %13512, %v14114_v18   ;;  %v13872_v47 = vunpack.i.l.bf16 %v18829_v55  ;;  %v12952_v11 = vsel %vm6316_vm6, 1.0, %v22593_v0  ;;  %v12953_v19 = vsel %vm6317_vm12, 1.0, %v22593_v0  ;;  %v13882_v45 = vunpack.i.l.bf16 %v18848_v44  ;;  %v18948_v25 = vpop.permute.xlu1 %13855 }
 0x6ff   : > { %v9970_v37 = vsel %vm9609_vm8, %v9969_v9, %v9965_v49  ;;  %v14189_v62 = vpack.i.bf16 %v12953_v19, %v12952_v11  ;;  %vm6226_vm0 = vcmp.gt.f32.partialorder %v22689_v35, %v5161_v34  ;;  %vm6227_vm7 = vcmp.gt.f32.partialorder %v22696_v13, %v5161_v34  ;;  %v22759_v34 = vld [vmem:[#allocation13_spill] sm:$0xff] }
 0x700   : > { %v9988_v18 = vsel %vm9609_vm8, %v9987_v60, %v9983_v12  ;;  %v12862_v55 = vsel %vm6226_vm0, 1.0, %v22593_v0  ;;  %v12863_v8 = vsel %vm6227_vm7, 1.0, %v22593_v0  ;;  %v10194_v42 = vrot.slane %v13883_v17, %v17076_v26 }
 0x701   : > { %14190 = vperm.xlu0 %13518, %v14189_v62   ;;  %v14124_v44 = vpack.i.bf16 %v12863_v8, %v12862_v55  ;;  %v13818_v9 = vunpack.i.h.bf16 %v18850_v31  ;;  %v13817_v49 = vunpack.i.l.bf16 %v18850_v31  ;;  %v5253_v11 = vrot.slane %v22759_v34, %v17046_v15  ;;  %v22760_v31 = vld [vmem:[#allocation16_spill] sm:$0xff]  ;;  %v18967_v62 = vpop.permute.xlu0 %13930 }
 0x702   : > { %v10190_v19 = vrot.slane %v13882_v45, %v17073_v24  ;;  %v5169_v60 = vrot.slane %v22696_v13, %v17061_v5  ;;  %v13893_v12 = vunpack.i.h.bf16 %v18877_v2  ;;  %v13892_v41 = vunpack.i.l.bf16 %v18877_v2  ;;  %v18969_v55 = vpop.permute.xlu1 %13865 }
 0x703   : > { %14125 = vperm.xlu1 %13512, %v14124_v44   ;;  %v10005_v17 = vrot.slane %v13818_v9, %v17076_v26  ;;  %v10001_v8 = vrot.slane %v13817_v49, %v17073_v24  ;;  %vm6272_vm1 = vcmp.gt.f32.partialorder %v22759_v34, %v5253_v11  ;;  %vm6273_vm13 = vcmp.gt.f32.partialorder %v22760_v31, %v5253_v11 }
 0x704   : > { %v12908_v45 = vsel %vm6272_vm1, 1.0, %v22593_v0  ;;  %v12909_v21 = vsel %vm6273_vm13, 1.0, %v22593_v0  ;;  %vm6230_vm14 = vcmp.gt.f32.partialorder %v22689_v35, %v5169_v60  ;;  %vm6231_vm15 = vcmp.gt.f32.partialorder %v22696_v13, %v5169_v60 }
 0x705   : > { %vm22761_vm4 = vcmask 1041409   ;;  %v14199_v44 = vpack.i.bf16 %v12909_v21, %v12908_v45  ;;  %v12866_v9 = vsel %vm6230_vm14, 1.0, %v22593_v0  ;;  %v12867_v49 = vsel %vm6231_vm15, 1.0, %v22593_v0 }
 0x706   : > { %v11941_v2 = vsel %vm22761_vm4, %v18735_v28, %v9970_v37  ;;  %v18980_v11 = vrot.slane %v13873_v7, %v17076_v26  ;;  %v18983_v50 = vrot.slane %v13872_v47, %v17073_v24  ;;  %vm22764_vm10 = vcmask 1042434   ;;  %v18994_v7 = vpop.permute.xlu0 %13940  ;;  %v18996_v45 = vpop.permute.xlu1 %13875  ;;  %vm22772_vm15 = vmmov %vm22761_vm4 }
 0x707   : > { %v18986_v59 = vsel %vm22764_vm10, %v9988_v18, %v11941_v2  ;;  %v14134_v36 = vpack.i.bf16 %v12867_v49, %v12866_v9  ;;  %14200 = vperm.xlu0 %13518, %v14199_v44   ;;  %v10212_v60 = vrot.slane %v13893_v12, %v17076_v26  ;;  %v10208_v28 = vrot.slane %v13892_v41, %v17073_v24 }
 0x708   : > { %22762 = vst [vmem:[#allocation13_spill] sm:$0xff] %v18980_v11  ;;  %22763 = vst [vmem:[#allocation16_spill] sm:$0xff] %v18983_v50  ;;  %v5261_v21 = vrot.slane %v22759_v34, %v17049_v58  ;;  %v5177_v37 = vrot.slane %v22696_v13, %v22663_v40  ;;  %v18999_v47 = vsel %vm9609_vm8, %v10194_v42, %v10190_v19  ;;  %v13828_v12 = vunpack.i.h.bf16 %v18879_v46 }
 0x709   : > { %22765 = vst [vmem:[#allocation77_spill] sm:$0xff] %v18986_v59  ;;  %v19002_v18 = vsel %vm9609_vm8, %v10005_v17, %v10001_v8  ;;  %14135 = vperm.xlu1 %13512, %v14134_v36   ;;  %v13827_v41 = vunpack.i.l.bf16 %v18879_v46  ;;  %v13838_v2 = vunpack.i.h.bf16 %v18905_v27  ;;  %v19015_v19 = vsel %vm9609_vm8, %v10212_v60, %v10208_v28 }
 0x70a   : > { %22766 = vst [vmem:[#allocation78_spill] sm:$0xff] %v19002_v18  ;;  %vm6276_vm5 = vcmp.gt.f32.partialorder %v22759_v34, %v5261_v21  ;;  %vm6277_vm11 = vcmp.gt.f32.partialorder %v22760_v31, %v5261_v21  ;;  %vm6234_vm2 = vcmp.gt.f32.partialorder %v22689_v35, %v5177_v37  ;;  %vm6235_vm9 = vcmp.gt.f32.partialorder %v22696_v13, %v5177_v37  ;;  %v19019_v9 = vpop.permute.xlu0 %13950  ;;  %v19021_v35 = vpop.permute.xlu1 %13885 }
 0x70b   : > { %v12912_v44 = vsel %vm6276_vm5, 1.0, %v22593_v0  ;;  %v12913_v42 = vsel %vm6277_vm11, 1.0, %v22593_v0  ;;  %v12870_v36 = vsel %vm6234_vm2, 1.0, %v22593_v0  ;;  %22767 = vst [vmem:[#allocation79_spill] sm:$0xff] %v19015_v19  ;;  %v12871_v17 = vsel %vm6235_vm9, 1.0, %v22593_v0 }
 0x70c   : > { %v14209_v46 = vpack.i.bf16 %v12913_v42, %v12912_v44  ;;  %v13903_v8 = vunpack.i.h.bf16 %v18903_v1  ;;  %v19024_v49 = vrot.slane %v13828_v12, %v17076_v26  ;;  %v14144_v21 = vpack.i.bf16 %v12871_v17, %v12870_v36 }
 0x70d   : > { %v13837_v13 = vunpack.i.l.bf16 %v18905_v27  ;;  %v5269_v37 = vrot.slane %v22759_v34, %v17058_v32  ;;  %v13902_v60 = vunpack.i.l.bf16 %v18903_v1  ;;  %v10329_v28 = vrot.slane %v13838_v2, %v17076_v26 }
 0x70e   : > { %22768 = vst [vmem:[#allocation80_spill] sm:$0xff] %v19024_v49  ;;  %14210 = vperm.xlu0 %13518, %v14209_v46   ;;  %v5313_v44 = vrot.slane %v22747_v61, %v16936_v56  ;;  %v13848_v42 = vunpack.i.h.bf16 %v18929_v52  ;;  %14145 = vperm.xlu1 %13512, %v14144_v21   ;;  %v13847_v27 = vunpack.i.l.bf16 %v18929_v52  ;;  %v19042_v2 = vpop.permute.xlu0 %13960  ;;  %v19044_v46 = vpop.permute.xlu1 %13895  ;;  %v19047_v17 = vrot.slane %v13827_v41, %v17073_v24 }
 0x70f   : > { %v10325_v12 = vrot.slane %v13837_v13, %v17073_v24  ;;  %vm6280_vm3 = vcmp.gt.f32.partialorder %v22759_v34, %v5269_v37  ;;  %vm6281_vm6 = vcmp.gt.f32.partialorder %v22760_v31, %v5269_v37  ;;  %v19052_v37 = vrot.slane %v13903_v8, %v17076_v26 }
 0x710   : > { %v12916_v36 = vsel %vm6280_vm3, 1.0, %v22593_v0  ;;  %v12917_v1 = vsel %vm6281_vm6, 1.0, %v22593_v0  ;;  %vm6302_vm12 = vcmp.gt.f32.partialorder %v22747_v61, %v5313_v44  ;;  %vm6303_vm0 = vcmp.gt.f32.partialorder %v22749_v23, %v5313_v44  ;;  %22769 = vst [vmem:[#allocation81_spill] sm:$0xff] %v19047_v17 }
 0x711   : > { %v14219_v21 = vpack.i.bf16 %v12917_v1, %v12916_v36  ;;  %v12938_v13 = vsel %vm6302_vm12, 1.0, %v22593_v0  ;;  %v12939_v52 = vsel %vm6303_vm0, 1.0, %v22593_v0  ;;  %22770 = vst [vmem:[#allocation82_spill] sm:$0xff] %v19052_v37  ;;  %v19055_v18 = vrot.slane %v13902_v60, %v17073_v24 }
 0x712   : > { %v14154_v59 = vpack.i.bf16 %v12939_v52, %v12938_v13  ;;  %v13913_v44 = vunpack.i.h.bf16 %v18927_v29  ;;  %v10330_v49 = vsel %vm9609_vm8, %v10329_v28, %v10325_v12  ;;  %v13912_v41 = vunpack.i.l.bf16 %v18927_v29  ;;  %v19068_v17 = vpop.permute.xlu0 %13970 }
 0x713   : > { %22771 = vst [vmem:[#allocation83_spill] sm:$0xff] %v19055_v18  ;;  %14220 = vperm.xlu0 %13518, %v14219_v21   ;;  %v5277_v36 = vrot.slane %v22759_v34, %v17064_v38  ;;  %v5321_v1 = vrot.slane %v22747_v61, %v17052_v54  ;;  %v10347_v8 = vrot.slane %v13848_v42, %v17076_v26  ;;  %v13923_v13 = vunpack.i.h.bf16 %v18946_v6  ;;  %v19070_v28 = vpop.permute.xlu1 %13905 }
 0x714   : > { %14155 = vperm.xlu1 %13512, %v14154_v59   ;;  %v10343_v60 = vrot.slane %v13847_v27, %v17073_v24  ;;  %v13922_v52 = vunpack.i.l.bf16 %v18946_v6  ;;  %v13858_v59 = vunpack.i.h.bf16 %v18948_v25  ;;  %v13857_v6 = vunpack.i.l.bf16 %v18948_v25 }
 0x715   : > { %vm6284_vm7 = vcmp.gt.f32.partialorder %v22759_v34, %v5277_v36  ;;  %vm6285_vm1 = vcmp.gt.f32.partialorder %v22760_v31, %v5277_v36  ;;  %vm6306_vm13 = vcmp.gt.f32.partialorder %v22747_v61, %v5321_v1  ;;  %vm6307_vm14 = vcmp.gt.f32.partialorder %v22749_v23, %v5321_v1 }
 0x716   : > { %v12920_v29 = vsel %vm6284_vm7, 1.0, %v22593_v0  ;;  %v12921_v42 = vsel %vm6285_vm1, 1.0, %v22593_v0  ;;  %v11976_v12 = vsel %vm22772_vm15, %v18861_v57, %v10330_v49  ;;  %v12942_v21 = vsel %vm6306_vm13, 1.0, %v22593_v0 }
 0x717   : > { %v14229_v27 = vpack.i.bf16 %v12921_v42, %v12920_v29  ;;  %v12943_v36 = vsel %vm6307_vm14, 1.0, %v22593_v0  ;;  %v19085_v19 = vrot.slane %v13913_v44, %v17076_v26  ;;  %v19088_v37 = vrot.slane %v13912_v41, %v17073_v24  ;;  %v19091_v1 = vpop.permute.xlu0 %13980  ;;  %v19093_v25 = vpop.permute.xlu1 %13915 }
 0x718   : > { %v10348_v18 = vsel %vm9609_vm8, %v10347_v8, %v10343_v60  ;;  %v14164_v11 = vpack.i.bf16 %v12943_v36, %v12942_v21  ;;  %v10410_v57 = vrot.slane %v13923_v13, %v17076_v26  ;;  %v10406_v49 = vrot.slane %v13922_v52, %v17073_v24 }
 0x719   : > { %22773 = vst [vmem:[#allocation84_spill] sm:$0xff] %v19085_v19  ;;  %22774 = vst [vmem:[#allocation85_spill] sm:$0xff] %v19088_v37  ;;  %14230 = vperm.xlu0 %13518, %v14229_v27   ;;  %v5349_v29 = vrot.slane %v22749_v23, %v17046_v15  ;;  %v5329_v44 = vrot.slane %v22747_v61, %v17061_v5  ;;  %v10365_v41 = vrot.slane %v13858_v59, %v17076_v26  ;;  %vm22775_vm2 = vcmask 1042434  }
 0x71a   : > { %14165 = vperm.xlu1 %13512, %v14164_v11   ;;  %v10361_v8 = vrot.slane %v13857_v6, %v17073_v24  ;;  %v13933_v60 = vunpack.i.h.bf16 %v18967_v62  ;;  %v13932_v42 = vunpack.i.l.bf16 %v18967_v62  ;;  %v19118_v62 = vsel %vm22775_vm2, %v10348_v18, %v11976_v12 }
 0x71b   : > { %vm6320_vm4 = vcmp.gt.f32.partialorder %v22747_v61, %v5349_v29  ;;  %vm6321_vm10 = vcmp.gt.f32.partialorder %v22749_v23, %v5349_v29  ;;  %vm6310_vm5 = vcmp.gt.f32.partialorder %v22747_v61, %v5329_v44  ;;  %vm6311_vm11 = vcmp.gt.f32.partialorder %v22749_v23, %v5329_v44  ;;  %v19113_v6 = vpop.permute.xlu0 %13990  ;;  %v19115_v27 = vpop.permute.xlu1 %13925  ;;  %22776 = vst [vmem:[#allocation86_spill] sm:$0xff] %v19118_v62 }
 0x71c   : > { %v12956_v13 = vsel %vm6320_vm4, 1.0, %v22593_v0  ;;  %v12957_v11 = vsel %vm6321_vm10, 1.0, %v22593_v0  ;;  %v12946_v52 = vsel %vm6310_vm5, 1.0, %v22593_v0  ;;  %v12947_v59 = vsel %vm6311_vm11, 1.0, %v22593_v0 }
 0x71d   : > { %v19121_v21 = vsel %vm9609_vm8, %v10410_v57, %v10406_v49  ;;  %v14239_v36 = vpack.i.bf16 %v12957_v11, %v12956_v13  ;;  %v14174_v29 = vpack.i.bf16 %v12947_v59, %v12946_v52  ;;  %v13868_v44 = vunpack.i.h.bf16 %v18969_v55 }
 0x71e   : > { %v13867_v19 = vunpack.i.l.bf16 %v18969_v55  ;;  %v5357_v37 = vrot.slane %v22749_v23, %v17049_v58  ;;  %v5337_v50 = vrot.slane %v22747_v61, %v22663_v40  ;;  %v19130_v22 = vsel %vm9609_vm8, %v10365_v41, %v10361_v8 }
 0x71f   : > { %22777 = vst [vmem:[#allocation87_spill] sm:$0xff] %v19130_v22  ;;  %14240 = vperm.xlu0 %13518, %v14239_v36   ;;  %14175 = vperm.xlu1 %13512, %v14174_v29   ;;  %v10428_v18 = vrot.slane %v13933_v60, %v17076_v26  ;;  %v10424_v12 = vrot.slane %v13932_v42, %v17073_v24  ;;  %v13878_v57 = vunpack.i.h.bf16 %v18996_v45  ;;  %v19139_v55 = vpop.permute.xlu0 %14000  ;;  %v19141_v49 = vpop.permute.xlu1 %13935  ;;  %v13943_v52 = vunpack.i.h.bf16 %v18994_v7 }
 0x720   : > { %vm6324_vm9 = vcmp.gt.f32.partialorder %v22747_v61, %v5357_v37  ;;  %vm6325_vm3 = vcmp.gt.f32.partialorder %v22749_v23, %v5357_v37  ;;  %vm6314_vm6 = vcmp.gt.f32.partialorder %v22747_v61, %v5337_v50  ;;  %vm6315_vm12 = vcmp.gt.f32.partialorder %v22749_v23, %v5337_v50 }
 0x721   : > { %v12960_v41 = vsel %vm6324_vm9, 1.0, %v22593_v0  ;;  %v12961_v8 = vsel %vm6325_vm3, 1.0, %v22593_v0  ;;  %v12950_v60 = vsel %vm6314_vm6, 1.0, %v22593_v0  ;;  %v12951_v42 = vsel %vm6315_vm12, 1.0, %v22593_v0 }
 0x722   : > { %v19148_v13 = vrot.slane %v13868_v44, %v17076_v26  ;;  %v19151_v37 = vrot.slane %v13867_v19, %v17073_v24  ;;  %v14249_v11 = vpack.i.bf16 %v12961_v8, %v12960_v41  ;;  %v14184_v50 = vpack.i.bf16 %v12951_v42, %v12950_v60 }
 0x723   : > { %v13877_v59 = vunpack.i.l.bf16 %v18996_v45  ;;  %v5365_v36 = vrot.slane %v22749_v23, %v17058_v32  ;;  %v5249_v29 = vrot.slane %v22759_v34, %v16936_v56  ;;  %v13942_v44 = vunpack.i.l.bf16 %v18994_v7 }
 0x724   : > { %22778 = vst [vmem:[#allocation88_spill] sm:$0xff] %v19148_v13  ;;  %22779 = vst [vmem:[#allocation89_spill] sm:$0xff] %v19151_v37  ;;  %14250 = vperm.xlu0 %13518, %v14249_v11   ;;  %14185 = vperm.xlu1 %13512, %v14184_v50   ;;  %v10185_v22 = vrot.slane %v13878_v57, %v17076_v26  ;;  %v13953_v19 = vunpack.i.h.bf16 %v19019_v9  ;;  %v13888_v41 = vunpack.i.h.bf16 %v19021_v35  ;;  %v19163_v8 = vpop.permute.xlu0 %14010  ;;  %v19165_v60 = vpop.permute.xlu1 %13945  ;;  %v13952_v37 = vunpack.i.l.bf16 %v19019_v9 }
 0x725   : > { %v10181_v45 = vrot.slane %v13877_v59, %v17073_v24  ;;  %vm6328_vm0 = vcmp.gt.f32.partialorder %v22747_v61, %v5365_v36  ;;  %vm6329_vm7 = vcmp.gt.f32.partialorder %v22749_v23, %v5365_v36  ;;  %vm6270_vm1 = vcmp.gt.f32.partialorder %v22759_v34, %v5249_v29 }
 0x726   : > { %v12964_v7 = vsel %vm6328_vm0, 1.0, %v22593_v0  ;;  %v12965_v57 = vsel %vm6329_vm7, 1.0, %v22593_v0  ;;  %vm6271_vm13 = vcmp.gt.f32.partialorder %v22760_v31, %v5249_v29  ;;  %v12906_v42 = vsel %vm6270_vm1, 1.0, %v22593_v0 }
 0x727   : > { %v19176_v11 = vsel %vm9609_vm8, %v10428_v18, %v10424_v12  ;;  %v19179_v50 = vrot.slane %v13943_v52, %v17076_v26  ;;  %v14259_v59 = vpack.i.bf16 %v12965_v57, %v12964_v7  ;;  %v12907_v62 = vsel %vm6271_vm13, 1.0, %v22593_v0 }
 0x728   : > { %22780 = vst [vmem:[#allocation90_spill] sm:$0xff] %v19176_v11  ;;  %v19183_v36 = vrot.slane %v13942_v44, %v17073_v24  ;;  %v14194_v13 = vpack.i.bf16 %v12907_v62, %v12906_v42  ;;  %v13887_v3 = vunpack.i.l.bf16 %v19021_v35  ;;  %v19187_v29 = vpop.permute.xlu0 %14020  ;;  %v19189_v4 = vpop.permute.xlu1 %13955  ;;  %v10186_v18 = vsel %vm9609_vm8, %v10185_v22, %v10181_v45 }
 0x729   : > { %22781 = vst [vmem:[#allocation91_spill] sm:$0xff] %v19179_v50  ;;  %14260 = vperm.xlu0 %13518, %v14259_v59   ;;  %v19193_v12 = vrot.slane %v13953_v19, %v17076_v26  ;;  %v5373_v52 = vrot.slane %v22749_v23, %v17064_v38  ;;  %v5257_v62 = vrot.slane %v22759_v34, %v17052_v54  ;;  %v13963_v35 = vunpack.i.h.bf16 %v19042_v2 }
 0x72a   : > { %22782 = vst [vmem:[#allocation92_spill] sm:$0xff] %v19183_v36  ;;  %14195 = vperm.xlu1 %13512, %v14194_v13   ;;  %v10203_v9 = vrot.slane %v13888_v41, %v17076_v26  ;;  %v13962_v44 = vunpack.i.l.bf16 %v19042_v2  ;;  %v13898_v7 = vunpack.i.h.bf16 %v19044_v46  ;;  %v5285_v22 = vrot.slane %v22760_v31, %v17046_v15 }
 0x72b   : > { %22783 = vst [vmem:[#allocation93_spill] sm:$0xff] %v19193_v12  ;;  %vm6332_vm14 = vcmp.gt.f32.partialorder %v22747_v61, %v5373_v52  ;;  %vm6333_vm15 = vcmp.gt.f32.partialorder %v22749_v23, %v5373_v52  ;;  %vm6274_vm4 = vcmp.gt.f32.partialorder %v22759_v34, %v5257_v62  ;;  %vm6275_vm10 = vcmp.gt.f32.partialorder %v22760_v31, %v5257_v62 }
 0x72c   : > { %v12968_v19 = vsel %vm6332_vm14, 1.0, %v22593_v0  ;;  %v12969_v13 = vsel %vm6333_vm15, 1.0, %v22593_v0  ;;  %v13897_v41 = vunpack.i.l.bf16 %v19044_v46  ;;  %v19214_v45 = vpop.permute.xlu1 %13965  ;;  %v10199_v57 = vrot.slane %v13887_v3, %v17073_v24 }
 0x72d   : > { %v19212_v2 = vpop.permute.xlu0 %14030  ;;  %v14269_v42 = vpack.i.bf16 %v12969_v13, %v12968_v19  ;;  %v12910_v59 = vsel %vm6274_vm4, 1.0, %v22593_v0  ;;  %v12911_v52 = vsel %vm6275_vm10, 1.0, %v22593_v0  ;;  %vm22784_vm5 = vcmask 1041409  }
 0x72e   : > { %v11962_v12 = vsel %vm22784_vm5, %v18999_v47, %v10186_v18  ;;  %v14204_v11 = vpack.i.bf16 %v12911_v52, %v12910_v59  ;;  %v10266_v50 = vrot.slane %v13963_v35, %v17076_v26  ;;  %v10262_v62 = vrot.slane %v13962_v44, %v17073_v24  ;;  %vm22794_vm10 = vmmov %vm22784_vm5 }
 0x72f   : > { %14270 = vperm.xlu0 %13518, %v14269_v42   ;;  %v10221_v46 = vrot.slane %v13898_v7, %v17076_v26  ;;  %vm6288_vm11 = vcmp.gt.f32.partialorder %v22759_v34, %v5285_v22  ;;  %vm6289_vm2 = vcmp.gt.f32.partialorder %v22760_v31, %v5285_v22  ;;  %v5265_v3 = vrot.slane %v22759_v34, %v17061_v5 }
 0x730   : > { %14205 = vperm.xlu1 %13512, %v14204_v11   ;;  %v10217_v19 = vrot.slane %v13897_v41, %v17073_v24  ;;  %v12924_v47 = vsel %vm6288_vm11, 1.0, %v22593_v0  ;;  %v12925_v18 = vsel %vm6289_vm2, 1.0, %v22593_v0  ;;  %v13973_v35 = vunpack.i.h.bf16 %v19068_v17  ;;  %v19234_v13 = vpop.permute.xlu1 %13975 }
 0x731   : > { %v19232_v44 = vpop.permute.xlu0 %14040  ;;  %v10204_v7 = vsel %vm9609_vm8, %v10203_v9, %v10199_v57  ;;  %v14279_v42 = vpack.i.bf16 %v12925_v18, %v12924_v47  ;;  %vm6278_vm9 = vcmp.gt.f32.partialorder %v22759_v34, %v5265_v3  ;;  %vm6279_vm3 = vcmp.gt.f32.partialorder %v22760_v31, %v5265_v3 }
 0x732   : > { %v19240_v11 = vrot.slane %v13952_v37, %v17073_v24  ;;  %v12914_v22 = vsel %vm6278_vm9, 1.0, %v22593_v0  ;;  %v12915_v41 = vsel %vm6279_vm3, 1.0, %v22593_v0  ;;  %v13972_v59 = vunpack.i.l.bf16 %v19068_v17 }
 0x733   : > { %14280 = vperm.xlu0 %13518, %v14279_v42   ;;  %v14214_v52 = vpack.i.bf16 %v12915_v41, %v12914_v22  ;;  %v13908_v36 = vunpack.i.h.bf16 %v19070_v28  ;;  %v5293_v9 = vrot.slane %v22760_v31, %v17049_v58  ;;  %v5273_v57 = vrot.slane %v22759_v34, %v22663_v40 }
 0x734   : > { %22785 = vst [vmem:[#allocation94_spill] sm:$0xff] %v19240_v11  ;;  %vm22786_vm6 = vcmask 1042434   ;;  %v19254_v37 = vsel %vm9609_vm8, %v10266_v50, %v10262_v62  ;;  %v19257_v47 = vsel %vm9609_vm8, %v10221_v46, %v10217_v19  ;;  %v10284_v17 = vrot.slane %v13973_v35, %v17076_v26 }
 0x735   : > { %v19251_v3 = vsel %vm22786_vm6, %v10204_v7, %v11962_v12  ;;  %22788 = vst [vmem:[#allocation96_spill] sm:$0xff] %v19257_v47  ;;  %v19260_v18 = vpop.permute.xlu0 %14050  ;;  %14215 = vperm.xlu1 %13512, %v14214_v52   ;;  %v13907_v42 = vunpack.i.l.bf16 %v19070_v28  ;;  %vm6292_vm12 = vcmp.gt.f32.partialorder %v22759_v34, %v5293_v9  ;;  %vm6293_vm0 = vcmp.gt.f32.partialorder %v22760_v31, %v5293_v9  ;;  %v19266_v12 = vpop.permute.xlu1 %13985 }
 0x736   : > { %22787 = vst [vmem:[#allocation95_spill] sm:$0xff] %v19251_v3  ;;  %vm6282_vm7 = vcmp.gt.f32.partialorder %v22759_v34, %v5273_v57  ;;  %v10280_v50 = vrot.slane %v13972_v59, %v17073_v24  ;;  %v12928_v62 = vsel %vm6292_vm12, 1.0, %v22593_v0  ;;  %v12929_v46 = vsel %vm6293_vm0, 1.0, %v22593_v0 }
 0x737   : > { %vm6283_vm1 = vcmp.gt.f32.partialorder %v22760_v31, %v5273_v57  ;;  %v19273_v19 = vrot.slane %v13908_v36, %v17076_v26  ;;  %v14289_v28 = vpack.i.bf16 %v12929_v46, %v12928_v62  ;;  %v12918_v35 = vsel %vm6282_vm7, 1.0, %v22593_v0 }
 0x738   : > { %v12919_v7 = vsel %vm6283_vm1, 1.0, %v22593_v0  ;;  %v13983_v41 = vunpack.i.h.bf16 %v19091_v1  ;;  %v13918_v52 = vunpack.i.h.bf16 %v19093_v25  ;;  %v13917_v59 = vunpack.i.l.bf16 %v19093_v25 }
 0x739   : > { %22789 = vst [vmem:[#allocation97_spill] sm:$0xff] %v19273_v19  ;;  %v14224_v22 = vpack.i.bf16 %v12919_v7, %v12918_v35  ;;  %v19281_v9 = vrot.slane %v13907_v42, %v17073_v24  ;;  %14290 = vperm.xlu0 %13518, %v14289_v28   ;;  %v13982_v57 = vunpack.i.l.bf16 %v19091_v1  ;;  %v5301_v36 = vrot.slane %v22760_v31, %v17058_v32  ;;  %v19288_v46 = vpop.permute.xlu0 %14060  ;;  %v19298_v1 = vpop.permute.xlu1 %13995 }
 0x73a   : > { %v5345_v62 = vrot.slane %v22749_v23, %v16936_v56  ;;  %v10401_v35 = vrot.slane %v13918_v52, %v17076_v26  ;;  %v10397_v7 = vrot.slane %v13917_v59, %v17073_v24  ;;  %v13928_v25 = vunpack.i.h.bf16 %v19115_v27 }
 0x73b   : > { %22790 = vst [vmem:[#allocation98_spill] sm:$0xff] %v19281_v9  ;;  %14225 = vperm.xlu1 %13512, %v14224_v22   ;;  %v13927_v42 = vunpack.i.l.bf16 %v19115_v27  ;;  %vm6296_vm13 = vcmp.gt.f32.partialorder %v22759_v34, %v5301_v36  ;;  %vm6297_vm14 = vcmp.gt.f32.partialorder %v22760_v31, %v5301_v36  ;;  %v19305_v27 = vsel %vm9609_vm8, %v10284_v17, %v10280_v50 }
 0x73c   : > { %vm6318_vm15 = vcmp.gt.f32.partialorder %v22747_v61, %v5345_v62  ;;  %vm6319_vm4 = vcmp.gt.f32.partialorder %v22749_v23, %v5345_v62  ;;  %v10402_v28 = vsel %vm9609_vm8, %v10401_v35, %v10397_v7  ;;  %v12932_v22 = vsel %vm6296_vm13, 1.0, %v22593_v0  ;;  %22791 = vst [vmem:[#allocation99_spill] sm:$0xff] %v19305_v27 }
 0x73d   : > { %v12933_v52 = vsel %vm6297_vm14, 1.0, %v22593_v0  ;;  %v12954_v59 = vsel %vm6318_vm15, 1.0, %v22593_v0  ;;  %v19308_v11 = vrot.slane %v13983_v41, %v17076_v26  ;;  %v12955_v47 = vsel %vm6319_vm4, 1.0, %v22593_v0 }
 0x73e   : > { %v14299_v36 = vpack.i.bf16 %v12933_v52, %v12932_v22  ;;  %v19312_v62 = vrot.slane %v13982_v57, %v17073_v24  ;;  %v14234_v3 = vpack.i.bf16 %v12955_v47, %v12954_v59  ;;  %v13993_v35 = vunpack.i.h.bf16 %v19113_v6  ;;  %v19323_v22 = vpop.permute.xlu0 %14070  ;;  %v19334_v52 = vpop.permute.xlu1 %14005 }
 0x73f   : > { %22792 = vst [vmem:[#allocation100_spill] sm:$0xff] %v19308_v11  ;;  %v13992_v7 = vunpack.i.l.bf16 %v19113_v6  ;;  %v11983_v19 = vsel %vm22794_vm10, %v19121_v21, %v10402_v28  ;;  %v10419_v17 = vrot.slane %v13928_v25, %v17076_v26  ;;  %v5309_v50 = vrot.slane %v22760_v31, %v17064_v38  ;;  %v22795_v21 = vld [vmem:[#allocation26_spill] sm:$0xff] }
 0x740   : > { %22793 = vst [vmem:[#allocation101_spill] sm:$0xff] %v19312_v62  ;;  %14300 = vperm.xlu0 %13518, %v14299_v36   ;;  %v5353_v41 = vrot.slane %v22749_v23, %v17052_v54  ;;  %14235 = vperm.xlu1 %13512, %v14234_v3   ;;  %v10415_v47 = vrot.slane %v13927_v42, %v17073_v24  ;;  %v14003_v57 = vunpack.i.h.bf16 %v19139_v55  ;;  %v14002_v6 = vunpack.i.l.bf16 %v19139_v55 }
 0x741   : > { %v5445_v28 = vrot.slane %v22795_v21, %v17046_v15  ;;  %vm6300_vm5 = vcmp.gt.f32.partialorder %v22759_v34, %v5309_v50  ;;  %vm6301_vm11 = vcmp.gt.f32.partialorder %v22760_v31, %v5309_v50  ;;  %v13938_v25 = vunpack.i.h.bf16 %v19141_v49 }
 0x742   : > { %vm6322_vm2 = vcmp.gt.f32.partialorder %v22747_v61, %v5353_v41  ;;  %v12936_v3 = vsel %vm6300_vm5, 1.0, %v22593_v0  ;;  %v12937_v42 = vsel %vm6301_vm11, 1.0, %v22593_v0  ;;  %vm6323_vm9 = vcmp.gt.f32.partialorder %v22749_v23, %v5353_v41 }
 0x743   : > { %v12958_v55 = vsel %vm6322_vm2, 1.0, %v22593_v0  ;;  %v19341_v59 = vrot.slane %v13993_v35, %v17076_v26  ;;  %v14309_v36 = vpack.i.bf16 %v12937_v42, %v12936_v3  ;;  %v12959_v50 = vsel %vm6323_vm9, 1.0, %v22593_v0  ;;  %v19353_v42 = vpop.permute.xlu0 %14080 }
 0x744   : > { %v13937_v27 = vunpack.i.l.bf16 %v19141_v49  ;;  %v10420_v11 = vsel %vm9609_vm8, %v10419_v17, %v10415_v47  ;;  %v14244_v62 = vpack.i.bf16 %v12959_v50, %v12958_v55  ;;  %v10626_v9 = vrot.slane %v14003_v57, %v17076_v26 }
 0x745   : > { %22796 = vst [vmem:[#allocation26_spill] sm:$0xff] %v19341_v59  ;;  %vm6368_vm3 = vcmp.gt.f32.partialorder %v22795_v21, %v5445_v28  ;;  %14310 = vperm.xlu0 %13518, %v14309_v36   ;;  %v10622_v41 = vrot.slane %v14002_v6, %v17073_v24  ;;  %vm6369_vm6 = vcmp.gt.f32.partialorder %v22797_v51, %v5445_v28  ;;  %v14013_v47 = vunpack.i.h.bf16 %v19163_v8  ;;  %v19362_v28 = vpop.permute.xlu1 %14015 }
 0x746   : > { %v13004_v35 = vsel %vm6368_vm3, 1.0, %v22593_v0  ;;  %v5361_v3 = vrot.slane %v22749_v23, %v17061_v5  ;;  %14245 = vperm.xlu1 %13512, %v14244_v62   ;;  %v10437_v49 = vrot.slane %v13938_v25, %v17076_v26  ;;  %v13005_v17 = vsel %vm6369_vm6, 1.0, %v22593_v0 }
 0x747   : > { %v14012_v57 = vunpack.i.l.bf16 %v19163_v8  ;;  %v10433_v6 = vrot.slane %v13937_v27, %v17073_v24  ;;  %v14319_v55 = vpack.i.bf16 %v13005_v17, %v13004_v35  ;;  %v19365_v36 = vrot.slane %v13992_v7, %v17073_v24 }
 0x748   : > { %vm6326_vm12 = vcmp.gt.f32.partialorder %v22747_v61, %v5361_v3  ;;  %vm6327_vm0 = vcmp.gt.f32.partialorder %v22749_v23, %v5361_v3  ;;  %vm22799_vm7 = vcmask 1042434   ;;  %v19373_v8 = vsel %vm9609_vm8, %v10626_v9, %v10622_v41 }
 0x749   : > { %22798 = vst [vmem:[#allocation27_spill] sm:$0xff] %v19365_v36  ;;  %v19368_v62 = vsel %vm22799_vm7, %v10420_v11, %v11983_v19  ;;  %v12962_v25 = vsel %vm6326_vm12, 1.0, %v22593_v0  ;;  %v12963_v50 = vsel %vm6327_vm0, 1.0, %v22593_v0  ;;  %14320 = vperm.xlu0 %13518, %v14319_v55   ;;  %v13948_v35 = vunpack.i.h.bf16 %v19165_v60  ;;  %v19389_v41 = vpop.permute.xlu0 %14090 }
 0x74a   : > { %22800 = vst [vmem:[#allocation102_spill] sm:$0xff] %v19368_v62  ;;  %v14254_v27 = vpack.i.bf16 %v12963_v50, %v12962_v25  ;;  %v5453_v3 = vrot.slane %v22795_v21, %v17049_v58  ;;  %v10644_v7 = vrot.slane %v14013_v47, %v17076_v26  ;;  %v10640_v17 = vrot.slane %v14012_v57, %v17073_v24 }
 0x74b   : > { %v13947_v11 = vunpack.i.l.bf16 %v19165_v60  ;;  %v5369_v19 = vrot.slane %v22749_v23, %v22663_v40  ;;  %v19384_v59 = vsel %vm9609_vm8, %v10437_v49, %v10433_v6  ;;  %v14023_v9 = vunpack.i.h.bf16 %v19187_v29 }
 0x74c   : > { %22801 = vst [vmem:[#allocation103_spill] sm:$0xff] %v19384_v59  ;;  %14255 = vperm.xlu1 %13512, %v14254_v27   ;;  %vm6372_vm1 = vcmp.gt.f32.partialorder %v22795_v21, %v5453_v3  ;;  %vm6373_vm13 = vcmp.gt.f32.partialorder %v22797_v51, %v5453_v3  ;;  %v19396_v60 = vrot.slane %v13948_v35, %v17076_v26  ;;  %v19400_v25 = vpop.permute.xlu1 %14025  ;;  %v13957_v35 = vunpack.i.l.bf16 %v19189_v4 }
 0x74d   : > { %v13008_v47 = vsel %vm6372_vm1, 1.0, %v22593_v0  ;;  %v13009_v57 = vsel %vm6373_vm13, 1.0, %v22593_v0  ;;  %vm6330_vm14 = vcmp.gt.f32.partialorder %v22747_v61, %v5369_v19  ;;  %vm6331_vm15 = vcmp.gt.f32.partialorder %v22749_v23, %v5369_v19 }
 0x74e   : > { %22802 = vst [vmem:[#allocation104_spill] sm:$0xff] %v19396_v60  ;;  %v14329_v49 = vpack.i.bf16 %v13009_v57, %v13008_v47  ;;  %v12966_v6 = vsel %vm6330_vm14, 1.0, %v22593_v0  ;;  %v12967_v55 = vsel %vm6331_vm15, 1.0, %v22593_v0  ;;  %v19403_v50 = vsel %vm9609_vm8, %v10644_v7, %v10640_v17 }
 0x74f   : > { %22803 = vst [vmem:[#allocation105_spill] sm:$0xff] %v19403_v50  ;;  %v19406_v27 = vrot.slane %v13947_v11, %v17073_v24  ;;  %v14264_v3 = vpack.i.bf16 %v12967_v55, %v12966_v6  ;;  %v14022_v61 = vunpack.i.l.bf16 %v19187_v29  ;;  %v13958_v23 = vunpack.i.h.bf16 %v19189_v4 }
 0x750   : > { %14330 = vperm.xlu0 %13518, %v14329_v49   ;;  %v5461_v19 = vrot.slane %v22795_v21, %v17058_v32  ;;  %v5281_v47 = vrot.slane %v22760_v31, %v16936_v56  ;;  %v19416_v7 = vrot.slane %v14023_v9, %v17076_v26  ;;  %v13968_v17 = vunpack.i.h.bf16 %v19214_v45  ;;  %v19426_v4 = vpop.permute.xlu0 %14100 }
 0x751   : > { %22804 = vst [vmem:[#allocation106_spill] sm:$0xff] %v19406_v27  ;;  %14265 = vperm.xlu1 %13512, %v14264_v3   ;;  %v13967_v11 = vunpack.i.l.bf16 %v19214_v45  ;;  %v5469_v29 = vrot.slane %v22795_v21, %v17064_v38  ;;  %v19429_v9 = vrot.slane %v14022_v61, %v17073_v24  ;;  %v10257_v6 = vrot.slane %v13958_v23, %v17076_v26  ;;  %v19437_v36 = vpop.permute.xlu1 %14035 }
 0x752   : > { %22805 = vst [vmem:[#allocation107_spill] sm:$0xff] %v19416_v7  ;;  %vm6376_vm4 = vcmp.gt.f32.partialorder %v22795_v21, %v5461_v19  ;;  %vm6377_vm10 = vcmp.gt.f32.partialorder %v22797_v51, %v5461_v19  ;;  %vm6286_vm5 = vcmp.gt.f32.partialorder %v22759_v34, %v5281_v47  ;;  %vm6287_vm11 = vcmp.gt.f32.partialorder %v22760_v31, %v5281_v47 }
 0x753   : > { %22806 = vst [vmem:[#allocation108_spill] sm:$0xff] %v19429_v9  ;;  %v13012_v57 = vsel %vm6376_vm4, 1.0, %v22593_v0  ;;  %v13013_v45 = vsel %vm6377_vm10, 1.0, %v22593_v0  ;;  %v12922_v49 = vsel %vm6286_vm5, 1.0, %v22593_v0  ;;  %v10253_v55 = vrot.slane %v13957_v35, %v17073_v24 }
 0x754   : > { %v14339_v3 = vpack.i.bf16 %v13013_v45, %v13012_v57  ;;  %v12923_v19 = vsel %vm6287_vm11, 1.0, %v22593_v0  ;;  %v14033_v59 = vunpack.i.h.bf16 %v19212_v2  ;;  %v10275_v61 = vrot.slane %v13968_v17, %v17076_v26 }
 0x755   : > { %v14274_v47 = vpack.i.bf16 %v12923_v19, %v12922_v49  ;;  %v10271_v62 = vrot.slane %v13967_v11, %v17073_v24  ;;  %vm6380_vm2 = vcmp.gt.f32.partialorder %v22795_v21, %v5469_v29  ;;  %vm6381_vm9 = vcmp.gt.f32.partialorder %v22797_v51, %v5469_v29 }
 0x756   : > { %14340 = vperm.xlu0 %13518, %v14339_v3   ;;  %v5289_v23 = vrot.slane %v22760_v31, %v17052_v54  ;;  %v14043_v35 = vunpack.i.h.bf16 %v19232_v44  ;;  %v14032_v57 = vunpack.i.l.bf16 %v19212_v2  ;;  %v13016_v45 = vsel %vm6380_vm2, 1.0, %v22593_v0  ;;  %v19454_v29 = vpop.permute.xlu0 %14110 }
 0x757   : > { %14275 = vperm.xlu1 %13512, %v14274_v47   ;;  %v13017_v49 = vsel %vm6381_vm9, 1.0, %v22593_v0  ;;  %v14042_v17 = vunpack.i.l.bf16 %v19232_v44  ;;  %v10258_v11 = vsel %vm9609_vm8, %v10257_v6, %v10253_v55  ;;  %v10276_v19 = vsel %vm9609_vm8, %v10275_v61, %v10271_v62  ;;  %v19460_v27 = vpop.permute.xlu1 %14045 }
 0x758   : > { %v14349_v3 = vpack.i.bf16 %v13017_v49, %v13016_v45  ;;  %vm6290_vm3 = vcmp.gt.f32.partialorder %v22759_v34, %v5289_v23  ;;  %vm6291_vm6 = vcmp.gt.f32.partialorder %v22760_v31, %v5289_v23  ;;  %v10482_v60 = vrot.slane %v14043_v35, %v17076_v26  ;;  %v22807_v23 = vld [vmem:[#allocation28_spill] sm:$0xff] }
 0x759   : > { %v12926_v47 = vsel %vm6290_vm3, 1.0, %v22593_v0  ;;  %v12927_v2 = vsel %vm6291_vm6, 1.0, %v22593_v0  ;;  %v13978_v6 = vunpack.i.h.bf16 %v19234_v13  ;;  %v13977_v55 = vunpack.i.l.bf16 %v19234_v13  ;;  %v22808_v13 = vld [vmem:[#allocation29_spill] sm:$0xff] }
 0x75a   : > { %14350 = vperm.xlu0 %13518, %v14349_v3   ;;  %v14284_v44 = vpack.i.bf16 %v12927_v2, %v12926_v47  ;;  %v5381_v45 = vrot.slane %v22807_v23, %v17046_v15  ;;  %v10478_v49 = vrot.slane %v14042_v17, %v17073_v24  ;;  %v5297_v62 = vrot.slane %v22760_v31, %v17061_v5 }
 0x75b   : > { %v14053_v61 = vunpack.i.h.bf16 %v19260_v18  ;;  %v14052_v35 = vunpack.i.l.bf16 %v19260_v18  ;;  %v10293_v3 = vrot.slane %v13978_v6, %v17076_v26  ;;  %v10289_v47 = vrot.slane %v13977_v55, %v17073_v24  ;;  %v19479_v7 = vpop.permute.xlu0 %14120 }
 0x75c   : > { %14285 = vperm.xlu1 %13512, %v14284_v44   ;;  %vm6336_vm12 = vcmp.gt.f32.partialorder %v22807_v23, %v5381_v45  ;;  %vm6337_vm0 = vcmp.gt.f32.partialorder %v22808_v13, %v5381_v45  ;;  %vm6294_vm7 = vcmp.gt.f32.partialorder %v22759_v34, %v5297_v62  ;;  %vm6295_vm1 = vcmp.gt.f32.partialorder %v22760_v31, %v5297_v62  ;;  %v19485_v9 = vpop.permute.xlu1 %14055 }
 0x75d   : > { %v12972_v2 = vsel %vm6336_vm12, 1.0, %v22593_v0  ;;  %v12973_v17 = vsel %vm6337_vm0, 1.0, %v22593_v0  ;;  %vm22809_vm13 = vcmask 1041409   ;;  %v12930_v6 = vsel %vm6294_vm7, 1.0, %v22593_v0 }
 0x75e   : > { %v11969_v18 = vsel %vm22809_vm13, %v19254_v37, %v10258_v11  ;;  %v14359_v44 = vpack.i.bf16 %v12973_v17, %v12972_v2  ;;  %v12931_v55 = vsel %vm6295_vm1, 1.0, %v22593_v0  ;;  %v19488_v45 = vrot.slane %v14033_v59, %v17076_v26  ;;  %vm22820_vm1 = vmmov %vm22809_vm13 }
 0x75f   : > { %v19491_v50 = vrot.slane %v14032_v57, %v17073_v24  ;;  %vm22812_vm14 = vcmask 1042434   ;;  %v14294_v63 = vpack.i.bf16 %v12931_v55, %v12930_v6  ;;  %v10500_v37 = vrot.slane %v14053_v61, %v17076_v26 }
 0x760   : > { %22810 = vst [vmem:[#allocation28_spill] sm:$0xff] %v19488_v45  ;;  %v19494_v62 = vsel %vm22812_vm14, %v10276_v19, %v11969_v18  ;;  %14360 = vperm.xlu0 %13518, %v14359_v44   ;;  %v10496_v11 = vrot.slane %v14052_v35, %v17073_v24  ;;  %v5389_v2 = vrot.slane %v22807_v23, %v17049_v58  ;;  %v13988_v19 = vunpack.i.h.bf16 %v19266_v12 }
 0x761   : > { %22811 = vst [vmem:[#allocation29_spill] sm:$0xff] %v19491_v50  ;;  %22813 = vst [vmem:[#allocation109_spill] sm:$0xff] %v19494_v62  ;;  %v5305_v17 = vrot.slane %v22760_v31, %v22663_v40  ;;  %v19503_v59 = vsel %vm9609_vm8, %v10482_v60, %v10478_v49  ;;  %v19506_v57 = vsel %vm9609_vm8, %v10293_v3, %v10289_v47  ;;  %14295 = vperm.xlu1 %13512, %v14294_v63   ;;  %v19518_v49 = vpop.permute.xlu0 %14130  ;;  %v19520_v3 = vpop.permute.xlu1 %14065 }
 0x762   : > { %22814 = vst [vmem:[#allocation110_spill] sm:$0xff] %v19506_v57  ;;  %v13987_v18 = vunpack.i.l.bf16 %v19266_v12  ;;  %vm6340_vm15 = vcmp.gt.f32.partialorder %v22807_v23, %v5389_v2  ;;  %vm6341_vm4 = vcmp.gt.f32.partialorder %v22808_v13, %v5389_v2  ;;  %v13998_v61 = vunpack.i.h.bf16 %v19298_v1 }
 0x763   : > { %vm6298_vm10 = vcmp.gt.f32.partialorder %v22759_v34, %v5305_v17  ;;  %v12976_v35 = vsel %vm6340_vm15, 1.0, %v22593_v0  ;;  %v12977_v60 = vsel %vm6341_vm4, 1.0, %v22593_v0  ;;  %vm6299_vm5 = vcmp.gt.f32.partialorder %v22760_v31, %v5305_v17 }
 0x764   : > { %v12934_v63 = vsel %vm6298_vm10, 1.0, %v22593_v0  ;;  %v19523_v12 = vsel %vm9609_vm8, %v10500_v37, %v10496_v11  ;;  %v14369_v47 = vpack.i.bf16 %v12977_v60, %v12976_v35  ;;  %v12935_v34 = vsel %vm6299_vm5, 1.0, %v22593_v0 }
 0x765   : > { %22815 = vst [vmem:[#allocation111_spill] sm:$0xff] %v19523_v12  ;;  %v14063_v44 = vunpack.i.h.bf16 %v19288_v46  ;;  %v19528_v6 = vrot.slane %v13988_v19, %v17076_v26  ;;  %v14304_v55 = vpack.i.bf16 %v12935_v34, %v12934_v63  ;;  %v13997_v31 = vunpack.i.l.bf16 %v19298_v1 }
 0x766   : > { %v5397_v2 = vrot.slane %v22807_v23, %v17058_v32  ;;  %14370 = vperm.xlu0 %13518, %v14369_v47   ;;  %v14062_v17 = vunpack.i.l.bf16 %v19288_v46  ;;  %v10617_v37 = vrot.slane %v13998_v61, %v17076_v26  ;;  %v5441_v11 = vrot.slane %v22795_v21, %v16936_v56  ;;  %v19546_v61 = vpop.permute.xlu0 %14140 }
 0x767   : > { %22816 = vst [vmem:[#allocation112_spill] sm:$0xff] %v19528_v6  ;;  %v14008_v35 = vunpack.i.h.bf16 %v19334_v52  ;;  %14305 = vperm.xlu1 %13512, %v14304_v55   ;;  %v10613_v19 = vrot.slane %v13997_v31, %v17073_v24  ;;  %v14007_v1 = vunpack.i.l.bf16 %v19334_v52  ;;  %v19549_v63 = vrot.slane %v13987_v18, %v17073_v24  ;;  %v19553_v31 = vpop.permute.xlu1 %14075 }
 0x768   : > { %vm6344_vm11 = vcmp.gt.f32.partialorder %v22807_v23, %v5397_v2  ;;  %vm6345_vm2 = vcmp.gt.f32.partialorder %v22808_v13, %v5397_v2  ;;  %vm6366_vm9 = vcmp.gt.f32.partialorder %v22795_v21, %v5441_v11  ;;  %vm6367_vm3 = vcmp.gt.f32.partialorder %v22797_v51, %v5441_v11 }
 0x769   : > { %v12980_v60 = vsel %vm6344_vm11, 1.0, %v22593_v0  ;;  %v12981_v46 = vsel %vm6345_vm2, 1.0, %v22593_v0  ;;  %22817 = vst [vmem:[#allocation113_spill] sm:$0xff] %v19549_v63  ;;  %v13002_v34 = vsel %vm6366_vm9, 1.0, %v22593_v0  ;;  %v13003_v55 = vsel %vm6367_vm3, 1.0, %v22593_v0 }
 0x76a   : > { %v14379_v47 = vpack.i.bf16 %v12981_v46, %v12980_v60  ;;  %v19556_v52 = vrot.slane %v14063_v44, %v17076_v26  ;;  %v19559_v2 = vrot.slane %v14062_v17, %v17073_v24  ;;  %v14314_v57 = vpack.i.bf16 %v13003_v55, %v13002_v34 }
 0x76b   : > { %v14073_v11 = vunpack.i.h.bf16 %v19323_v22  ;;  %v10618_v62 = vsel %vm9609_vm8, %v10617_v37, %v10613_v19  ;;  %v14072_v18 = vunpack.i.l.bf16 %v19323_v22  ;;  %v5405_v60 = vrot.slane %v22807_v23, %v17064_v38 }
 0x76c   : > { %22818 = vst [vmem:[#allocation114_spill] sm:$0xff] %v19556_v52  ;;  %22819 = vst [vmem:[#allocation115_spill] sm:$0xff] %v19559_v2  ;;  %14380 = vperm.xlu0 %13518, %v14379_v47   ;;  %v5449_v46 = vrot.slane %v22795_v21, %v17052_v54  ;;  %14315 = vperm.xlu1 %13512, %v14314_v57   ;;  %v10635_v44 = vrot.slane %v14008_v35, %v17076_v26  ;;  %v14083_v34 = vunpack.i.h.bf16 %v19353_v42  ;;  %v19580_v19 = vpop.permute.xlu0 %14150  ;;  %vm22823_vm10 = vcmask 1042434  }
 0x76d   : > { %v10631_v17 = vrot.slane %v14007_v1, %v17073_v24  ;;  %v14082_v55 = vunpack.i.l.bf16 %v19353_v42  ;;  %vm6348_vm6 = vcmp.gt.f32.partialorder %v22807_v23, %v5405_v60  ;;  %vm6349_vm12 = vcmp.gt.f32.partialorder %v22808_v13, %v5405_v60  ;;  %v19586_v6 = vpop.permute.xlu1 %14085 }
 0x76e   : > { %vm6370_vm0 = vcmp.gt.f32.partialorder %v22795_v21, %v5449_v46  ;;  %v14018_v22 = vunpack.i.h.bf16 %v19362_v28  ;;  %v12984_v37 = vsel %vm6348_vm6, 1.0, %v22593_v0  ;;  %v12985_v57 = vsel %vm6349_vm12, 1.0, %v22593_v0 }
 0x76f   : > { %vm6371_vm7 = vcmp.gt.f32.partialorder %v22797_v51, %v5449_v46  ;;  %v14017_v35 = vunpack.i.l.bf16 %v19362_v28  ;;  %v12004_v42 = vsel %vm22820_vm1, %v19373_v8, %v10618_v62  ;;  %v14389_v1 = vpack.i.bf16 %v12985_v57, %v12984_v37 }
 0x770   : > { %v13006_v47 = vsel %vm6370_vm0, 1.0, %v22593_v0  ;;  %v13007_v60 = vsel %vm6371_vm7, 1.0, %v22593_v0  ;;  %v19589_v63 = vrot.slane %v14073_v11, %v17076_v26  ;;  %v19592_v52 = vrot.slane %v14072_v18, %v17073_v24 }
 0x771   : > { %v10636_v28 = vsel %vm9609_vm8, %v10635_v44, %v10631_v17  ;;  %v14324_v46 = vpack.i.bf16 %v13007_v60, %v13006_v47  ;;  %14390 = vperm.xlu0 %13518, %v14389_v1   ;;  %v10698_v2 = vrot.slane %v14083_v34, %v17076_v26  ;;  %v10694_v8 = vrot.slane %v14082_v55, %v17073_v24  ;;  %v19605_v17 = vpop.permute.xlu0 %14160 }
 0x772   : > { %22821 = vst [vmem:[#allocation116_spill] sm:$0xff] %v19589_v63  ;;  %22822 = vst [vmem:[#allocation117_spill] sm:$0xff] %v19592_v52  ;;  %v5477_v62 = vrot.slane %v22797_v51, %v17046_v15  ;;  %v5457_v37 = vrot.slane %v22795_v21, %v17061_v5  ;;  %v10653_v11 = vrot.slane %v14018_v22, %v17076_v26  ;;  %v14093_v57 = vunpack.i.h.bf16 %v19389_v41  ;;  %v19615_v1 = vpop.permute.xlu1 %14095 }
 0x773   : > { %14325 = vperm.xlu1 %13512, %v14324_v46   ;;  %v10649_v18 = vrot.slane %v14017_v35, %v17073_v24  ;;  %v14092_v44 = vunpack.i.l.bf16 %v19389_v41  ;;  %v19618_v41 = vsel %vm22823_vm10, %v10636_v28, %v12004_v42  ;;  %v19621_v47 = vsel %vm9609_vm8, %v10698_v2, %v10694_v8 }
 0x774   : > { %vm6384_vm13 = vcmp.gt.f32.partialorder %v22795_v21, %v5477_v62  ;;  %vm6385_vm14 = vcmp.gt.f32.partialorder %v22797_v51, %v5477_v62  ;;  %vm6374_vm15 = vcmp.gt.f32.partialorder %v22795_v21, %v5457_v37  ;;  %vm6375_vm4 = vcmp.gt.f32.partialorder %v22797_v51, %v5457_v37  ;;  %22824 = vst [vmem:[#allocation118_spill] sm:$0xff] %v19618_v41 }
 0x775   : > { %v13020_v34 = vsel %vm6384_vm13, 1.0, %v22593_v0  ;;  %v13021_v55 = vsel %vm6385_vm14, 1.0, %v22593_v0  ;;  %v13010_v22 = vsel %vm6374_vm15, 1.0, %v22593_v0  ;;  %v13011_v35 = vsel %vm6375_vm4, 1.0, %v22593_v0 }
 0x776   : > { %v14399_v60 = vpack.i.bf16 %v13021_v55, %v13020_v34  ;;  %v14334_v46 = vpack.i.bf16 %v13011_v35, %v13010_v22  ;;  %v14028_v62 = vunpack.i.h.bf16 %v19400_v25  ;;  %v14027_v37 = vunpack.i.l.bf16 %v19400_v25  ;;  %v19639_v25 = vpop.permute.xlu0 %14170 }
 0x777   : > { %v5485_v63 = vrot.slane %v22797_v51, %v17049_v58  ;;  %v5465_v52 = vrot.slane %v22795_v21, %v22663_v40  ;;  %v19630_v12 = vsel %vm9609_vm8, %v10653_v11, %v10649_v18  ;;  %v10716_v2 = vrot.slane %v14093_v57, %v17076_v26 }
 0x778   : > { %22825 = vst [vmem:[#allocation119_spill] sm:$0xff] %v19630_v12  ;;  %14400 = vperm.xlu0 %13518, %v14399_v60   ;;  %14335 = vperm.xlu1 %13512, %v14334_v46   ;;  %v10712_v42 = vrot.slane %v14092_v44, %v17073_v24  ;;  %v14038_v28 = vunpack.i.h.bf16 %v19437_v36  ;;  %v19645_v44 = vpop.permute.xlu1 %14105  ;;  %v19648_v34 = vrot.slane %v14028_v62, %v17076_v26  ;;  %v14103_v22 = vunpack.i.h.bf16 %v19426_v4 }
 0x779   : > { %vm6388_vm5 = vcmp.gt.f32.partialorder %v22795_v21, %v5485_v63  ;;  %vm6389_vm11 = vcmp.gt.f32.partialorder %v22797_v51, %v5485_v63  ;;  %vm6378_vm2 = vcmp.gt.f32.partialorder %v22795_v21, %v5465_v52  ;;  %vm6379_vm9 = vcmp.gt.f32.partialorder %v22797_v51, %v5465_v52 }
 0x77a   : > { %v13024_v8 = vsel %vm6388_vm5, 1.0, %v22593_v0  ;;  %v13025_v11 = vsel %vm6389_vm11, 1.0, %v22593_v0  ;;  %v13014_v18 = vsel %vm6378_vm2, 1.0, %v22593_v0  ;;  %v13015_v57 = vsel %vm6379_vm9, 1.0, %v22593_v0  ;;  %22826 = vst [vmem:[#allocation120_spill] sm:$0xff] %v19648_v34 }
 0x77b   : > { %v19651_v63 = vrot.slane %v14027_v37, %v17073_v24  ;;  %v14409_v55 = vpack.i.bf16 %v13025_v11, %v13024_v8  ;;  %v14344_v52 = vpack.i.bf16 %v13015_v57, %v13014_v18  ;;  %v14037_v35 = vunpack.i.l.bf16 %v19437_v36 }
 0x77c   : > { %v5493_v60 = vrot.slane %v22797_v51, %v17058_v32  ;;  %v5377_v46 = vrot.slane %v22807_v23, %v16936_v56  ;;  %v14102_v62 = vunpack.i.l.bf16 %v19426_v4  ;;  %v10473_v45 = vrot.slane %v14038_v28, %v17076_v26  ;;  %v19671_v28 = vpop.permute.xlu0 %14180 }
 0x77d   : > { %22827 = vst [vmem:[#allocation121_spill] sm:$0xff] %v19651_v63  ;;  %14410 = vperm.xlu0 %13518, %v14409_v55   ;;  %14345 = vperm.xlu1 %13512, %v14344_v52   ;;  %v14113_v37 = vunpack.i.h.bf16 %v19454_v29  ;;  %v14048_v8 = vunpack.i.h.bf16 %v19460_v27  ;;  %v10469_v11 = vrot.slane %v14037_v35, %v17073_v24  ;;  %v19674_v57 = vsel %vm9609_vm8, %v10716_v2, %v10712_v42 }
 0x77e   : > { %vm6392_vm3 = vcmp.gt.f32.partialorder %v22795_v21, %v5493_v60  ;;  %vm6393_vm6 = vcmp.gt.f32.partialorder %v22797_v51, %v5493_v60  ;;  %vm6334_vm12 = vcmp.gt.f32.partialorder %v22807_v23, %v5377_v46  ;;  %vm6335_vm0 = vcmp.gt.f32.partialorder %v22808_v13, %v5377_v46  ;;  %22828 = vst [vmem:[#allocation122_spill] sm:$0xff] %v19674_v57  ;;  %v19680_v60 = vpop.permute.xlu1 %14115 }
 0x77f   : > { %v13028_v36 = vsel %vm6392_vm3, 1.0, %v22593_v0  ;;  %v13029_v18 = vsel %vm6393_vm6, 1.0, %v22593_v0  ;;  %v12970_v4 = vsel %vm6334_vm12, 1.0, %v22593_v0  ;;  %v19677_v55 = vrot.slane %v14103_v22, %v17076_v26 }
 0x780   : > { %v14419_v52 = vpack.i.bf16 %v13029_v18, %v13028_v36  ;;  %v12971_v35 = vsel %vm6335_vm0, 1.0, %v22593_v0  ;;  %v19683_v50 = vrot.slane %v14102_v62, %v17073_v24  ;;  %v14112_v46 = vunpack.i.l.bf16 %v19454_v29 }
 0x781   : > { %22829 = vst [vmem:[#allocation123_spill] sm:$0xff] %v19677_v55  ;;  %v14354_v12 = vpack.i.bf16 %v12971_v35, %v12970_v4  ;;  %v14047_v41 = vunpack.i.l.bf16 %v19460_v27  ;;  %v10474_v34 = vsel %vm9609_vm8, %v10473_v45, %v10469_v11  ;;  %v19689_v2 = vrot.slane %v14113_v37, %v17076_v26  ;;  %v19699_v45 = vpop.permute.xlu0 %14190 }
 0x782   : > { %22830 = vst [vmem:[#allocation124_spill] sm:$0xff] %v19683_v50  ;;  %14420 = vperm.xlu0 %13518, %v14419_v52   ;;  %v5501_v42 = vrot.slane %v22797_v51, %v17064_v38  ;;  %v5385_v22 = vrot.slane %v22807_v23, %v17052_v54  ;;  %v10491_v62 = vrot.slane %v14048_v8, %v17076_v26  ;;  %v14123_v36 = vunpack.i.h.bf16 %v19479_v7  ;;  %v19710_v11 = vpop.permute.xlu1 %14125 }
 0x783   : > { %22831 = vst [vmem:[#allocation125_spill] sm:$0xff] %v19689_v2  ;;  %14355 = vperm.xlu1 %13512, %v14354_v12   ;;  %v14122_v29 = vunpack.i.l.bf16 %v19479_v7  ;;  %v14058_v27 = vunpack.i.h.bf16 %v19485_v9  ;;  %v5413_v37 = vrot.slane %v22808_v13, %v17046_v15  ;;  %v14057_v7 = vunpack.i.l.bf16 %v19485_v9 }
 0x784   : > { %vm6396_vm7 = vcmp.gt.f32.partialorder %v22795_v21, %v5501_v42  ;;  %vm6397_vm1 = vcmp.gt.f32.partialorder %v22797_v51, %v5501_v42  ;;  %vm6338_vm13 = vcmp.gt.f32.partialorder %v22807_v23, %v5385_v22  ;;  %vm6339_vm14 = vcmp.gt.f32.partialorder %v22808_v13, %v5385_v22 }
 0x785   : > { %v13032_v12 = vsel %vm6396_vm7, 1.0, %v22593_v0  ;;  %v13033_v8 = vsel %vm6397_vm1, 1.0, %v22593_v0  ;;  %v10487_v18 = vrot.slane %v14047_v41, %v17073_v24  ;;  %v12974_v52 = vsel %vm6338_vm13, 1.0, %v22593_v0 }
 0x786   : > { %v14429_v4 = vpack.i.bf16 %v13033_v8, %v13032_v12  ;;  %v12975_v35 = vsel %vm6339_vm14, 1.0, %v22593_v0  ;;  %vm22832_vm15 = vcmask 1041409   ;;  %v10554_v57 = vrot.slane %v14123_v36, %v17076_v26 }
 0x787   : > { %v11990_v42 = vsel %vm22832_vm15, %v19503_v59, %v10474_v34  ;;  %v14364_v2 = vpack.i.bf16 %v12975_v35, %v12974_v52  ;;  %v10550_v55 = vrot.slane %v14122_v29, %v17073_v24  ;;  %v10509_v9 = vrot.slane %v14058_v27, %v17076_v26  ;;  %v19728_v29 = vpop.permute.xlu0 %14200  ;;  %vm22842_vm14 = vmmov %vm22832_vm15 }
 0x788   : > { %14430 = vperm.xlu0 %13518, %v14429_v4   ;;  %vm6352_vm4 = vcmp.gt.f32.partialorder %v22807_v23, %v5413_v37  ;;  %vm6353_vm10 = vcmp.gt.f32.partialorder %v22808_v13, %v5413_v37  ;;  %v5393_v41 = vrot.slane %v22807_v23, %v17061_v5  ;;  %v10505_v22 = vrot.slane %v14057_v7, %v17073_v24  ;;  %v19733_v37 = vpop.permute.xlu1 %14135 }
 0x789   : > { %14365 = vperm.xlu1 %13512, %v14364_v2   ;;  %v12988_v59 = vsel %vm6352_vm4, 1.0, %v22593_v0  ;;  %v12989_v34 = vsel %vm6353_vm10, 1.0, %v22593_v0  ;;  %v14133_v36 = vunpack.i.h.bf16 %v19518_v49  ;;  %v10492_v27 = vsel %vm9609_vm8, %v10491_v62, %v10487_v18 }
 0x78a   : > { %v14439_v12 = vpack.i.bf16 %v12989_v34, %v12988_v59  ;;  %vm6342_vm5 = vcmp.gt.f32.partialorder %v22807_v23, %v5393_v41  ;;  %vm6343_vm11 = vcmp.gt.f32.partialorder %v22808_v13, %v5393_v41  ;;  %v19736_v2 = vrot.slane %v14112_v46, %v17073_v24 }
 0x78b   : > { %v12978_v8 = vsel %vm6342_vm5, 1.0, %v22593_v0  ;;  %v12979_v7 = vsel %vm6343_vm11, 1.0, %v22593_v0  ;;  %v14132_v4 = vunpack.i.l.bf16 %v19518_v49  ;;  %v14068_v62 = vunpack.i.h.bf16 %v19520_v3 }
 0x78c   : > { %22833 = vst [vmem:[#allocation126_spill] sm:$0xff] %v19736_v2  ;;  %14440 = vperm.xlu0 %13518, %v14439_v12   ;;  %v14374_v52 = vpack.i.bf16 %v12979_v7, %v12978_v8  ;;  %v5421_v18 = vrot.slane %v22808_v13, %v17049_v58  ;;  %v5401_v35 = vrot.slane %v22807_v23, %v22663_v40  ;;  %vm22834_vm2 = vcmask 1042434  }
 0x78d   : > { %v19747_v41 = vsel %vm22834_vm2, %v10492_v27, %v11990_v42  ;;  %v19750_v46 = vsel %vm9609_vm8, %v10554_v57, %v10550_v55  ;;  %v19753_v59 = vsel %vm9609_vm8, %v10509_v9, %v10505_v22  ;;  %v10572_v49 = vrot.slane %v14133_v36, %v17076_v26  ;;  %v19764_v55 = vpop.permute.xlu0 %14210  ;;  %v19771_v12 = vpop.permute.xlu1 %14145 }
 0x78e   : > { %22835 = vst [vmem:[#allocation127_spill] sm:$0xff] %v19747_v41  ;;  %22836 = vst [vmem:[#allocation128_spill] sm:$0xff] %v19753_v59  ;;  %14375 = vperm.xlu1 %13512, %v14374_v52   ;;  %v14067_v34 = vunpack.i.l.bf16 %v19520_v3  ;;  %vm6356_vm9 = vcmp.gt.f32.partialorder %v22807_v23, %v5421_v18  ;;  %vm6357_vm3 = vcmp.gt.f32.partialorder %v22808_v13, %v5421_v18  ;;  %v14143_v7 = vunpack.i.h.bf16 %v19546_v61 }
 0x78f   : > { %vm6346_vm6 = vcmp.gt.f32.partialorder %v22807_v23, %v5401_v35  ;;  %v10568_v42 = vrot.slane %v14132_v4, %v17073_v24  ;;  %v12992_v27 = vsel %vm6356_vm9, 1.0, %v22593_v0  ;;  %v12993_v57 = vsel %vm6357_vm3, 1.0, %v22593_v0 }
 0x790   : > { %vm6347_vm12 = vcmp.gt.f32.partialorder %v22808_v13, %v5401_v35  ;;  %v19767_v9 = vrot.slane %v14068_v62, %v17076_v26  ;;  %v14449_v3 = vpack.i.bf16 %v12993_v57, %v12992_v27  ;;  %v12982_v22 = vsel %vm6346_vm6, 1.0, %v22593_v0 }
 0x791   : > { %v12983_v36 = vsel %vm6347_vm12, 1.0, %v22593_v0  ;;  %v14078_v4 = vunpack.i.h.bf16 %v19553_v31  ;;  %v14077_v52 = vunpack.i.l.bf16 %v19553_v31  ;;  %v19777_v18 = vrot.slane %v14067_v34, %v17073_v24 }
 0x792   : > { %22837 = vst [vmem:[#allocation129_spill] sm:$0xff] %v19767_v9  ;;  %v14384_v8 = vpack.i.bf16 %v12983_v36, %v12982_v22  ;;  %14450 = vperm.xlu0 %13518, %v14449_v3   ;;  %v14142_v62 = vunpack.i.l.bf16 %v19546_v61  ;;  %v5429_v35 = vrot.slane %v22808_v13, %v17058_v32  ;;  %v5473_v27 = vrot.slane %v22797_v51, %v16936_v56  ;;  %v19792_v61 = vpop.permute.xlu0 %14220 }
 0x793   : > { %22838 = vst [vmem:[#allocation130_spill] sm:$0xff] %v19777_v18  ;;  %v10689_v57 = vrot.slane %v14078_v4, %v17076_v26  ;;  %v10685_v22 = vrot.slane %v14077_v52, %v17073_v24  ;;  %v14088_v36 = vunpack.i.h.bf16 %v19586_v6  ;;  %v14087_v31 = vunpack.i.l.bf16 %v19586_v6  ;;  %v19798_v52 = vpop.permute.xlu1 %14155  ;;  %v22845_v18 = vld [vmem:[#allocation4_spill] sm:$0xff] }
 0x794   : > { %14385 = vperm.xlu1 %13512, %v14384_v8   ;;  %vm6360_vm0 = vcmp.gt.f32.partialorder %v22807_v23, %v5429_v35  ;;  %vm6361_vm7 = vcmp.gt.f32.partialorder %v22808_v13, %v5429_v35  ;;  %vm6382_vm1 = vcmp.gt.f32.partialorder %v22795_v21, %v5473_v27  ;;  %vm6383_vm13 = vcmp.gt.f32.partialorder %v22797_v51, %v5473_v27 }
 0x795   : > { %v10690_v34 = vsel %vm9609_vm8, %v10689_v57, %v10685_v22  ;;  %v12996_v3 = vsel %vm6360_vm0, 1.0, %v22593_v0  ;;  %v12997_v8 = vsel %vm6361_vm7, 1.0, %v22593_v0  ;;  %v13018_v4 = vsel %vm6382_vm1, 1.0, %v22593_v0 }
 0x796   : > { %v19801_v6 = vsel %vm9609_vm8, %v10572_v49, %v10568_v42  ;;  %v19804_v35 = vrot.slane %v14143_v7, %v17076_v26  ;;  %v14459_v2 = vpack.i.bf16 %v12997_v8, %v12996_v3  ;;  %v13019_v27 = vsel %vm6383_vm13, 1.0, %v22593_v0 }
 0x797   : > { %22839 = vst [vmem:[#allocation131_spill] sm:$0xff] %v19801_v6  ;;  %v19808_v50 = vrot.slane %v14142_v62, %v17073_v24  ;;  %v14394_v57 = vpack.i.bf16 %v13019_v27, %v13018_v4  ;;  %v14153_v22 = vunpack.i.h.bf16 %v19580_v19  ;;  %v14152_v59 = vunpack.i.l.bf16 %v19580_v19  ;;  %v22843_v19 = vld [vmem:[#allocation2_spill] sm:$0xff] }
 0x798   : > { %22840 = vst [vmem:[#allocation132_spill] sm:$0xff] %v19804_v35  ;;  %v12011_v41 = vsel %vm22842_vm14, %v19621_v47, %v10690_v34  ;;  %14460 = vperm.xlu0 %13518, %v14459_v2   ;;  %v10707_v49 = vrot.slane %v14088_v36, %v17076_v26  ;;  %v5437_v42 = vrot.slane %v22808_v13, %v17064_v38  ;;  %v14163_v3 = vunpack.i.h.bf16 %v19605_v17  ;;  %v19828_v2 = vpop.permute.xlu0 %14230 }
 0x799   : > { %22841 = vst [vmem:[#allocation133_spill] sm:$0xff] %v19808_v50  ;;  %v5481_v7 = vrot.slane %v22797_v51, %v17052_v54  ;;  %14395 = vperm.xlu1 %13512, %v14394_v57   ;;  %v10703_v62 = vrot.slane %v14087_v31, %v17073_v24  ;;  %v14162_v8 = vunpack.i.l.bf16 %v19605_v17  ;;  %v5573_v4 = vrot.slane %v22843_v19, %v17046_v15  ;;  %v19834_v34 = vpop.permute.xlu1 %14165 }
 0x79a   : > { %vm6364_vm15 = vcmp.gt.f32.partialorder %v22807_v23, %v5437_v42  ;;  %vm6365_vm4 = vcmp.gt.f32.partialorder %v22808_v13, %v5437_v42  ;;  %v14098_v47 = vunpack.i.h.bf16 %v19615_v1  ;;  %v19837_v27 = vrot.slane %v14153_v22, %v17076_v26 }
 0x79b   : > { %vm6386_vm10 = vcmp.gt.f32.partialorder %v22795_v21, %v5481_v7  ;;  %v13000_v36 = vsel %vm6364_vm15, 1.0, %v22593_v0  ;;  %v13001_v31 = vsel %vm6365_vm4, 1.0, %v22593_v0  ;;  %vm6387_vm5 = vcmp.gt.f32.partialorder %v22797_v51, %v5481_v7 }
 0x79c   : > { %v13022_v17 = vsel %vm6386_vm10, 1.0, %v22593_v0  ;;  %22844 = vst [vmem:[#allocation2_spill] sm:$0xff] %v19837_v27  ;;  %v14469_v57 = vpack.i.bf16 %v13001_v31, %v13000_v36  ;;  %v13023_v42 = vsel %vm6387_vm5, 1.0, %v22593_v0  ;;  %v14097_v35 = vunpack.i.l.bf16 %v19615_v1 }
 0x79d   : > { %v10708_v50 = vsel %vm9609_vm8, %v10707_v49, %v10703_v62  ;;  %v14404_v6 = vpack.i.bf16 %v13023_v42, %v13022_v17  ;;  %v10914_v9 = vrot.slane %v14163_v3, %v17076_v26  ;;  %vm6432_vm11 = vcmp.gt.f32.partialorder %v22843_v19, %v5573_v4 }
 0x79e   : > { %14470 = vperm.xlu0 %13518, %v14469_v57   ;;  %v10910_v7 = vrot.slane %v14162_v8, %v17073_v24  ;;  %vm6433_vm2 = vcmp.gt.f32.partialorder %v22845_v18, %v5573_v4  ;;  %v13068_v22 = vsel %vm6432_vm11, 1.0, %v22593_v0  ;;  %v5489_v36 = vrot.slane %v22797_v51, %v17061_v5  ;;  %v19856_v8 = vpop.permute.xlu0 %14240  ;;  %v19858_v4 = vpop.permute.xlu1 %14175 }
 0x79f   : > { %14405 = vperm.xlu1 %13512, %v14404_v6   ;;  %v10725_v1 = vrot.slane %v14098_v47, %v17076_v26  ;;  %v13069_v49 = vsel %vm6433_vm2, 1.0, %v22593_v0  ;;  %v14173_v62 = vunpack.i.h.bf16 %v19639_v25  ;;  %v14172_v3 = vunpack.i.l.bf16 %v19639_v25 }
 0x7a0   : > { %v10721_v31 = vrot.slane %v14097_v35, %v17073_v24  ;;  %v14479_v17 = vpack.i.bf16 %v13069_v49, %v13068_v22  ;;  %vm6390_vm9 = vcmp.gt.f32.partialorder %v22795_v21, %v5489_v36  ;;  %vm6391_vm3 = vcmp.gt.f32.partialorder %v22797_v51, %v5489_v36 }
 0x7a1   : > { %v19861_v6 = vrot.slane %v14152_v59, %v17073_v24  ;;  %vm22847_vm6 = vcmask 1042434   ;;  %v13026_v57 = vsel %vm6390_vm9, 1.0, %v22593_v0  ;;  %v13027_v25 = vsel %vm6391_vm3, 1.0, %v22593_v0 }
 0x7a2   : > { %v19864_v47 = vsel %vm22847_vm6, %v10708_v50, %v12011_v41  ;;  %v19869_v35 = vsel %vm9609_vm8, %v10914_v9, %v10910_v7  ;;  %14480 = vperm.xlu0 %13518, %v14479_v17   ;;  %v14414_v42 = vpack.i.bf16 %v13027_v25, %v13026_v57  ;;  %v14108_v22 = vunpack.i.h.bf16 %v19645_v44 }
 0x7a3   : > { %22846 = vst [vmem:[#allocation4_spill] sm:$0xff] %v19861_v6  ;;  %22848 = vst [vmem:[#allocation134_spill] sm:$0xff] %v19864_v47  ;;  %v5581_v36 = vrot.slane %v22843_v19, %v17049_v58  ;;  %v10932_v59 = vrot.slane %v14173_v62, %v17076_v26  ;;  %v10928_v49 = vrot.slane %v14172_v3, %v17073_v24  ;;  %v14107_v50 = vunpack.i.l.bf16 %v19645_v44  ;;  %v19889_v44 = vpop.permute.xlu0 %14250  ;;  %v19891_v3 = vpop.permute.xlu1 %14185 }
 0x7a4   : > { %v5497_v41 = vrot.slane %v22797_v51, %v22663_v40  ;;  %v19880_v27 = vsel %vm9609_vm8, %v10725_v1, %v10721_v31  ;;  %14415 = vperm.xlu1 %13512, %v14414_v42   ;;  %v14183_v9 = vunpack.i.h.bf16 %v19671_v28  ;;  %v19894_v1 = vrot.slane %v14108_v22, %v17076_v26 }
 0x7a5   : > { %22849 = vst [vmem:[#allocation135_spill] sm:$0xff] %v19880_v27  ;;  %vm6436_vm12 = vcmp.gt.f32.partialorder %v22843_v19, %v5581_v36  ;;  %vm6437_vm0 = vcmp.gt.f32.partialorder %v22845_v18, %v5581_v36  ;;  %v19899_v25 = vsel %vm9609_vm8, %v10932_v59, %v10928_v49  ;;  %v19902_v42 = vrot.slane %v14107_v50, %v17073_v24 }
 0x7a6   : > { %v13072_v7 = vsel %vm6436_vm12, 1.0, %v22593_v0  ;;  %v13073_v62 = vsel %vm6437_vm0, 1.0, %v22593_v0  ;;  %vm6394_vm7 = vcmp.gt.f32.partialorder %v22795_v21, %v5497_v41  ;;  %vm6395_vm1 = vcmp.gt.f32.partialorder %v22797_v51, %v5497_v41  ;;  %22850 = vst [vmem:[#allocation136_spill] sm:$0xff] %v19894_v1  ;;  %22851 = vst [vmem:[#allocation137_spill] sm:$0xff] %v19899_v25 }
 0x7a7   : > { %v14489_v31 = vpack.i.bf16 %v13073_v62, %v13072_v7  ;;  %v13030_v17 = vsel %vm6394_vm7, 1.0, %v22593_v0  ;;  %v13031_v57 = vsel %vm6395_vm1, 1.0, %v22593_v0  ;;  %22852 = vst [vmem:[#allocation138_spill] sm:$0xff] %v19902_v42  ;;  %v14182_v51 = vunpack.i.l.bf16 %v19671_v28 }
 0x7a8   : > { %v14424_v21 = vpack.i.bf16 %v13031_v57, %v13030_v17  ;;  %v14118_v36 = vunpack.i.h.bf16 %v19680_v60  ;;  %v14117_v22 = vunpack.i.l.bf16 %v19680_v60  ;;  %v5589_v41 = vrot.slane %v22843_v19, %v17058_v32  ;;  %v19922_v60 = vpop.permute.xlu0 %14260 }
 0x7a9   : > { %14490 = vperm.xlu0 %13518, %v14489_v31   ;;  %v5409_v7 = vrot.slane %v22808_v13, %v16936_v56  ;;  %v19912_v59 = vrot.slane %v14183_v9, %v17076_v26  ;;  %v14128_v49 = vunpack.i.h.bf16 %v19710_v11  ;;  %v14127_v50 = vunpack.i.l.bf16 %v19710_v11  ;;  %v19930_v17 = vpop.permute.xlu1 %14195 }
 0x7aa   : > { %14425 = vperm.xlu1 %13512, %v14424_v21   ;;  %v5597_v28 = vrot.slane %v22843_v19, %v17064_v38  ;;  %vm6440_vm13 = vcmp.gt.f32.partialorder %v22843_v19, %v5589_v41  ;;  %vm6441_vm14 = vcmp.gt.f32.partialorder %v22845_v18, %v5589_v41  ;;  %v19925_v9 = vrot.slane %v14182_v51, %v17073_v24 }
 0x7ab   : > { %22853 = vst [vmem:[#allocation139_spill] sm:$0xff] %v19912_v59  ;;  %vm6350_vm15 = vcmp.gt.f32.partialorder %v22807_v23, %v5409_v7  ;;  %vm6351_vm4 = vcmp.gt.f32.partialorder %v22808_v13, %v5409_v7  ;;  %v13076_v62 = vsel %vm6440_vm13, 1.0, %v22593_v0  ;;  %v13077_v11 = vsel %vm6441_vm14, 1.0, %v22593_v0 }
 0x7ac   : > { %22854 = vst [vmem:[#allocation140_spill] sm:$0xff] %v19925_v9  ;;  %v12986_v31 = vsel %vm6350_vm15, 1.0, %v22593_v0  ;;  %v10545_v57 = vrot.slane %v14118_v36, %v17076_v26  ;;  %v10541_v21 = vrot.slane %v14117_v22, %v17073_v24  ;;  %v14499_v41 = vpack.i.bf16 %v13077_v11, %v13076_v62 }
 0x7ad   : > { %v12987_v7 = vsel %vm6351_vm4, 1.0, %v22593_v0  ;;  %v14193_v27 = vunpack.i.h.bf16 %v19699_v45  ;;  %v10563_v51 = vrot.slane %v14128_v49, %v17076_v26  ;;  %v10559_v47 = vrot.slane %v14127_v50, %v17073_v24 }
 0x7ae   : > { %v14434_v6 = vpack.i.bf16 %v12987_v7, %v12986_v31  ;;  %14500 = vperm.xlu0 %13518, %v14499_v41   ;;  %vm6444_vm10 = vcmp.gt.f32.partialorder %v22843_v19, %v5597_v28  ;;  %vm6445_vm5 = vcmp.gt.f32.partialorder %v22845_v18, %v5597_v28  ;;  %v5417_v36 = vrot.slane %v22808_v13, %v17052_v54  ;;  %v19950_v28 = vpop.permute.xlu0 %14270 }
 0x7af   : > { %v14203_v22 = vunpack.i.h.bf16 %v19728_v29  ;;  %v14192_v62 = vunpack.i.l.bf16 %v19699_v45  ;;  %v13080_v11 = vsel %vm6444_vm10, 1.0, %v22593_v0  ;;  %v13081_v31 = vsel %vm6445_vm5, 1.0, %v22593_v0  ;;  %v19956_v42 = vpop.permute.xlu1 %14205 }
 0x7b0   : > { %14435 = vperm.xlu1 %13512, %v14434_v6   ;;  %v14202_v49 = vunpack.i.l.bf16 %v19728_v29  ;;  %v10546_v50 = vsel %vm9609_vm8, %v10545_v57, %v10541_v21  ;;  %v14509_v41 = vpack.i.bf16 %v13081_v31, %v13080_v11  ;;  %vm6354_vm11 = vcmp.gt.f32.partialorder %v22807_v23, %v5417_v36 }
 0x7b1   : > { %vm6355_vm2 = vcmp.gt.f32.partialorder %v22808_v13, %v5417_v36  ;;  %v10564_v7 = vsel %vm9609_vm8, %v10563_v51, %v10559_v47  ;;  %v12990_v6 = vsel %vm6354_vm11, 1.0, %v22593_v0  ;;  %v10770_v1 = vrot.slane %v14203_v22, %v17076_v26  ;;  %v22855_v36 = vld [vmem:[#allocation6_spill] sm:$0xff] }
 0x7b2   : > { %v12991_v45 = vsel %vm6355_vm2, 1.0, %v22593_v0  ;;  %14510 = vperm.xlu0 %13518, %v14509_v41   ;;  %v14138_v57 = vunpack.i.h.bf16 %v19733_v37  ;;  %v14137_v21 = vunpack.i.l.bf16 %v19733_v37  ;;  %v5509_v11 = vrot.slane %v22855_v36, %v17046_v15  ;;  %v22856_v37 = vld [vmem:[#allocation10_spill] sm:$0xff] }
 0x7b3   : > { %v14444_v29 = vpack.i.bf16 %v12991_v45, %v12990_v6  ;;  %v10766_v31 = vrot.slane %v14202_v49, %v17073_v24  ;;  %v5425_v47 = vrot.slane %v22808_v13, %v17061_v5  ;;  %v14213_v51 = vunpack.i.h.bf16 %v19764_v55  ;;  %v19971_v45 = vpop.permute.xlu0 %14280 }
 0x7b4   : > { %v14212_v22 = vunpack.i.l.bf16 %v19764_v55  ;;  %v10581_v41 = vrot.slane %v14138_v57, %v17076_v26  ;;  %v10577_v6 = vrot.slane %v14137_v21, %v17073_v24  ;;  %vm6400_vm9 = vcmp.gt.f32.partialorder %v22855_v36, %v5509_v11  ;;  %v19981_v59 = vpop.permute.xlu1 %14215 }
 0x7b5   : > { %14445 = vperm.xlu1 %13512, %v14444_v29   ;;  %vm6401_vm3 = vcmp.gt.f32.partialorder %v22856_v37, %v5509_v11  ;;  %v13036_v49 = vsel %vm6400_vm9, 1.0, %v22593_v0  ;;  %vm6358_vm6 = vcmp.gt.f32.partialorder %v22807_v23, %v5425_v47  ;;  %vm6359_vm12 = vcmp.gt.f32.partialorder %v22808_v13, %v5425_v47 }
 0x7b6   : > { %v13037_v25 = vsel %vm6401_vm3, 1.0, %v22593_v0  ;;  %vm22857_vm0 = vcmask 1041409   ;;  %v12994_v57 = vsel %vm6358_vm6, 1.0, %v22593_v0  ;;  %v12995_v21 = vsel %vm6359_vm12, 1.0, %v22593_v0 }
 0x7b7   : > { %v11997_v55 = vsel %vm22857_vm0, %v19750_v46, %v10546_v50  ;;  %v14519_v29 = vpack.i.bf16 %v13037_v25, %v13036_v49  ;;  %v19984_v11 = vrot.slane %v14193_v27, %v17076_v26  ;;  %v19987_v9 = vrot.slane %v14192_v62, %v17073_v24  ;;  %vm22868_vm12 = vmmov %vm22857_vm0 }
 0x7b8   : > { %vm22860_vm7 = vcmask 1042434   ;;  %v14454_v47 = vpack.i.bf16 %v12995_v21, %v12994_v57  ;;  %v10788_v46 = vrot.slane %v14213_v51, %v17076_v26  ;;  %v10784_v25 = vrot.slane %v14212_v22, %v17073_v24  ;;  %v20010_v22 = vpop.permute.xlu0 %14290 }
 0x7b9   : > { %22858 = vst [vmem:[#allocation6_spill] sm:$0xff] %v19984_v11  ;;  %22859 = vst [vmem:[#allocation10_spill] sm:$0xff] %v19987_v9  ;;  %v19990_v63 = vsel %vm22860_vm7, %v10564_v7, %v11997_v55  ;;  %14520 = vperm.xlu0 %13518, %v14519_v29   ;;  %v5517_v50 = vrot.slane %v22855_v36, %v17049_v58  ;;  %v5433_v49 = vrot.slane %v22808_v13, %v22663_v40 }
 0x7ba   : > { %22861 = vst [vmem:[#allocation141_spill] sm:$0xff] %v19990_v63  ;;  %v19999_v27 = vsel %vm9609_vm8, %v10770_v1, %v10766_v31  ;;  %v20002_v62 = vsel %vm9609_vm8, %v10581_v41, %v10577_v6  ;;  %14455 = vperm.xlu1 %13512, %v14454_v47   ;;  %v14148_v7 = vunpack.i.h.bf16 %v19771_v12  ;;  %v14147_v55 = vunpack.i.l.bf16 %v19771_v12  ;;  %v20016_v6 = vpop.permute.xlu1 %14225 }
 0x7bb   : > { %22862 = vst [vmem:[#allocation142_spill] sm:$0xff] %v20002_v62  ;;  %vm6404_vm1 = vcmp.gt.f32.partialorder %v22855_v36, %v5517_v50  ;;  %vm6405_vm13 = vcmp.gt.f32.partialorder %v22856_v37, %v5517_v50  ;;  %vm6362_vm14 = vcmp.gt.f32.partialorder %v22807_v23, %v5433_v49  ;;  %v14158_v51 = vunpack.i.h.bf16 %v19798_v52 }
 0x7bc   : > { %v13040_v1 = vsel %vm6404_vm1, 1.0, %v22593_v0  ;;  %v13041_v31 = vsel %vm6405_vm13, 1.0, %v22593_v0  ;;  %vm6363_vm15 = vcmp.gt.f32.partialorder %v22808_v13, %v5433_v49  ;;  %v12998_v41 = vsel %vm6362_vm14, 1.0, %v22593_v0 }
 0x7bd   : > { %v20019_v12 = vsel %vm9609_vm8, %v10788_v46, %v10784_v25  ;;  %v14529_v29 = vpack.i.bf16 %v13041_v31, %v13040_v1  ;;  %v12999_v23 = vsel %vm6363_vm15, 1.0, %v22593_v0  ;;  %v14223_v57 = vunpack.i.h.bf16 %v19792_v61 }
 0x7be   : > { %22863 = vst [vmem:[#allocation143_spill] sm:$0xff] %v20019_v12  ;;  %v20024_v21 = vrot.slane %v14148_v7, %v17076_v26  ;;  %v14464_v47 = vpack.i.bf16 %v12999_v23, %v12998_v41  ;;  %v14157_v50 = vunpack.i.l.bf16 %v19798_v52  ;;  %v5525_v13 = vrot.slane %v22855_v36, %v17058_v32 }
 0x7bf   : > { %14530 = vperm.xlu0 %13518, %v14529_v29   ;;  %v14222_v49 = vunpack.i.l.bf16 %v19792_v61  ;;  %v10905_v46 = vrot.slane %v14158_v51, %v17076_v26  ;;  %v5569_v25 = vrot.slane %v22843_v19, %v16936_v56  ;;  %v14168_v1 = vunpack.i.h.bf16 %v19834_v34  ;;  %v20042_v51 = vpop.permute.xlu0 %14300 }
 0x7c0   : > { %22864 = vst [vmem:[#allocation144_spill] sm:$0xff] %v20024_v21  ;;  %14465 = vperm.xlu1 %13512, %v14464_v47   ;;  %v10901_v7 = vrot.slane %v14157_v50, %v17073_v24  ;;  %vm6408_vm4 = vcmp.gt.f32.partialorder %v22855_v36, %v5525_v13  ;;  %vm6409_vm10 = vcmp.gt.f32.partialorder %v22856_v37, %v5525_v13  ;;  %v14167_v52 = vunpack.i.l.bf16 %v19834_v34  ;;  %v20049_v50 = vpop.permute.xlu1 %14235 }
 0x7c1   : > { %v13044_v31 = vsel %vm6408_vm4, 1.0, %v22593_v0  ;;  %v13045_v61 = vsel %vm6409_vm10, 1.0, %v22593_v0  ;;  %vm6430_vm5 = vcmp.gt.f32.partialorder %v22843_v19, %v5569_v25  ;;  %vm6431_vm11 = vcmp.gt.f32.partialorder %v22845_v18, %v5569_v25 }
 0x7c2   : > { %v20045_v41 = vrot.slane %v14147_v55, %v17073_v24  ;;  %v14539_v29 = vpack.i.bf16 %v13045_v61, %v13044_v31  ;;  %v13066_v23 = vsel %vm6430_vm5, 1.0, %v22593_v0  ;;  %v13067_v47 = vsel %vm6431_vm11, 1.0, %v22593_v0 }
 0x7c3   : > { %v20052_v34 = vrot.slane %v14223_v57, %v17076_v26  ;;  %v20055_v13 = vrot.slane %v14222_v49, %v17073_v24  ;;  %v14474_v62 = vpack.i.bf16 %v13067_v47, %v13066_v23  ;;  %v14233_v25 = vunpack.i.h.bf16 %v19828_v2 }
 0x7c4   : > { %22865 = vst [vmem:[#allocation145_spill] sm:$0xff] %v20045_v41  ;;  %v10906_v63 = vsel %vm9609_vm8, %v10905_v46, %v10901_v7  ;;  %14540 = vperm.xlu0 %13518, %v14539_v29   ;;  %v14232_v55 = vunpack.i.l.bf16 %v19828_v2  ;;  %v5533_v31 = vrot.slane %v22855_v36, %v17064_v38  ;;  %v5577_v61 = vrot.slane %v22843_v19, %v17052_v54  ;;  %v20076_v7 = vpop.permute.xlu0 %14310 }
 0x7c5   : > { %22866 = vst [vmem:[#allocation146_spill] sm:$0xff] %v20052_v34  ;;  %22867 = vst [vmem:[#allocation147_spill] sm:$0xff] %v20055_v13  ;;  %14475 = vperm.xlu1 %13512, %v14474_v62   ;;  %v10923_v57 = vrot.slane %v14168_v1, %v17076_v26  ;;  %v10919_v49 = vrot.slane %v14167_v52, %v17073_v24  ;;  %v14243_v23 = vunpack.i.h.bf16 %v19856_v8  ;;  %v14242_v47 = vunpack.i.l.bf16 %v19856_v8  ;;  %v20082_v21 = vpop.permute.xlu1 %14245 }
 0x7c6   : > { %vm6412_vm2 = vcmp.gt.f32.partialorder %v22855_v36, %v5533_v31  ;;  %vm6413_vm9 = vcmp.gt.f32.partialorder %v22856_v37, %v5533_v31  ;;  %vm6434_vm3 = vcmp.gt.f32.partialorder %v22843_v19, %v5577_v61  ;;  %v14178_v2 = vunpack.i.h.bf16 %v19858_v4 }
 0x7c7   : > { %v13048_v46 = vsel %vm6412_vm2, 1.0, %v22593_v0  ;;  %v13049_v62 = vsel %vm6413_vm9, 1.0, %v22593_v0  ;;  %vm6435_vm6 = vcmp.gt.f32.partialorder %v22845_v18, %v5577_v61  ;;  %v14177_v1 = vunpack.i.l.bf16 %v19858_v4 }
 0x7c8   : > { %v12032_v8 = vsel %vm22868_vm12, %v19869_v35, %v10906_v63  ;;  %v14549_v52 = vpack.i.bf16 %v13049_v62, %v13048_v46  ;;  %v13070_v29 = vsel %vm6434_vm3, 1.0, %v22593_v0  ;;  %v13071_v31 = vsel %vm6435_vm6, 1.0, %v22593_v0 }
 0x7c9   : > { %v20085_v41 = vrot.slane %v14233_v25, %v17076_v26  ;;  %v20088_v34 = vrot.slane %v14232_v55, %v17073_v24  ;;  %v10924_v4 = vsel %vm9609_vm8, %v10923_v57, %v10919_v49  ;;  %v14484_v61 = vpack.i.bf16 %v13071_v31, %v13070_v29  ;;  %v20101_v49 = vpop.permute.xlu0 %14320 }
 0x7ca   : > { %14550 = vperm.xlu0 %13518, %v14549_v52   ;;  %v10986_v13 = vrot.slane %v14243_v23, %v17076_v26  ;;  %v10982_v63 = vrot.slane %v14242_v47, %v17073_v24  ;;  %v5605_v35 = vrot.slane %v22845_v18, %v17046_v15  ;;  %v5585_v46 = vrot.slane %v22843_v19, %v17061_v5 }
 0x7cb   : > { %22869 = vst [vmem:[#allocation148_spill] sm:$0xff] %v20085_v41  ;;  %22870 = vst [vmem:[#allocation149_spill] sm:$0xff] %v20088_v34  ;;  %14485 = vperm.xlu1 %13512, %v14484_v61   ;;  %v10941_v25 = vrot.slane %v14178_v2, %v17076_v26  ;;  %v10937_v55 = vrot.slane %v14177_v1, %v17073_v24  ;;  %v14253_v62 = vunpack.i.h.bf16 %v19889_v44  ;;  %v14252_v57 = vunpack.i.l.bf16 %v19889_v44  ;;  %v20111_v52 = vpop.permute.xlu1 %14255 }
 0x7cc   : > { %vm6448_vm0 = vcmp.gt.f32.partialorder %v22843_v19, %v5605_v35  ;;  %vm6449_vm7 = vcmp.gt.f32.partialorder %v22845_v18, %v5605_v35  ;;  %vm6438_vm1 = vcmp.gt.f32.partialorder %v22843_v19, %v5585_v46  ;;  %vm6439_vm13 = vcmp.gt.f32.partialorder %v22845_v18, %v5585_v46 }
 0x7cd   : > { %v13084_v23 = vsel %vm6448_vm0, 1.0, %v22593_v0  ;;  %v13085_v47 = vsel %vm6449_vm7, 1.0, %v22593_v0  ;;  %v13074_v2 = vsel %vm6438_vm1, 1.0, %v22593_v0  ;;  %v13075_v1 = vsel %vm6439_vm13, 1.0, %v22593_v0 }
 0x7ce   : > { %vm22871_vm14 = vcmask 1042434   ;;  %v20117_v29 = vsel %vm9609_vm8, %v10986_v13, %v10982_v63  ;;  %v14559_v31 = vpack.i.bf16 %v13085_v47, %v13084_v23  ;;  %v14494_v61 = vpack.i.bf16 %v13075_v1, %v13074_v2 }
 0x7cf   : > { %v20114_v44 = vsel %vm22871_vm14, %v10924_v4, %v12032_v8  ;;  %v14188_v35 = vunpack.i.h.bf16 %v19891_v3  ;;  %v14187_v46 = vunpack.i.l.bf16 %v19891_v3  ;;  %v5613_v41 = vrot.slane %v22845_v18, %v17049_v58  ;;  %v20135_v3 = vpop.permute.xlu0 %14330 }
 0x7d0   : > { %22872 = vst [vmem:[#allocation150_spill] sm:$0xff] %v20114_v44  ;;  %v5593_v34 = vrot.slane %v22843_v19, %v22663_v40  ;;  %v20126_v12 = vsel %vm9609_vm8, %v10941_v25, %v10937_v55  ;;  %14560 = vperm.xlu0 %13518, %v14559_v31   ;;  %14495 = vperm.xlu1 %13512, %v14494_v61   ;;  %v14198_v4 = vunpack.i.h.bf16 %v19930_v17  ;;  %v14263_v2 = vunpack.i.h.bf16 %v19922_v60 }
 0x7d1   : > { %22873 = vst [vmem:[#allocation151_spill] sm:$0xff] %v20126_v12  ;;  %v11004_v13 = vrot.slane %v14253_v62, %v17076_v26  ;;  %v11000_v8 = vrot.slane %v14252_v57, %v17073_v24  ;;  %vm6452_vm15 = vcmp.gt.f32.partialorder %v22843_v19, %v5613_v41  ;;  %vm6453_vm4 = vcmp.gt.f32.partialorder %v22845_v18, %v5613_v41  ;;  %v20141_v57 = vpop.permute.xlu1 %14265 }
 0x7d2   : > { %vm6442_vm10 = vcmp.gt.f32.partialorder %v22843_v19, %v5593_v34  ;;  %vm6443_vm5 = vcmp.gt.f32.partialorder %v22845_v18, %v5593_v34  ;;  %v13088_v63 = vsel %vm6452_vm15, 1.0, %v22593_v0  ;;  %v13089_v25 = vsel %vm6453_vm4, 1.0, %v22593_v0 }
 0x7d3   : > { %v13078_v55 = vsel %vm6442_vm10, 1.0, %v22593_v0  ;;  %v13079_v62 = vsel %vm6443_vm5, 1.0, %v22593_v0  ;;  %v20144_v23 = vrot.slane %v14188_v35, %v17076_v26  ;;  %v20147_v41 = vrot.slane %v14187_v46, %v17073_v24 }
 0x7d4   : > { %v14569_v47 = vpack.i.bf16 %v13089_v25, %v13088_v63  ;;  %v14504_v34 = vpack.i.bf16 %v13079_v62, %v13078_v55  ;;  %v14197_v1 = vunpack.i.l.bf16 %v19930_v17  ;;  %v5621_v31 = vrot.slane %v22845_v18, %v17058_v32 }
 0x7d5   : > { %22874 = vst [vmem:[#allocation152_spill] sm:$0xff] %v20144_v23  ;;  %22875 = vst [vmem:[#allocation153_spill] sm:$0xff] %v20147_v41  ;;  %v5505_v61 = vrot.slane %v22855_v36, %v16936_v56  ;;  %v14262_v35 = vunpack.i.l.bf16 %v19922_v60  ;;  %v10761_v12 = vrot.slane %v14198_v4, %v17076_v26  ;;  %v14273_v46 = vunpack.i.h.bf16 %v19950_v28  ;;  %v20167_v4 = vpop.permute.xlu0 %14340 }
 0x7d6   : > { %14570 = vperm.xlu0 %13518, %v14569_v47   ;;  %14505 = vperm.xlu1 %13512, %v14504_v34   ;;  %v14208_v63 = vunpack.i.h.bf16 %v19956_v42  ;;  %v10757_v25 = vrot.slane %v14197_v1, %v17073_v24  ;;  %vm6456_vm11 = vcmp.gt.f32.partialorder %v22843_v19, %v5621_v31  ;;  %vm6457_vm2 = vcmp.gt.f32.partialorder %v22845_v18, %v5621_v31  ;;  %v20176_v31 = vpop.permute.xlu1 %14275 }
 0x7d7   : > { %vm6398_vm9 = vcmp.gt.f32.partialorder %v22855_v36, %v5505_v61  ;;  %v13092_v17 = vsel %vm6456_vm11, 1.0, %v22593_v0  ;;  %v13093_v55 = vsel %vm6457_vm2, 1.0, %v22593_v0  ;;  %vm6399_vm3 = vcmp.gt.f32.partialorder %v22856_v37, %v5505_v61 }
 0x7d8   : > { %v13034_v60 = vsel %vm6398_vm9, 1.0, %v22593_v0  ;;  %v20170_v62 = vsel %vm9609_vm8, %v11004_v13, %v11000_v8  ;;  %v20173_v47 = vrot.slane %v14263_v2, %v17076_v26  ;;  %v14579_v34 = vpack.i.bf16 %v13093_v55, %v13092_v17 }
 0x7d9   : > { %22876 = vst [vmem:[#allocation154_spill] sm:$0xff] %v20170_v62  ;;  %v13035_v1 = vsel %vm6399_vm3, 1.0, %v22593_v0  ;;  %v20179_v44 = vrot.slane %v14262_v35, %v17073_v24  ;;  %v14272_v61 = vunpack.i.l.bf16 %v19950_v28  ;;  %v14207_v9 = vunpack.i.l.bf16 %v19956_v42 }
 0x7da   : > { %22877 = vst [vmem:[#allocation155_spill] sm:$0xff] %v20173_v47  ;;  %v14514_v11 = vpack.i.bf16 %v13035_v1, %v13034_v60  ;;  %v10762_v23 = vsel %vm9609_vm8, %v10761_v12, %v10757_v25  ;;  %14580 = vperm.xlu0 %13518, %v14579_v34   ;;  %v20185_v13 = vrot.slane %v14273_v46, %v17076_v26  ;;  %v14283_v17 = vunpack.i.h.bf16 %v19971_v45  ;;  %v20195_v12 = vpop.permute.xlu0 %14350 }
 0x7db   : > { %22878 = vst [vmem:[#allocation156_spill] sm:$0xff] %v20179_v44  ;;  %v5629_v8 = vrot.slane %v22845_v18, %v17064_v38  ;;  %v5513_v2 = vrot.slane %v22855_v36, %v17052_v54  ;;  %v10779_v35 = vrot.slane %v14208_v63, %v17076_v26  ;;  %v14282_v28 = vunpack.i.l.bf16 %v19971_v45  ;;  %v20206_v25 = vpop.permute.xlu1 %14285 }
 0x7dc   : > { %22879 = vst [vmem:[#allocation157_spill] sm:$0xff] %v20185_v13  ;;  %14515 = vperm.xlu1 %13512, %v14514_v11   ;;  %v14218_v42 = vunpack.i.h.bf16 %v19981_v59  ;;  %v5541_v46 = vrot.slane %v22856_v37, %v17046_v15  ;;  %v14217_v45 = vunpack.i.l.bf16 %v19981_v59  ;;  %v10775_v55 = vrot.slane %v14207_v9, %v17073_v24 }
 0x7dd   : > { %vm6460_vm6 = vcmp.gt.f32.partialorder %v22843_v19, %v5629_v8  ;;  %vm6461_vm12 = vcmp.gt.f32.partialorder %v22845_v18, %v5629_v8  ;;  %vm6402_vm0 = vcmp.gt.f32.partialorder %v22855_v36, %v5513_v2  ;;  %vm6403_vm7 = vcmp.gt.f32.partialorder %v22856_v37, %v5513_v2 }
 0x7de   : > { %v13096_v11 = vsel %vm6460_vm6, 1.0, %v22593_v0  ;;  %v13097_v63 = vsel %vm6461_vm12, 1.0, %v22593_v0  ;;  %v13038_v34 = vsel %vm6402_vm0, 1.0, %v22593_v0  ;;  %v13039_v1 = vsel %vm6403_vm7, 1.0, %v22593_v0 }
 0x7df   : > { %v14589_v60 = vpack.i.bf16 %v13097_v63, %v13096_v11  ;;  %vm22880_vm1 = vcmask 1041409   ;;  %v14524_v13 = vpack.i.bf16 %v13039_v1, %v13038_v34  ;;  %v10842_v47 = vrot.slane %v14283_v17, %v17076_v26 }
 0x7e0   : > { %v12018_v8 = vsel %vm22880_vm1, %v19999_v27, %v10762_v23  ;;  %v10838_v44 = vrot.slane %v14282_v28, %v17073_v24  ;;  %v10797_v59 = vrot.slane %v14218_v42, %v17076_v26  ;;  %vm6416_vm13 = vcmp.gt.f32.partialorder %v22855_v36, %v5541_v46  ;;  %v20224_v28 = vpop.permute.xlu0 %14360  ;;  %vm22890_vm7 = vmmov %vm22880_vm1 }
 0x7e1   : > { %14590 = vperm.xlu0 %13518, %v14589_v60   ;;  %vm6417_vm14 = vcmp.gt.f32.partialorder %v22856_v37, %v5541_v46  ;;  %v5521_v9 = vrot.slane %v22855_v36, %v17061_v5  ;;  %14525 = vperm.xlu1 %13512, %v14524_v13   ;;  %v10793_v2 = vrot.slane %v14217_v45, %v17073_v24  ;;  %v13052_v27 = vsel %vm6416_vm13, 1.0, %v22593_v0  ;;  %v20229_v46 = vpop.permute.xlu1 %14295 }
 0x7e2   : > { %v13053_v23 = vsel %vm6417_vm14, 1.0, %v22593_v0  ;;  %v14293_v17 = vunpack.i.h.bf16 %v20010_v22  ;;  %v10780_v42 = vsel %vm9609_vm8, %v10779_v35, %v10775_v55  ;;  %v20232_v13 = vrot.slane %v14272_v61, %v17073_v24 }
 0x7e3   : > { %v14599_v11 = vpack.i.bf16 %v13053_v23, %v13052_v27  ;;  %vm6406_vm15 = vcmp.gt.f32.partialorder %v22855_v36, %v5521_v9  ;;  %vm6407_vm4 = vcmp.gt.f32.partialorder %v22856_v37, %v5521_v9  ;;  %v14292_v60 = vunpack.i.l.bf16 %v20010_v22 }
 0x7e4   : > { %22881 = vst [vmem:[#allocation158_spill] sm:$0xff] %v20232_v13  ;;  %v13042_v63 = vsel %vm6406_vm15, 1.0, %v22593_v0  ;;  %v13043_v45 = vsel %vm6407_vm4, 1.0, %v22593_v0  ;;  %v14228_v35 = vunpack.i.h.bf16 %v20016_v6  ;;  %v5549_v55 = vrot.slane %v22856_v37, %v17049_v58 }
 0x7e5   : > { %14600 = vperm.xlu0 %13518, %v14599_v11   ;;  %v14534_v34 = vpack.i.bf16 %v13043_v45, %v13042_v63  ;;  %v5529_v1 = vrot.slane %v22855_v36, %v22663_v40  ;;  %vm22882_vm10 = vcmask 1042434   ;;  %v20246_v61 = vsel %vm9609_vm8, %v10842_v47, %v10838_v44  ;;  %v20260_v47 = vpop.permute.xlu0 %14370 }
 0x7e6   : > { %v20243_v9 = vsel %vm22882_vm10, %v10780_v42, %v12018_v8  ;;  %v20249_v27 = vsel %vm9609_vm8, %v10797_v59, %v10793_v2  ;;  %v10860_v22 = vrot.slane %v14293_v17, %v17076_v26  ;;  %v14227_v23 = vunpack.i.l.bf16 %v20016_v6  ;;  %v20267_v11 = vpop.permute.xlu1 %14305 }
 0x7e7   : > { %22883 = vst [vmem:[#allocation159_spill] sm:$0xff] %v20243_v9  ;;  %22884 = vst [vmem:[#allocation160_spill] sm:$0xff] %v20249_v27  ;;  %14535 = vperm.xlu1 %13512, %v14534_v34   ;;  %vm6420_vm5 = vcmp.gt.f32.partialorder %v22855_v36, %v5549_v55  ;;  %vm6421_vm11 = vcmp.gt.f32.partialorder %v22856_v37, %v5549_v55  ;;  %vm6410_vm2 = vcmp.gt.f32.partialorder %v22855_v36, %v5529_v1 }
 0x7e8   : > { %v10856_v8 = vrot.slane %v14292_v60, %v17073_v24  ;;  %v13056_v42 = vsel %vm6420_vm5, 1.0, %v22593_v0  ;;  %v13057_v44 = vsel %vm6421_vm11, 1.0, %v22593_v0  ;;  %vm6411_vm9 = vcmp.gt.f32.partialorder %v22856_v37, %v5529_v1 }
 0x7e9   : > { %v20263_v59 = vrot.slane %v14228_v35, %v17076_v26  ;;  %v14609_v6 = vpack.i.bf16 %v13057_v44, %v13056_v42  ;;  %v13046_v2 = vsel %vm6410_vm2, 1.0, %v22593_v0  ;;  %v13047_v17 = vsel %vm6411_vm9, 1.0, %v22593_v0 }
 0x7ea   : > { %v14544_v63 = vpack.i.bf16 %v13047_v17, %v13046_v2  ;;  %v14303_v45 = vunpack.i.h.bf16 %v20042_v51  ;;  %v14238_v60 = vunpack.i.h.bf16 %v20049_v50  ;;  %v14237_v34 = vunpack.i.l.bf16 %v20049_v50 }
 0x7eb   : > { %22885 = vst [vmem:[#allocation161_spill] sm:$0xff] %v20263_v59  ;;  %v20273_v55 = vrot.slane %v14227_v23, %v17073_v24  ;;  %14610 = vperm.xlu0 %13518, %v14609_v6   ;;  %v14302_v35 = vunpack.i.l.bf16 %v20042_v51  ;;  %v5557_v1 = vrot.slane %v22856_v37, %v17058_v32  ;;  %v5601_v42 = vrot.slane %v22845_v18, %v16936_v56  ;;  %v20288_v51 = vpop.permute.xlu0 %14380 }
 0x7ec   : > { %14545 = vperm.xlu1 %13512, %v14544_v63   ;;  %v10977_v44 = vrot.slane %v14238_v60, %v17076_v26  ;;  %v10973_v2 = vrot.slane %v14237_v34, %v17073_v24  ;;  %v14248_v17 = vunpack.i.h.bf16 %v20082_v21  ;;  %v14247_v50 = vunpack.i.l.bf16 %v20082_v21  ;;  %v20294_v34 = vpop.permute.xlu1 %14315 }
 0x7ed   : > { %22886 = vst [vmem:[#allocation162_spill] sm:$0xff] %v20273_v55  ;;  %vm6424_vm3 = vcmp.gt.f32.partialorder %v22855_v36, %v5557_v1  ;;  %vm6425_vm6 = vcmp.gt.f32.partialorder %v22856_v37, %v5557_v1  ;;  %vm6446_vm12 = vcmp.gt.f32.partialorder %v22843_v19, %v5601_v42  ;;  %vm6447_vm0 = vcmp.gt.f32.partialorder %v22845_v18, %v5601_v42  ;;  %v22893_v55 = vld [vmem:[#allocation15_spill] sm:$0xff] }
 0x7ee   : > { %v10978_v23 = vsel %vm9609_vm8, %v10977_v44, %v10973_v2  ;;  %v13060_v6 = vsel %vm6424_vm3, 1.0, %v22593_v0  ;;  %v13061_v63 = vsel %vm6425_vm6, 1.0, %v22593_v0  ;;  %v13082_v60 = vsel %vm6446_vm12, 1.0, %v22593_v0 }
 0x7ef   : > { %v20297_v21 = vsel %vm9609_vm8, %v10860_v22, %v10856_v8  ;;  %v20300_v1 = vrot.slane %v14303_v45, %v17076_v26  ;;  %v14619_v13 = vpack.i.bf16 %v13061_v63, %v13060_v6  ;;  %v13083_v42 = vsel %vm6447_vm0, 1.0, %v22593_v0 }
 0x7f0   : > { %22887 = vst [vmem:[#allocation163_spill] sm:$0xff] %v20297_v21  ;;  %v20304_v62 = vrot.slane %v14302_v35, %v17073_v24  ;;  %v14554_v44 = vpack.i.bf16 %v13083_v42, %v13082_v60  ;;  %v14313_v2 = vunpack.i.h.bf16 %v20076_v7  ;;  %v14312_v27 = vunpack.i.l.bf16 %v20076_v7  ;;  %v22891_v7 = vld [vmem:[#allocation11_spill] sm:$0xff] }
 0x7f1   : > { %22888 = vst [vmem:[#allocation164_spill] sm:$0xff] %v20300_v1  ;;  %v12039_v9 = vsel %vm22890_vm7, %v20117_v29, %v10978_v23  ;;  %14620 = vperm.xlu0 %13518, %v14619_v13   ;;  %v10995_v22 = vrot.slane %v14248_v17, %v17076_v26  ;;  %v5565_v8 = vrot.slane %v22856_v37, %v17064_v38  ;;  %v14323_v6 = vunpack.i.h.bf16 %v20101_v49  ;;  %v20324_v13 = vpop.permute.xlu0 %14390 }
 0x7f2   : > { %22889 = vst [vmem:[#allocation165_spill] sm:$0xff] %v20304_v62  ;;  %v5609_v45 = vrot.slane %v22845_v18, %v17052_v54  ;;  %14555 = vperm.xlu1 %13512, %v14554_v44   ;;  %v10991_v35 = vrot.slane %v14247_v50, %v17073_v24  ;;  %v14322_v63 = vunpack.i.l.bf16 %v20101_v49  ;;  %v5701_v60 = vrot.slane %v22891_v7, %v17046_v15  ;;  %v20330_v23 = vpop.permute.xlu1 %14325 }
 0x7f3   : > { %vm6428_vm1 = vcmp.gt.f32.partialorder %v22855_v36, %v5565_v8  ;;  %vm6429_vm13 = vcmp.gt.f32.partialorder %v22856_v37, %v5565_v8  ;;  %v14258_v29 = vunpack.i.h.bf16 %v20111_v52  ;;  %v20333_v42 = vrot.slane %v14313_v2, %v17076_v26 }
 0x7f4   : > { %vm6450_vm14 = vcmp.gt.f32.partialorder %v22843_v19, %v5609_v45  ;;  %v13064_v17 = vsel %vm6428_vm1, 1.0, %v22593_v0  ;;  %v13065_v50 = vsel %vm6429_vm13, 1.0, %v22593_v0  ;;  %vm6451_vm15 = vcmp.gt.f32.partialorder %v22845_v18, %v5609_v45 }
 0x7f5   : > { %v13086_v49 = vsel %vm6450_vm14, 1.0, %v22593_v0  ;;  %22892 = vst [vmem:[#allocation11_spill] sm:$0xff] %v20333_v42  ;;  %v14629_v44 = vpack.i.bf16 %v13065_v50, %v13064_v17  ;;  %v13087_v8 = vsel %vm6451_vm15, 1.0, %v22593_v0  ;;  %v14257_v1 = vunpack.i.l.bf16 %v20111_v52 }
 0x7f6   : > { %v10996_v62 = vsel %vm9609_vm8, %v10995_v22, %v10991_v35  ;;  %v14564_v21 = vpack.i.bf16 %v13087_v8, %v13086_v49  ;;  %v11202_v59 = vrot.slane %v14323_v6, %v17076_v26  ;;  %vm6496_vm4 = vcmp.gt.f32.partialorder %v22891_v7, %v5701_v60 }
 0x7f7   : > { %14630 = vperm.xlu0 %13518, %v14629_v44   ;;  %v11198_v45 = vrot.slane %v14322_v63, %v17073_v24  ;;  %vm6497_vm10 = vcmp.gt.f32.partialorder %v22893_v55, %v5701_v60  ;;  %v13132_v2 = vsel %vm6496_vm4, 1.0, %v22593_v0  ;;  %v5617_v17 = vrot.slane %v22845_v18, %v17061_v5  ;;  %v20352_v63 = vpop.permute.xlu0 %14400  ;;  %v20354_v60 = vpop.permute.xlu1 %14335 }
 0x7f8   : > { %14565 = vperm.xlu1 %13512, %v14564_v21   ;;  %v11013_v52 = vrot.slane %v14258_v29, %v17076_v26  ;;  %v13133_v22 = vsel %vm6497_vm10, 1.0, %v22593_v0  ;;  %v14333_v35 = vunpack.i.h.bf16 %v20135_v3  ;;  %v14332_v6 = vunpack.i.l.bf16 %v20135_v3 }
 0x7f9   : > { %v11009_v50 = vrot.slane %v14257_v1, %v17073_v24  ;;  %v14639_v49 = vpack.i.bf16 %v13133_v22, %v13132_v2  ;;  %vm6454_vm5 = vcmp.gt.f32.partialorder %v22843_v19, %v5617_v17  ;;  %vm6455_vm11 = vcmp.gt.f32.partialorder %v22845_v18, %v5617_v17 }
 0x7fa   : > { %v20357_v21 = vrot.slane %v14312_v27, %v17073_v24  ;;  %vm22895_vm2 = vcmask 1042434   ;;  %v13090_v44 = vsel %vm6454_vm5, 1.0, %v22593_v0  ;;  %v13091_v3 = vsel %vm6455_vm11, 1.0, %v22593_v0 }
 0x7fb   : > { %v20360_v29 = vsel %vm22895_vm2, %v10996_v62, %v12039_v9  ;;  %v20365_v1 = vsel %vm9609_vm8, %v11202_v59, %v11198_v45  ;;  %14640 = vperm.xlu0 %13518, %v14639_v49   ;;  %v14574_v8 = vpack.i.bf16 %v13091_v3, %v13090_v44  ;;  %v14268_v2 = vunpack.i.h.bf16 %v20141_v57 }
 0x7fc   : > { %22894 = vst [vmem:[#allocation15_spill] sm:$0xff] %v20357_v21  ;;  %22896 = vst [vmem:[#allocation166_spill] sm:$0xff] %v20360_v29  ;;  %v5709_v17 = vrot.slane %v22891_v7, %v17049_v58  ;;  %v11220_v27 = vrot.slane %v14333_v35, %v17076_v26  ;;  %v11216_v22 = vrot.slane %v14332_v6, %v17073_v24  ;;  %v14267_v62 = vunpack.i.l.bf16 %v20141_v57  ;;  %v20385_v57 = vpop.permute.xlu0 %14410  ;;  %v20387_v6 = vpop.permute.xlu1 %14345 }
 0x7fd   : > { %v5625_v9 = vrot.slane %v22845_v18, %v22663_v40  ;;  %v20376_v42 = vsel %vm9609_vm8, %v11013_v52, %v11009_v50  ;;  %14575 = vperm.xlu1 %13512, %v14574_v8   ;;  %v14343_v59 = vunpack.i.h.bf16 %v20167_v4  ;;  %v20390_v52 = vrot.slane %v14268_v2, %v17076_v26 }
 0x7fe   : > { %22897 = vst [vmem:[#allocation167_spill] sm:$0xff] %v20376_v42  ;;  %vm6500_vm9 = vcmp.gt.f32.partialorder %v22891_v7, %v5709_v17  ;;  %vm6501_vm3 = vcmp.gt.f32.partialorder %v22893_v55, %v5709_v17  ;;  %v20395_v3 = vsel %vm9609_vm8, %v11220_v27, %v11216_v22  ;;  %v20398_v8 = vrot.slane %v14267_v62, %v17073_v24 }
 0x7ff   : > { %v13136_v45 = vsel %vm6500_vm9, 1.0, %v22593_v0  ;;  %v13137_v35 = vsel %vm6501_vm3, 1.0, %v22593_v0  ;;  %vm6458_vm6 = vcmp.gt.f32.partialorder %v22843_v19, %v5625_v9  ;;  %vm6459_vm12 = vcmp.gt.f32.partialorder %v22845_v18, %v5625_v9  ;;  %22898 = vst [vmem:[#allocation168_spill] sm:$0xff] %v20390_v52  ;;  %22899 = vst [vmem:[#allocation169_spill] sm:$0xff] %v20395_v3 }
 0x800   : > { %v14649_v50 = vpack.i.bf16 %v13137_v35, %v13136_v45  ;;  %v13094_v49 = vsel %vm6458_vm6, 1.0, %v22593_v0  ;;  %v13095_v44 = vsel %vm6459_vm12, 1.0, %v22593_v0  ;;  %22900 = vst [vmem:[#allocation170_spill] sm:$0xff] %v20398_v8  ;;  %v14342_v18 = vunpack.i.l.bf16 %v20167_v4  ;;  %v22902_v4 = vld [vmem:[#allocation14_spill] sm:$0xff]  ;;  %v22904_v8 = vld [vmem:[#allocation3_spill] sm:$0xff] }
 0x801   : > { %v14584_v19 = vpack.i.bf16 %v13095_v44, %v13094_v49  ;;  %v14278_v17 = vunpack.i.h.bf16 %v20176_v31  ;;  %v14277_v2 = vunpack.i.l.bf16 %v20176_v31  ;;  %v5717_v9 = vrot.slane %v22891_v7, %v17058_v32  ;;  %v20418_v31 = vpop.permute.xlu0 %14420 }
 0x802   : > { %14650 = vperm.xlu0 %13518, %v14649_v50   ;;  %v5537_v45 = vrot.slane %v22856_v37, %v16936_v56  ;;  %v20408_v27 = vrot.slane %v14343_v59, %v17076_v26  ;;  %v14288_v22 = vunpack.i.h.bf16 %v20206_v25  ;;  %v14287_v62 = vunpack.i.l.bf16 %v20206_v25  ;;  %v20426_v44 = vpop.permute.xlu1 %14355 }
 0x803   : > { %14585 = vperm.xlu1 %13512, %v14584_v19   ;;  %v5637_v35 = vrot.slane %v22902_v4, %v17046_v15  ;;  %vm6504_vm0 = vcmp.gt.f32.partialorder %v22891_v7, %v5717_v9  ;;  %vm6505_vm7 = vcmp.gt.f32.partialorder %v22893_v55, %v5717_v9  ;;  %v20421_v59 = vrot.slane %v14342_v18, %v17073_v24 }
 0x804   : > { %22901 = vst [vmem:[#allocation171_spill] sm:$0xff] %v20408_v27  ;;  %vm6414_vm1 = vcmp.gt.f32.partialorder %v22855_v36, %v5537_v45  ;;  %vm6415_vm13 = vcmp.gt.f32.partialorder %v22856_v37, %v5537_v45  ;;  %v13140_v50 = vsel %vm6504_vm0, 1.0, %v22593_v0  ;;  %v13141_v25 = vsel %vm6505_vm7, 1.0, %v22593_v0 }
 0x805   : > { %22903 = vst [vmem:[#allocation14_spill] sm:$0xff] %v20421_v59  ;;  %v13050_v49 = vsel %vm6414_vm1, 1.0, %v22593_v0  ;;  %v10833_v19 = vrot.slane %v14278_v17, %v17076_v26  ;;  %v10829_v9 = vrot.slane %v14277_v2, %v17073_v24  ;;  %v14659_v21 = vpack.i.bf16 %v13141_v25, %v13140_v50 }
 0x806   : > { %v13051_v45 = vsel %vm6415_vm13, 1.0, %v22593_v0  ;;  %v14353_v29 = vunpack.i.h.bf16 %v20195_v12  ;;  %v10851_v18 = vrot.slane %v14288_v22, %v17076_v26  ;;  %v10847_v52 = vrot.slane %v14287_v62, %v17073_v24 }
 0x807   : > { %v14594_v42 = vpack.i.bf16 %v13051_v45, %v13050_v49  ;;  %14660 = vperm.xlu0 %13518, %v14659_v21   ;;  %vm6464_vm14 = vcmp.gt.f32.partialorder %v22902_v4, %v5637_v35  ;;  %vm6465_vm15 = vcmp.gt.f32.partialorder %v22904_v8, %v5637_v35  ;;  %v5545_v17 = vrot.slane %v22856_v37, %v17052_v54  ;;  %v20446_v35 = vpop.permute.xlu0 %14430 }
 0x808   : > { %v14363_v2 = vunpack.i.h.bf16 %v20224_v28  ;;  %v14352_v50 = vunpack.i.l.bf16 %v20195_v12  ;;  %v13100_v25 = vsel %vm6464_vm14, 1.0, %v22593_v0  ;;  %v13101_v49 = vsel %vm6465_vm15, 1.0, %v22593_v0  ;;  %v20452_v27 = vpop.permute.xlu1 %14365 }
 0x809   : > { %14595 = vperm.xlu1 %13512, %v14594_v42   ;;  %v14362_v22 = vunpack.i.l.bf16 %v20224_v28  ;;  %v10834_v21 = vsel %vm9609_vm8, %v10833_v19, %v10829_v9  ;;  %v14679_v62 = vpack.i.bf16 %v13101_v49, %v13100_v25  ;;  %vm6418_vm4 = vcmp.gt.f32.partialorder %v22855_v36, %v5545_v17 }
 0x80a   : > { %vm6419_vm10 = vcmp.gt.f32.partialorder %v22856_v37, %v5545_v17  ;;  %v10852_v45 = vsel %vm9609_vm8, %v10851_v18, %v10847_v52  ;;  %v13054_v42 = vsel %vm6418_vm4, 1.0, %v22593_v0  ;;  %v11058_v3 = vrot.slane %v14363_v2, %v17076_v26 }
 0x80b   : > { %v13055_v12 = vsel %vm6419_vm10, 1.0, %v22593_v0  ;;  %14680 = vperm.xlu0 %13518, %v14679_v62   ;;  %v14298_v19 = vunpack.i.h.bf16 %v20229_v46  ;;  %v14297_v9 = vunpack.i.l.bf16 %v20229_v46  ;;  %v5645_v17 = vrot.slane %v22902_v4, %v17049_v58  ;;  %v20467_v46 = vpop.permute.xlu0 %14440 }
 0x80c   : > { %v14604_v28 = vpack.i.bf16 %v13055_v12, %v13054_v42  ;;  %v11054_v25 = vrot.slane %v14362_v22, %v17073_v24  ;;  %v5553_v52 = vrot.slane %v22856_v37, %v17061_v5  ;;  %v14373_v18 = vunpack.i.h.bf16 %v20260_v47 }
 0x80d   : > { %v14372_v2 = vunpack.i.l.bf16 %v20260_v47  ;;  %v10869_v49 = vrot.slane %v14298_v19, %v17076_v26  ;;  %v10865_v62 = vrot.slane %v14297_v9, %v17073_v24  ;;  %vm6468_vm5 = vcmp.gt.f32.partialorder %v22902_v4, %v5645_v17  ;;  %v20477_v9 = vpop.permute.xlu1 %14375 }
 0x80e   : > { %14605 = vperm.xlu1 %13512, %v14604_v28   ;;  %vm6469_vm11 = vcmp.gt.f32.partialorder %v22904_v8, %v5645_v17  ;;  %v13104_v22 = vsel %vm6468_vm5, 1.0, %v22593_v0  ;;  %vm6422_vm2 = vcmp.gt.f32.partialorder %v22855_v36, %v5553_v52  ;;  %vm6423_vm9 = vcmp.gt.f32.partialorder %v22856_v37, %v5553_v52 }
 0x80f   : > { %v13105_v42 = vsel %vm6469_vm11, 1.0, %v22593_v0  ;;  %vm22905_vm3 = vcmask 1041409   ;;  %v13058_v28 = vsel %vm6422_vm2, 1.0, %v22593_v0  ;;  %v13059_v19 = vsel %vm6423_vm9, 1.0, %v22593_v0 }
 0x810   : > { %v12025_v47 = vsel %vm22905_vm3, %v20246_v61, %v10834_v21  ;;  %v14689_v12 = vpack.i.bf16 %v13105_v42, %v13104_v22  ;;  %v20480_v17 = vrot.slane %v14353_v29, %v17076_v26  ;;  %v20483_v59 = vrot.slane %v14352_v50, %v17073_v24  ;;  %vm22916_vm9 = vmmov %vm22905_vm3 }
 0x811   : > { %vm22908_vm6 = vcmask 1042434   ;;  %v14614_v52 = vpack.i.bf16 %v13059_v19, %v13058_v28  ;;  %v11076_v61 = vrot.slane %v14373_v18, %v17076_v26  ;;  %v11072_v21 = vrot.slane %v14372_v2, %v17073_v24  ;;  %v20506_v2 = vpop.permute.xlu0 %14450 }
 0x812   : > { %22906 = vst [vmem:[#allocation3_spill] sm:$0xff] %v20480_v17  ;;  %22907 = vst [vmem:[#allocation172_spill] sm:$0xff] %v20483_v59  ;;  %v20486_v41 = vsel %vm22908_vm6, %v10852_v45, %v12025_v47  ;;  %14690 = vperm.xlu0 %13518, %v14689_v12   ;;  %v5653_v22 = vrot.slane %v22902_v4, %v17058_v32  ;;  %v5561_v42 = vrot.slane %v22856_v37, %v22663_v40 }
 0x813   : > { %22909 = vst [vmem:[#allocation173_spill] sm:$0xff] %v20486_v41  ;;  %v20495_v29 = vsel %vm9609_vm8, %v11058_v3, %v11054_v25  ;;  %v20498_v50 = vsel %vm9609_vm8, %v10869_v49, %v10865_v62  ;;  %14615 = vperm.xlu1 %13512, %v14614_v52   ;;  %v14308_v45 = vunpack.i.h.bf16 %v20267_v11  ;;  %v14307_v47 = vunpack.i.l.bf16 %v20267_v11  ;;  %v20512_v62 = vpop.permute.xlu1 %14385 }
 0x814   : > { %22910 = vst [vmem:[#allocation174_spill] sm:$0xff] %v20498_v50  ;;  %vm6472_vm12 = vcmp.gt.f32.partialorder %v22902_v4, %v5653_v22  ;;  %vm6473_vm0 = vcmp.gt.f32.partialorder %v22904_v8, %v5653_v22  ;;  %vm6426_vm7 = vcmp.gt.f32.partialorder %v22855_v36, %v5561_v42  ;;  %v14318_v18 = vunpack.i.h.bf16 %v20294_v34 }
 0x815   : > { %v13108_v3 = vsel %vm6472_vm12, 1.0, %v22593_v0  ;;  %v13109_v25 = vsel %vm6473_vm0, 1.0, %v22593_v0  ;;  %vm6427_vm1 = vcmp.gt.f32.partialorder %v22856_v37, %v5561_v42  ;;  %v13062_v49 = vsel %vm6426_vm7, 1.0, %v22593_v0 }
 0x816   : > { %v20515_v11 = vsel %vm9609_vm8, %v11076_v61, %v11072_v21  ;;  %v14699_v12 = vpack.i.bf16 %v13109_v25, %v13108_v3  ;;  %v13063_v36 = vsel %vm6427_vm1, 1.0, %v22593_v0  ;;  %v14383_v28 = vunpack.i.h.bf16 %v20288_v51 }
 0x817   : > { %22911 = vst [vmem:[#allocation175_spill] sm:$0xff] %v20515_v11  ;;  %v20520_v19 = vrot.slane %v14308_v45, %v17076_v26  ;;  %v14624_v52 = vpack.i.bf16 %v13063_v36, %v13062_v49  ;;  %v14317_v22 = vunpack.i.l.bf16 %v20294_v34  ;;  %v5661_v37 = vrot.slane %v22902_v4, %v17064_v38 }
 0x818   : > { %14700 = vperm.xlu0 %13518, %v14699_v12   ;;  %v14382_v42 = vunpack.i.l.bf16 %v20288_v51  ;;  %v11193_v61 = vrot.slane %v14318_v18, %v17076_v26  ;;  %v5697_v21 = vrot.slane %v22891_v7, %v16936_v56  ;;  %v14328_v3 = vunpack.i.h.bf16 %v20330_v23  ;;  %v20538_v18 = vpop.permute.xlu0 %14460 }
 0x819   : > { %22912 = vst [vmem:[#allocation176_spill] sm:$0xff] %v20520_v19  ;;  %14625 = vperm.xlu1 %13512, %v14624_v52   ;;  %v11189_v45 = vrot.slane %v14317_v22, %v17073_v24  ;;  %vm6476_vm13 = vcmp.gt.f32.partialorder %v22902_v4, %v5661_v37  ;;  %vm6477_vm14 = vcmp.gt.f32.partialorder %v22904_v8, %v5661_v37  ;;  %v14327_v34 = vunpack.i.l.bf16 %v20330_v23  ;;  %v20545_v22 = vpop.permute.xlu1 %14395 }
 0x81a   : > { %v13112_v25 = vsel %vm6476_vm13, 1.0, %v22593_v0  ;;  %v13113_v51 = vsel %vm6477_vm14, 1.0, %v22593_v0  ;;  %vm6494_vm15 = vcmp.gt.f32.partialorder %v22891_v7, %v5697_v21  ;;  %vm6495_vm4 = vcmp.gt.f32.partialorder %v22893_v55, %v5697_v21 }
 0x81b   : > { %v20541_v49 = vrot.slane %v14307_v47, %v17073_v24  ;;  %v14709_v12 = vpack.i.bf16 %v13113_v51, %v13112_v25  ;;  %v13130_v36 = vsel %vm6494_vm15, 1.0, %v22593_v0  ;;  %v13131_v52 = vsel %vm6495_vm4, 1.0, %v22593_v0 }
 0x81c   : > { %v20548_v23 = vrot.slane %v14383_v28, %v17076_v26  ;;  %v20551_v37 = vrot.slane %v14382_v42, %v17073_v24  ;;  %v14634_v50 = vpack.i.bf16 %v13131_v52, %v13130_v36  ;;  %v14393_v21 = vunpack.i.h.bf16 %v20324_v13 }
 0x81d   : > { %22913 = vst [vmem:[#allocation177_spill] sm:$0xff] %v20541_v49  ;;  %v11194_v41 = vsel %vm9609_vm8, %v11193_v61, %v11189_v45  ;;  %14710 = vperm.xlu0 %13518, %v14709_v12   ;;  %v14392_v47 = vunpack.i.l.bf16 %v20324_v13  ;;  %v5729_v25 = vrot.slane %v22893_v55, %v16936_v56  ;;  %v5705_v51 = vrot.slane %v22891_v7, %v17052_v54  ;;  %v20572_v45 = vpop.permute.xlu0 %14470 }
 0x81e   : > { %22914 = vst [vmem:[#allocation178_spill] sm:$0xff] %v20548_v23  ;;  %22915 = vst [vmem:[#allocation179_spill] sm:$0xff] %v20551_v37  ;;  %14635 = vperm.xlu1 %13512, %v14634_v50   ;;  %v11211_v28 = vrot.slane %v14328_v3, %v17076_v26  ;;  %v11207_v42 = vrot.slane %v14327_v34, %v17073_v24  ;;  %v14403_v36 = vunpack.i.h.bf16 %v20352_v63  ;;  %v14402_v52 = vunpack.i.l.bf16 %v20352_v63  ;;  %v20578_v19 = vpop.permute.xlu1 %14405 }
 0x81f   : > { %vm6510_vm10 = vcmp.gt.f32.partialorder %v22891_v7, %v5729_v25  ;;  %vm6511_vm5 = vcmp.gt.f32.partialorder %v22893_v55, %v5729_v25  ;;  %vm6498_vm11 = vcmp.gt.f32.partialorder %v22891_v7, %v5705_v51  ;;  %v14338_v13 = vunpack.i.h.bf16 %v20354_v60 }
 0x820   : > { %v13146_v61 = vsel %vm6510_vm10, 1.0, %v22593_v0  ;;  %v13147_v50 = vsel %vm6511_vm5, 1.0, %v22593_v0  ;;  %vm6499_vm2 = vcmp.gt.f32.partialorder %v22893_v55, %v5705_v51  ;;  %v14337_v3 = vunpack.i.l.bf16 %v20354_v60 }
 0x821   : > { %v12060_v63 = vsel %vm22916_vm9, %v20365_v1, %v11194_v41  ;;  %v14714_v34 = vpack.i.bf16 %v13147_v50, %v13146_v61  ;;  %v13134_v12 = vsel %vm6498_vm11, 1.0, %v22593_v0  ;;  %v13135_v25 = vsel %vm6499_vm2, 1.0, %v22593_v0  ;;  %vm22926_vm2 = vmmov %vm22916_vm9 }
 0x822   : > { %v20581_v49 = vrot.slane %v14393_v21, %v17076_v26  ;;  %v20584_v11 = vrot.slane %v14392_v47, %v17073_v24  ;;  %v11212_v60 = vsel %vm9609_vm8, %v11211_v28, %v11207_v42  ;;  %v14644_v51 = vpack.i.bf16 %v13135_v25, %v13134_v12  ;;  %v20597_v42 = vpop.permute.xlu0 %14480 }
 0x823   : > { %14715 = vperm.xlu0 %13518, %v14714_v34   ;;  %v11274_v23 = vrot.slane %v14403_v36, %v17076_v26  ;;  %v11270_v41 = vrot.slane %v14402_v52, %v17073_v24  ;;  %v5737_v1 = vrot.slane %v22893_v55, %v17052_v54  ;;  %v5713_v61 = vrot.slane %v22891_v7, %v17061_v5  ;;  %v20607_v34 = vpop.permute.xlu1 %14415 }
 0x824   : > { %22917 = vst [vmem:[#allocation180_spill] sm:$0xff] %v20581_v49  ;;  %22918 = vst [vmem:[#allocation181_spill] sm:$0xff] %v20584_v11  ;;  %14645 = vperm.xlu1 %13512, %v14644_v51   ;;  %v11229_v21 = vrot.slane %v14338_v13, %v17076_v26  ;;  %v11225_v47 = vrot.slane %v14337_v3, %v17073_v24  ;;  %v14413_v50 = vunpack.i.h.bf16 %v20385_v57  ;;  %v14412_v28 = vunpack.i.l.bf16 %v20385_v57 }
 0x825   : > { %vm6514_vm3 = vcmp.gt.f32.partialorder %v22891_v7, %v5737_v1  ;;  %vm6515_vm6 = vcmp.gt.f32.partialorder %v22893_v55, %v5737_v1  ;;  %vm6502_vm12 = vcmp.gt.f32.partialorder %v22891_v7, %v5713_v61  ;;  %vm6503_vm0 = vcmp.gt.f32.partialorder %v22893_v55, %v5713_v61 }
 0x826   : > { %v13150_v36 = vsel %vm6514_vm3, 1.0, %v22593_v0  ;;  %v13151_v52 = vsel %vm6515_vm6, 1.0, %v22593_v0  ;;  %v13138_v13 = vsel %vm6502_vm12, 1.0, %v22593_v0  ;;  %v13139_v3 = vsel %vm6503_vm0, 1.0, %v22593_v0 }
 0x827   : > { %vm22919_vm7 = vcmask 1042434   ;;  %v20613_v12 = vsel %vm9609_vm8, %v11274_v23, %v11270_v41  ;;  %v14724_v25 = vpack.i.bf16 %v13151_v52, %v13150_v36  ;;  %v14654_v51 = vpack.i.bf16 %v13139_v3, %v13138_v13 }
 0x828   : > { %v20610_v57 = vsel %vm22919_vm7, %v11212_v60, %v12060_v63  ;;  %v20616_v1 = vsel %vm9609_vm8, %v11229_v21, %v11225_v47  ;;  %v14348_v61 = vunpack.i.h.bf16 %v20387_v6  ;;  %v5745_v49 = vrot.slane %v22893_v55, %v17061_v5  ;;  %v20631_v21 = vpop.permute.xlu0 %14490 }
 0x829   : > { %22920 = vst [vmem:[#allocation182_spill] sm:$0xff] %v20610_v57  ;;  %22921 = vst [vmem:[#allocation183_spill] sm:$0xff] %v20616_v1  ;;  %v5721_v11 = vrot.slane %v22891_v7, %v22663_v40  ;;  %14725 = vperm.xlu0 %13518, %v14724_v25   ;;  %14655 = vperm.xlu1 %13512, %v14654_v51   ;;  %v11292_v63 = vrot.slane %v14413_v50, %v17076_v26  ;;  %v14347_v60 = vunpack.i.l.bf16 %v20387_v6  ;;  %v20637_v36 = vpop.permute.xlu1 %14425 }
 0x82a   : > { %v11288_v23 = vrot.slane %v14412_v28, %v17073_v24  ;;  %v14358_v41 = vunpack.i.h.bf16 %v20426_v44  ;;  %vm6518_vm1 = vcmp.gt.f32.partialorder %v22891_v7, %v5745_v49  ;;  %vm6519_vm13 = vcmp.gt.f32.partialorder %v22893_v55, %v5745_v49 }
 0x82b   : > { %vm6506_vm14 = vcmp.gt.f32.partialorder %v22891_v7, %v5721_v11  ;;  %vm6507_vm15 = vcmp.gt.f32.partialorder %v22893_v55, %v5721_v11  ;;  %v13154_v47 = vsel %vm6518_vm1, 1.0, %v22593_v0  ;;  %v13155_v50 = vsel %vm6519_vm13, 1.0, %v22593_v0 }
 0x82c   : > { %v13142_v28 = vsel %vm6506_vm14, 1.0, %v22593_v0  ;;  %v13143_v6 = vsel %vm6507_vm15, 1.0, %v22593_v0  ;;  %v20640_v52 = vrot.slane %v14348_v61, %v17076_v26  ;;  %v14734_v49 = vpack.i.bf16 %v13155_v50, %v13154_v47 }
 0x82d   : > { %v14664_v13 = vpack.i.bf16 %v13143_v6, %v13142_v28  ;;  %v14423_v3 = vunpack.i.h.bf16 %v20418_v31  ;;  %v11049_v11 = vrot.slane %v14358_v41, %v17076_v26  ;;  %v14357_v25 = vunpack.i.l.bf16 %v20426_v44  ;;  %v20661_v6 = vpop.permute.xlu0 %14500 }
 0x82e   : > { %v5753_v51 = vrot.slane %v22893_v55, %v22663_v40  ;;  %v5725_v37 = vrot.slane %v22891_v7, %v17064_v38  ;;  %14735 = vperm.xlu0 %13518, %v14734_v49   ;;  %v14422_v1 = vunpack.i.l.bf16 %v20418_v31  ;;  %v14433_v61 = vunpack.i.h.bf16 %v20446_v35 }
 0x82f   : > { %14665 = vperm.xlu1 %13512, %v14664_v13   ;;  %v14368_v47 = vunpack.i.h.bf16 %v20452_v27  ;;  %v14367_v50 = vunpack.i.l.bf16 %v20452_v27  ;;  %v11045_v41 = vrot.slane %v14357_v25, %v17073_v24  ;;  %v20664_v27 = vrot.slane %v14347_v60, %v17073_v24 }
 0x830   : > { %vm6522_vm4 = vcmp.gt.f32.partialorder %v22891_v7, %v5753_v51  ;;  %vm6523_vm10 = vcmp.gt.f32.partialorder %v22893_v55, %v5753_v51  ;;  %vm6508_vm5 = vcmp.gt.f32.partialorder %v22891_v7, %v5725_v37  ;;  %vm6509_vm11 = vcmp.gt.f32.partialorder %v22893_v55, %v5725_v37  ;;  %v20668_v51 = vpop.permute.xlu1 %14435 }
 0x831   : > { %v13158_v44 = vsel %vm6522_vm4, 1.0, %v22593_v0  ;;  %v13159_v28 = vsel %vm6523_vm10, 1.0, %v22593_v0  ;;  %v13144_v31 = vsel %vm6508_vm5, 1.0, %v22593_v0  ;;  %v11050_v49 = vsel %vm9609_vm8, %v11049_v11, %v11045_v41 }
 0x832   : > { %v14744_v13 = vpack.i.bf16 %v13159_v28, %v13158_v44  ;;  %v13145_v25 = vsel %vm6509_vm11, 1.0, %v22593_v0  ;;  %v20671_v57 = vsel %vm9609_vm8, %v11292_v63, %v11288_v23  ;;  %v20674_v17 = vrot.slane %v14423_v3, %v17076_v26 }
 0x833   : > { %22922 = vst [vmem:[#allocation184_spill] sm:$0xff] %v20671_v57  ;;  %v20677_v37 = vrot.slane %v14422_v1, %v17073_v24  ;;  %v14669_v59 = vpack.i.bf16 %v13145_v25, %v13144_v31  ;;  %v20680_v60 = vrot.slane %v14433_v61, %v17076_v26  ;;  %v14432_v11 = vunpack.i.l.bf16 %v20446_v35  ;;  %v20697_v61 = vpop.permute.xlu0 %14510 }
 0x834   : > { %22923 = vst [vmem:[#allocation185_spill] sm:$0xff] %v20674_v17  ;;  %14745 = vperm.xlu0 %13518, %v14744_v13   ;;  %v5757_v41 = vrot.slane %v22893_v55, %v17064_v38  ;;  %v5633_v63 = vrot.slane %v22902_v4, %v16936_v56  ;;  %v12046_v23 = vsel %vm22926_vm2, %v20495_v29, %v11050_v49  ;;  %v14443_v44 = vunpack.i.h.bf16 %v20467_v46 }
 0x835   : > { %22924 = vst [vmem:[#allocation186_spill] sm:$0xff] %v20677_v37  ;;  %22925 = vst [vmem:[#allocation187_spill] sm:$0xff] %v20680_v60  ;;  %14670 = vperm.xlu1 %13512, %v14669_v59   ;;  %v11067_v1 = vrot.slane %v14368_v47, %v17076_v26  ;;  %v11063_v3 = vrot.slane %v14367_v50, %v17073_v24  ;;  %v5669_v35 = vrot.slane %v22904_v8, %v17046_v15  ;;  %v20703_v50 = vpop.permute.xlu1 %14445  ;;  %vm22928_vm1 = vcmask 1042434  }
 0x836   : > { %vm6524_vm9 = vcmp.gt.f32.partialorder %v22891_v7, %v5757_v41  ;;  %vm6525_vm3 = vcmp.gt.f32.partialorder %v22893_v55, %v5757_v41  ;;  %vm6462_vm6 = vcmp.gt.f32.partialorder %v22902_v4, %v5633_v63  ;;  %vm6463_vm12 = vcmp.gt.f32.partialorder %v22904_v8, %v5633_v63 }
 0x837   : > { %v13160_v29 = vsel %vm6524_vm9, 1.0, %v22593_v0  ;;  %v13161_v59 = vsel %vm6525_vm3, 1.0, %v22593_v0  ;;  %v14442_v47 = vunpack.i.l.bf16 %v20467_v46  ;;  %v20706_v28 = vrot.slane %v14432_v11, %v17073_v24 }
 0x838   : > { %v14749_v31 = vpack.i.bf16 %v13161_v59, %v13160_v29  ;;  %v13098_v49 = vsel %vm6462_vm6, 1.0, %v22593_v0  ;;  %v13099_v13 = vsel %vm6463_vm12, 1.0, %v22593_v0  ;;  %v11068_v25 = vsel %vm9609_vm8, %v11067_v1, %v11063_v3 }
 0x839   : > { %22927 = vst [vmem:[#allocation188_spill] sm:$0xff] %v20706_v28  ;;  %v14674_v41 = vpack.i.bf16 %v13099_v13, %v13098_v49  ;;  %v14378_v60 = vunpack.i.h.bf16 %v20477_v9  ;;  %v14377_v57 = vunpack.i.l.bf16 %v20477_v9  ;;  %v11130_v46 = vrot.slane %v14443_v44, %v17076_v26  ;;  %v20729_v59 = vpop.permute.xlu1 %14455 }
 0x83a   : > { %14750 = vperm.xlu0 %13518, %v14749_v31   ;;  %vm6480_vm0 = vcmp.gt.f32.partialorder %v22902_v4, %v5669_v35  ;;  %vm6481_vm7 = vcmp.gt.f32.partialorder %v22904_v8, %v5669_v35  ;;  %v5641_v11 = vrot.slane %v22902_v4, %v17052_v54  ;;  %v11126_v63 = vrot.slane %v14442_v47, %v17073_v24  ;;  %v20727_v35 = vpop.permute.xlu0 %14520 }
 0x83b   : > { %14675 = vperm.xlu1 %13512, %v14674_v41   ;;  %v13116_v1 = vsel %vm6480_vm0, 1.0, %v22593_v0  ;;  %v13117_v3 = vsel %vm6481_vm7, 1.0, %v22593_v0  ;;  %v14453_v29 = vunpack.i.h.bf16 %v20506_v2  ;;  %v20723_v9 = vsel %vm22928_vm1, %v11068_v25, %v12046_v23 }
 0x83c   : > { %v14759_v44 = vpack.i.bf16 %v13117_v3, %v13116_v1  ;;  %vm6466_vm13 = vcmp.gt.f32.partialorder %v22902_v4, %v5641_v11  ;;  %vm6467_vm14 = vcmp.gt.f32.partialorder %v22904_v8, %v5641_v11  ;;  %v11085_v47 = vrot.slane %v14378_v60, %v17076_v26 }
 0x83d   : > { %v13102_v31 = vsel %vm6466_vm13, 1.0, %v22593_v0  ;;  %v13103_v49 = vsel %vm6467_vm14, 1.0, %v22593_v0  ;;  %v14452_v13 = vunpack.i.l.bf16 %v20506_v2  ;;  %v11081_v23 = vrot.slane %v14377_v57, %v17073_v24 }
 0x83e   : > { %14760 = vperm.xlu0 %13518, %v14759_v44   ;;  %v14684_v25 = vpack.i.bf16 %v13103_v49, %v13102_v31  ;;  %v5677_v41 = vrot.slane %v22904_v8, %v17049_v58  ;;  %v5649_v11 = vrot.slane %v22902_v4, %v17061_v5  ;;  %v20741_v1 = vsel %vm9609_vm8, %v11130_v46, %v11126_v63  ;;  %v20759_v49 = vpop.permute.xlu0 %14530 }
 0x83f   : > { %v11148_v60 = vrot.slane %v14453_v29, %v17076_v26  ;;  %v14388_v3 = vunpack.i.h.bf16 %v20512_v62  ;;  %v14387_v28 = vunpack.i.l.bf16 %v20512_v62  ;;  %v11144_v2 = vrot.slane %v14452_v13, %v17073_v24  ;;  %v20761_v13 = vpop.permute.xlu1 %14465 }
 0x840   : > { %14685 = vperm.xlu1 %13512, %v14684_v25   ;;  %vm6484_vm15 = vcmp.gt.f32.partialorder %v22902_v4, %v5677_v41  ;;  %vm6485_vm4 = vcmp.gt.f32.partialorder %v22904_v8, %v5677_v41  ;;  %vm6470_vm10 = vcmp.gt.f32.partialorder %v22902_v4, %v5649_v11  ;;  %vm6471_vm5 = vcmp.gt.f32.partialorder %v22904_v8, %v5649_v11 }
 0x841   : > { %v13120_v57 = vsel %vm6484_vm15, 1.0, %v22593_v0  ;;  %v13121_v46 = vsel %vm6485_vm4, 1.0, %v22593_v0  ;;  %v14463_v63 = vunpack.i.h.bf16 %v20538_v18  ;;  %v20755_v29 = vsel %vm9609_vm8, %v11085_v47, %v11081_v23 }
 0x842   : > { %22929 = vst [vmem:[#allocation189_spill] sm:$0xff] %v20755_v29  ;;  %v14769_v62 = vpack.i.bf16 %v13121_v46, %v13120_v57  ;;  %v13106_v44 = vsel %vm6470_vm10, 1.0, %v22593_v0  ;;  %v13107_v31 = vsel %vm6471_vm5, 1.0, %v22593_v0  ;;  %v20764_v25 = vrot.slane %v14388_v3, %v17076_v26 }
 0x843   : > { %v14694_v41 = vpack.i.bf16 %v13107_v31, %v13106_v44  ;;  %v14398_v11 = vunpack.i.h.bf16 %v20545_v22  ;;  %v14397_v17 = vunpack.i.l.bf16 %v20545_v22  ;;  %v20769_v47 = vrot.slane %v14387_v28, %v17073_v24 }
 0x844   : > { %14770 = vperm.xlu0 %13518, %v14769_v62   ;;  %v14462_v23 = vunpack.i.l.bf16 %v20538_v18  ;;  %v5685_v57 = vrot.slane %v22904_v8, %v17058_v32  ;;  %v5657_v46 = vrot.slane %v22902_v4, %v22663_v40  ;;  %v20777_v3 = vsel %vm9609_vm8, %v11148_v60, %v11144_v2  ;;  %v20792_v62 = vpop.permute.xlu1 %14475 }
 0x845   : > { %22930 = vst [vmem:[#allocation190_spill] sm:$0xff] %v20777_v3  ;;  %14695 = vperm.xlu1 %13512, %v14694_v41   ;;  %v20780_v44 = vrot.slane %v14463_v63, %v17076_v26  ;;  %v11265_v22 = vrot.slane %v14398_v11, %v17076_v26  ;;  %v11261_v28 = vrot.slane %v14397_v17, %v17073_v24  ;;  %v14408_v63 = vunpack.i.h.bf16 %v20578_v19 }
 0x846   : > { %vm6488_vm11 = vcmp.gt.f32.partialorder %v22902_v4, %v5685_v57  ;;  %vm6489_vm2 = vcmp.gt.f32.partialorder %v22904_v8, %v5685_v57  ;;  %vm6474_vm9 = vcmp.gt.f32.partialorder %v22902_v4, %v5657_v46  ;;  %vm6475_vm3 = vcmp.gt.f32.partialorder %v22904_v8, %v5657_v46  ;;  %v20799_v57 = vpop.permute.xlu0 %14540 }
 0x847   : > { %22931 = vst [vmem:[#allocation191_spill] sm:$0xff] %v20780_v44  ;;  %v13124_v18 = vsel %vm6488_vm11, 1.0, %v22593_v0  ;;  %v13125_v60 = vsel %vm6489_vm2, 1.0, %v22593_v0  ;;  %v13110_v2 = vsel %vm6474_vm9, 1.0, %v22593_v0  ;;  %v20795_v17 = vrot.slane %v14462_v23, %v17073_v24 }
 0x848   : > { %v14779_v31 = vpack.i.bf16 %v13125_v60, %v13124_v18  ;;  %v13111_v41 = vsel %vm6475_vm3, 1.0, %v22593_v0  ;;  %v14407_v11 = vunpack.i.l.bf16 %v20578_v19  ;;  %v11266_v46 = vsel %vm9609_vm8, %v11265_v22, %v11261_v28 }
 0x849   : > { %22932 = vst [vmem:[#allocation192_spill] sm:$0xff] %v20795_v17  ;;  %v14704_v44 = vpack.i.bf16 %v13111_v41, %v13110_v2  ;;  %v14473_v3 = vunpack.i.h.bf16 %v20572_v45  ;;  %v14472_v37 = vunpack.i.l.bf16 %v20572_v45  ;;  %v5693_v29 = vrot.slane %v22904_v8, %v17064_v38 }
 0x84a   : > { %14780 = vperm.xlu0 %13518, %v14779_v31   ;;  %v5733_v23 = vrot.slane %v22893_v55, %v17046_v15  ;;  %v14483_v18 = vunpack.i.h.bf16 %v20597_v42  ;;  %v14482_v19 = vunpack.i.l.bf16 %v20597_v42  ;;  %v11283_v60 = vrot.slane %v14408_v63, %v17076_v26 }
 0x84b   : > { %14705 = vperm.xlu1 %13512, %v14704_v44   ;;  %v14418_v22 = vunpack.i.h.bf16 %v20607_v34  ;;  %v14417_v28 = vunpack.i.l.bf16 %v20607_v34  ;;  %v5741_v45 = vrot.slane %v22893_v55, %v17049_v58  ;;  %v11279_v2 = vrot.slane %v14407_v11, %v17073_v24  ;;  %v20823_v34 = vpop.permute.xlu1 %14485 }
 0x84c   : > { %vm6492_vm6 = vcmp.gt.f32.partialorder %v22902_v4, %v5693_v29  ;;  %vm6493_vm12 = vcmp.gt.f32.partialorder %v22904_v8, %v5693_v29  ;;  %vm6512_vm0 = vcmp.gt.f32.partialorder %v22891_v7, %v5733_v23  ;;  %vm6513_vm7 = vcmp.gt.f32.partialorder %v22893_v55, %v5733_v23  ;;  %v20828_v29 = vpop.permute.xlu0 %14550 }
 0x84d   : > { %v13128_v15 = vsel %vm6492_vm6, 1.0, %v22593_v0  ;;  %v13129_v38 = vsel %vm6493_vm12, 1.0, %v22593_v0  ;;  %v13148_v42 = vsel %vm6512_vm0, 1.0, %v22593_v0  ;;  %v13149_v58 = vsel %vm6513_vm7, 1.0, %v22593_v0 }
 0x84e   : > { %v14789_v44 = vpack.i.bf16 %v13129_v38, %v13128_v15  ;;  %v11490_v63 = vrot.slane %v14483_v18, %v17076_v26  ;;  %v11486_v31 = vrot.slane %v14482_v19, %v17073_v24  ;;  %v14719_v41 = vpack.i.bf16 %v13149_v58, %v13148_v42 }
 0x84f   : > { %v11301_v11 = vrot.slane %v14418_v22, %v17076_v26  ;;  %v11297_v17 = vrot.slane %v14417_v28, %v17073_v24  ;;  %vm6516_vm1 = vcmp.gt.f32.partialorder %v22891_v7, %v5741_v45  ;;  %vm22933_vm13 = vcmask 1041409  }
 0x850   : > { %v12067_v23 = vsel %vm22933_vm13, %v20613_v12, %v11266_v46  ;;  %v11284_v15 = vsel %vm9609_vm8, %v11283_v60, %v11279_v2  ;;  %14790 = vperm.xlu0 %13518, %v14789_v44   ;;  %vm6517_vm14 = vcmp.gt.f32.partialorder %v22893_v55, %v5741_v45  ;;  %v13152_v18 = vsel %vm6516_vm1, 1.0, %v22593_v0  ;;  %14720 = vperm.xlu1 %13512, %v14719_v41   ;;  %v20851_v2 = vpop.permute.xlu1 %14495  ;;  %vm22937_vm3 = vmmov %vm22933_vm13 }
 0x851   : > { %v20839_v19 = vrot.slane %v14473_v3, %v17076_v26  ;;  %v20842_v38 = vrot.slane %v14472_v37, %v17073_v24  ;;  %v13153_v22 = vsel %vm6517_vm14, 1.0, %v22593_v0  ;;  %v14493_v28 = vunpack.i.h.bf16 %v20631_v21 }
 0x852   : > { %v14492_v12 = vunpack.i.l.bf16 %v20631_v21  ;;  %v14428_v46 = vunpack.i.h.bf16 %v20637_v36  ;;  %v14427_v60 = vunpack.i.l.bf16 %v20637_v36  ;;  %v5749_v45 = vrot.slane %v22893_v55, %v17058_v32  ;;  %v20866_v36 = vpop.permute.xlu0 %14560 }
 0x853   : > { %22934 = vst [vmem:[#allocation193_spill] sm:$0xff] %v20839_v19  ;;  %22935 = vst [vmem:[#allocation194_spill] sm:$0xff] %v20842_v38  ;;  %vm22936_vm15 = vcmask 1042434   ;;  %v20857_v37 = vsel %vm9609_vm8, %v11490_v63, %v11486_v31  ;;  %v20860_v42 = vsel %vm9609_vm8, %v11301_v11, %v11297_v17  ;;  %v14729_v44 = vpack.i.bf16 %v13153_v22, %v13152_v18  ;;  %v23061_v19 = vld [vmem:[#allocation17_spill] sm:$0xff]  ;;  %v23082_v38 = vld [vmem:[#allocation38_spill] sm:$0xff] }
 0x854   : > { %v20854_v3 = vsel %vm22936_vm15, %v11284_v15, %v12067_v23  ;;  %vm6520_vm4 = vcmp.gt.f32.partialorder %v22891_v7, %v5749_v45  ;;  %vm6521_vm10 = vcmp.gt.f32.partialorder %v22893_v55, %v5749_v45  ;;  %v14503_v21 = vunpack.i.h.bf16 %v20661_v6  ;;  %vm22938_vm6 = vmmov %vm22936_vm15 }
 0x855   : > { %v14438_v32 = vunpack.i.h.bf16 %v20668_v51  ;;  %14730 = vperm.xlu1 %13512, %v14729_v44   ;;  %v11508_v58 = vrot.slane %v14493_v28, %v17076_v26  ;;  %v13156_v63 = vsel %vm6520_vm4, 1.0, %v22593_v0  ;;  %v13157_v31 = vsel %vm6521_vm10, 1.0, %v22593_v0  ;;  %v20884_v28 = vpop.permute.xlu1 %14505 }
 0x856   : > { %v14502_v17 = vunpack.i.l.bf16 %v20661_v6  ;;  %v11504_v41 = vrot.slane %v14492_v12, %v17073_v24  ;;  %v20874_v7 = vrot.slane %v14428_v46, %v17076_v26  ;;  %v20877_v55 = vrot.slane %v14427_v60, %v17073_v24 }
 0x857   : > { %v14437_v11 = vunpack.i.l.bf16 %v20668_v51  ;;  %v14739_v23 = vpack.i.bf16 %v13157_v31, %v13156_v63  ;;  %v11121_v15 = vrot.slane %v14438_v32, %v17076_v26  ;;  %v5665_v18 = vrot.slane %v22904_v8, %v16936_v56  ;;  %v20899_v32 = vpop.permute.xlu0 %14570 }
 0x858   : > { %v14448_v22 = vunpack.i.h.bf16 %v20703_v50  ;;  %v11526_v6 = vrot.slane %v14503_v21, %v17076_v26  ;;  %v14447_v46 = vunpack.i.l.bf16 %v20703_v50  ;;  %v5673_v60 = vrot.slane %v22904_v8, %v17052_v54 }
 0x859   : > { %v11117_v12 = vrot.slane %v14437_v11, %v17073_v24  ;;  %14740 = vperm.xlu1 %13512, %v14739_v23   ;;  %v11522_v51 = vrot.slane %v14502_v17, %v17073_v24  ;;  %vm6478_vm5 = vcmp.gt.f32.partialorder %v22902_v4, %v5665_v18  ;;  %vm6479_vm11 = vcmp.gt.f32.partialorder %v22904_v8, %v5665_v18 }
 0x85a   : > { %v14513_v56 = vunpack.i.h.bf16 %v20697_v61  ;;  %v13114_v45 = vsel %vm6478_vm5, 1.0, %v22593_v0  ;;  %v13115_v44 = vsel %vm6479_vm11, 1.0, %v22593_v0  ;;  %v14512_v21 = vunpack.i.l.bf16 %v20697_v61  ;;  %vm22947_vm11 = vmmov %vm22937_vm3 }
 0x85b   : > { %v11139_v50 = vrot.slane %v14448_v22, %v17076_v26  ;;  %v11122_v54 = vsel %vm9609_vm8, %v11121_v15, %v11117_v12  ;;  %v14754_v63 = vpack.i.bf16 %v13115_v44, %v13114_v45  ;;  %v11135_v31 = vrot.slane %v14447_v46, %v17073_v24  ;;  %v20912_v12 = vpop.permute.xlu1 %14515 }
 0x85c   : > { %vm6482_vm2 = vcmp.gt.f32.partialorder %v22902_v4, %v5673_v60  ;;  %vm6483_vm9 = vcmp.gt.f32.partialorder %v22904_v8, %v5673_v60  ;;  %v14523_v11 = vunpack.i.h.bf16 %v20727_v35  ;;  %v14522_v23 = vunpack.i.l.bf16 %v20727_v35 }
 0x85d   : > { %v13118_v17 = vsel %vm6482_vm2, 1.0, %v22593_v0  ;;  %14755 = vperm.xlu1 %13512, %v14754_v63   ;;  %v11140_v61 = vsel %vm9609_vm8, %v11139_v50, %v11135_v31  ;;  %v13119_v18 = vsel %vm6483_vm9, 1.0, %v22593_v0  ;;  %v14458_v15 = vunpack.i.h.bf16 %v20729_v59  ;;  %vm22948_vm2 = vmmov %vm22938_vm6 }
 0x85e   : > { %v14457_v22 = vunpack.i.l.bf16 %v20729_v59  ;;  %v20915_v46 = vsel %vm9609_vm8, %v11508_v58, %v11504_v41  ;;  %v20918_v60 = vsel %vm9609_vm8, %v11526_v6, %v11522_v51  ;;  %v20921_v45 = vrot.slane %v14513_v56, %v17076_v26  ;;  %v20937_v56 = vpop.permute.xlu0 %14580 }
 0x85f   : > { %v20924_v35 = vrot.slane %v14512_v21, %v17073_v24  ;;  %v12053_v44 = vsel %vm22937_vm3, %v20741_v1, %v11122_v54  ;;  %v14764_v50 = vpack.i.bf16 %v13119_v18, %v13118_v17  ;;  %v5681_v59 = vrot.slane %v22904_v8, %v17061_v5 }
 0x860   : > { %v14533_v63 = vunpack.i.h.bf16 %v20759_v49  ;;  %v20932_v58 = vsel %vm22938_vm6, %v11140_v61, %v12053_v44  ;;  %v11346_v41 = vrot.slane %v14523_v11, %v17076_v26  ;;  %v11342_v6 = vrot.slane %v14522_v23, %v17073_v24  ;;  %v20951_v18 = vpop.permute.xlu1 %14525 }
 0x861   : > { %22939 = vst [vmem:[#allocation195_spill] sm:$0xff] %v20932_v58  ;;  %v14532_v51 = vunpack.i.l.bf16 %v20759_v49  ;;  %14765 = vperm.xlu1 %13512, %v14764_v50   ;;  %v11157_v1 = vrot.slane %v14458_v15, %v17076_v26  ;;  %v11153_v21 = vrot.slane %v14457_v22, %v17073_v24  ;;  %vm6486_vm12 = vcmp.gt.f32.partialorder %v22902_v4, %v5681_v59  ;;  %v23088_v58 = vld [vmem:[#allocation39_spill] sm:$0xff] }
 0x862   : > { %vm6487_vm0 = vcmp.gt.f32.partialorder %v22904_v8, %v5681_v59  ;;  %v13122_v5 = vsel %vm6486_vm12, 1.0, %v22593_v0  ;;  %v14468_v31 = vunpack.i.h.bf16 %v20761_v13  ;;  %v14467_v17 = vunpack.i.l.bf16 %v20761_v13 }
 0x863   : > { %v13123_v54 = vsel %vm6487_vm0, 1.0, %v22593_v0  ;;  %v11364_v11 = vrot.slane %v14533_v63, %v17076_v26  ;;  %v11360_v23 = vrot.slane %v14532_v51, %v17073_v24  ;;  %v5689_v61 = vrot.slane %v22904_v8, %v22663_v40 }
 0x864   : > { %v14774_v49 = vpack.i.bf16 %v13123_v54, %v13122_v5  ;;  %v20954_v15 = vsel %vm9609_vm8, %v11346_v41, %v11342_v6  ;;  %v14543_v22 = vunpack.i.h.bf16 %v20799_v57  ;;  %v14478_v44 = vunpack.i.h.bf16 %v20792_v62 }
 0x865   : > { %v14477_v50 = vunpack.i.l.bf16 %v20792_v62  ;;  %v20960_v13 = vsel %vm9609_vm8, %v11157_v1, %v11153_v21  ;;  %vm6490_vm7 = vcmp.gt.f32.partialorder %v22902_v4, %v5689_v61  ;;  %vm6491_vm1 = vcmp.gt.f32.partialorder %v22904_v8, %v5689_v61  ;;  %v20971_v62 = vpop.permute.xlu0 %14590 }
 0x866   : > { %22940 = vst [vmem:[#allocation196_spill] sm:$0xff] %v20960_v13  ;;  %14775 = vperm.xlu1 %13512, %v14774_v49   ;;  %v14542_v40 = vunpack.i.l.bf16 %v20799_v57  ;;  %v20966_v59 = vrot.slane %v14468_v31, %v17076_v26  ;;  %v13126_v63 = vsel %vm6490_vm7, 1.0, %v22593_v0  ;;  %v13127_v41 = vsel %vm6491_vm1, 1.0, %v22593_v0  ;;  %v20984_v54 = vpop.permute.xlu1 %14535  ;;  %v23087_v13 = vld [vmem:[#allocation7_spill] sm:$0xff] }
 0x867   : > { %v11481_v6 = vrot.slane %v14478_v44, %v17076_v26  ;;  %v20974_v51 = vsel %vm9609_vm8, %v11364_v11, %v11360_v23  ;;  %v20977_v4 = vrot.slane %v14467_v17, %v17073_v24  ;;  %v14784_v8 = vpack.i.bf16 %v13127_v41, %v13126_v63  ;;  %v22942_v44 = vld [vmem:[#allocation8_spill] sm:$0xff] }
 0x868   : > { %v11477_v57 = vrot.slane %v14477_v50, %v17073_v24  ;;  %v11382_v1 = vrot.slane %v14543_v22, %v17076_v26  ;;  %v14553_v21 = vunpack.i.h.bf16 %v20828_v29  ;;  %v14488_v5 = vunpack.i.h.bf16 %v20823_v34 }
 0x869   : > { %v14487_v0 = vunpack.i.l.bf16 %v20823_v34  ;;  %v11378_v31 = vrot.slane %v14542_v40, %v17073_v24  ;;  %v14552_v17 = vunpack.i.l.bf16 %v20828_v29  ;;  %v9799_v11 = vsel %vm9609_vm8, %v18132_v39, %v18142_v53  ;;  %v21010_v63 = vpop.permute.xlu0 %14600 }
 0x86a   : > { %14785 = vperm.xlu1 %13512, %v14784_v8   ;;  %v11482_v49 = vsel %vm9609_vm8, %v11481_v6, %v11477_v57  ;;  %v11499_v23 = vrot.slane %v14488_v5, %v17076_v26  ;;  %v9808_v34 = vsel %vm9609_vm8, %v18184_v10, %v18187_v30  ;;  %vm22941_vm13 = vcmask 1043459  }
 0x86b   : > { %v11495_v61 = vrot.slane %v14487_v0, %v17073_v24  ;;  %v11922_v22 = vsel %vm22941_vm13, %v18117_v16, %v18129_v48  ;;  %v9817_v29 = vsel %vm9609_vm8, %v18178_v43, %v18181_v20  ;;  %vm22943_vm14 = vcmask 1044484   ;;  %v21016_v41 = vpop.permute.xlu1 %14545  ;;  %vm22951_vm9 = vmmov %vm22941_vm13 }
 0x86c   : > { %v11923_v50 = vsel %vm22943_vm14, %v22942_v44, %v11922_v22  ;;  %v14563_v39 = vunpack.i.h.bf16 %v20866_v36  ;;  %v14562_v53 = vunpack.i.l.bf16 %v20866_v36  ;;  %vm22944_vm15 = vcmask 1045509   ;;  %v22955_v44 = vld [vmem:[#allocation25_spill] sm:$0xff]  ;;  %vm22957_vm3 = vmmov %vm22943_vm14 }
 0x86d   : > { %v11924_v40 = vsel %vm22944_vm15, %v9799_v11, %v11923_v50  ;;  %vm12162_vm4 = vcmask 130048   ;;  %v14498_v10 = vunpack.i.h.bf16 %v20851_v2  ;;  %v14497_v30 = vunpack.i.l.bf16 %v20851_v2  ;;  %vm22958_vm6 = vmmov %vm22944_vm15 }
 0x86e   : > { %v11500_v16 = vsel %vm9609_vm8, %v11499_v23, %v11495_v61  ;;  %vm22945_vm10 = vcmask 1046534   ;;  %v11562_v43 = vrot.slane %v14563_v39, %v17076_v26  ;;  %v11558_v20 = vrot.slane %v14562_v53, %v17073_v24  ;;  %v22949_v61 = vld [vmem:[#allocation47_spill] sm:$0xff]  ;;  %v22956_v39 = vld [vmem:[#allocation48_spill] sm:$0xff]  ;;  %vm22967_vm7 = vmmov %vm22951_vm9 }
 0x86f   : > { %v11925_v48 = vsel %vm22945_vm10, %v9808_v34, %v11924_v40  ;;  %v21019_v36 = vrot.slane %v14553_v21, %v17076_v26  ;;  %vm22946_vm5 = vcmask 1047559   ;;  %v11517_v8 = vrot.slane %v14498_v10, %v17076_v26  ;;  %v22950_v34 = vld [vmem:[#allocation23_spill] sm:$0xff]  ;;  %vm22959_vm12 = vmmov %vm22945_vm10 }
 0x870   : > { %v11926_v6 = vsel %vm22946_vm5, %v9817_v29, %v11925_v48  ;;  %v11513_v2 = vrot.slane %v14497_v30, %v17073_v24  ;;  %v21025_v57 = vsel %vm9609_vm8, %v11382_v1, %v11378_v31  ;;  %v12088_v5 = vsel %vm22947_vm11, %v20857_v37, %v11482_v49  ;;  %v22952_v49 = vld [vmem:[#allocation36_spill] sm:$0xff]  ;;  %v22954_v29 = vld [vmem:[#allocation37_spill] sm:$0xff]  ;;  %v21060_v30 = vpop.permute.xlu0 %14610  ;;  %vm22962_vm0 = vmmov %vm22946_vm5 }
 0x871   : > { %v21030_v0 = vrot.slane %v14552_v17, %v17073_v24  ;;  %v12169_v11 = vsel %vm12162_vm4, %v11926_v6, 0.0  ;;  %v21034_v21 = vsel %vm22948_vm2, %v11500_v16, %v12088_v5  ;;  %v9736_v23 = vsel %vm9609_vm8, %v18591_v33, %v18594_v14  ;;  %v22953_v17 = vld [vmem:[#allocation35_spill] sm:$0xff]  ;;  %vm22969_vm1 = vmmov %vm22957_vm3 }
 0x872   : > { %12170 = vadd.xlane.f32.xlu0 %v12169_v11  ;;  %v11915_v1 = vsel %vm22951_vm9, %v22950_v34, %v22949_v61  ;;  %v14573_v31 = vunpack.i.h.bf16 %v20899_v32  ;;  %v21044_v37 = vsel %vm9609_vm8, %v11562_v43, %v11558_v20  ;;  %v9727_v22 = vsel %vm9609_vm8, %v22953_v17, %v22952_v49  ;;  %v22960_v20 = vld [vmem:[#allocation44_spill] sm:$0xff]  ;;  %v22961_v6 = vld [vmem:[#allocation43_spill] sm:$0xff]  ;;  %v22963_v11 = vld [vmem:[#allocation57_spill] sm:$0xff] }
 0x873   : > { %v9745_v50 = vsel %vm9609_vm8, %v22955_v44, %v22954_v29  ;;  %v11916_v33 = vsel %vm22957_vm3, %v22956_v39, %v11915_v1  ;;  %v21055_v14 = vsel %vm9609_vm8, %v11517_v8, %v11513_v2  ;;  %v14572_v40 = vunpack.i.l.bf16 %v20899_v32  ;;  %v21068_v8 = vpop.permute.xlu1 %14555  ;;  %v22964_v32 = vld [vmem:[#allocation56_spill] sm:$0xff]  ;;  %v22965_v34 = vld [vmem:[#allocation54_spill] sm:$0xff]  ;;  %v22968_v49 = vld [vmem:[#allocation55_spill] sm:$0xff] }
 0x874   : > { %v11917_v53 = vsel %vm22958_vm6, %v9727_v22, %v11916_v33  ;;  %v14508_v10 = vunpack.i.h.bf16 %v20884_v28  ;;  %v11580_v48 = vrot.slane %v14573_v31, %v17076_v26  ;;  %v14507_v43 = vunpack.i.l.bf16 %v20884_v28  ;;  %v22966_v1 = vld [vmem:[#allocation42_spill] sm:$0xff]  ;;  %vm22970_vm13 = vmmov %vm22958_vm6 }
 0x875   : > { %v11918_v16 = vsel %vm22959_vm12, %v9736_v23, %v11917_v53  ;;  %v10087_v5 = vsel %vm9609_vm8, %v22961_v6, %v22960_v20  ;;  %v10096_v61 = vsel %vm9609_vm8, %v22964_v32, %v22963_v11  ;;  %v11950_v23 = vsel %vm22967_vm7, %v22966_v1, %v22965_v34  ;;  %v22971_v53 = vld [vmem:[#allocation46_spill] sm:$0xff]  ;;  %vm22973_vm14 = vmmov %vm22945_vm10  ;;  %v22976_v32 = vld [vmem:[#allocation65_spill] sm:$0xff] }
 0x876   : > { %v11919_v2 = vsel %vm22962_vm0, %v9745_v50, %v11918_v16  ;;  %v14583_v31 = vunpack.i.h.bf16 %v20937_v56  ;;  %v11951_v17 = vsel %vm22969_vm1, %v22968_v49, %v11950_v23  ;;  %v14582_v22 = vunpack.i.l.bf16 %v20937_v56  ;;  %v22972_v16 = vld [vmem:[#allocation45_spill] sm:$0xff]  ;;  %vm22974_vm15 = vmmov %vm22962_vm0  ;;  %v22977_v34 = vld [vmem:[#allocation63_spill] sm:$0xff]  ;;  %v21103_v23 = vpop.permute.xlu0 %14620 }
 0x877   : > { %v12166_v28 = vsel %vm12162_vm4, %v11919_v2, 0.0  ;;  %v14518_v29 = vunpack.i.h.bf16 %v20912_v12  ;;  %v11576_v44 = vrot.slane %v14572_v40, %v17073_v24  ;;  %v21085_v50 = vrot.slane %v14508_v10, %v17076_v26  ;;  %v22975_v10 = vld [vmem:[#allocation67_spill] sm:$0xff]  ;;  %vm22979_vm10 = vmmov %vm22967_vm7  ;;  %v22981_v49 = vld [vmem:[#allocation50_spill] sm:$0xff] }
 0x878   : > { %12167 = vadd.xlane.f32.xlu0 %v12166_v28  ;;  %v11952_v39 = vsel %vm22970_vm13, %v10087_v5, %v11951_v17  ;;  %v14517_v33 = vunpack.i.l.bf16 %v20912_v12  ;;  %v10105_v20 = vsel %vm9609_vm8, %v22972_v16, %v22971_v53  ;;  %v11598_v56 = vrot.slane %v14583_v31, %v17076_v26  ;;  %v22978_v12 = vld [vmem:[#allocation49_spill] sm:$0xff]  ;;  %v22980_v28 = vld [vmem:[#allocation51_spill] sm:$0xff]  ;;  %vm22983_vm5 = vmmov %vm22969_vm1 }
 0x879   : > { %v11953_v6 = vsel %vm22973_vm14, %v10096_v61, %v11952_v39  ;;  %v11337_v2 = vrot.slane %v14518_v29, %v17076_v26  ;;  %v9952_v5 = vsel %vm9609_vm8, %v22976_v32, %v22975_v10  ;;  %v11936_v1 = vsel %vm22979_vm10, %v22978_v12, %v22977_v34  ;;  %v22982_v29 = vld [vmem:[#allocation64_spill] sm:$0xff]  ;;  %v22984_v16 = vld [vmem:[#allocation53_spill] sm:$0xff]  ;;  %vm22986_vm11 = vmmov %vm22958_vm6 }
 0x87a   : > { %v11954_v11 = vsel %vm22974_vm15, %v10105_v20, %v11953_v6  ;;  %v11333_v40 = vrot.slane %v14517_v33, %v17073_v24  ;;  %v11594_v31 = vrot.slane %v14582_v22, %v17073_v24  ;;  %v9943_v17 = vsel %vm9609_vm8, %v22981_v49, %v22980_v28  ;;  %v21112_v33 = vpop.permute.xlu1 %14565  ;;  %v22985_v20 = vld [vmem:[#allocation52_spill] sm:$0xff]  ;;  %vm22987_vm2 = vmmov %vm22959_vm12  ;;  %v22994_v49 = vld [vmem:[#allocation86_spill] sm:$0xff] }
 0x87b   : > { %v12181_v61 = vsel %vm12162_vm4, %v11954_v11, 0.0  ;;  %v11937_v39 = vsel %vm22983_vm5, %v22982_v29, %v11936_v1  ;;  %v9961_v6 = vsel %vm9609_vm8, %v22985_v20, %v22984_v16  ;;  %v14528_v22 = vunpack.i.h.bf16 %v20951_v18  ;;  %vm22989_vm9 = vmmov %vm22962_vm0  ;;  %v22999_v20 = vld [vmem:[#allocation76_spill] sm:$0xff] }
 0x87c   : > { %12182 = vadd.xlane.f32.xlu0 %v12181_v61  ;;  %v11338_v53 = vsel %vm9609_vm8, %v11337_v2, %v11333_v40  ;;  %v11938_v11 = vsel %vm22986_vm11, %v9943_v17, %v11937_v39  ;;  %v14593_v32 = vunpack.i.h.bf16 %v20971_v62  ;;  %v14592_v34 = vunpack.i.l.bf16 %v20971_v62  ;;  %v22995_v17 = vld [vmem:[#allocation73_spill] sm:$0xff]  ;;  %vm22996_vm6 = vmmov %vm22967_vm7 }
 0x87d   : > { %v11939_v10 = vsel %vm22987_vm2, %v9952_v5, %v11938_v11  ;;  %v14527_v12 = vunpack.i.l.bf16 %v20951_v18  ;;  %v21125_v1 = vsel %vm9609_vm8, %v11580_v48, %v11576_v44  ;;  %v21128_v2 = vrot.slane %v14507_v43, %v17073_v24  ;;  %v22992_v48 = vld [vmem:[#allocation89_spill] sm:$0xff]  ;;  %v22993_v44 = vld [vmem:[#allocation88_spill] sm:$0xff]  ;;  %vm23002_vm12 = vmmov %vm22969_vm1 }
 0x87e   : > { %22988 = vst [vmem:[#allocation8_spill] sm:$0xff] %v21125_v1  ;;  %v11940_v40 = vsel %vm22989_vm9, %v9961_v6, %v11939_v10  ;;  %v11355_v61 = vrot.slane %v14528_v22, %v17076_v26  ;;  %v21133_v28 = vsel %vm9609_vm8, %v11598_v56, %v11594_v31  ;;  %vm22991_vm3 = vcmask 1041409   ;;  %v21147_v31 = vpop.permute.xlu0 %14630  ;;  %v23000_v6 = vld [vmem:[#allocation75_spill] sm:$0xff]  ;;  %vm23003_vm0 = vmmov %vm22986_vm11  ;;  %v23045_v1 = vld [vmem:[#allocation128_spill] sm:$0xff] }
 0x87f   : > { %22990 = vst [vmem:[#allocation47_spill] sm:$0xff] %v21133_v28  ;;  %v12074_v5 = vsel %vm22991_vm3, %v20954_v15, %v11338_v53  ;;  %v12175_v62 = vsel %vm12162_vm4, %v11940_v40, 0.0  ;;  %v11351_v18 = vrot.slane %v14527_v12, %v17073_v24  ;;  %v10384_v43 = vsel %vm9609_vm8, %v22993_v44, %v22992_v48  ;;  %v21149_v15 = vpop.permute.xlu1 %14575  ;;  %v23001_v22 = vld [vmem:[#allocation87_spill] sm:$0xff]  ;;  %v23005_v48 = vld [vmem:[#allocation13_spill] sm:$0xff]  ;;  %vm23006_vm7 = vmmov %vm22987_vm2 }
 0x880   : > { %12176 = vadd.xlane.f32.xlu0 %v12175_v62  ;;  %v11978_v29 = vsel %vm22996_vm6, %v22995_v17, %v22994_v49  ;;  %v14603_v39 = vunpack.i.h.bf16 %v21010_v63  ;;  %v14602_v56 = vunpack.i.l.bf16 %v21010_v63  ;;  %v21152_v53 = vrot.slane %v14593_v32, %v17076_v26  ;;  %v23004_v32 = vld [vmem:[#allocation16_spill] sm:$0xff]  ;;  %vm23007_vm1 = vmmov %vm22989_vm9 }
 0x881   : > { %v21155_v16 = vrot.slane %v14592_v34, %v17073_v24  ;;  %v10375_v11 = vsel %vm9609_vm8, %v23000_v6, %v22999_v20  ;;  %v11979_v10 = vsel %vm23002_vm12, %v23001_v22, %v11978_v29  ;;  %v11356_v12 = vsel %vm9609_vm8, %v11355_v61, %v11351_v18  ;;  %v23008_v20 = vld [vmem:[#allocation83_spill] sm:$0xff]  ;;  %v23009_v61 = vld [vmem:[#allocation82_spill] sm:$0xff]  ;;  %vm23014_vm13 = vmmov %vm22996_vm6 }
 0x882   : > { %22997 = vst [vmem:[#allocation23_spill] sm:$0xff] %v21152_v53  ;;  %v11980_v63 = vsel %vm23003_vm0, %v10375_v11, %v11979_v10  ;;  %v14538_v40 = vunpack.i.h.bf16 %v20984_v54  ;;  %v14537_v62 = vunpack.i.l.bf16 %v20984_v54  ;;  %v10393_v34 = vsel %vm9609_vm8, %v23005_v48, %v23004_v32  ;;  %v23010_v6 = vld [vmem:[#allocation98_spill] sm:$0xff]  ;;  %v23011_v11 = vld [vmem:[#allocation97_spill] sm:$0xff]  ;;  %v23012_v22 = vld [vmem:[#allocation95_spill] sm:$0xff] }
 0x883   : > { %22998 = vst [vmem:[#allocation36_spill] sm:$0xff] %v21155_v16  ;;  %v11981_v44 = vsel %vm23006_vm7, %v10384_v43, %v11980_v63  ;;  %v11418_v49 = vrot.slane %v14603_v39, %v17076_v26  ;;  %v11414_v17 = vrot.slane %v14602_v56, %v17073_v24  ;;  %v10231_v18 = vsel %vm9609_vm8, %v23009_v61, %v23008_v20  ;;  %v23013_v10 = vld [vmem:[#allocation79_spill] sm:$0xff]  ;;  %v23016_v56 = vld [vmem:[#allocation96_spill] sm:$0xff]  ;;  %vm23017_vm15 = vmmov %vm22983_vm5 }
 0x884   : > { %v11982_v29 = vsel %vm23007_vm1, %v10393_v34, %v11981_v44  ;;  %v10240_v54 = vsel %vm9609_vm8, %v23011_v11, %v23010_v6  ;;  %v11964_v32 = vsel %vm23014_vm13, %v23013_v10, %v23012_v22  ;;  %vm23015_vm14 = vcmask 1042434   ;;  %v21189_v34 = vpop.permute.xlu1 %14585  ;;  %vm23018_vm10 = vmmov %vm23003_vm0  ;;  %v23020_v11 = vld [vmem:[#allocation84_spill] sm:$0xff] }
 0x885   : > { %v21183_v43 = vsel %vm23015_vm14, %v11356_v12, %v12074_v5  ;;  %v12193_v39 = vsel %vm12162_vm4, %v11982_v29, 0.0  ;;  %v11965_v63 = vsel %vm23017_vm15, %v23016_v56, %v11964_v32  ;;  %v14613_v48 = vunpack.i.h.bf16 %v21060_v30  ;;  %v21195_v5 = vpop.permute.xlu0 %14640  ;;  %v23019_v29 = vld [vmem:[#allocation85_spill] sm:$0xff]  ;;  %vm23021_vm5 = vmmov %vm22987_vm2  ;;  %v23054_v16 = vld [vmem:[#allocation12_spill] sm:$0xff] }
 0x886   : > { %12194 = vadd.xlane.f32.xlu0 %v12193_v39  ;;  %v11373_v44 = vrot.slane %v14538_v40, %v17076_v26  ;;  %v11369_v20 = vrot.slane %v14537_v62, %v17073_v24  ;;  %v11966_v61 = vsel %vm23018_vm10, %v10231_v18, %v11965_v63  ;;  %v14612_v6 = vunpack.i.l.bf16 %v21060_v30  ;;  %vm23022_vm11 = vmmov %vm23007_vm1  ;;  %v23025_v63 = vld [vmem:[#allocation118_spill] sm:$0xff] }
 0x887   : > { %v21198_v12 = vsel %vm9609_vm8, %v11418_v49, %v11414_v17  ;;  %v10249_v22 = vsel %vm9609_vm8, %v23020_v11, %v23019_v29  ;;  %v11967_v10 = vsel %vm23021_vm5, %v10240_v54, %v11966_v61  ;;  %v14548_v32 = vunpack.i.h.bf16 %v21016_v41  ;;  %v23023_v49 = vld [vmem:[#allocation121_spill] sm:$0xff]  ;;  %v23024_v17 = vld [vmem:[#allocation120_spill] sm:$0xff]  ;;  %vm23027_vm2 = vmmov %vm22996_vm6 }
 0x888   : > { %v11968_v40 = vsel %vm23022_vm11, %v10249_v22, %v11967_v10  ;;  %v11436_v62 = vrot.slane %v14613_v48, %v17076_v26  ;;  %v11432_v18 = vrot.slane %v14612_v6, %v17073_v24  ;;  %v14547_v30 = vunpack.i.l.bf16 %v21016_v41  ;;  %v23026_v29 = vld [vmem:[#allocation105_spill] sm:$0xff]  ;;  %v23028_v48 = vld [vmem:[#allocation108_spill] sm:$0xff]  ;;  %v23029_v6 = vld [vmem:[#allocation107_spill] sm:$0xff] }
 0x889   : > { %v12187_v39 = vsel %vm12162_vm4, %v11968_v40, 0.0  ;;  %v10672_v56 = vsel %vm9609_vm8, %v23024_v17, %v23023_v49  ;;  %v12006_v54 = vsel %vm23027_vm2, %v23026_v29, %v23025_v63  ;;  %v14623_v61 = vunpack.i.h.bf16 %v21103_v23  ;;  %v23030_v22 = vld [vmem:[#allocation119_spill] sm:$0xff]  ;;  %vm23031_vm9 = vmmov %vm23002_vm12 }
 0x88a   : > { %v21218_v11 = vsel %vm9609_vm8, %v11373_v44, %v11369_v20  ;;  %12188 = vadd.xlane.f32.xlu0 %v12187_v39  ;;  %v10663_v41 = vsel %vm9609_vm8, %v23029_v6, %v23028_v48  ;;  %v12007_v10 = vsel %vm23031_vm9, %v23030_v22, %v12006_v54  ;;  %v14622_v40 = vunpack.i.l.bf16 %v21103_v23  ;;  %vm23032_vm3 = vmmov %vm23003_vm0  ;;  %v21232_v20 = vpop.permute.xlu1 %14595  ;;  %v23034_v54 = vld [vmem:[#allocation29_spill] sm:$0xff]  ;;  %v23035_v48 = vld [vmem:[#allocation28_spill] sm:$0xff]  ;;  %v21244_v6 = vpop.permute.xlu0 %14650 }
 0x88b   : > { %v21227_v49 = vrot.slane %v14548_v32, %v17076_v26  ;;  %v12008_v17 = vsel %vm23032_vm3, %v10663_v41, %v12007_v10  ;;  %v14558_v63 = vunpack.i.h.bf16 %v21068_v8  ;;  %v14557_v44 = vunpack.i.l.bf16 %v21068_v8  ;;  %vm23036_vm6 = vmmov %vm23021_vm5  ;;  %v23038_v22 = vld [vmem:[#allocation130_spill] sm:$0xff]  ;;  %v23039_v10 = vld [vmem:[#allocation129_spill] sm:$0xff] }
 0x88c   : > { %v21235_v39 = vsel %vm9609_vm8, %v11436_v62, %v11432_v18  ;;  %v21238_v29 = vrot.slane %v14547_v30, %v17073_v24  ;;  %v10681_v23 = vsel %vm9609_vm8, %v23035_v48, %v23034_v54  ;;  %v12009_v32 = vsel %vm23036_vm6, %v10672_v56, %v12008_v17  ;;  %vm23037_vm12 = vmmov %vm23007_vm1  ;;  %v23040_v18 = vld [vmem:[#allocation127_spill] sm:$0xff]  ;;  %v23044_v56 = vld [vmem:[#allocation114_spill] sm:$0xff] }
 0x88d   : > { %23033 = vst [vmem:[#allocation35_spill] sm:$0xff] %v21235_v39  ;;  %v12010_v41 = vsel %vm23037_vm12, %v10681_v23, %v12009_v32  ;;  %v11454_v8 = vrot.slane %v14623_v61, %v17076_v26  ;;  %v10528_v62 = vsel %vm9609_vm8, %v23039_v10, %v23038_v22  ;;  %v23041_v39 = vld [vmem:[#allocation111_spill] sm:$0xff]  ;;  %vm23042_vm0 = vmmov %vm23027_vm2  ;;  %v11450_v54 = vrot.slane %v14622_v40, %v17073_v24  ;;  %v23048_v10 = vld [vmem:[#allocation21_spill] sm:$0xff] }
 0x88e   : > { %v11992_v30 = vsel %vm23042_vm0, %v23041_v39, %v23040_v18  ;;  %v12205_v28 = vsel %vm12162_vm4, %v12010_v41, 0.0  ;;  %v23043_v48 = vld [vmem:[#allocation115_spill] sm:$0xff]  ;;  %vm23046_vm7 = vmmov %vm23031_vm9  ;;  %v11553_v61 = vrot.slane %v14558_v63, %v17076_v26  ;;  %v11549_v32 = vrot.slane %v14557_v44, %v17073_v24  ;;  %v23049_v39 = vld [vmem:[#allocation32_spill] sm:$0xff] }
 0x88f   : > { %v10519_v17 = vsel %vm9609_vm8, %v23044_v56, %v23043_v48  ;;  %v11993_v23 = vsel %vm23046_vm7, %v23045_v1, %v11992_v30  ;;  %12206 = vadd.xlane.f32.xlu0 %v12205_v28  ;;  %vm23047_vm1 = vmmov %vm23032_vm3  ;;  %v9655_v41 = vsel %vm9609_vm8, %v23049_v39, %v23048_v10  ;;  %v23050_v18 = vld [vmem:[#allocation117_spill] sm:$0xff]  ;;  %v23051_v40 = vld [vmem:[#allocation116_spill] sm:$0xff]  ;;  %v21277_v30 = vpop.permute.xlu1 %14605 }
 0x890   : > { %v11994_v22 = vsel %vm23047_vm1, %v10519_v17, %v11993_v23  ;;  %v10537_v53 = vsel %vm9609_vm8, %v23051_v40, %v23050_v18  ;;  %vm23052_vm13 = vmmov %vm23021_vm5  ;;  %v23053_v56 = vld [vmem:[#allocation24_spill] sm:$0xff]  ;;  %v23055_v28 = vld [vmem:[#allocation9_spill] sm:$0xff] }
 0x891   : > { %v11995_v48 = vsel %vm23052_vm13, %v10528_v62, %v11994_v22  ;;  %v9664_v1 = vsel %vm9609_vm8, %v23054_v16, %v23053_v56  ;;  %v23056_v63 = vld [vmem:[#allocation31_spill] sm:$0xff]  ;;  %vm23057_vm14 = vmmov %vm23042_vm0  ;;  %v23059_v23 = vld [vmem:[#allocation34_spill] sm:$0xff]  ;;  %v14568_v62 = vunpack.i.h.bf16 %v21112_v33  ;;  %v21287_v22 = vsel %vm9609_vm8, %v11454_v8, %v11450_v54 }
 0x892   : > { %v11908_v44 = vsel %vm23057_vm14, %v23056_v63, %v23055_v28  ;;  %vm23058_vm15 = vmmov %vm23022_vm11  ;;  %v23060_v10 = vld [vmem:[#allocation33_spill] sm:$0xff]  ;;  %23063 = vst [vmem:[#allocation37_spill] sm:$0xff] %v21287_v22  ;;  %v14567_v56 = vunpack.i.l.bf16 %v21112_v33  ;;  %v21292_v28 = vpop.permute.xlu0 %14660  ;;  %v14632_v63 = vunpack.i.l.bf16 %v21147_v31 }
 0x893   : > { %v11996_v17 = vsel %vm23058_vm15, %v10537_v53, %v11995_v48  ;;  %v9673_v39 = vsel %vm9609_vm8, %v23060_v10, %v23059_v23  ;;  %vm23062_vm10 = vmmov %vm23046_vm7  ;;  %v11554_v53 = vsel %vm9609_vm8, %v11553_v61, %v11549_v32  ;;  %v11571_v54 = vrot.slane %v14568_v62, %v17076_v26  ;;  %v23069_v61 = vld [vmem:[#allocation153_spill] sm:$0xff]  ;;  %v23070_v32 = vld [vmem:[#allocation152_spill] sm:$0xff] }
 0x894   : > { %v11909_v18 = vsel %vm23062_vm10, %v23061_v19, %v11908_v44  ;;  %v12199_v16 = vsel %vm12162_vm4, %v11996_v17, 0.0  ;;  %vm23064_vm5 = vmmov %vm23047_vm1  ;;  %v14633_v19 = vunpack.i.h.bf16 %v21147_v31  ;;  %v11567_v44 = vrot.slane %v14567_v56, %v17073_v24  ;;  %v23068_v17 = vld [vmem:[#allocation139_spill] sm:$0xff]  ;;  %v23071_v10 = vld [vmem:[#allocation10_spill] sm:$0xff] }
 0x895   : > { %v11910_v40 = vsel %vm23064_vm5, %v9655_v41, %v11909_v18  ;;  %12200 = vadd.xlane.f32.xlu0 %v12199_v16  ;;  %vm23065_vm11 = vmmov %vm23036_vm6  ;;  %v23067_v41 = vld [vmem:[#allocation140_spill] sm:$0xff]  ;;  %v23072_v18 = vld [vmem:[#allocation6_spill] sm:$0xff]  ;;  %vm23094_vm10 = vcmask 1041409  }
 0x896   : > { %v11911_v48 = vsel %vm23065_vm11, %v9664_v1, %v11910_v40  ;;  %vm23066_vm2 = vmmov %vm23037_vm12  ;;  %v10951_v33 = vsel %vm9609_vm8, %v23068_v17, %v23067_v41  ;;  %v10960_v1 = vsel %vm9609_vm8, %v23070_v32, %v23069_v61  ;;  %v10969_v31 = vsel %vm9609_vm8, %v23072_v18, %v23071_v10  ;;  %v23073_v16 = vld [vmem:[#allocation150_spill] sm:$0xff]  ;;  %v21314_v40 = vpop.permute.xlu1 %14615  ;;  %v23076_v56 = vld [vmem:[#allocation151_spill] sm:$0xff] }
 0x897   : > { %v11912_v8 = vsel %vm23066_vm2, %v9673_v39, %v11911_v48  ;;  %v23074_v39 = vld [vmem:[#allocation137_spill] sm:$0xff]  ;;  %vm23075_vm9 = vmmov %vm23042_vm0  ;;  %v23081_v61 = vld [vmem:[#allocation40_spill] sm:$0xff] }
 0x898   : > { %v12163_v23 = vsel %vm12162_vm4, %v11912_v8, 0.0  ;;  %v12034_v62 = vsel %vm23075_vm9, %v23074_v39, %v23073_v16  ;;  %vm23077_vm3 = vmmov %vm23046_vm7  ;;  %v23078_v41 = vld [vmem:[#allocation5_spill] sm:$0xff]  ;;  %v23079_v8 = vld [vmem:[#allocation22_spill] sm:$0xff] }
 0x899   : > { %12164 = vadd.xlane.f32.xlu1 %v12163_v23  ;;  %v12035_v48 = vsel %vm23077_vm3, %v23076_v56, %v12034_v62  ;;  %v9871_v17 = vsel %vm9609_vm8, %v23079_v8, %v23078_v41  ;;  %v23080_v22 = vld [vmem:[#allocation41_spill] sm:$0xff]  ;;  %v23083_v10 = vld [vmem:[#allocation30_spill] sm:$0xff]  ;;  %vm23084_vm6 = vmmov %vm23042_vm0  ;;  %v14643_v56 = vunpack.i.h.bf16 %v21195_v5 }
 0x89a   : > { %v9880_v32 = vsel %vm9609_vm8, %v23081_v61, %v23080_v22  ;;  %v11929_v18 = vsel %vm23084_vm6, %v23083_v10, %v23082_v38  ;;  %vm23085_vm12 = vmmov %vm23047_vm1  ;;  %v23086_v39 = vld [vmem:[#allocation18_spill] sm:$0xff]  ;;  %v14642_v22 = vunpack.i.l.bf16 %v21195_v5  ;;  %v14578_v61 = vunpack.i.h.bf16 %v21149_v15  ;;  %v21338_v38 = vpop.permute.xlu0 %14680 }
 0x89b   : > { %v12036_v16 = vsel %vm23085_vm12, %v10951_v33, %v12035_v48  ;;  %v9889_v23 = vsel %vm9609_vm8, %v23087_v13, %v23086_v39  ;;  %vm23089_vm0 = vmmov %vm23077_vm3  ;;  %v11778_v13 = vrot.slane %v14643_v56, %v17076_v26  ;;  %v11572_v10 = vsel %vm9609_vm8, %v11571_v54, %v11567_v44  ;;  %v23096_v39 = vld [vmem:[#allocation162_spill] sm:$0xff] }
 0x89c   : > { %v11930_v62 = vsel %vm23089_vm0, %v23088_v58, %v11929_v18  ;;  %vm23090_vm7 = vmmov %vm23065_vm11  ;;  %v14577_v58 = vunpack.i.l.bf16 %v21149_v15  ;;  %v11774_v5 = vrot.slane %v14642_v22, %v17073_v24  ;;  %v12095_v18 = vsel %vm23094_vm10, %v21044_v37, %v11554_v53  ;;  %v23098_v53 = vld [vmem:[#allocation159_spill] sm:$0xff] }
 0x89d   : > { %v12037_v41 = vsel %vm23090_vm7, %v10960_v1, %v12036_v16  ;;  %v11931_v8 = vsel %vm23047_vm1, %v9871_v17, %v11930_v62  ;;  %vm23091_vm13 = vmmov %vm23066_vm2  ;;  %v21351_v16 = vrot.slane %v14633_v19, %v17076_v26  ;;  %v11589_v54 = vrot.slane %v14578_v61, %v17076_v26  ;;  %v23099_v19 = vld [vmem:[#allocation143_spill] sm:$0xff]  ;;  %v23104_v61 = vld [vmem:[#allocation160_spill] sm:$0xff] }
 0x89e   : > { %v12038_v33 = vsel %vm23091_vm13, %v10969_v31, %v12037_v41  ;;  %vm23092_vm14 = vmmov %vm23090_vm7  ;;  %v21354_v31 = vrot.slane %v14632_v63, %v17073_v24  ;;  %v11585_v44 = vrot.slane %v14577_v58, %v17073_v24  ;;  %vm23101_vm11 = vcmask 1042434   ;;  %v23102_v41 = vld [vmem:[#allocation147_spill] sm:$0xff]  ;;  %v23107_v58 = vld [vmem:[#allocation74_spill] sm:$0xff] }
 0x89f   : > { %v11932_v48 = vsel %vm23092_vm14, %v9880_v32, %v11931_v8  ;;  %v12217_v1 = vsel %vm12162_vm4, %v12038_v33, 0.0  ;;  %vm23093_vm15 = vmmov %vm23066_vm2  ;;  %23095 = vst [vmem:[#allocation25_spill] sm:$0xff] %v21351_v16  ;;  %v21357_v32 = vpop.permute.xlu1 %14625  ;;  %v21368_v63 = vsel %vm23101_vm11, %v11572_v10, %v12095_v18  ;;  %v21371_v56 = vsel %vm9609_vm8, %v11778_v13, %v11774_v5  ;;  %v23103_v8 = vld [vmem:[#allocation146_spill] sm:$0xff]  ;;  %v21386_v5 = vpop.permute.xlu0 %14690  ;;  %v23112_v18 = vld [vmem:[#allocation149_spill] sm:$0xff] }
 0x8a0   : > { %v11933_v17 = vsel %vm23093_vm15, %v9889_v23, %v11932_v48  ;;  %12218 = vadd.xlane.f32.xlu0 %v12217_v1  ;;  %v23097_v23 = vld [vmem:[#allocation161_spill] sm:$0xff]  ;;  %vm23100_vm5 = vmmov %vm23084_vm6  ;;  %v10807_v22 = vsel %vm9609_vm8, %v23103_v8, %v23102_v41  ;;  %v23108_v1 = vld [vmem:[#allocation72_spill] sm:$0xff]  ;;  %v14653_v13 = vunpack.i.h.bf16 %v21244_v6 }
 0x8a1   : > { %v12172_v15 = vsel %vm12162_vm4, %v11933_v17, 0.0  ;;  %v10816_v37 = vsel %vm9609_vm8, %v23097_v23, %v23096_v39  ;;  %v12020_v62 = vsel %vm23100_vm5, %v23099_v19, %v23098_v53  ;;  %vm23105_vm2 = vmmov %vm23089_vm0  ;;  %v10168_v17 = vsel %vm9609_vm8, %v23108_v1, %v23107_v58  ;;  %v23110_v39 = vld [vmem:[#allocation58_spill] sm:$0xff]  ;;  %v23113_v23 = vld [vmem:[#allocation148_spill] sm:$0xff] }
 0x8a2   : > { %12173 = vadd.xlane.f32.xlu1 %v12172_v15  ;;  %v12021_v33 = vsel %vm23105_vm2, %v23104_v61, %v12020_v62  ;;  %vm23106_vm9 = vmmov %vm23047_vm1  ;;  %v23109_v15 = vld [vmem:[#allocation70_spill] sm:$0xff]  ;;  %v10825_v53 = vsel %vm9609_vm8, %v23113_v23, %v23112_v18  ;;  %v23115_v62 = vld [vmem:[#allocation60_spill] sm:$0xff] }
 0x8a3   : > { %v12022_v48 = vsel %vm23106_vm9, %v10807_v22, %v12021_v33  ;;  %vm23111_vm3 = vmmov %vm23100_vm5  ;;  %v23116_v41 = vld [vmem:[#allocation59_spill] sm:$0xff]  ;;  %v21398_v33 = vsel %vm9609_vm8, %v11589_v54, %v11585_v44  ;;  %v23120_v1 = vld [vmem:[#allocation62_spill] sm:$0xff]  ;;  %v21405_v23 = vpop.permute.xlu1 %14635  ;;  %v11796_v44 = vrot.slane %v14653_v13, %v17076_v26 }
 0x8a4   : > { %v11957_v10 = vsel %vm23111_vm3, %v23110_v39, %v23109_v15  ;;  %vm23114_vm6 = vmmov %vm23090_vm7  ;;  %v10159_v8 = vsel %vm9609_vm8, %v23116_v41, %v23115_v62  ;;  %v23117_v22 = vld [vmem:[#allocation71_spill] sm:$0xff]  ;;  %v23121_v15 = vld [vmem:[#allocation61_spill] sm:$0xff]  ;;  %v14652_v62 = vunpack.i.l.bf16 %v21244_v6 }
 0x8a5   : > { %v12023_v19 = vsel %vm23114_vm6, %v10816_v37, %v12022_v48  ;;  %vm23118_vm12 = vmmov %vm23089_vm0  ;;  %v10177_v39 = vsel %vm9609_vm8, %v23121_v15, %v23120_v1  ;;  %v23126_v41 = vld [vmem:[#allocation171_spill] sm:$0xff]  ;;  %v23127_v6 = vld [vmem:[#allocation172_spill] sm:$0xff] }
 0x8a6   : > { %v11958_v61 = vsel %vm23118_vm12, %v23117_v22, %v11957_v10  ;;  %vm23119_vm0 = vmmov %vm23091_vm13  ;;  %v14588_v10 = vunpack.i.h.bf16 %v21189_v34  ;;  %v23129_v1 = vld [vmem:[#allocation182_spill] sm:$0xff]  ;;  %v23130_v15 = vld [vmem:[#allocation169_spill] sm:$0xff] }
 0x8a7   : > { %v12024_v58 = vsel %vm23119_vm0, %v10825_v53, %v12023_v19  ;;  %vm23122_vm7 = vmmov %vm23047_vm1  ;;  %v14587_v53 = vunpack.i.l.bf16 %v21189_v34  ;;  %v23125_v19 = vld [vmem:[#allocation14_spill] sm:$0xff]  ;;  %v23132_v34 = vld [vmem:[#allocation183_spill] sm:$0xff] }
 0x8a8   : > { %v11959_v18 = vsel %vm23122_vm7, %v10159_v8, %v11958_v61  ;;  %v12211_v37 = vsel %vm12162_vm4, %v12024_v58, 0.0  ;;  %vm23123_vm1 = vmmov %vm23114_vm6  ;;  %v11239_v8 = vsel %vm9609_vm8, %v23126_v41, %v23125_v19  ;;  %v23128_v61 = vld [vmem:[#allocation3_spill] sm:$0xff]  ;;  %v23137_v19 = vld [vmem:[#allocation80_spill] sm:$0xff] }
 0x8a9   : > { %v11960_v48 = vsel %vm23123_vm1, %v10168_v17, %v11959_v18  ;;  %12212 = vadd.xlane.f32.xlu0 %v12211_v37  ;;  %vm23124_vm13 = vmmov %vm23119_vm0  ;;  %v11248_v17 = vsel %vm9609_vm8, %v20640_v52, %v20664_v27  ;;  %v11257_v58 = vsel %vm9609_vm8, %v23128_v61, %v23127_v6  ;;  %v23134_v18 = vld [vmem:[#allocation69_spill] sm:$0xff]  ;;  %v23135_v37 = vld [vmem:[#allocation68_spill] sm:$0xff]  ;;  %v21438_v61 = vpop.permute.xlu0 %14700 }
 0x8aa   : > { %v11961_v54 = vsel %vm23124_vm13, %v10177_v39, %v11960_v48  ;;  %vm23131_vm14 = vmmov %vm23111_vm3  ;;  %v10015_v48 = vsel %vm9609_vm8, %v23135_v37, %v23134_v18  ;;  %v23138_v27 = vld [vmem:[#allocation77_spill] sm:$0xff]  ;;  %v23139_v41 = vld [vmem:[#allocation66_spill] sm:$0xff] }
 0x8ab   : > { %v12184_v22 = vsel %vm12162_vm4, %v11961_v54, 0.0  ;;  %v12062_v13 = vsel %vm23131_vm14, %v23130_v15, %v23129_v1  ;;  %vm23133_vm15 = vmmov %vm23105_vm2  ;;  %v23136_v54 = vld [vmem:[#allocation81_spill] sm:$0xff] }
 0x8ac   : > { %12185 = vadd.xlane.f32.xlu1 %v12184_v22  ;;  %v12063_v39 = vsel %vm23133_vm15, %v23132_v34, %v12062_v13  ;;  %v10024_v52 = vsel %vm9609_vm8, %v23137_v19, %v23136_v54  ;;  %vm23140_vm10 = vmmov %vm23111_vm3  ;;  %v23142_v22 = vld [vmem:[#allocation78_spill] sm:$0xff]  ;;  %v14663_v13 = vunpack.i.h.bf16 %v21292_v28  ;;  %v14662_v34 = vunpack.i.l.bf16 %v21292_v28 }
 0x8ad   : > { %v11943_v6 = vsel %vm23140_vm10, %v23139_v41, %v23138_v27  ;;  %vm23141_vm5 = vmmov %vm23122_vm7  ;;  %v14598_v54 = vunpack.i.h.bf16 %v21232_v20  ;;  %v14597_v19 = vunpack.i.l.bf16 %v21232_v20  ;;  %v21449_v27 = vpop.permute.xlu1 %14645  ;;  %v11792_v41 = vrot.slane %v14652_v62, %v17073_v24 }
 0x8ae   : > { %v12064_v1 = vsel %vm23141_vm5, %v11239_v8, %v12063_v39  ;;  %vm23143_vm11 = vmmov %vm23105_vm2  ;;  %v23147_v39 = vld [vmem:[#allocation20_spill] sm:$0xff]  ;;  %v21465_v62 = vrot.slane %v14587_v53, %v17073_v24 }
 0x8af   : > { %v11944_v15 = vsel %vm23143_vm11, %v23142_v22, %v11943_v6  ;;  %vm23144_vm2 = vmmov %vm23123_vm1  ;;  %v23148_v6 = vld [vmem:[#allocation19_spill] sm:$0xff]  ;;  %v11405_v20 = vrot.slane %v14597_v19, %v17073_v24 }
 0x8b0   : > { %v12065_v18 = vsel %vm23144_vm2, %v11248_v17, %v12064_v1  ;;  %vm23145_vm9 = vmmov %vm23141_vm5  ;;  %v10033_v22 = vsel %vm9609_vm8, %v23148_v6, %v23147_v39  ;;  %v11409_v1 = vrot.slane %v14598_v54, %v17076_v26  ;;  %v23153_v19 = vld [vmem:[#allocation175_spill] sm:$0xff]  ;;  %v21479_v39 = vpop.permute.xlu0 %14710 }
 0x8b1   : > { %v11945_v37 = vsel %vm23145_vm9, %v10015_v48, %v11944_v15  ;;  %vm23146_vm3 = vmmov %vm23119_vm0  ;;  %v21462_v15 = vrot.slane %v14588_v10, %v17076_v26  ;;  %v11104_v10 = vsel %vm9609_vm8, %v20764_v25, %v20769_v47  ;;  %v21490_v25 = vpop.permute.xlu1 %14655 }
 0x8b2   : > { %v12066_v8 = vsel %vm23146_vm3, %v11257_v58, %v12065_v18  ;;  %vm23149_vm6 = vmmov %vm23123_vm1  ;;  %v11814_v18 = vrot.slane %v14663_v13, %v17076_v26  ;;  %v11410_v6 = vsel %vm9609_vm8, %v11409_v1, %v11405_v20  ;;  %v23155_v13 = vld [vmem:[#allocation181_spill] sm:$0xff]  ;;  %v23164_v1 = vld [vmem:[#allocation102_spill] sm:$0xff] }
 0x8b3   : > { %v11946_v28 = vsel %vm23149_vm6, %v10024_v52, %v11945_v37  ;;  %v12229_v17 = vsel %vm12162_vm4, %v12066_v8, 0.0  ;;  %vm23150_vm12 = vmmov %vm23119_vm0  ;;  %v11810_v52 = vrot.slane %v14662_v34, %v17073_v24  ;;  %v23151_v37 = vld [vmem:[#allocation179_spill] sm:$0xff]  ;;  %v23152_v8 = vld [vmem:[#allocation178_spill] sm:$0xff] }
 0x8b4   : > { %v11947_v48 = vsel %vm23150_vm12, %v10033_v22, %v11946_v28  ;;  %12230 = vadd.xlane.f32.xlu0 %v12229_v17  ;;  %v11095_v54 = vsel %vm9609_vm8, %v23152_v8, %v23151_v37  ;;  %vm23154_vm0 = vmmov %vm23140_vm10  ;;  %v23156_v22 = vld [vmem:[#allocation180_spill] sm:$0xff]  ;;  %v23157_v28 = vld [vmem:[#allocation189_spill] sm:$0xff] }
 0x8b5   : > { %v12178_v58 = vsel %vm12162_vm4, %v11947_v48, 0.0  ;;  %v12048_v53 = vsel %vm23154_vm0, %v23153_v19, %v20723_v9  ;;  %v11113_v34 = vsel %vm9609_vm8, %v23156_v22, %v23155_v13  ;;  %vm23158_vm7 = vmmov %vm23143_vm11  ;;  %v23159_v48 = vld [vmem:[#allocation92_spill] sm:$0xff]  ;;  %v23162_v9 = vld [vmem:[#allocation106_spill] sm:$0xff]  ;;  %v14683_v13 = vunpack.i.h.bf16 %v21338_v38 }
 0x8b6   : > { %12179 = vadd.xlane.f32.xlu1 %v12178_v58  ;;  %v12049_v17 = vsel %vm23158_vm7, %v23157_v28, %v12048_v53  ;;  %v23160_v58 = vld [vmem:[#allocation91_spill] sm:$0xff]  ;;  %vm23161_vm1 = vmmov %vm23141_vm5  ;;  %v23163_v8 = vld [vmem:[#allocation104_spill] sm:$0xff]  ;;  %vm23172_vm11 = vcmask 1041409  }
 0x8b7   : > { %v10447_v37 = vsel %vm9609_vm8, %v23160_v58, %v23159_v48  ;;  %v12050_v47 = vsel %vm23161_vm1, %v11095_v54, %v12049_v17  ;;  %v10456_v19 = vsel %vm9609_vm8, %v23163_v8, %v23162_v9  ;;  %v23165_v20 = vld [vmem:[#allocation90_spill] sm:$0xff]  ;;  %vm23166_vm13 = vmmov %vm23154_vm0  ;;  %v23168_v22 = vld [vmem:[#allocation103_spill] sm:$0xff]  ;;  %v14608_v48 = vunpack.i.h.bf16 %v21277_v30 }
 0x8b8   : > { %v11985_v16 = vsel %vm23166_vm13, %v23165_v20, %v23164_v1  ;;  %vm23167_vm14 = vmmov %vm23144_vm2  ;;  %v14607_v58 = vunpack.i.l.bf16 %v21277_v30  ;;  %v21506_v54 = vsel %vm9609_vm8, %v11796_v44, %v11792_v41  ;;  %v21509_v17 = vsel %vm9609_vm8, %v11814_v18, %v11810_v52  ;;  %v23174_v1 = vld [vmem:[#allocation93_spill] sm:$0xff] }
 0x8b9   : > { %v12051_v53 = vsel %vm23167_vm14, %v11104_v10, %v12050_v47  ;;  %vm23169_vm15 = vmmov %vm23158_vm7  ;;  %v21515_v10 = vsel %vm23172_vm11, %v21198_v12, %v11410_v6  ;;  %v23173_v47 = vld [vmem:[#allocation94_spill] sm:$0xff]  ;;  %v11634_v18 = vrot.slane %v14683_v13, %v17076_v26  ;;  %v14682_v52 = vunpack.i.l.bf16 %v21338_v38  ;;  %v21528_v12 = vpop.permute.xlu1 %14665 }
 0x8ba   : > { %v11986_v28 = vsel %vm23169_vm15, %v23168_v22, %v11985_v16  ;;  %vm23170_vm10 = vmmov %vm23146_vm3  ;;  %v10465_v30 = vsel %vm9609_vm8, %v23174_v1, %v23173_v47  ;;  %v11423_v20 = vrot.slane %v14607_v58, %v17073_v24  ;;  %v11545_v38 = vsel %vm9609_vm8, %v20921_v45, %v20924_v35  ;;  %v23178_v22 = vld [vmem:[#allocation101_spill] sm:$0xff] }
 0x8bb   : > { %v12052_v9 = vsel %vm23170_vm10, %v11113_v34, %v12051_v53  ;;  %vm23171_vm5 = vmmov %vm23161_vm1  ;;  %v11427_v34 = vrot.slane %v14608_v48, %v17076_v26  ;;  %v23180_v58 = vld [vmem:[#allocation113_spill] sm:$0xff]  ;;  %v14693_v45 = vunpack.i.h.bf16 %v21386_v5  ;;  %v14692_v35 = vunpack.i.l.bf16 %v21386_v5  ;;  %v23190_v5 = vld [vmem:[#allocation27_spill] sm:$0xff] }
 0x8bc   : > { %v11987_v8 = vsel %vm23171_vm5, %v10447_v37, %v11986_v28  ;;  %v12223_v16 = vsel %vm12162_vm4, %v12052_v9, 0.0  ;;  %vm23175_vm9 = vmmov %vm23146_vm3  ;;  %v21526_v37 = vpop.permute.xlu0 %14715  ;;  %v23179_v28 = vld [vmem:[#allocation100_spill] sm:$0xff]  ;;  %v14618_v1 = vunpack.i.h.bf16 %v21314_v40 }
 0x8bd   : > { %v11988_v44 = vsel %vm23144_vm2, %v10456_v19, %v11987_v8  ;;  %12224 = vadd.xlane.f32.xlu0 %v12223_v16  ;;  %v11536_v19 = vsel %vm9609_vm8, %v21085_v50, %v21128_v2  ;;  %vm23176_vm3 = vmmov %vm23154_vm0  ;;  %v10303_v48 = vsel %vm9609_vm8, %v23179_v28, %v23178_v22  ;;  %v23181_v9 = vld [vmem:[#allocation112_spill] sm:$0xff]  ;;  %v23186_v16 = vld [vmem:[#allocation110_spill] sm:$0xff]  ;;  %v11652_v28 = vrot.slane %v14693_v45, %v17076_v26 }
 0x8be   : > { %v11989_v41 = vsel %vm23175_vm9, %v10465_v30, %v11988_v44  ;;  %v12090_v13 = vsel %vm23176_vm3, %v20915_v46, %v21034_v21  ;;  %vm23177_vm6 = vmmov %vm23158_vm7  ;;  %v10312_v50 = vsel %vm9609_vm8, %v23181_v9, %v23180_v58  ;;  %v23183_v46 = vld [vmem:[#allocation109_spill] sm:$0xff]  ;;  %v23184_v21 = vld [vmem:[#allocation99_spill] sm:$0xff]  ;;  %v14617_v30 = vunpack.i.l.bf16 %v21314_v40  ;;  %v21573_v40 = vpop.permute.xlu1 %14670 }
 0x8bf   : > { %v12196_v6 = vsel %vm12162_vm4, %v11989_v41, 0.0  ;;  %v12091_v53 = vsel %vm23177_vm6, %v21055_v14, %v12090_v13  ;;  %vm23182_vm12 = vmmov %vm23161_vm1  ;;  %v11971_v8 = vsel %vm23154_vm0, %v23184_v21, %v23183_v46  ;;  %v11630_v44 = vrot.slane %v14682_v52, %v17073_v24  ;;  %v23196_v21 = vld [vmem:[#allocation124_spill] sm:$0xff] }
 0x8c0   : > { %12197 = vadd.xlane.f32.xlu1 %v12196_v6  ;;  %v12092_v2 = vsel %vm23182_vm12, %v20918_v60, %v12091_v53  ;;  %vm23185_vm7 = vmmov %vm23144_vm2  ;;  %v11428_v60 = vsel %vm9609_vm8, %v11427_v34, %v11423_v20  ;;  %v23191_v53 = vld [vmem:[#allocation26_spill] sm:$0xff]  ;;  %v21571_v58 = vpop.permute.xlu0 %14725  ;;  %v11648_v34 = vrot.slane %v14692_v35, %v17073_v24  ;;  %v11445_v20 = vrot.slane %v14618_v1, %v17076_v26 }
 0x8c1   : > { %v12093_v14 = vsel %vm23185_vm7, %v11536_v19, %v12092_v2  ;;  %vm23187_vm1 = vmmov %vm23177_vm6  ;;  %v10321_v19 = vsel %vm9609_vm8, %v23191_v53, %v23190_v5  ;;  %v11392_v9 = vsel %vm9609_vm8, %v21227_v49, %v21238_v29  ;;  %v23198_v35 = vld [vmem:[#allocation138_spill] sm:$0xff]  ;;  %v23210_v53 = vld [vmem:[#allocation125_spill] sm:$0xff] }
 0x8c2   : > { %v11972_v47 = vsel %vm23187_vm1, %v23186_v16, %v11971_v8  ;;  %vm23188_vm13 = vmmov %vm23175_vm9  ;;  %v23197_v8 = vld [vmem:[#allocation123_spill] sm:$0xff]  ;;  %v23200_v29 = vld [vmem:[#allocation134_spill] sm:$0xff] }
 0x8c3   : > { %v12094_v41 = vsel %vm23188_vm13, %v11545_v38, %v12093_v14  ;;  %vm23189_vm14 = vmmov %vm23171_vm5  ;;  %v11441_v38 = vrot.slane %v14617_v30, %v17073_v24  ;;  %v10735_v45 = vsel %vm9609_vm8, %v23197_v8, %v23196_v21  ;;  %v23199_v14 = vld [vmem:[#allocation136_spill] sm:$0xff]  ;;  %v23201_v16 = vld [vmem:[#allocation122_spill] sm:$0xff]  ;;  %vm23213_vm13 = vcmask 1042434  }
 0x8c4   : > { %v11973_v6 = vsel %vm23189_vm14, %v10303_v48, %v11972_v47  ;;  %v12241_v13 = vsel %vm12162_vm4, %v12094_v41, 0.0  ;;  %vm23192_vm15 = vmmov %vm23144_vm2  ;;  %v10744_v49 = vsel %vm9609_vm8, %v23199_v14, %v23198_v35  ;;  %v14702_v47 = vunpack.i.l.bf16 %v21438_v61  ;;  %v23209_v5 = vld [vmem:[#allocation126_spill] sm:$0xff]  ;;  %v23215_v35 = vld [vmem:[#allocation144_spill] sm:$0xff] }
 0x8c5   : > { %v11974_v22 = vsel %vm23192_vm15, %v10312_v50, %v11973_v6  ;;  %12242 = vadd.xlane.f32.xlu0 %v12241_v13  ;;  %vm23193_vm10 = vmmov %vm23175_vm9  ;;  %v11401_v50 = vsel %vm9609_vm8, %v21019_v36, %v21030_v0  ;;  %v14628_v41 = vunpack.i.h.bf16 %v21357_v32  ;;  %v14627_v6 = vunpack.i.l.bf16 %v21357_v32 }
 0x8c6   : > { %v11975_v52 = vsel %vm23193_vm10, %v10321_v19, %v11974_v22  ;;  %vm23194_vm5 = vmmov %vm23154_vm0  ;;  %v21611_v13 = vsel %vm9609_vm8, %v11634_v18, %v11630_v44  ;;  %v10753_v19 = vsel %vm9609_vm8, %v23210_v53, %v23209_v5  ;;  %v11666_v18 = vrot.slane %v14702_v47, %v17073_v24  ;;  %v23228_v5 = vld [vmem:[#allocation168_spill] sm:$0xff] }
 0x8c7   : > { %v12190_v48 = vsel %vm12162_vm4, %v11975_v52, 0.0  ;;  %v12076_v2 = vsel %vm23194_vm5, %v20974_v51, %v21183_v43  ;;  %vm23195_vm11 = vmmov %vm23187_vm1  ;;  %v23204_v51 = vld [vmem:[#allocation135_spill] sm:$0xff]  ;;  %v21620_v52 = vpop.permute.xlu1 %14675  ;;  %v21628_v44 = vsel %vm23213_vm13, %v11428_v60, %v21515_v10  ;;  %v21638_v21 = vrot.slane %v14628_v41, %v17076_v26  ;;  %v23216_v60 = vld [vmem:[#allocation141_spill] sm:$0xff] }
 0x8c8   : > { %12191 = vadd.xlane.f32.xlu1 %v12190_v48  ;;  %v12077_v46 = vsel %vm23195_vm11, %v21218_v11, %v12076_v2  ;;  %vm23202_vm2 = vmmov %vm23154_vm0  ;;  %v14703_v11 = vunpack.i.h.bf16 %v21438_v61  ;;  %v21618_v61 = vpop.permute.xlu0 %14735  ;;  %v21634_v2 = vsel %vm9609_vm8, %v11445_v20, %v11441_v38  ;;  %v21641_v8 = vrot.slane %v14627_v6, %v17073_v24  ;;  %v23219_v20 = vld [vmem:[#allocation133_spill] sm:$0xff]  ;;  %v23220_v38 = vld [vmem:[#allocation132_spill] sm:$0xff] }
 0x8c9   : > { %v12013_v36 = vsel %vm23202_vm2, %v23201_v16, %v23200_v29  ;;  %vm23203_vm9 = vmmov %vm23182_vm12  ;;  %v10591_v14 = vsel %vm9609_vm8, %v23220_v38, %v23219_v20  ;;  %v14638_v16 = vunpack.i.h.bf16 %v21405_v23  ;;  %v14648_v20 = vunpack.i.h.bf16 %v21449_v27 }
 0x8ca   : > { %v12078_v0 = vsel %vm23203_vm9, %v21025_v57, %v12077_v46  ;;  %vm23205_vm3 = vmmov %vm23187_vm1  ;;  %v11670_v32 = vrot.slane %v14703_v11, %v17076_v26 }
 0x8cb   : > { %v12014_v43 = vsel %vm23205_vm3, %v23204_v51, %v12013_v36  ;;  %vm23206_vm6 = vmmov %vm23185_vm7  ;;  %v14637_v36 = vunpack.i.l.bf16 %v21405_v23  ;;  %v23223_v51 = vld [vmem:[#allocation4_spill] sm:$0xff]  ;;  %v11769_v6 = vrot.slane %v14638_v16, %v17076_v26  ;;  %v23227_v23 = vld [vmem:[#allocation170_spill] sm:$0xff] }
 0x8cc   : > { %v12079_v1 = vsel %vm23206_vm6, %v11392_v9, %v12078_v0  ;;  %vm23207_vm12 = vmmov %vm23203_vm9  ;;  %v21657_v0 = vsel %vm9609_vm8, %v11670_v32, %v11666_v18  ;;  %v11032_v53 = vsel %vm9609_vm8, %v23228_v5, %v23227_v23  ;;  %v14718_v18 = vunpack.i.h.bf16 %v21526_v37  ;;  %v23241_v23 = vld [vmem:[#allocation177_spill] sm:$0xff]  ;;  %v23242_v5 = vld [vmem:[#allocation176_spill] sm:$0xff] }
 0x8cd   : > { %v12015_v30 = vsel %vm23207_vm12, %v10735_v45, %v12014_v43  ;;  %vm23208_vm0 = vmmov %vm23193_vm10  ;;  %v23214_v45 = vld [vmem:[#allocation145_spill] sm:$0xff]  ;;  %v23224_v43 = vld [vmem:[#allocation2_spill] sm:$0xff] }
 0x8ce   : > { %v12080_v57 = vsel %vm23208_vm0, %v11401_v50, %v12079_v1  ;;  %vm23211_vm7 = vmmov %vm23206_vm6  ;;  %v21631_v50 = vsel %vm9609_vm8, %v11652_v28, %v11648_v34  ;;  %v10600_v10 = vsel %vm9609_vm8, %v23215_v35, %v23214_v45  ;;  %v23217_v28 = vld [vmem:[#allocation131_spill] sm:$0xff]  ;;  %v10609_v11 = vsel %vm9609_vm8, %v23224_v43, %v23223_v51  ;;  %v23232_v35 = vld [vmem:[#allocation156_spill] sm:$0xff] }
 0x8cf   : > { %v12016_v22 = vsel %vm23211_vm7, %v10744_v49, %v12015_v30  ;;  %v12235_v48 = vsel %vm12162_vm4, %v12080_v57, 0.0  ;;  %vm23212_vm1 = vmmov %vm23208_vm0  ;;  %v23221_v49 = vld [vmem:[#allocation142_spill] sm:$0xff]  ;;  %v14713_v1 = vunpack.i.h.bf16 %v21479_v39  ;;  %v21664_v30 = vpop.permute.xlu1 %14685  ;;  %v11765_v57 = vrot.slane %v14637_v36, %v17073_v24 }
 0x8d0   : > { %v12017_v9 = vsel %vm23212_vm1, %v10753_v19, %v12016_v22  ;;  %12236 = vadd.xlane.f32.xlu0 %v12235_v48  ;;  %vm23218_vm14 = vmmov %vm23202_vm2  ;;  %v21672_v19 = vpop.permute.xlu0 %14745  ;;  %v23230_v48 = vld [vmem:[#allocation166_spill] sm:$0xff]  ;;  %v11841_v51 = vrot.slane %v14718_v18, %v17076_v26  ;;  %v14728_v18 = vunpack.i.h.bf16 %v21571_v58  ;;  %vm23250_vm1 = vcmask 1041409  }
 0x8d1   : > { %v12208_v46 = vsel %vm12162_vm4, %v12017_v9, 0.0  ;;  %v11999_v34 = vsel %vm23218_vm14, %v23217_v28, %v23216_v60  ;;  %vm23222_vm15 = vmmov %vm23205_vm3  ;;  %v23231_v9 = vld [vmem:[#allocation154_spill] sm:$0xff]  ;;  %v23234_v28 = vld [vmem:[#allocation167_spill] sm:$0xff]  ;;  %v21688_v38 = vrot.slane %v14713_v1, %v17076_v26  ;;  %v11770_v1 = vsel %vm9609_vm8, %v11769_v6, %v11765_v57 }
 0x8d2   : > { %12209 = vadd.xlane.f32.xlu1 %v12208_v46  ;;  %v12000_v29 = vsel %vm23222_vm15, %v23221_v49, %v11999_v34  ;;  %vm23225_vm10 = vmmov %vm23203_vm9  ;;  %v12041_v32 = vsel %vm23202_vm2, %v23231_v9, %v23230_v48  ;;  %v14717_v46 = vunpack.i.l.bf16 %v21526_v37  ;;  %v23236_v49 = vld [vmem:[#allocation158_spill] sm:$0xff]  ;;  %v23243_v9 = vld [vmem:[#allocation173_spill] sm:$0xff] }
 0x8d3   : > { %v12001_v47 = vsel %vm23225_vm10, %v10591_v14, %v12000_v29  ;;  %vm23226_vm5 = vmmov %vm23206_vm6  ;;  %v14712_v14 = vunpack.i.l.bf16 %v21479_v39  ;;  %v23237_v29 = vld [vmem:[#allocation157_spill] sm:$0xff] }
 0x8d4   : > { %v12002_v41 = vsel %vm23226_vm5, %v10600_v10, %v12001_v47  ;;  %vm23229_vm11 = vmmov %vm23208_vm0  ;;  %v23233_v10 = vld [vmem:[#allocation155_spill] sm:$0xff]  ;;  %v11041_v37 = vsel %vm9609_vm8, %v23237_v29, %v23236_v49  ;;  %v11837_v43 = vrot.slane %v14717_v46, %v17073_v24  ;;  %v21699_v47 = vpop.permute.xlu1 %14695  ;;  %v21713_v46 = vpop.permute.xlu0 %14750  ;;  %v23246_v57 = vld [vmem:[#allocation165_spill] sm:$0xff] }
 0x8d5   : > { %v12003_v22 = vsel %vm23229_vm11, %v10609_v11, %v12002_v41  ;;  %v11023_v60 = vsel %vm9609_vm8, %v23233_v10, %v23232_v35  ;;  %vm23235_vm9 = vmmov %vm23205_vm3  ;;  %v14647_v11 = vunpack.i.l.bf16 %v21449_v27  ;;  %v11787_v41 = vrot.slane %v14648_v20, %v17076_v26  ;;  %v23248_v10 = vld [vmem:[#allocation174_spill] sm:$0xff] }
 0x8d6   : > { %v12202_v45 = vsel %vm12162_vm4, %v12003_v22, 0.0  ;;  %v12042_v34 = vsel %vm23235_vm9, %v23234_v28, %v12041_v32  ;;  %vm23238_vm3 = vmmov %vm23225_vm10  ;;  %v10888_v22 = vsel %vm9609_vm8, %v23242_v5, %v23241_v23  ;;  %v23244_v32 = vld [vmem:[#allocation163_spill] sm:$0xff]  ;;  %v21716_v6 = vrot.slane %v14712_v14, %v17073_v24 }
 0x8d7   : > { %12203 = vadd.xlane.f32.xlu1 %v12202_v45  ;;  %v12043_v16 = vsel %vm23238_vm3, %v11023_v60, %v12042_v34  ;;  %vm23239_vm6 = vmmov %vm23226_vm5  ;;  %v11783_v48 = vrot.slane %v14647_v11, %v17073_v24  ;;  %v23247_v45 = vld [vmem:[#allocation164_spill] sm:$0xff]  ;;  %v14727_v28 = vunpack.i.l.bf16 %v21571_v58  ;;  %v12116_v34 = vsel %vm23250_vm1, %v21371_v56, %v11770_v1  ;;  %v23257_v1 = vld [vmem:[#allocation185_spill] sm:$0xff] }
 0x8d8   : > { %v12044_v36 = vsel %vm23239_vm6, %v11032_v53, %v12043_v16  ;;  %vm23240_vm12 = vmmov %vm23208_vm0  ;;  %v10879_v35 = vsel %vm9609_vm8, %v23247_v45, %v23246_v57  ;;  %v21727_v20 = vsel %vm9609_vm8, %v11841_v51, %v11837_v43  ;;  %v14658_v14 = vunpack.i.h.bf16 %v21490_v25  ;;  %v23253_v16 = vld [vmem:[#allocation11_spill] sm:$0xff]  ;;  %v23256_v43 = vld [vmem:[#allocation186_spill] sm:$0xff]  ;;  %v21743_v5 = vpop.permute.xlu1 %14705  ;;  %v21760_v57 = vpop.permute.xlu0 %14760 }
 0x8d9   : > { %v12045_v39 = vsel %vm23240_vm12, %v11041_v37, %v12044_v36  ;;  %vm23245_vm0 = vmmov %vm23202_vm2  ;;  %v11788_v29 = vsel %vm9609_vm8, %v11787_v41, %v11783_v48  ;;  %v23252_v37 = vld [vmem:[#allocation15_spill] sm:$0xff]  ;;  %v14657_v58 = vunpack.i.l.bf16 %v21490_v25  ;;  %v11859_v56 = vrot.slane %v14728_v18, %v17076_v26  ;;  %v23258_v25 = vld [vmem:[#allocation184_spill] sm:$0xff] }
 0x8da   : > { %v12220_v53 = vsel %vm12162_vm4, %v12045_v39, 0.0  ;;  %v12027_v27 = vsel %vm23245_vm0, %v23244_v32, %v23243_v9  ;;  %vm23249_vm7 = vmmov %vm23235_vm9  ;;  %v10897_v36 = vsel %vm9609_vm8, %v23253_v16, %v23252_v37  ;;  %v11855_v51 = vrot.slane %v14727_v28, %v17073_v24  ;;  %v23263_v45 = vld [vmem:[#allocation187_spill] sm:$0xff]  ;;  %v23268_v37 = vld [vmem:[#allocation190_spill] sm:$0xff] }
 0x8db   : > { %12221 = vadd.xlane.f32.xlu1 %v12220_v53  ;;  %v12028_v60 = vsel %vm23249_vm7, %v23248_v10, %v12027_v27  ;;  %vm23251_vm13 = vmmov %vm23238_vm3  ;;  %v11311_v23 = vsel %vm9609_vm8, %v23257_v1, %v23256_v43  ;;  %v14738_v48 = vunpack.i.h.bf16 %v21618_v61  ;;  %v11805_v32 = vrot.slane %v14658_v14, %v17076_v26 }
 0x8dc   : > { %v12029_v49 = vsel %vm23251_vm13, %v10879_v35, %v12028_v60  ;;  %vm23254_vm14 = vmmov %vm23226_vm5  ;;  %vm23260_vm5 = vcmask 1042434   ;;  %v14737_v18 = vunpack.i.l.bf16 %v21618_v61  ;;  %v14668_v10 = vunpack.i.h.bf16 %v21528_v12  ;;  %v21789_v43 = vpop.permute.xlu1 %14720 }
 0x8dd   : > { %v12030_v11 = vsel %vm23254_vm14, %v10888_v22, %v12029_v49  ;;  %vm23255_vm15 = vmmov %vm23229_vm11  ;;  %v11320_v22 = vsel %vm9609_vm8, %v20874_v7, %v20877_v55  ;;  %v21754_v9 = vsel %vm23260_vm5, %v11788_v29, %v12116_v34  ;;  %v11801_v7 = vrot.slane %v14657_v58, %v17073_v24  ;;  %v23262_v55 = vld [vmem:[#allocation188_spill] sm:$0xff]  ;;  %v23267_v29 = vld [vmem:[#allocation195_spill] sm:$0xff] }
 0x8de   : > { %v12031_v39 = vsel %vm23255_vm15, %v10897_v36, %v12030_v11  ;;  %vm23259_vm10 = vmmov %vm23245_vm0  ;;  %v21769_v60 = vsel %vm9609_vm8, %v11859_v56, %v11855_v51  ;;  %v14667_v61 = vunpack.i.l.bf16 %v21528_v12  ;;  %v11873_v49 = vrot.slane %v14737_v18, %v17073_v24  ;;  %v23270_v11 = vld [vmem:[#allocation192_spill] sm:$0xff]  ;;  %v23271_v58 = vld [vmem:[#allocation191_spill] sm:$0xff] }
 0x8df   : > { %v12214_v41 = vsel %vm12162_vm4, %v12031_v39, 0.0  ;;  %v12069_v53 = vsel %vm23259_vm10, %v23258_v25, %v20854_v3  ;;  %vm23261_vm11 = vmmov %vm23249_vm7  ;;  %v11329_v3 = vsel %vm9609_vm8, %v23263_v45, %v23262_v55  ;;  %v11176_v14 = vsel %vm9609_vm8, %v20966_v59, %v20977_v4  ;;  %v23272_v56 = vld [vmem:[#allocation196_spill] sm:$0xff] }
 0x8e0   : > { %12215 = vadd.xlane.f32.xlu1 %v12214_v41  ;;  %v12070_v27 = vsel %vm23261_vm11, %v20860_v42, %v12069_v53  ;;  %vm23264_vm2 = vmmov %vm23238_vm3  ;;  %v11877_v42 = vrot.slane %v14738_v48, %v17076_v26  ;;  %v11167_v39 = vsel %vm9609_vm8, %v23271_v58, %v23270_v11  ;;  %v14748_v51 = vunpack.i.h.bf16 %v21672_v19  ;;  %v23275_v41 = vld [vmem:[#allocation194_spill] sm:$0xff] }
 0x8e1   : > { %v12071_v35 = vsel %vm23264_vm2, %v11311_v23, %v12070_v27  ;;  %vm23265_vm9 = vmmov %vm23239_vm6  ;;  %v21792_v1 = vsel %vm9609_vm8, %v11805_v32, %v11801_v7  ;;  %v21795_v59 = vrot.slane %v14668_v10, %v17076_v26  ;;  %v14747_v23 = vunpack.i.l.bf16 %v21672_v19  ;;  %v14771_v32 = vpop.permute.xlu0 %14770 }
 0x8e2   : > { %v12072_v28 = vsel %vm23265_vm9, %v11320_v22, %v12071_v35  ;;  %vm23266_vm3 = vmmov %vm23240_vm12  ;;  %v23276_v22 = vld [vmem:[#allocation193_spill] sm:$0xff]  ;;  %v14673_v48 = vunpack.i.h.bf16 %v21573_v40  ;;  %v14672_v27 = vunpack.i.l.bf16 %v21573_v40  ;;  %v21806_v18 = vsel %vm9609_vm8, %v11877_v42, %v11873_v49  ;;  %v23279_v35 = vld [vmem:[#allocation36_spill] sm:$0xff] }
 0x8e3   : > { %v12073_v34 = vsel %vm23266_vm3, %v11329_v3, %v12072_v28  ;;  %vm23269_vm6 = vmmov %vm23245_vm0  ;;  %v11185_v25 = vsel %vm9609_vm8, %v23276_v22, %v23275_v41  ;;  %v21809_v7 = vrot.slane %v14667_v61, %v17073_v24  ;;  %v21813_v19 = vrot.slane %v14748_v51, %v17076_v26  ;;  %v23280_v40 = vld [vmem:[#allocation23_spill] sm:$0xff]  ;;  %v23281_v28 = vld [vmem:[#allocation8_spill] sm:$0xff]  ;;  %v21825_v61 = vpop.permute.xlu1 %14730 }
 0x8e4   : > { %v12055_v16 = vsel %vm23269_vm6, %v23268_v37, %v23267_v29  ;;  %v12232_v36 = vsel %vm12162_vm4, %v12073_v34, 0.0  ;;  %vm23273_vm12 = vmmov %vm23249_vm7  ;;  %v11608_v3 = vsel %vm9609_vm8, %v21462_v15, %v21465_v62  ;;  %v11617_v10 = vsel %vm9609_vm8, %v23280_v40, %v23279_v35  ;;  %v23291_v41 = vld [vmem:[#allocation37_spill] sm:$0xff] }
 0x8e5   : > { %v12056_v12 = vsel %vm23273_vm12, %v23272_v56, %v12055_v16  ;;  %12233 = vadd.xlane.f32.xlu1 %v12232_v36  ;;  %vm23274_vm0 = vmmov %vm23264_vm2  ;;  %v21828_v34 = vrot.slane %v14747_v23, %v17073_v24  ;;  %v14677_v15 = vunpack.i.l.bf16 %v21620_v52  ;;  %v21835_v62 = vrot.slane %v14673_v48, %v17076_v26 }
 0x8e6   : > { %v12057_v4 = vsel %vm23274_vm0, %v11167_v39, %v12056_v12  ;;  %vm23277_vm7 = vmmov %vm23265_vm9  ;;  %v21838_v29 = vrot.slane %v14672_v27, %v17073_v24  ;;  %v11464_v16 = vsel %vm9609_vm8, %v21638_v21, %v21641_v8  ;;  %v14763_v12 = vunpack.i.h.bf16 %v21760_v57  ;;  %v14781_v21 = vpop.permute.xlu0 %14780 }
 0x8e7   : > { %v12058_v53 = vsel %vm23277_vm7, %v11176_v14, %v12057_v4  ;;  %vm23278_vm1 = vmmov %vm23266_vm3  ;;  %v14678_v14 = vunpack.i.h.bf16 %v21620_v52  ;;  %v11621_v11 = vrot.slane %v14677_v15, %v17073_v24  ;;  %v23287_v52 = vld [vmem:[#allocation35_spill] sm:$0xff]  ;;  %v14762_v51 = vunpack.i.l.bf16 %v21760_v57  ;;  %v21856_v8 = vpop.permute.xlu1 %14740 }
 0x8e8   : > { %v12059_v55 = vsel %vm23278_vm1, %v11185_v25, %v12058_v53  ;;  %vm23282_vm13 = vmmov %vm23269_vm6  ;;  %v14753_v23 = vunpack.i.h.bf16 %v21713_v46  ;;  %v11706_v48 = vrot.slane %v14763_v12, %v17076_v26  ;;  %v14783_v15 = vunpack.i.h.bf16 %v14781_v21 }
 0x8e9   : > { %v12226_v45 = vsel %vm12162_vm4, %v12059_v55, 0.0  ;;  %v12097_v42 = vsel %vm23282_vm13, %v23281_v28, %v21368_v63  ;;  %vm23283_vm14 = vmmov %vm23261_vm11  ;;  %v23284_v63 = vld [vmem:[#allocation47_spill] sm:$0xff]  ;;  %v11702_v40 = vrot.slane %v14762_v51, %v17073_v24  ;;  %v14698_v28 = vunpack.i.h.bf16 %v21699_v47 }
 0x8ea   : > { %12227 = vadd.xlane.f32.xlu1 %v12226_v45  ;;  %v12098_v49 = vsel %vm23283_vm14, %v21398_v33, %v12097_v42  ;;  %vm23285_vm15 = vmmov %vm23274_vm0  ;;  %v11625_v33 = vrot.slane %v14678_v14, %v17076_v26  ;;  %v14687_v45 = vunpack.i.l.bf16 %v21664_v30  ;;  %v14697_v14 = vunpack.i.l.bf16 %v21699_v47 }
 0x8eb   : > { %v12099_v37 = vsel %vm23285_vm15, %v23284_v63, %v12098_v49  ;;  %vm23286_vm10 = vmmov %vm23277_vm7  ;;  %v21875_v42 = vpop.permute.xlu1 %14755  ;;  %v14752_v63 = vunpack.i.l.bf16 %v21713_v46  ;;  %v11896_v46 = vsel %vm9609_vm8, %v21813_v19, %v21828_v34 }
 0x8ec   : > { %v12100_v36 = vsel %vm23286_vm10, %v11608_v3, %v12099_v37  ;;  %vm23288_vm5 = vmmov %vm23269_vm6  ;;  %v11626_v25 = vsel %vm9609_vm8, %v11625_v33, %v11621_v11  ;;  %v14773_v3 = vunpack.i.h.bf16 %v14771_v32  ;;  %v14782_v37 = vunpack.i.l.bf16 %v14781_v21 }
 0x8ed   : > { %v12083_v58 = vsel %vm23288_vm5, %v23287_v52, %v21628_v44  ;;  %vm23289_vm11 = vmmov %vm23278_vm1  ;;  %v14688_v44 = vunpack.i.h.bf16 %v21664_v30  ;;  %v11661_v33 = vrot.slane %v14698_v28, %v17076_v26  ;;  %v11657_v11 = vrot.slane %v14697_v14, %v17073_v24 }
 0x8ee   : > { %v12101_v39 = vsel %vm23289_vm11, %v11617_v10, %v12100_v36  ;;  %vm23290_vm2 = vmmov %vm23273_vm12  ;;  %v14772_v10 = vunpack.i.l.bf16 %v14771_v32  ;;  %v11724_v49 = vrot.slane %v14773_v3, %v17076_v26  ;;  %v21883_v32 = vpop.permute.xlu0 %14790  ;;  %v14707_v52 = vunpack.i.l.bf16 %v21743_v5 }
 0x8ef   : > { %v12084_v56 = vsel %vm23290_vm2, %v21634_v2, %v12083_v58  ;;  %v12244_v4 = vsel %vm12162_vm4, %v12101_v39, 0.0  ;;  %vm23292_vm9 = vmmov %vm23274_vm0  ;;  %v23293_v2 = vld [vmem:[#allocation25_spill] sm:$0xff]  ;;  %v11643_v55 = vrot.slane %v14688_v44, %v17076_v26  ;;  %vm23296_vm12 = vcmask 1041409   ;;  %v14766_v12 = vpop.permute.xlu1 %14765 }
 0x8f0   : > { %v12085_v22 = vsel %vm23292_vm9, %v23291_v41, %v12084_v56  ;;  %12245 = vadd.xlane.f32.xlu1 %v12244_v4  ;;  %v11473_v53 = vsel %vm9609_vm8, %v23293_v2, %v21354_v31  ;;  %vm23294_vm3 = vmmov %vm23277_vm7  ;;  %v11639_v31 = vrot.slane %v14687_v45, %v17073_v24  ;;  %v11720_v30 = vrot.slane %v14772_v10, %v17073_v24 }
 0x8f1   : > { %v12086_v57 = vsel %vm23294_vm3, %v11464_v16, %v12085_v22  ;;  %vm23295_vm6 = vmmov %vm23278_vm1  ;;  %v14708_v16 = vunpack.i.h.bf16 %v21743_v5  ;;  %v12102_v47 = vsel %vm23296_vm12, %v21611_v13, %v11626_v25  ;;  %v21892_v58 = vsel %vm9609_vm8, %v11706_v48, %v11702_v40 }
 0x8f2   : > { %v12087_v27 = vsel %vm23295_vm6, %v11473_v53, %v12086_v57  ;;  %v11644_v36 = vsel %vm9609_vm8, %v11643_v55, %v11639_v31  ;;  %v21895_v39 = vrot.slane %v14783_v15, %v17076_v26  ;;  %vm23297_vm0 = vcmask 1042434   ;;  %vm23298_vm7 = vmmov %vm23288_vm5 }
 0x8f3   : > { %v12238_v35 = vsel %vm12162_vm4, %v12087_v27, 0.0  ;;  %v11679_v56 = vrot.slane %v14708_v16, %v17076_v26  ;;  %v12103_v51 = vsel %vm23297_vm0, %v11644_v36, %v12102_v47  ;;  %v21900_v21 = vsel %vm9609_vm8, %v11724_v49, %v11720_v30  ;;  %vm23299_vm1 = vmmov %vm23290_vm2 }
 0x8f4   : > { %12239 = vadd.xlane.f32.xlu1 %v12238_v35  ;;  %v11675_v4 = vrot.slane %v14707_v52, %v17073_v24  ;;  %v14793_v5 = vunpack.i.h.bf16 %v21883_v32  ;;  %v21905_v13 = vrot.slane %v14782_v37, %v17073_v24  ;;  %v14723_v41 = vunpack.i.h.bf16 %v21789_v43  ;;  %vm23300_vm13 = vmmov %vm23296_vm12 }
 0x8f5   : > { %v14722_v22 = vunpack.i.l.bf16 %v21789_v43  ;;  %v14733_v44 = vunpack.i.h.bf16 %v21825_v61  ;;  %v11662_v25 = vsel %vm9609_vm8, %v11661_v33, %v11657_v11  ;;  %v14792_v53 = vunpack.i.l.bf16 %v21883_v32  ;;  %v14776_v43 = vpop.permute.xlu1 %14775  ;;  %vm23301_vm14 = vmmov %vm23292_vm9 }
 0x8f6   : > { %v21912_v2 = vrot.slane %v14793_v5, %v17076_v26  ;;  %v14732_v57 = vunpack.i.l.bf16 %v21825_v61  ;;  %v11850_v48 = vrot.slane %v14723_v41, %v17076_v26  ;;  %v11680_v45 = vsel %vm9609_vm8, %v11679_v56, %v11675_v4  ;;  %vm23302_vm15 = vmmov %vm23297_vm0 }
 0x8f7   : > { %v11846_v27 = vrot.slane %v14722_v22, %v17073_v24  ;;  %v11868_v55 = vrot.slane %v14733_v44, %v17076_v26  ;;  %v12104_v35 = vsel %vm23298_vm7, %v21631_v50, %v12103_v51  ;;  %v14743_v40 = vunpack.i.h.bf16 %v21856_v8  ;;  %vm23303_vm10 = vmmov %vm23294_vm3 }
 0x8f8   : > { %v11864_v3 = vrot.slane %v14732_v57, %v17073_v24  ;;  %v14742_v10 = vunpack.i.l.bf16 %v21856_v8  ;;  %v11689_v28 = vsel %vm9609_vm8, %v21688_v38, %v21716_v6  ;;  %v12105_v31 = vsel %vm23299_vm1, %v11662_v25, %v12104_v35  ;;  %vm23304_vm11 = vmmov %vm23295_vm6 }
 0x8f9   : > { %v11851_v61 = vsel %vm9609_vm8, %v11850_v48, %v11846_v27  ;;  %v11824_v49 = vsel %vm9609_vm8, %v21795_v59, %v21809_v7  ;;  %v12106_v8 = vsel %vm23301_vm14, %v21657_v0, %v12105_v31  ;;  %v11833_v15 = vsel %vm9609_vm8, %v21835_v62, %v21838_v29  ;;  %vm23305_vm2 = vmmov %vm23299_vm1  ;;  %v14786_v32 = vpop.permute.xlu1 %14785 }
 0x8fa   : > { %v12123_v14 = vsel %vm23300_vm13, %v11851_v61, %v21727_v20  ;;  %v11869_v50 = vsel %vm9609_vm8, %v11868_v55, %v11864_v3  ;;  %v12107_v6 = vsel %vm23303_vm10, %v11680_v45, %v12106_v8  ;;  %v11886_v30 = vrot.slane %v14743_v40, %v17076_v26  ;;  %vm23306_vm9 = vmmov %vm23288_vm5 }
 0x8fb   : > { %v12124_v38 = vsel %vm23302_vm15, %v21769_v60, %v12123_v14  ;;  %v12118_v20 = vsel %vm23288_vm5, %v21506_v54, %v21754_v9  ;;  %v12108_v59 = vsel %vm23304_vm11, %v11689_v28, %v12107_v6  ;;  %v11882_v7 = vrot.slane %v14742_v10, %v17073_v24  ;;  %vm23307_vm3 = vmmov %vm23301_vm14 }
 0x8fc   : > { %v12119_v0 = vsel %vm23305_vm2, %v21792_v1, %v12118_v20  ;;  %v14758_v62 = vunpack.i.h.bf16 %v21875_v42  ;;  %v12125_v29 = vsel %vm23306_vm9, %v11869_v50, %v12124_v38  ;;  %v12247_v60 = vsel %vm12162_vm4, %v12108_v59, 0.0  ;;  %vm23308_vm6 = vmmov %vm23303_vm10 }
 0x8fd   : > { %v12120_v37 = vsel %vm23307_vm3, %v21509_v17, %v12119_v0  ;;  %v14757_v16 = vunpack.i.l.bf16 %v21875_v42  ;;  %12248 = vadd.xlane.f32.xlu0 %v12247_v60  ;;  %v14768_v36 = vunpack.i.h.bf16 %v14766_v12  ;;  %v14767_v33 = vunpack.i.l.bf16 %v14766_v12  ;;  %vm23309_vm12 = vmmov %vm23304_vm11 }
 0x8fe   : > { %v12121_v54 = vsel %vm23308_vm6, %v11824_v49, %v12120_v37  ;;  %v11697_v9 = vrot.slane %v14758_v62, %v17076_v26  ;;  %v14778_v52 = vunpack.i.h.bf16 %v14776_v43  ;;  %v14777_v47 = vunpack.i.l.bf16 %v14776_v43  ;;  %vm23310_vm0 = vmmov %vm23300_vm13 }
 0x8ff   : > { %v12122_v1 = vsel %vm23309_vm12, %v11833_v15, %v12121_v54  ;;  %v11693_v11 = vrot.slane %v14757_v16, %v17073_v24  ;;  %v11715_v17 = vrot.slane %v14768_v36, %v17076_v26  ;;  %v11711_v42 = vrot.slane %v14767_v33, %v17073_v24  ;;  %vm23311_vm7 = vmmov %vm23302_vm15  ;;  %v12171_v19 = vpop.xlane.xlu0 %12170 }
 0x900   : > { %v12253_v56 = vsel %vm12162_vm4, %v12122_v1, 0.0  ;;  %v14788_v51 = vunpack.i.h.bf16 %v14786_v32  ;;  %v11733_v5 = vrot.slane %v14778_v52, %v17076_v26  ;;  %v11729_v41 = vrot.slane %v14777_v47, %v17073_v24  ;;  %vm23312_vm1 = vmmov %vm23288_vm5 }
 0x901   : > { %v11698_v4 = vsel %vm9609_vm8, %v11697_v9, %v11693_v11  ;;  %v14787_v12 = vunpack.i.l.bf16 %v14786_v32  ;;  %v11887_v22 = vsel %vm9609_vm8, %v11886_v30, %v11882_v7  ;;  %12254 = vadd.xlane.f32.xlu0 %v12253_v56  ;;  %v11716_v25 = vsel %vm9609_vm8, %v11715_v17, %v11711_v42  ;;  %vm23313_vm13 = vmmov %vm23305_vm2 }
 0x902   : > { %v12109_v44 = vsel %vm23310_vm0, %v21892_v58, %v11698_v4  ;;  %v11751_v57 = vrot.slane %v14788_v51, %v17076_v26  ;;  %v11756_v48 = vrot.slane %v14792_v53, %v17073_v24  ;;  %v11734_v55 = vsel %vm9609_vm8, %v11733_v5, %v11729_v41  ;;  %vm23314_vm14 = vmmov %vm23305_vm2 }
 0x903   : > { %v12110_v27 = vsel %vm23311_vm7, %v11716_v25, %v12109_v44  ;;  %v11747_v45 = vrot.slane %v14787_v12, %v17073_v24  ;;  %v11904_v43 = vrot.slane %v14753_v23, %v17076_v26  ;;  %v11900_v58 = vrot.slane %v14752_v63, %v17073_v24  ;;  %vm23315_vm15 = vmmov %vm23307_vm3 }
 0x904   : > { %v12111_v3 = vsel %vm23312_vm1, %v21900_v21, %v12110_v27  ;;  %v12126_v53 = vsel %vm23313_vm13, %v21806_v18, %v12125_v29  ;;  %v11743_v35 = vsel %vm9609_vm8, %v21895_v39, %v21905_v13  ;;  %vm23316_vm10 = vmmov %vm23307_vm3  ;;  %v11761_v63 = vsel %vm9609_vm8, %v21912_v2, %v11756_v48 }
 0x905   : > { %v11752_v40 = vsel %vm9609_vm8, %v11751_v57, %v11747_v45  ;;  %v12112_v10 = vsel %vm23314_vm14, %v11734_v55, %v12111_v3  ;;  %v12127_v23 = vsel %vm23315_vm15, %v11887_v22, %v12126_v53  ;;  %vm23317_vm5 = vmmov %vm23308_vm6  ;;  %v11905_v28 = vsel %vm9609_vm8, %v11904_v43, %v11900_v58  ;;  %v12168_v14 = vpop.xlane.xlu0 %12167 }
 0x906   : > { %v12113_v61 = vsel %vm23316_vm10, %v11743_v35, %v12112_v10  ;;  %vm23318_vm11 = vmmov %vm23317_vm5  ;;  %v12303_v62 = vrot.slane %v12171_v19, %v17073_v24  ;;  %v12298_v37 = vrot.slane %v12168_v14, %v17076_v26 }
 0x907   : > { %v12114_v18 = vsel %vm23317_vm5, %v11752_v40, %v12113_v61  ;;  %v12128_v21 = vsel %vm23318_vm11, %v11896_v46, %v12127_v23  ;;  %vm23319_vm2 = vmmov %vm23309_vm12 }
 0x908   : > { %v12115_v39 = vsel %vm23319_vm2, %v11761_v63, %v12114_v18  ;;  %vm23320_vm9 = vmmov %vm23319_vm2 }
 0x909   : > { %v12250_v13 = vsel %vm12162_vm4, %v12115_v39, 0.0  ;;  %v12129_v31 = vsel %vm23320_vm9, %v11905_v28, %v12128_v21  ;;  %v12183_v50 = vpop.xlane.xlu0 %12182  ;;  %vm23321_vm3 = vmmov %vm23310_vm0 }
 0x90a   : > { %12251 = vadd.xlane.f32.xlu1 %v12250_v13  ;;  %v12256_v49 = vsel %vm12162_vm4, %v12129_v31, 0.0  ;;  %v12321_v47 = vrot.slane %v12183_v50, %v17073_v24  ;;  %vm23322_vm6 = vmmov %vm23311_vm7 }
 0x90b   : > { %vm23323_vm12 = vmmov %vm23312_vm1 }
 0x90c   : > { %vm23324_vm0 = vmmov %vm23313_vm13 }
 0x90d   : > { %v12177_v15 = vpop.xlane.xlu0 %12176  ;;  %vm23325_vm7 = vmmov %vm23316_vm10 }
 0x90e   : > { %12257 = vadd.xlane.f32.xlu1 %v12256_v49  ;;  %v12312_v60 = vrot.slane %v12177_v15, %v17073_v24  ;;  %vm23326_vm1 = vmmov %vm23317_vm5 }
 0x90f   : > { %vm23327_vm13 = vmmov %vm23319_vm2 }
 0x910   : > { %vm23328_vm14 = vmmov %vm23321_vm3 }
 0x911   : > { %vm23329_vm15 = vmmov %vm23322_vm6 }
 0x912   : > { %vm23330_vm10 = vmmov %vm23323_vm12 }
 0x913   : > { %v12195_v6 = vpop.xlane.xlu0 %12194  ;;  %vm23331_vm5 = vmmov %vm23324_vm0 }
 0x914   : > { %v12339_v41 = vrot.slane %v12195_v6, %v17073_v24  ;;  %vm23332_vm11 = vmmov %vm23325_vm7 }
 0x915   : > { %vm23333_vm2 = vmmov %vm23326_vm1 }
 0x917   : > { %v12189_v20 = vpop.xlane.xlu0 %12188 }
 0x918   : > { %v12330_v11 = vrot.slane %v12189_v20, %v17073_v24 }
 0x91c   : > { %v12207_v16 = vpop.xlane.xlu0 %12206 }
 0x91d   : > { %v12357_v48 = vrot.slane %v12207_v16, %v17073_v24 }
 0x922   : > { %v12201_v42 = vpop.xlane.xlu0 %12200 }
 0x923   : > { %v12348_v25 = vrot.slane %v12201_v42, %v17073_v24 }
 0x926   : > { %v12165_v34 = vpop.xlane.xlu1 %12164 }
 0x927   : > { %v12294_v29 = vrot.slane %v12165_v34, %v17073_v24 }
 0x929   : > { %v12299_v36 = vsel %vm9609_vm8, %v12298_v37, %v12294_v29 }
 0x92d   : > { %v12219_v53 = vpop.xlane.xlu0 %12218 }
 0x92e   : > { %v12375_v14 = vrot.slane %v12219_v53, %v17073_v24 }
 0x92f   : > { %v12174_v2 = vpop.xlane.xlu1 %12173 }
 0x930   : > { %v12307_v59 = vrot.slane %v12174_v2, %v17076_v26 }
 0x932   : > { %v12308_v32 = vsel %vm9609_vm8, %v12307_v59, %v12303_v62 }
 0x933   : > { %v12435_v52 = vsel %vm23321_vm3, %v12308_v32, %v12299_v36 }
 0x936   : > { %v12213_v40 = vpop.xlane.xlu0 %12212 }
 0x937   : > { %v12366_v31 = vrot.slane %v12213_v40, %v17073_v24 }
 0x939   : > { %v12186_v8 = vpop.xlane.xlu1 %12185 }
 0x93a   : > { %v12325_v33 = vrot.slane %v12186_v8, %v17076_v26 }
 0x93c   : > { %v12326_v51 = vsel %vm9609_vm8, %v12325_v33, %v12321_v47 }
 0x941   : > { %v12231_v23 = vpop.xlane.xlu0 %12230 }
 0x942   : > { %v12393_v59 = vrot.slane %v12231_v23, %v17073_v24 }
 0x943   : > { %v12180_v38 = vpop.xlane.xlu1 %12179 }
 0x944   : > { %v12316_v0 = vrot.slane %v12180_v38, %v17076_v26 }
 0x946   : > { %v12317_v54 = vsel %vm9609_vm8, %v12316_v0, %v12312_v60 }
 0x947   : > { %v12436_v56 = vsel %vm23322_vm6, %v12317_v54, %v12435_v52 }
 0x948   : > { %v12437_v5 = vsel %vm23323_vm12, %v12326_v51, %v12436_v56 }
 0x94a   : > { %v12225_v46 = vpop.xlane.xlu0 %12224 }
 0x94b   : > { %v12384_v34 = vrot.slane %v12225_v46, %v17073_v24 }
 0x94d   : > { %v12198_v30 = vpop.xlane.xlu1 %12197 }
 0x94e   : > { %v12343_v4 = vrot.slane %v12198_v30, %v17076_v26 }
 0x950   : > { %v12344_v27 = vsel %vm9609_vm8, %v12343_v4, %v12339_v41 }
 0x952   : > { %v12243_v18 = vpop.xlane.xlu0 %12242 }
 0x955   : > { %v12192_v7 = vpop.xlane.xlu1 %12191 }
 0x956   : > { %v12334_v9 = vrot.slane %v12192_v7, %v17076_v26 }
 0x958   : > { %v12335_v17 = vsel %vm9609_vm8, %v12334_v9, %v12330_v11  ;;  %v12411_v9 = vrot.slane %v12243_v18, %v17073_v24 }
 0x959   : > { %v12438_v12 = vsel %vm23324_vm0, %v12335_v17, %v12437_v5 }
 0x95a   : > { %v12439_v45 = vsel %vm23325_vm7, %v12344_v27, %v12438_v12 }
 0x95d   : > { %v12237_v13 = vpop.xlane.xlu0 %12236 }
 0x95e   : > { %v12402_v30 = vrot.slane %v12237_v13, %v17073_v24 }
 0x95f   : > { %v12210_v1 = vpop.xlane.xlu1 %12209 }
 0x960   : > { %v12361_v22 = vrot.slane %v12210_v1, %v17076_v26 }
 0x962   : > { %v12362_v43 = vsel %vm9609_vm8, %v12361_v22, %v12357_v48 }
 0x964   : > { %v12204_v44 = vpop.xlane.xlu1 %12203 }
 0x965   : > { %v12352_v57 = vrot.slane %v12204_v44, %v17076_v26 }
 0x967   : > { %v12353_v55 = vsel %vm9609_vm8, %v12352_v57, %v12348_v25 }
 0x968   : > { %v12440_v58 = vsel %vm23326_vm1, %v12353_v55, %v12439_v45  ;;  %v12222_v35 = vpop.xlane.xlu1 %12221 }
 0x969   : > { %v12441_v3 = vsel %vm23327_vm13, %v12362_v43, %v12440_v58  ;;  %v12379_v49 = vrot.slane %v12222_v35, %v17076_v26 }
 0x96a   : > { %12451 = vst.msk [vmem:[%s22037_s26] sm:$0xff] %vm12162_vm4, %v12441_v3 }
 0x96b   : > { %v12380_v38 = vsel %vm9609_vm8, %v12379_v49, %v12375_v14 }
 0x96d   : > { %v12216_v10 = vpop.xlane.xlu1 %12215 }
 0x96e   : > { %v12370_v39 = vrot.slane %v12216_v10, %v17076_v26 }
 0x970   : > { %v12371_v2 = vsel %vm9609_vm8, %v12370_v39, %v12366_v31 }
 0x971   : > { %v12442_v20 = vsel %vm23328_vm14, %v12380_v38, %v12371_v2 }
 0x972   : > { %v12234_v61 = vpop.xlane.xlu1 %12233 }
 0x973   : > { %v12397_v6 = vrot.slane %v12234_v61, %v17076_v26 }
 0x975   : > { %v12398_v29 = vsel %vm9609_vm8, %v12397_v6, %v12393_v59 }
 0x977   : > { %v12228_v63 = vpop.xlane.xlu1 %12227 }
 0x978   : > { %v12388_v28 = vrot.slane %v12228_v63, %v17076_v26 }
 0x97a   : > { %v12389_v50 = vsel %vm9609_vm8, %v12388_v28, %v12384_v34 }
 0x97b   : > { %v12443_v7 = vsel %vm23329_vm15, %v12389_v50, %v12442_v20 }
 0x97c   : > { %v12444_v16 = vsel %vm23330_vm10, %v12398_v29, %v12443_v7 }
 0x97d   : > { %v12246_v21 = vpop.xlane.xlu1 %12245 }
 0x97e   : > { %v12415_v60 = vrot.slane %v12246_v21, %v17076_v26 }
 0x980   : > { %v12416_v11 = vsel %vm9609_vm8, %v12415_v60, %v12411_v9 }
 0x981   : > { %v12240_v19 = vpop.xlane.xlu1 %12239 }
 0x982   : > { %v12406_v8 = vrot.slane %v12240_v19, %v17076_v26 }
 0x984   : > { %v12407_v0 = vsel %vm9609_vm8, %v12406_v8, %v12402_v30 }
 0x985   : > { %v12445_v36 = vsel %vm23331_vm5, %v12407_v0, %v12444_v16 }
 0x986   : > { %v12446_v56 = vsel %vm23332_vm11, %v12416_v11, %v12445_v36 }
 0x98a   : > { %v12249_v15 = vpop.xlane.xlu0 %12248 }
 0x98b   : > { %v12420_v32 = vrot.slane %v12249_v15, %v17073_v24 }
 0x98e   : > { %v12255_v54 = vpop.xlane.xlu0 %12254 }
 0x98f   : > { %v12429_v52 = vrot.slane %v12255_v54, %v17073_v24 }
 0x997   : > { %v12252_v62 = vpop.xlane.xlu1 %12251 }
 0x998   : > { %v12424_v37 = vrot.slane %v12252_v62, %v17076_v26 }
 0x99a   : > { %v12425_v33 = vsel %vm9609_vm8, %v12424_v37, %v12420_v32 }
 0x99b   : > { %v12258_v1 = vpop.xlane.xlu1 %12257  ;;  %v12447_v17 = vsel %vm23333_vm2, %v12425_v33, %v12446_v56 }
 0x99c   : > { %v12433_v47 = vrot.slane %v12258_v1, %v17076_v26 }
 0x99e   : > { %v12434_v42 = vsel %vm9609_vm8, %v12433_v47, %v12429_v52 }
 0x99f   : > { %v12448_v51 = vsel %vm23320_vm9, %v12434_v42, %v12447_v17 }
 0x9a0   : > { %12452 = vst.msk [vmem:[%s22037_s26 + $0x8] sm:$0xff] %vm12162_vm4, %v12448_v51 }
 0x9a1 PF: > { %s18_s27 = sadd.s32 1, %s14912_s27  }
 0x9a2   : > { %p15_p5 = scmp.ge.s32.totalorder %s18_s27, 4  }
 0x9a4   :  { %17 = sbr.rel (!%p15_p5) target bundleno = 1 (0x1), region = 82 }

</bundles_post_ra>
